<compile_context>
chip_gen: v6e
topology: v6e:2x2x1
jax: 0.10.0
libtpu: 0.0.40
codegen_flags: <defaults>
</compile_context>

<pallas_src>
import math

import jax
import jax.numpy as jnp
from jax.experimental import pallas as pl
from jax.experimental.pallas import tpu as pltpu


# ------------------------------- Pallas kernel --------------------------------

_SQRT_2_OVER_PI = 0.7978845608028654   # sqrt(2 / pi)
_LN_EPS = 1e-12


def _transform_kernel(x_ref, w_ref, b_ref, lnw_ref, lnb_ref, o_ref):
    # Dense: bf16 operands straight from HBM on the MXU, f32 accumulation.
    y = jnp.dot(x_ref[...], w_ref[...],
                preferred_element_type=jnp.float32) + b_ref[...]

    # GELU, tanh approximation (transcendental goes to the EUP slot).
    # TODO(synk): torch reference uses exact erf GELU; tanh approximation
    # differs by up to ~1e-3, well inside the validation tolerance.
    y = 0.5 * y * (1.0 + jnp.tanh(_SQRT_2_OVER_PI * (y + 0.044715 * (y * y * y))))

    # BertLayerNorm (eps=1e-12), f32 math, single-pass statistics.
    inv_h = 1.0 / y.shape[-1]
    u = jnp.sum(y, axis=-1, keepdims=True) * inv_h
    msq = jnp.sum(y * y, axis=-1, keepdims=True) * inv_h
    var = jnp.maximum(msq - u * u, 0.0)            # guard f32 cancellation
    y = (y - u) * jax.lax.rsqrt(var + _LN_EPS)     # rsqrt -> EUP slot
    o_ref[...] = (lnw_ref[...] * y + lnb_ref[...]).astype(o_ref.dtype)


# --------------------------------- wrapper -------------------------------------

def _round_up(n, m):
    return ((n + m - 1) // m) * m


def bert_prediction_head_transform(x, w_bf16, bias, ln_w, ln_b, *,
                                    block_rows=512, out_dtype=jnp.bfloat16):
    """y = LayerNorm(gelu(x @ W + b)) for x of shape (..., H).

    * x is consumed in bf16 (cast at the boundary only if the caller did not
      already emit bf16) and the output is bf16 -> half the streamed HBM bytes.
    * w_bf16 is stored [in_features, out_features] in bf16, so y = x @ W + b is
      the same computation as torch's x @ W.T + b with these weights.
    """
    orig_shape = x.shape
    H = orig_shape[-1]
    x2 = x.reshape(-1, H)
    if x2.dtype != jnp.bfloat16:
        # Upstream layer should already emit bf16; boundary fallback only.
        x2 = x2.astype(jnp.bfloat16)
    N = x2.shape[0]

    # Row tile: multiple of 8 (sublane constraint), capped at block_rows, and
    # chosen so the grid has >= 2 row blocks (both v7x TensorCores get work).
    tm = max(8, min(block_rows, _round_up(pl.cdiv(N, 2), 8)))
    # Ragged last block (when tm does not divide N) is masked by Pallas; any
    # garbage rows stay row-local under LayerNorm and are not stored.
    grid = (pl.cdiv(N, tm),)

    resident = dict(pipeline_mode=pl.Buffered(1))   # never re-DMA'd -> 1 buffer

    out = pl.pallas_call(
        _transform_kernel,
        out_shape=jax.ShapeDtypeStruct((N, H), out_dtype),
        grid=grid,
        in_specs=[
            pl.BlockSpec((tm, H), lambda i: (i, 0)),             # activations (bf16)
            pl.BlockSpec((H, H), lambda i: (0, 0), **resident),  # dense weight (bf16)
            pl.BlockSpec((1, H), lambda i: (0, 0), **resident),  # dense bias (f32)
            pl.BlockSpec((1, H), lambda i: (0, 0), **resident),  # LN weight (f32)
            pl.BlockSpec((1, H), lambda i: (0, 0), **resident),  # LN bias (f32)
        ],
        out_specs=pl.BlockSpec((tm, H), lambda i: (i, 0)),
        compiler_params=pltpu.CompilerParams(
            # >= 2 row blocks -> both v7x TensorCores get work.
            dimension_semantics=("parallel",),
            # Explicit scoped-VMEM budget (v5e default is 16 MiB); usage at
            # tm=512 bf16 in/out + resident weight is ~7 MiB, safe on v7x too.
            vmem_limit_bytes=32 * 1024 * 1024,
        ),
    )(x2, w_bf16, bias, ln_w, ln_b)

    return out.reshape(orig_shape)


# ----------------------------------- main ---------------------------------------

if __name__ == "__main__":
    # hidden_size=1024 and seq_length=32 from the module's BertConfig.
    H = 1024
    B, S = 8, 32     # 256 rows -> 2 parallel row blocks of 128

    key = jax.random.PRNGKey(0)
    kx, kw, kb = jax.random.split(key, 3)

    # Upstream layer emits bf16 activations (no in-kernel cast, half HBM read).
    x = jax.random.normal(kx, (B, S, H), jnp.float32).astype(jnp.bfloat16)
    # nn.Linear(H, H): weight stored [in, out] so y = x @ W + b; kept bf16 in HBM.
    w_bf16 = (jax.random.normal(kw, (H, H), jnp.float32) * 0.02).astype(jnp.bfloat16)
    bias = jax.random.normal(kb, (1, H), jnp.float32) * 0.02
    ln_w = jnp.ones((1, H), jnp.float32)
    ln_b = jnp.zeros((1, H), jnp.float32)

    y = bert_prediction_head_transform(x, w_bf16, bias, ln_w, ln_b)
    jax.block_until_ready(y)

    # Pure-JAX reference with torch semantics (exact erf GELU, two-pass LN),
    # same bf16 matmul operands / f32 accumulation as the kernel.
    def ref(x2):
        h = jnp.dot(x2, w_bf16, preferred_element_type=jnp.float32) + bias
        h = h * 0.5 * (1.0 + jax.lax.erf(h / math.sqrt(2.0)))
        u = jnp.mean(h, axis=-1, keepdims=True)
        v = jnp.mean(jnp.square(h - u), axis=-1, keepdims=True)
        return ln_w * ((h - u) * jax.lax.rsqrt(v + 1e-12)) + ln_b

    y_ref = ref(x.reshape(-1, H)).reshape(B, S, H)
    y_f32 = y.astype(jnp.float32)

    assert y.shape == (B, S, H)
    assert y.dtype == jnp.bfloat16
    assert bool(jnp.all(jnp.isfinite(y_f32)))
    max_err = float(jnp.max(jnp.abs(y_f32 - y_ref)))
    assert bool(jnp.allclose(y_f32, y_ref, atol=2e-2, rtol=2e-2)), max_err
    print("KERNEL_OK")
</pallas_src>

<mosaic_0001>
module attributes {stable_mosaic.version = 11 : i64} {
  func.func @_transform_kernel(%arg0: i32, %arg1: memref<128x1024xbf16, #tpu.memory_space<vmem>>, %arg2: memref<1024x1024xbf16, #tpu.memory_space<vmem>>, %arg3: memref<1x1024xf32, #tpu.memory_space<vmem>>, %arg4: memref<1x1024xf32, #tpu.memory_space<vmem>>, %arg5: memref<1x1024xf32, #tpu.memory_space<vmem>>, %arg6: memref<128x1024xbf16, #tpu.memory_space<vmem>>) attributes {dimension_semantics = [#tpu.dimension_semantics<parallel>], iteration_bounds = array<i64: 2>, scalar_prefetch = 0 : i64, scratch_operands = 0 : i64, tpu.core_type = #tpu.core_type<tc>, window_params = [{transform_indices = @transform_0, window_bounds = array<i64: 128, 1024>}, {pipeline_mode = #tpu.pipeline_mode<synchronous>, transform_indices = @transform_1, window_bounds = array<i64: 1024, 1024>}, {pipeline_mode = #tpu.pipeline_mode<synchronous>, transform_indices = @transform_2, window_bounds = array<i64: 1, 1024>}, {pipeline_mode = #tpu.pipeline_mode<synchronous>, transform_indices = @transform_3, window_bounds = array<i64: 1, 1024>}, {pipeline_mode = #tpu.pipeline_mode<synchronous>, transform_indices = @transform_4, window_bounds = array<i64: 1, 1024>}, {transform_indices = @transform_5, window_bounds = array<i64: 128, 1024>}]} {
    %c0 = arith.constant 0 : index
    %c0_0 = arith.constant 0 : index
    %0 = vector.load %arg1[%c0, %c0_0] : memref<128x1024xbf16, #tpu.memory_space<vmem>>, vector<128x1024xbf16>
    %c0_1 = arith.constant 0 : index
    %c0_2 = arith.constant 0 : index
    %1 = vector.load %arg2[%c0_1, %c0_2] : memref<1024x1024xbf16, #tpu.memory_space<vmem>>, vector<1024x1024xbf16>
    %cst = arith.constant dense<0.000000e+00> : vector<128x1024xf32>
    %2 = tpu.matmul %0, %1, %cst {dimension_numbers = #tpu.dot_dimension_numbers<[1], [0], [0], [1], [0, 0, 1, 1], [], []>} : vector<128x1024xbf16>, vector<1024x1024xbf16>, vector<128x1024xf32> -> vector<128x1024xf32>
    %c0_3 = arith.constant 0 : index
    %c0_4 = arith.constant 0 : index
    %3 = vector.load %arg3[%c0_3, %c0_4] : memref<1x1024xf32, #tpu.memory_space<vmem>>, vector<1x1024xf32>
    %4 = vector.broadcast %3 : vector<1x1024xf32> to vector<128x1024xf32>
    %5 = arith.addf %2, %4 : vector<128x1024xf32>
    %cst_5 = arith.constant 5.000000e-01 : f32
    %6 = vector.broadcast %cst_5 : f32 to vector<128x1024xf32>
    %7 = arith.mulf %6, %5 : vector<128x1024xf32>
    %8 = arith.mulf %5, %5 : vector<128x1024xf32>
    %9 = arith.mulf %8, %5 : vector<128x1024xf32>
    %cst_6 = arith.constant 4.471500e-02 : f32
    %10 = vector.broadcast %cst_6 : f32 to vector<128x1024xf32>
    %11 = arith.mulf %10, %9 : vector<128x1024xf32>
    %12 = arith.addf %5, %11 : vector<128x1024xf32>
    %cst_7 = arith.constant 0.797884583 : f32
    %13 = vector.broadcast %cst_7 : f32 to vector<128x1024xf32>
    %14 = arith.mulf %13, %12 : vector<128x1024xf32>
    %15 = math.tanh %14 : vector<128x1024xf32>
    %cst_8 = arith.constant 1.000000e+00 : f32
    %16 = vector.broadcast %cst_8 : f32 to vector<128x1024xf32>
    %17 = arith.addf %16, %15 : vector<128x1024xf32>
    %18 = arith.mulf %7, %17 : vector<128x1024xf32>
    %cst_9 = arith.constant dense<0.000000e+00> : vector<128xf32>
    %19 = vector.multi_reduction <add>, %18, %cst_9 [1] : vector<128x1024xf32> to vector<128xf32>
    %20 = vector.shape_cast %19 : vector<128xf32> to vector<128x1xf32>
    %cst_10 = arith.constant 9.765625E-4 : f32
    %21 = vector.broadcast %cst_10 : f32 to vector<128x1xf32>
    %22 = arith.mulf %20, %21 : vector<128x1xf32>
    %23 = arith.mulf %18, %18 : vector<128x1024xf32>
    %cst_11 = arith.constant dense<0.000000e+00> : vector<128xf32>
    %24 = vector.multi_reduction <add>, %23, %cst_11 [1] : vector<128x1024xf32> to vector<128xf32>
    %25 = vector.shape_cast %24 : vector<128xf32> to vector<128x1xf32>
    %cst_12 = arith.constant 9.765625E-4 : f32
    %26 = vector.broadcast %cst_12 : f32 to vector<128x1xf32>
    %27 = arith.mulf %25, %26 : vector<128x1xf32>
    %28 = arith.mulf %22, %22 : vector<128x1xf32>
    %29 = arith.subf %27, %28 : vector<128x1xf32>
    %cst_13 = arith.constant 0.000000e+00 : f32
    %30 = vector.broadcast %cst_13 : f32 to vector<128x1xf32>
    %31 = arith.maximumf %29, %30 : vector<128x1xf32>
    %32 = vector.broadcast %22 : vector<128x1xf32> to vector<128x1024xf32>
    %33 = arith.subf %18, %32 : vector<128x1024xf32>
    %cst_14 = arith.constant 9.99999996E-13 : f32
    %34 = vector.broadcast %cst_14 : f32 to vector<128x1xf32>
    %35 = arith.addf %31, %34 : vector<128x1xf32>
    %36 = math.rsqrt %35 : vector<128x1xf32>
    %37 = vector.broadcast %36 : vector<128x1xf32> to vector<128x1024xf32>
    %38 = arith.mulf %33, %37 : vector<128x1024xf32>
    %c0_15 = arith.constant 0 : index
    %c0_16 = arith.constant 0 : index
    %39 = vector.load %arg4[%c0_15, %c0_16] : memref<1x1024xf32, #tpu.memory_space<vmem>>, vector<1x1024xf32>
    %40 = vector.broadcast %39 : vector<1x1024xf32> to vector<128x1024xf32>
    %41 = arith.mulf %40, %38 : vector<128x1024xf32>
    %c0_17 = arith.constant 0 : index
    %c0_18 = arith.constant 0 : index
    %42 = vector.load %arg5[%c0_17, %c0_18] : memref<1x1024xf32, #tpu.memory_space<vmem>>, vector<1x1024xf32>
    %43 = vector.broadcast %42 : vector<1x1024xf32> to vector<128x1024xf32>
    %44 = arith.addf %41, %43 : vector<128x1024xf32>
    %45 = arith.truncf %44 : vector<128x1024xf32> to vector<128x1024xbf16>
    %c0_19 = arith.constant 0 : index
    %c0_20 = arith.constant 0 : index
    %46 = vector.load %arg6[%c0_19, %c0_20] : memref<128x1024xbf16, #tpu.memory_space<vmem>>, vector<128x1024xbf16>
    tpu.vector_store %arg6[%c0_19, %c0_20], %45 {strides = array<i32>} : memref<128x1024xbf16, #tpu.memory_space<vmem>>, vector<128x1024xbf16>,
    return
  }
  func.func @transform_0(%arg0: i32) -> (i32, i32) {
    %c0_i32 = arith.constant 0 : i32
    %c0_i32_0 = arith.constant 0 : i32
    return %arg0, %c0_i32 : i32, i32
  }
  func.func @transform_1(%arg0: i32) -> (i32, i32) {
    %c0_i32 = arith.constant 0 : i32
    %c0_i32_0 = arith.constant 0 : i32
    %c0_i32_1 = arith.constant 0 : i32
    return %c0_i32, %c0_i32_0 : i32, i32
  }
  func.func @transform_2(%arg0: i32) -> (i32, i32) {
    %c0_i32 = arith.constant 0 : i32
    %c0_i32_0 = arith.constant 0 : i32
    %c0_i32_1 = arith.constant 0 : i32
    return %c0_i32, %c0_i32_0 : i32, i32
  }
  func.func @transform_3(%arg0: i32) -> (i32, i32) {
    %c0_i32 = arith.constant 0 : i32
    %c0_i32_0 = arith.constant 0 : i32
    %c0_i32_1 = arith.constant 0 : i32
    return %c0_i32, %c0_i32_0 : i32, i32
  }
  func.func @transform_4(%arg0: i32) -> (i32, i32) {
    %c0_i32 = arith.constant 0 : i32
    %c0_i32_0 = arith.constant 0 : i32
    %c0_i32_1 = arith.constant 0 : i32
    return %c0_i32, %c0_i32_0 : i32, i32
  }
  func.func @transform_5(%arg0: i32) -> (i32, i32) {
    %c0_i32 = arith.constant 0 : i32
    %c0_i32_0 = arith.constant 0 : i32
    return %arg0, %c0_i32 : i32, i32
  }
}

</mosaic_0001>

<bundles_post_ra>
// kernel: tpu_custom_call.1
= control target key start
LH: loop header
LB: loop body
LE: loop exit
PB: predicated region body
PF: predicated region fallthrough
CT: control target
= control target key end

     0   :  { %10 = vsyncpa [#allocation3], 0  ;;  %s15893_s0 = inlined_call_operand.hbm [shape: bf16[256,1024], index: 0, kind: input, shape index: {}]   ;;  %s15894_s1 = inlined_call_operand.hbm [shape: bf16[1024,1024], index: 1, kind: input, shape index: {}]   ;;  %s15895_s2 = inlined_call_operand.hbm [shape: f32[1,1024], index: 2, kind: input, shape index: {}]   ;;  %s15896_s3 = inlined_call_operand.hbm [shape: f32[1,1024], index: 3, kind: input, shape index: {}]   ;;  %s15897_s4 = inlined_call_operand.hbm [shape: f32[1,1024], index: 4, kind: input, shape index: {}]   ;;  %s15898_s5 = inlined_call_operand.hbm [shape: bf16[256,1024], index: 5, kind: output, shape index: {}]  }
   0x1   :  { %12 = vsyncpa [#allocation3 + $0x1], 0 }
   0x2   :  { %13 = vsyncpa [#allocation6], 0 }
   0x3   :  { %14 = vsyncpa [#allocation9], 0 }
   0x4   :  { %15 = vsyncpa [#allocation4], 0 }
   0x5   :  { %17 = vsyncpa [#allocation4 + $0x1], 0  ;;  %s9813_s18 = smov 0   ;;  %s9815_s19 = smov 0  }
   0x6   :  { %s9817_s20 = smov 0   ;;  %s9819_s21 = smov 0  }
   0x7 LB: > { %s9834_s22 = sadd.s32 4294967295, %s9771_s21   ;;  %s8454_s23 = sadd.s32 4294967294, %s9771_s21   ;;  %s9771_s21 = sphi %s9819_s21, %s17794_s21   ;;  %s9767_s20 = sphi %s9817_s20, %s17793_s20   ;;  %s9763_s19 = sphi %s9815_s19, %s17792_s19   ;;  %s9759_s18 = sphi %s9813_s18, %s17791_s18  }
   0x8   : > { %p43_p0 = scmp.ne.s32.totalorder %s9763_s19, %s9759_s18  ;;  %p15899_p1 = scmp.eq.s32.totalorder %s9834_s22, 0 }
   0x9   : > { %p157_p3 = scmp.eq.s32.totalorder %s8454_s23, 1  ;;  %p8455_p5 = scmp.ge.s32.totalorder %s9771_s21, 1 }
   0xa   : > { %p9843_p4 = por %p15899_p1, %p43_p0  ;;  %p164_p7 = scmp.lt.s32.totalorder %s9771_s21, 3 }
   0xb   : > { %p9848_p6 = por %p157_p3, %p43_p0  ;;  %s9773_s27 = smov [#allocation5]  }
   0xc   : > { %s16440_s24 = scalar_select %p9843_p4, 1, 0 }
   0xd   : > { %s16441_s25 = scalar_select %p9848_p6, 1, 0 }
   0xe   : > { %p9853_p8 = pnand %p8455_p5, %p164_p7  ;;  %s176_s28 = sshll.u32 %s9773_s27, 4  ;;  %s177_s28 = int_to_ptr.vmem [resolvable:$true] %s176_s28 }
   0xf   : > { %s9774_s30 = smov [#allocation8]   ;;  %s9775_s7 = smov [#allocation7]  }
  0x10   : > { %s16442_s26 = scalar_select %p9853_p8, 1, 0 }
  0x11   : > { %p9206_p9 = pneg %p9853_p8  ;;  %s201_s6 = sshll.u32 %s9774_s30, 4  ;;  %s202_s6 = int_to_ptr.vmem [resolvable:$true] %s201_s6 }
  0x12   : > { %s190_s8 = sshll.u32 %s9775_s7, 4  ;;  %s9578_s9 = scalar_lea.vmem %s177_s28, 65536  ;;  %s191_s8 = int_to_ptr.vmem [resolvable:$true] %s190_s8 }
  0x13   : > { %p9862_p11 = pnand %p9206_p9, %p15899_p1  ;;  %p9579_p13 = scmp.ne.s32.totalorder %s177_s28, %s9578_s9 }
  0x14   : > { %p9586_p5 = scmp.lt.s32.totalorder %s177_s28, %s177_s28  ;;  %p9587_p7 = scmp.lt.s32.totalorder %s9578_s9, %s9578_s9 }
  0x15   : > { %p9569_p12 = pneg %p9862_p11 }
  0x16   : > { %p9588_p9 = por %p9587_p7, %p9586_p5 }
  0x17   : > { %p9581_p0 = pnand %p9579_p13, %p9569_p12 }
  0x19   : > { %p9582_p3 = pneg %p9581_p0 }
  0x1b   : > { %p9589_p10 = pnand %p9588_p9, %p9582_p3 }
  0x1d   : > { %9592 = shalt.err (!%p9589_p10)
}
  0x1e   : > { %s15901_s10 = smov 512   ;;  %s9777_s11 = smov 32  }
  0x1f   : > { %9209 = dma.hbm_to_vmem [thread:$0]  (!%p9862_p11), %s15894_s1, 65536, %s177_s28, [#allocation6], %s15901_s10, %s15901_s10, %s9777_s11  }
  0x20   : > { %s9604_s14 = scalar_lea.vmem %s202_s6, 128  ;;  %p9612_p3 = scmp.lt.s32.totalorder %s202_s6, %s202_s6 }
  0x21   : > { %p9605_p13 = scmp.ne.s32.totalorder %s202_s6, %s9604_s14  ;;  %p9613_p10 = scmp.lt.s32.totalorder %s9604_s14, %s9604_s14 }
  0x23   : > { %p9607_p0 = pnand %p9605_p13, %p9569_p12  ;;  %p9614_p7 = por %p9613_p10, %p9612_p3 }
  0x25   : > { %p9608_p5 = pneg %p9607_p0 }
  0x27   : > { %p9615_p9 = pnand %p9614_p7, %p9608_p5 }
  0x29   : > { %9618 = shalt.err (!%p9615_p9)
}
  0x2a   : > { %9215 = dma.hbm_to_vmem [thread:$0]  (!%p9862_p11), %s15896_s3, 128, %s202_s6, [#allocation9]  }
  0x2b   : > { %s9630_s17 = scalar_lea.vmem %s191_s8, 128  ;;  %p9638_p0 = scmp.lt.s32.totalorder %s191_s8, %s191_s8 }
  0x2c   : > { %p9631_p1 = scmp.ne.s32.totalorder %s191_s8, %s9630_s17  ;;  %p9639_p6 = scmp.lt.s32.totalorder %s9630_s17, %s9630_s17 }
  0x2e   : > { %p9633_p2 = pnand %p9631_p1, %p9569_p12  ;;  %p9640_p4 = por %p9639_p6, %p9638_p0 }
  0x30   : > { %p9634_p13 = pneg %p9633_p2 }
  0x32   : > { %p9641_p3 = pnand %p9640_p4, %p9634_p13 }
  0x34   : > { %9644 = shalt.err (!%p9641_p3)
}
  0x35   : > { %9212 = dma.hbm_to_vmem [thread:$0]  (!%p9862_p11), %s15895_s2, 128, %s191_s8, [#allocation6]  }
  0x36   : > { %s9778_s28 = smov [#allocation10]  }
  0x37   : > { %s212_s30 = sshll.u32 %s9778_s28, 4  ;;  %s213_s30 = int_to_ptr.vmem [resolvable:$true] %s212_s30 }
  0x38   : > { %s9656_s6 = scalar_lea.vmem %s213_s30, 128  ;;  %p9664_p10 = scmp.lt.s32.totalorder %s213_s30, %s213_s30 }
  0x39   : > { %p9657_p5 = scmp.ne.s32.totalorder %s213_s30, %s9656_s6  ;;  %p9665_p6 = scmp.lt.s32.totalorder %s9656_s6, %s9656_s6 }
  0x3b   : > { %p9659_p1 = pnand %p9657_p5, %p9569_p12  ;;  %p9666_p4 = por %p9665_p6, %p9664_p10 }
  0x3d   : > { %p9660_p2 = pneg %p9659_p1 }
  0x3f   : > { %p9667_p7 = pnand %p9666_p4, %p9660_p2 }
  0x41   : > { %9670 = shalt.err (!%p9667_p7)
}
  0x42   : > { %9218 = dma.hbm_to_vmem [thread:$0]  (!%p9862_p11), %s15897_s4, 128, %s213_s30, [#allocation9]  }
  0x43   : > { %s9904_s8 = sadd.s32 1, %s9771_s21   ;;  %s30_s12 = sadd.s32 1, %s9767_s20 }
  0x44   : > { %s27_s29 = ssub.s32 %s9771_s21, %s9904_s8  ;;  %p37_p12 = scmp.ne.s32.totalorder %s9767_s20, %s9763_s19 }
  0x45   : > { %p28_p9 = scmp.eq.s32.totalorder %s27_s29, 0  ;;  %p38_p13 = scmp.eq.s32.totalorder %s9771_s21, 0 }
  0x46   : > { %p16444_p0 = scmp.eq.s32.totalorder %s9834_s22, 1  ;;  %p9231_p5 = scmp.lt.s32.totalorder %s9771_s21, 2 }
  0x47   : > { %s9920_s14 = scalar_select %p28_p9, %s9767_s20, %s30_s12  }
  0x48   : > { %p9914_p3 = por %p16444_p0, %p37_p12  ;;  %p39_p1 = por %p38_p13, %p37_p12 }
  0x49   : > { %s223_s15 = sand.u32 1, %s9767_s20   ;;  %s9119_s17 = sshll.u32 %s9771_s21, 13 }
  0x4a   : > { %s16445_s13 = scalar_select %p9914_p3, 1, 0 }
  0x4b   : > { %s8461_s16 = sshll.u32 %s223_s15, 9  ;;  %s9927_s28 = scalar_lea.hbm %s15893_s0, %s9119_s17 }
  0x4c   : > { %s227_s30 = scalar_lea.vmem [#allocation2], %s8461_s16  ;;  %p9931_p11 = pnand %p9231_p5, %p39_p1 }
  0x4d   : > { %s235_s6 = sshll.u32 %s227_s30, 4  ;;  %s9935_s9 = scalar_lea.sflag [#allocation3], %s223_s15  ;;  %s9929_s6 = int_to_ptr.vmem [resolvable:$true] %s235_s6 }
  0x4e   : > { %s9671_s12 = scalar_lea.hbm %s9927_s28, 8192  ;;  %p9673_p10 = pneg %p9931_p11 }
  0x4f   : > { %p9672_p2 = scmp.ne.s32.totalorder %s9927_s28, %s9671_s12  ;;  %s9676_s16 = scalar_lea.hbm %s15893_s0, 16384 }
  0x50   : > { %p9677_p7 = scmp.lt.s32.totalorder %s9927_s28, %s15893_s0  ;;  %p9678_p12 = scmp.lt.s32.totalorder %s9676_s16, %s9671_s12 }
  0x51   : > { %p9674_p6 = pnand %p9673_p10, %p9672_p2 }
  0x52   : > { %p9679_p9 = por %p9678_p12, %p9677_p7 }
  0x53   : > { %p9675_p4 = pneg %p9674_p6 }
  0x55   : > { %p9680_p13 = pnand %p9679_p9, %p9675_p4 }
  0x57   : > { %9683 = shalt.err (!%p9680_p13)
}
  0x58   : > { %s9684_s15 = scalar_lea.vmem %s9929_s6, 8192  ;;  %s9779_s30 = smov [#allocation2]  }
  0x59   : > { %p9685_p0 = scmp.ne.s32.totalorder %s9929_s6, %s9684_s15  ;;  %s9689_s10 = sshll.u32 %s9779_s30, 4  ;;  %s9690_s10 = int_to_ptr.vmem [resolvable:$false] %s9689_s10 }
  0x5a   : > { %s9691_s29 = scalar_lea.vmem %s9690_s10, 16384  ;;  %p9692_p2 = scmp.lt.s32.totalorder %s9929_s6, %s9690_s10 }
  0x5b   : > { %p9687_p5 = pnand %p9685_p0, %p9673_p10  ;;  %p9693_p6 = scmp.lt.s32.totalorder %s9691_s29, %s9684_s15 }
  0x5d   : > { %p9688_p1 = pneg %p9687_p5  ;;  %p9694_p3 = por %p9693_p6, %p9692_p2 }
  0x5f   : > { %p9695_p8 = pnand %p9694_p3, %p9688_p1 }
  0x61   : > { %9698 = shalt.err (!%p9695_p8)
}
  0x62   : > { %s16447_s12 = smov 512   ;;  %p16448_p10 = scmp.ne.s32.totalorder %s16442_s26, 0 }
  0x63   : > { %9222 = dma.hbm_to_vmem [thread:$0]  (!%p9931_p11), %s9927_s28, 8192, %s9929_s6, %s9935_s9, %s16447_s12, %s16447_s12, %s9777_s11  }
  0x64   : > { %247 = sbr.rel (%p16448_p10) target bundleno = 1348 (0x544), region = 40 }
  0x69   : > { %s9962_s17 = sand.u32 1, %s9763_s19   ;;  %p16449_p8 = scmp.ne.s32.totalorder %s16440_s24, 0 }
  0x6a   : > { %s8466_s10 = sshll.u32 %s9962_s17, 9  ;;  %s250_s16 = scalar_lea.sflag [#allocation3], %s9962_s17 }
  0x6b   : > { %s9968_s7 = scalar_lea.vmem [#allocation2], %s8466_s10 }
  0x6c   : > { %9742 = dma.done.wait (%p16449_p8), %s250_s16, 8192  }
  0x6d   : > { %9744 = vsyncadd (%p16449_p8), %s250_s16, 4294959104  ;;  %p16450_p3 = scmp.eq.s32.totalorder %s9834_s22, 0 }
  0x6f   : > { %9746 = dma.done.wait (%p16450_p3), [#allocation6], 65664   ;;  %p16451_p11 = pmov %p16450_p3 }
  0x70   : > { %p16452_p4 = pmov %p16450_p3 }
  0x71   : > { %9748 = vsyncadd (%p16451_p11), [#allocation6], 4294901632 }
  0x72   : > { %9750 = dma.done.wait (%p16452_p4), [#allocation9], 256   ;;  %p16453_p7 = pmov %p16450_p3 }
  0x73   : > { %v418_v0 = vld [vmem:[#allocation5 + $0x1c0] sm:$0xff]  ;;  %v9993_v59 = vld [vmem:[%s9968_s7 + $0x8] sm:$0xff]  ;;  %s14997_s24 = scalar_lea.vmem [#allocation11], %s8466_s10  ;;  %s9185_s26 = sshll.u32 %s9834_s22, 13 }
  0x74   : > { %9752 = vsyncadd (%p16453_p7), [#allocation9], 4294967040  ;;  %v422_v1 = vld [vmem:[#allocation5 + $0x1e0] sm:$0xff]  ;;  %v9996_v60 = vld [vmem:[%s9968_s7 + $0x28] sm:$0xff]  ;;  %s8343_s11 = sshll.u32 %s14997_s24, 4  ;;  %s15844_s6 = scalar_lea.hbm %s15898_s5, %s9185_s26  ;;  %s15846_s11 = int_to_ptr.vmem [resolvable:$true] %s8343_s11 }
  0x75   : > { %v546_v2 = vld [vmem:[#allocation5 + $0x5c0] sm:$0xff]  ;;  %v8593_v3 = vcombine.high %v418_v0, %v422_v1  ;;  %v8592_v5 = vcombine.low %v418_v0, %v422_v1  ;;  %v10000_v63 = vcombine.high %v9993_v59, %v9996_v60  ;;  %s8329_s9 = scalar_lea.sflag [#allocation4], %s9962_s17  ;;  %s9699_s23 = scalar_lea.vmem %s15846_s11, 8192 }
  0x76   : > { %v550_v4 = vld [vmem:[#allocation5 + $0x5e0] sm:$0xff]  ;;  %p9700_p12 = scmp.ne.s32.totalorder %s15846_s11, %s9699_s23  ;;  %p17788_p9 = scmp.ne.s32.totalorder %s16445_s13, 0 }
  0x77   : > { %v410_v6 = vld [vmem:[#allocation5 + $0x180] sm:$0xff]  ;;  %v8721_v8 = vcombine.high %v546_v2, %v550_v4  ;;  %v8720_v9 = vcombine.low %v546_v2, %v550_v4  ;;  %3796 = vmatprep.subr.bf16.mxu0 %v8593_v3  ;;  %16455 = vst [vmem:[#allocation17_spill] sm:$0xff] %v10000_v63  ;;  %3941 = vmatprep.mubr.bf16.mxu1 %v10000_v63  ;;  %s9780_s27 = smov [#allocation11]  }
  0x78   : > { %v414_v7 = vld [vmem:[#allocation5 + $0x1a0] sm:$0xff]  ;;  %3797 = vmatpush1.bf16.msra.mxu0 %v8592_v5  ;;  %p9701_p13 = pnand %p9700_p12, %p17788_p9  ;;  %s9703_s15 = sshll.u32 %s9780_s27, 4  ;;  %s9704_s15 = int_to_ptr.vmem [resolvable:$false] %s9703_s15 }
  0x79   : > { %v8585_v10 = vcombine.high %v410_v6, %v414_v7  ;;  %v538_v11 = vld [vmem:[#allocation5 + $0x580] sm:$0xff]  ;;  %3909 = vmatprep.subr.bf16.mxu1 %v8721_v8  ;;  %v8584_v18 = vcombine.low %v410_v6, %v414_v7  ;;  %s9705_s30 = scalar_lea.vmem %s9704_s15, 16384  ;;  %p9706_p5 = scmp.lt.s32.totalorder %s15846_s11, %s9704_s15 }
  0x7a   : > { %v542_v12 = vld [vmem:[#allocation5 + $0x5a0] sm:$0xff]  ;;  %3910 = vmatpush1.bf16.msra.mxu1 %v8720_v9  ;;  %p9702_p0 = pneg %p9701_p13  ;;  %p9707_p1 = scmp.lt.s32.totalorder %s9705_s30, %s9699_s23 }
  0x7b   : > { %v402_v13 = vld [vmem:[#allocation5 + $0x140] sm:$0xff]  ;;  %v8713_v14 = vcombine.high %v538_v11, %v542_v12  ;;  %3798 = vmatprep.subr.bf16.mxu0 %v8585_v10  ;;  %v8712_v19 = vcombine.low %v538_v11, %v542_v12 }
  0x7c   : > { %v406_v15 = vld [vmem:[#allocation5 + $0x160] sm:$0xff]  ;;  %3799 = vmatpush1.bf16.msra.mxu0 %v8584_v18  ;;  %p9708_p2 = por %p9707_p1, %p9706_p5 }
  0x7d   : > { %v530_v16 = vld [vmem:[#allocation5 + $0x540] sm:$0xff]  ;;  %v8577_v20 = vcombine.high %v402_v13, %v406_v15  ;;  %3911 = vmatprep.subr.bf16.mxu1 %v8713_v14  ;;  %v8576_v26 = vcombine.low %v402_v13, %v406_v15 }
  0x7e   : > { %v534_v17 = vld [vmem:[#allocation5 + $0x560] sm:$0xff]  ;;  %3912 = vmatpush1.bf16.msra.mxu1 %v8712_v19  ;;  %p9709_p6 = pnand %p9708_p2, %p9702_p0 }
  0x7f   : > { %v8705_v21 = vcombine.high %v530_v16, %v534_v17  ;;  %v394_v22 = vld [vmem:[#allocation5 + $0x100] sm:$0xff]  ;;  %3800 = vmatprep.subr.bf16.mxu0 %v8577_v20  ;;  %v8704_v27 = vcombine.low %v530_v16, %v534_v17 }
  0x80   : > { %v398_v23 = vld [vmem:[#allocation5 + $0x120] sm:$0xff]  ;;  %3801 = vmatpush1.bf16.msra.mxu0 %v8576_v26 }
  0x81   : > { %v522_v24 = vld [vmem:[#allocation5 + $0x500] sm:$0xff]  ;;  %v8569_v28 = vcombine.high %v394_v22, %v398_v23  ;;  %3913 = vmatprep.subr.bf16.mxu1 %v8705_v21  ;;  %v8568_v34 = vcombine.low %v394_v22, %v398_v23 }
  0x82   : > { %v526_v25 = vld [vmem:[#allocation5 + $0x520] sm:$0xff]  ;;  %3914 = vmatpush1.bf16.msra.mxu1 %v8704_v27 }
  0x83   : > { %v8697_v29 = vcombine.high %v522_v24, %v526_v25  ;;  %v386_v30 = vld [vmem:[#allocation5 + $0xc0] sm:$0xff]  ;;  %3802 = vmatprep.subr.bf16.mxu0 %v8569_v28  ;;  %v8696_v35 = vcombine.low %v522_v24, %v526_v25 }
  0x84   : > { %v390_v31 = vld [vmem:[#allocation5 + $0xe0] sm:$0xff]  ;;  %3803 = vmatpush1.bf16.msra.mxu0 %v8568_v34 }
  0x85   : > { %v514_v32 = vld [vmem:[#allocation5 + $0x4c0] sm:$0xff]  ;;  %v8561_v36 = vcombine.high %v386_v30, %v390_v31  ;;  %3915 = vmatprep.subr.bf16.mxu1 %v8697_v29  ;;  %v8560_v42 = vcombine.low %v386_v30, %v390_v31 }
  0x86   : > { %v518_v33 = vld [vmem:[#allocation5 + $0x4e0] sm:$0xff]  ;;  %3916 = vmatpush1.bf16.msra.mxu1 %v8696_v35 }
  0x87   : > { %v8689_v37 = vcombine.high %v514_v32, %v518_v33  ;;  %v378_v38 = vld [vmem:[#allocation5 + $0x80] sm:$0xff]  ;;  %3804 = vmatprep.subr.bf16.mxu0 %v8561_v36  ;;  %v8688_v43 = vcombine.low %v514_v32, %v518_v33 }
  0x88   : > { %v382_v39 = vld [vmem:[#allocation5 + $0xa0] sm:$0xff]  ;;  %3805 = vmatpush1.bf16.msra.mxu0 %v8560_v42 }
  0x89   : > { %v506_v40 = vld [vmem:[#allocation5 + $0x480] sm:$0xff]  ;;  %v8553_v44 = vcombine.high %v378_v38, %v382_v39  ;;  %3917 = vmatprep.subr.bf16.mxu1 %v8689_v37  ;;  %v8552_v50 = vcombine.low %v378_v38, %v382_v39 }
  0x8a   : > { %v510_v41 = vld [vmem:[#allocation5 + $0x4a0] sm:$0xff]  ;;  %3918 = vmatpush1.bf16.msra.mxu1 %v8688_v43 }
  0x8b   : > { %v8681_v45 = vcombine.high %v506_v40, %v510_v41  ;;  %v370_v46 = vld [vmem:[#allocation5 + $0x40] sm:$0xff]  ;;  %3806 = vmatprep.subr.bf16.mxu0 %v8553_v44  ;;  %v8680_v51 = vcombine.low %v506_v40, %v510_v41 }
  0x8c   : > { %v374_v47 = vld [vmem:[#allocation5 + $0x60] sm:$0xff]  ;;  %3807 = vmatpush1.bf16.msra.mxu0 %v8552_v50 }
  0x8d   : > { %v498_v48 = vld [vmem:[#allocation5 + $0x440] sm:$0xff]  ;;  %v8545_v52 = vcombine.high %v370_v46, %v374_v47  ;;  %3919 = vmatprep.subr.bf16.mxu1 %v8681_v45  ;;  %v8544_v0 = vcombine.low %v370_v46, %v374_v47 }
  0x8e   : > { %v502_v49 = vld [vmem:[#allocation5 + $0x460] sm:$0xff]  ;;  %3920 = vmatpush1.bf16.msra.mxu1 %v8680_v51 }
  0x8f   : > { %v362_v53 = vld [vmem:[#allocation5] sm:$0xff]  ;;  %v8673_v56 = vcombine.high %v498_v48, %v502_v49  ;;  %3808 = vmatprep.subr.bf16.mxu0 %v8545_v52  ;;  %v8672_v1 = vcombine.low %v498_v48, %v502_v49 }
  0x90   : > { %v9983_v54 = vld [vmem:[%s9968_s7] sm:$0xff]  ;;  %3809 = vmatpush1.bf16.msra.mxu0 %v8544_v0 }
  0x91   : > { %v9986_v55 = vld [vmem:[%s9968_s7 + $0x20] sm:$0xff]  ;;  %3921 = vmatprep.subr.bf16.mxu1 %v8673_v56 }
  0x92   : > { %v366_v57 = vld [vmem:[#allocation5 + $0x20] sm:$0xff]  ;;  %v9990_v58 = vcombine.high %v9983_v54, %v9986_v55  ;;  %3922 = vmatpush1.bf16.msra.mxu1 %v8672_v1 }
  0x93   : > { %v490_v61 = vld [vmem:[#allocation5 + $0x400] sm:$0xff]  ;;  %v8537_v2 = vcombine.high %v362_v53, %v366_v57  ;;  %v8536_v8 = vcombine.low %v362_v53, %v366_v57 }
  0x94   : > { %16454 = vst [vmem:[#allocation16_spill] sm:$0xff] %v9990_v58  ;;  %v494_v62 = vld [vmem:[#allocation5 + $0x420] sm:$0xff]  ;;  %3828 = vmatprep.mubr.bf16.mxu0 %v9990_v58 }
  0x95   : > { %v8665_v3 = vcombine.high %v490_v61, %v494_v62  ;;  %v482_v4 = vld [vmem:[#allocation5 + $0x3c0] sm:$0xff]  ;;  %3810 = vmatprep.subr.bf16.mxu0 %v8537_v2  ;;  %v8664_v9 = vcombine.low %v490_v61, %v494_v62 }
  0x96   : > { %v486_v5 = vld [vmem:[#allocation5 + $0x3e0] sm:$0xff]  ;;  %3811 = vmatpush1.bf16.msra.mxu0 %v8536_v8 }
  0x97   : > { %v610_v6 = vld [vmem:[#allocation5 + $0x7c0] sm:$0xff]  ;;  %v8657_v10 = vcombine.high %v482_v4, %v486_v5  ;;  %3923 = vmatprep.subr.bf16.mxu1 %v8665_v3  ;;  %v8656_v16 = vcombine.low %v482_v4, %v486_v5 }
  0x98   : > { %v614_v7 = vld [vmem:[#allocation5 + $0x7e0] sm:$0xff]  ;;  %3924 = vmatpush1.bf16.msra.mxu1 %v8664_v9 }
  0x99   : > { %v8785_v11 = vcombine.high %v610_v6, %v614_v7  ;;  %v474_v12 = vld [vmem:[#allocation5 + $0x380] sm:$0xff]  ;;  %3812 = vmatprep.subr.bf16.mxu0 %v8657_v10  ;;  %v8784_v17 = vcombine.low %v610_v6, %v614_v7 }
  0x9a   : > { %v478_v13 = vld [vmem:[#allocation5 + $0x3a0] sm:$0xff]  ;;  %3813 = vmatpush2.bf16.msra.mxu0 %v8656_v16 }
  0x9b   : > { %v602_v14 = vld [vmem:[#allocation5 + $0x780] sm:$0xff]  ;;  %v8649_v18 = vcombine.high %v474_v12, %v478_v13  ;;  %3925 = vmatprep.subr.bf16.mxu1 %v8785_v11  ;;  %v8648_v24 = vcombine.low %v474_v12, %v478_v13 }
  0x9c   : > { %v606_v15 = vld [vmem:[#allocation5 + $0x7a0] sm:$0xff]  ;;  %3926 = vmatpush2.bf16.msra.mxu1 %v8784_v17 }
  0x9d   : > { %v8777_v19 = vcombine.high %v602_v14, %v606_v15  ;;  %v466_v20 = vld [vmem:[#allocation5 + $0x340] sm:$0xff]  ;;  %3814 = vmatprep.subr.bf16.mxu0 %v8649_v18  ;;  %v8776_v25 = vcombine.low %v602_v14, %v606_v15 }
  0x9e   : > { %v470_v21 = vld [vmem:[#allocation5 + $0x360] sm:$0xff]  ;;  %3815 = vmatpush2.bf16.msra.mxu0 %v8648_v24 }
  0x9f   : > { %v594_v22 = vld [vmem:[#allocation5 + $0x740] sm:$0xff]  ;;  %v8641_v26 = vcombine.high %v466_v20, %v470_v21  ;;  %3927 = vmatprep.subr.bf16.mxu1 %v8777_v19  ;;  %v8640_v32 = vcombine.low %v466_v20, %v470_v21  ;;  %v10006_v21 = vcombine.low %v9983_v54, %v9986_v55 }
  0xa0   : > { %v598_v23 = vld [vmem:[#allocation5 + $0x760] sm:$0xff]  ;;  %3928 = vmatpush2.bf16.msra.mxu1 %v8776_v25  ;;  %v10012_v25 = vcombine.low %v9993_v59, %v9996_v60 }
  0xa1   : > { %v8769_v27 = vcombine.high %v594_v22, %v598_v23  ;;  %v458_v28 = vld [vmem:[#allocation5 + $0x300] sm:$0xff]  ;;  %3816 = vmatprep.subr.bf16.mxu0 %v8641_v26  ;;  %v8768_v33 = vcombine.low %v594_v22, %v598_v23  ;;  %16456 = vst [vmem:[#allocation18_spill] sm:$0xff] %v10006_v21 }
  0xa2   : > { %v462_v29 = vld [vmem:[#allocation5 + $0x320] sm:$0xff]  ;;  %3817 = vmatpush2.bf16.msra.mxu0 %v8640_v32  ;;  %16457 = vst [vmem:[#allocation19_spill] sm:$0xff] %v10012_v25 }
  0xa3   : > { %v586_v30 = vld [vmem:[#allocation5 + $0x700] sm:$0xff]  ;;  %v8633_v34 = vcombine.high %v458_v28, %v462_v29  ;;  %3929 = vmatprep.subr.bf16.mxu1 %v8769_v27  ;;  %v8632_v40 = vcombine.low %v458_v28, %v462_v29  ;;  %v307_v27 = vld [vmem:[%s9968_s7 + $0x48] sm:$0xff] }
  0xa4   : > { %v590_v31 = vld [vmem:[#allocation5 + $0x720] sm:$0xff]  ;;  %3930 = vmatpush2.bf16.msra.mxu1 %v8768_v33  ;;  %v311_v28 = vld [vmem:[%s9968_s7 + $0x68] sm:$0xff] }
  0xa5   : > { %v8761_v35 = vcombine.high %v586_v30, %v590_v31  ;;  %v450_v36 = vld [vmem:[#allocation5 + $0x2c0] sm:$0xff]  ;;  %3818 = vmatprep.subr.bf16.mxu0 %v8633_v34  ;;  %v8760_v41 = vcombine.low %v586_v30, %v590_v31  ;;  %v10019_v33 = vcombine.high %v307_v27, %v311_v28 }
  0xa6   : > { %v454_v37 = vld [vmem:[#allocation5 + $0x2e0] sm:$0xff]  ;;  %3819 = vmatpush2.bf16.msra.mxu0 %v8632_v40 }
  0xa7   : > { %v578_v38 = vld [vmem:[#allocation5 + $0x6c0] sm:$0xff]  ;;  %v8625_v42 = vcombine.high %v450_v36, %v454_v37  ;;  %3931 = vmatprep.subr.bf16.mxu1 %v8761_v35  ;;  %v8624_v48 = vcombine.low %v450_v36, %v454_v37  ;;  %16459 = vst [vmem:[#allocation21_spill] sm:$0xff] %v10019_v33 }
  0xa8   : > { %v582_v39 = vld [vmem:[#allocation5 + $0x6e0] sm:$0xff]  ;;  %3932 = vmatpush2.bf16.msra.mxu1 %v8760_v41 }
  0xa9   : > { %v8753_v43 = vcombine.high %v578_v38, %v582_v39  ;;  %v442_v44 = vld [vmem:[#allocation5 + $0x280] sm:$0xff]  ;;  %3820 = vmatprep.subr.bf16.mxu0 %v8625_v42  ;;  %v8752_v49 = vcombine.low %v578_v38, %v582_v39 }
  0xaa   : > { %v446_v45 = vld [vmem:[#allocation5 + $0x2a0] sm:$0xff]  ;;  %3821 = vmatpush2.bf16.msra.mxu0 %v8624_v48  ;;  %v319_v48 = vld [vmem:[%s9968_s7 + $0xa8] sm:$0xff] }
  0xab   : > { %v570_v46 = vld [vmem:[#allocation5 + $0x680] sm:$0xff]  ;;  %v8617_v50 = vcombine.high %v442_v44, %v446_v45  ;;  %3933 = vmatprep.subr.bf16.mxu1 %v8753_v43  ;;  %v8616_v61 = vcombine.low %v442_v44, %v446_v45  ;;  %v10028_v45 = vcombine.low %v307_v27, %v311_v28 }
  0xac   : > { %v574_v47 = vld [vmem:[#allocation5 + $0x6a0] sm:$0xff]  ;;  %3934 = vmatpush2.bf16.msra.mxu1 %v8752_v49 }
  0xad   : > { %v8745_v51 = vcombine.high %v570_v46, %v574_v47  ;;  %v434_v52 = vld [vmem:[#allocation5 + $0x240] sm:$0xff]  ;;  %3822 = vmatprep.subr.bf16.mxu0 %v8617_v50  ;;  %v8744_v62 = vcombine.low %v570_v46, %v574_v47  ;;  %16461 = vst [vmem:[#allocation23_spill] sm:$0xff] %v10028_v45  ;;  %v315_v47 = vld [vmem:[%s9968_s7 + $0x88] sm:$0xff] }
  0xae   : > { %v438_v53 = vld [vmem:[#allocation5 + $0x260] sm:$0xff]  ;;  %3823 = vmatpush2.bf16.msra.mxu0 %v8616_v61 }
  0xaf   : > { %v562_v56 = vld [vmem:[#allocation5 + $0x640] sm:$0xff]  ;;  %v8609_v0 = vcombine.high %v434_v52, %v438_v53  ;;  %3935 = vmatprep.subr.bf16.mxu1 %v8745_v51  ;;  %v8608_v6 = vcombine.low %v434_v52, %v438_v53 }
  0xb0   : > { %v566_v57 = vld [vmem:[#allocation5 + $0x660] sm:$0xff]  ;;  %3936 = vmatpush2.bf16.msra.mxu1 %v8744_v62 }
  0xb1   : > { %v8737_v1 = vcombine.high %v562_v56, %v566_v57  ;;  %v426_v2 = vld [vmem:[#allocation5 + $0x200] sm:$0xff]  ;;  %3824 = vmatprep.subr.bf16.mxu0 %v8609_v0  ;;  %v8736_v7 = vcombine.low %v562_v56, %v566_v57  ;;  %v10035_v57 = vcombine.high %v315_v47, %v319_v48 }
  0xb2   : > { %v430_v3 = vld [vmem:[#allocation5 + $0x220] sm:$0xff]  ;;  %3825 = vmatpush2.bf16.msra.mxu0 %v8608_v6 }
  0xb3   : > { %v554_v4 = vld [vmem:[#allocation5 + $0x600] sm:$0xff]  ;;  %v8601_v8 = vcombine.high %v426_v2, %v430_v3  ;;  %3937 = vmatprep.subr.bf16.mxu1 %v8737_v1  ;;  %v8600_v14 = vcombine.low %v426_v2, %v430_v3  ;;  %16463 = vst [vmem:[#allocation25_spill] sm:$0xff] %v10035_v57 }
  0xb4   : > { %v558_v5 = vld [vmem:[#allocation5 + $0x620] sm:$0xff]  ;;  %3938 = vmatpush2.bf16.msra.mxu1 %v8736_v7 }
  0xb5   : > { %v8729_v9 = vcombine.high %v554_v4, %v558_v5  ;;  %v674_v10 = vld [vmem:[#allocation5 + $0x9c0] sm:$0xff]  ;;  %3826 = vmatprep.subr.bf16.mxu0 %v8601_v8  ;;  %v8728_v15 = vcombine.low %v554_v4, %v558_v5 }
  0xb6   : > { %v678_v11 = vld [vmem:[#allocation5 + $0x9e0] sm:$0xff]  ;;  %3827 = vmatpush2.bf16.msra.mxu0 %v8600_v14  ;;  %v327_v14 = vld [vmem:[%s9968_s7 + $0xe8] sm:$0xff] }
  0xb7   : > { %v802_v12 = vld [vmem:[#allocation5 + $0xdc0] sm:$0xff]  ;;  %v8849_v16 = vcombine.high %v674_v10, %v678_v11  ;;  %3939 = vmatprep.subr.bf16.mxu1 %v8729_v9  ;;  %v8848_v26 = vcombine.low %v674_v10, %v678_v11  ;;  %v10044_v11 = vcombine.low %v315_v47, %v319_v48 }
  0xb8   : > { %v806_v13 = vld [vmem:[#allocation5 + $0xde0] sm:$0xff]  ;;  %3940 = vmatpush2.bf16.msra.mxu1 %v8728_v15 }
  0xb9   : > { %v8977_v17 = vcombine.high %v802_v12, %v806_v13  ;;  %v666_v18 = vld [vmem:[#allocation5 + $0x980] sm:$0xff]  ;;  %4022 = vmatprep.subr.bf16.mxu0 %v8849_v16  ;;  %v8976_v29 = vcombine.low %v802_v12, %v806_v13  ;;  %3829 = vmatmul.mubr.bf16.vlgmr.msra.gmra.mxu0 %v10006_v21  ;;  %16465 = vst [vmem:[#allocation27_spill] sm:$0xff] %v10044_v11  ;;  %v323_v13 = vld [vmem:[%s9968_s7 + $0xc8] sm:$0xff] }
  0xba   : > { %v670_v19 = vld [vmem:[#allocation5 + $0x9a0] sm:$0xff]  ;;  %4023 = vmatpush1.bf16.msra.mxu0 %v8848_v26 }
  0xbb   : > { %v794_v20 = vld [vmem:[#allocation5 + $0xd80] sm:$0xff]  ;;  %v8841_v30 = vcombine.high %v666_v18, %v670_v19  ;;  %4135 = vmatprep.subr.bf16.mxu1 %v8977_v17  ;;  %3942 = vmatmul.mubr.bf16.vlgmr.msra.gmra.mxu1 %v10012_v25  ;;  %v8840_v60 = vcombine.low %v666_v18, %v670_v19 }
  0xbc   : > { %v798_v22 = vld [vmem:[#allocation5 + $0xda0] sm:$0xff]  ;;  %4136 = vmatpush1.bf16.msra.mxu1 %v8976_v29  ;;  %3951 = vmatprep.mubr.bf16.mxu1 %v10019_v33 }
  0xbd   : > { %v306_v23 = vld [vmem:[%s9968_s7 + $0x40] sm:$0xff]  ;;  %v8969_v31 = vcombine.high %v794_v20, %v798_v22  ;;  %4024 = vmatprep.subr.bf16.mxu0 %v8841_v30  ;;  %v8968_v35 = vcombine.low %v794_v20, %v798_v22  ;;  %v10051_v22 = vcombine.high %v323_v13, %v327_v14 }
  0xbe   : > { %v310_v24 = vld [vmem:[%s9968_s7 + $0x60] sm:$0xff]  ;;  %4025 = vmatpush1.bf16.msra.mxu0 %v8840_v60 }
  0xbf   : > { %v10016_v32 = vcombine.high %v306_v23, %v310_v24  ;;  %v658_v54 = vld [vmem:[#allocation5 + $0x940] sm:$0xff]  ;;  %4137 = vmatprep.subr.bf16.mxu1 %v8969_v31  ;;  %v10024_v41 = vcombine.low %v306_v23, %v310_v24  ;;  %16467 = vst [vmem:[#allocation29_spill] sm:$0xff] %v10051_v22 }
  0xc0   : > { %v662_v55 = vld [vmem:[#allocation5 + $0x960] sm:$0xff]  ;;  %4138 = vmatpush1.bf16.msra.mxu1 %v8968_v35  ;;  %v10060_v35 = vcombine.low %v323_v13, %v327_v14 }
  0xc1   : > { %16458 = vst [vmem:[#allocation20_spill] sm:$0xff] %v10016_v32  ;;  %v786_v34 = vld [vmem:[#allocation5 + $0xd40] sm:$0xff]  ;;  %v8833_v36 = vcombine.high %v658_v54, %v662_v55  ;;  %3838 = vmatprep.mubr.bf16.mxu0 %v10016_v32  ;;  %16460 = vst [vmem:[#allocation22_spill] sm:$0xff] %v10024_v41  ;;  %v8832_v46 = vcombine.low %v658_v54, %v662_v55 }
  0xc2   : > { %v790_v59 = vld [vmem:[#allocation5 + $0xd60] sm:$0xff]  ;;  %3839 = vmatmul.mubr.bf16.gmra.mxu0 %v10024_v41  ;;  %16469 = vst [vmem:[#allocation31_spill] sm:$0xff] %v10060_v35 }
  0xc3   : > { %v8961_v37 = vcombine.high %v786_v34, %v790_v59  ;;  %v650_v38 = vld [vmem:[#allocation5 + $0x900] sm:$0xff]  ;;  %4026 = vmatprep.subr.bf16.mxu0 %v8833_v36  ;;  %v8960_v49 = vcombine.low %v786_v34, %v790_v59  ;;  %3952 = vmatmul.mubr.bf16.gmra.mxu1 %v10028_v45 }
  0xc4   : > { %v654_v39 = vld [vmem:[#allocation5 + $0x920] sm:$0xff]  ;;  %4027 = vmatpush1.bf16.msra.mxu0 %v8832_v46  ;;  %3961 = vmatprep.mubr.bf16.mxu1 %v10035_v57 }
  0xc5   : > { %v778_v40 = vld [vmem:[#allocation5 + $0xd00] sm:$0xff]  ;;  %v8825_v50 = vcombine.high %v650_v38, %v654_v39  ;;  %4139 = vmatprep.subr.bf16.mxu1 %v8961_v37  ;;  %v8824_v0 = vcombine.low %v650_v38, %v654_v39  ;;  %v331_v37 = vld [vmem:[%s9968_s7 + $0x108] sm:$0xff] }
  0xc6   : > { %v782_v42 = vld [vmem:[#allocation5 + $0xd20] sm:$0xff]  ;;  %4140 = vmatpush1.bf16.msra.mxu1 %v8960_v49  ;;  %v335_v38 = vld [vmem:[%s9968_s7 + $0x128] sm:$0xff] }
  0xc7   : > { %v314_v43 = vld [vmem:[%s9968_s7 + $0x80] sm:$0xff]  ;;  %v8953_v51 = vcombine.high %v778_v40, %v782_v42  ;;  %4028 = vmatprep.subr.bf16.mxu0 %v8825_v50  ;;  %v8952_v1 = vcombine.low %v778_v40, %v782_v42  ;;  %v10067_v47 = vcombine.high %v331_v37, %v335_v38 }
  0xc8   : > { %v318_v44 = vld [vmem:[%s9968_s7 + $0xa0] sm:$0xff]  ;;  %4029 = vmatpush1.bf16.msra.mxu0 %v8824_v0 }
  0xc9   : > { %v10032_v52 = vcombine.high %v314_v43, %v318_v44  ;;  %v642_v53 = vld [vmem:[#allocation5 + $0x8c0] sm:$0xff]  ;;  %4141 = vmatprep.subr.bf16.mxu1 %v8953_v51  ;;  %v10040_v7 = vcombine.low %v314_v43, %v318_v44  ;;  %16471 = vst [vmem:[#allocation33_spill] sm:$0xff] %v10067_v47 }
  0xca   : > { %v646_v56 = vld [vmem:[#allocation5 + $0x8e0] sm:$0xff]  ;;  %4142 = vmatpush1.bf16.msra.mxu1 %v8952_v1 }
  0xcb   : > { %16462 = vst [vmem:[#allocation24_spill] sm:$0xff] %v10032_v52  ;;  %v770_v61 = vld [vmem:[#allocation5 + $0xcc0] sm:$0xff]  ;;  %v8817_v2 = vcombine.high %v642_v53, %v646_v56  ;;  %3848 = vmatprep.mubr.bf16.mxu0 %v10032_v52  ;;  %16464 = vst [vmem:[#allocation26_spill] sm:$0xff] %v10040_v7  ;;  %v8816_v12 = vcombine.low %v642_v53, %v646_v56  ;;  %3962 = vmatmul.mubr.bf16.gmra.mxu1 %v10044_v11 }
  0xcc   : > { %v774_v62 = vld [vmem:[#allocation5 + $0xce0] sm:$0xff]  ;;  %3849 = vmatmul.mubr.bf16.gmra.mxu0 %v10040_v7  ;;  %3971 = vmatprep.mubr.bf16.mxu1 %v10051_v22 }
  0xcd   : > { %v8945_v3 = vcombine.high %v770_v61, %v774_v62  ;;  %v634_v4 = vld [vmem:[#allocation5 + $0x880] sm:$0xff]  ;;  %4030 = vmatprep.subr.bf16.mxu0 %v8817_v2  ;;  %v8944_v15 = vcombine.low %v770_v61, %v774_v62 }
  0xce   : > { %v638_v5 = vld [vmem:[#allocation5 + $0x8a0] sm:$0xff]  ;;  %4031 = vmatpush1.bf16.msra.mxu0 %v8816_v12 }
  0xcf   : > { %v762_v6 = vld [vmem:[#allocation5 + $0xc80] sm:$0xff]  ;;  %v8809_v16 = vcombine.high %v634_v4, %v638_v5  ;;  %4143 = vmatprep.subr.bf16.mxu1 %v8945_v3  ;;  %v8808_v26 = vcombine.low %v634_v4, %v638_v5  ;;  %v10076_v5 = vcombine.low %v331_v37, %v335_v38  ;;  %v347_v37 = vld [vmem:[%s9968_s7 + $0x188] sm:$0xff] }
  0xd0   : > { %v766_v8 = vld [vmem:[#allocation5 + $0xca0] sm:$0xff]  ;;  %4144 = vmatpush1.bf16.msra.mxu1 %v8944_v15  ;;  %v351_v38 = vld [vmem:[%s9968_s7 + $0x1a8] sm:$0xff] }
  0xd1   : > { %v322_v9 = vld [vmem:[%s9968_s7 + $0xc0] sm:$0xff]  ;;  %v8937_v17 = vcombine.high %v762_v6, %v766_v8  ;;  %4032 = vmatprep.subr.bf16.mxu0 %v8809_v16  ;;  %v8936_v27 = vcombine.low %v762_v6, %v766_v8  ;;  %16473 = vst [vmem:[#allocation35_spill] sm:$0xff] %v10076_v5  ;;  %v339_v8 = vld [vmem:[%s9968_s7 + $0x148] sm:$0xff] }
  0xd2   : > { %v326_v10 = vld [vmem:[%s9968_s7 + $0xe0] sm:$0xff]  ;;  %4033 = vmatpush1.bf16.msra.mxu0 %v8808_v26 }
  0xd3   : > { %v10048_v18 = vcombine.high %v322_v9, %v326_v10  ;;  %v626_v19 = vld [vmem:[#allocation5 + $0x840] sm:$0xff]  ;;  %4145 = vmatprep.subr.bf16.mxu1 %v8937_v17  ;;  %v10056_v55 = vcombine.low %v322_v9, %v326_v10  ;;  %3972 = vmatmul.mubr.bf16.gmra.mxu1 %v10060_v35  ;;  %v343_v9 = vld [vmem:[%s9968_s7 + $0x168] sm:$0xff] }
  0xd4   : > { %v630_v20 = vld [vmem:[#allocation5 + $0x860] sm:$0xff]  ;;  %4146 = vmatpush1.bf16.msra.mxu1 %v8936_v27  ;;  %3981 = vmatprep.mubr.bf16.mxu1 %v10067_v47  ;;  %v10083_v17 = vcombine.high %v339_v8, %v343_v9 }
  0xd5   : > { %16466 = vst [vmem:[#allocation28_spill] sm:$0xff] %v10048_v18  ;;  %v754_v23 = vld [vmem:[#allocation5 + $0xc40] sm:$0xff]  ;;  %v8801_v28 = vcombine.high %v626_v19, %v630_v20  ;;  %3858 = vmatprep.mubr.bf16.mxu0 %v10048_v18  ;;  %16468 = vst [vmem:[#allocation30_spill] sm:$0xff] %v10056_v55  ;;  %v8800_v36 = vcombine.low %v626_v19, %v630_v20 }
  0xd6   : > { %v758_v24 = vld [vmem:[#allocation5 + $0xc60] sm:$0xff]  ;;  %3859 = vmatmul.mubr.bf16.gmra.mxu0 %v10056_v55  ;;  %16475 = vst [vmem:[#allocation37_spill] sm:$0xff] %v10083_v17 }
  0xd7   : > { %v8929_v29 = vcombine.high %v754_v23, %v758_v24  ;;  %v618_v30 = vld [vmem:[#allocation5 + $0x800] sm:$0xff]  ;;  %4034 = vmatprep.subr.bf16.mxu0 %v8801_v28  ;;  %v8928_v39 = vcombine.low %v754_v23, %v758_v24 }
  0xd8   : > { %v622_v31 = vld [vmem:[#allocation5 + $0x820] sm:$0xff]  ;;  %4035 = vmatpush1.bf16.msra.mxu0 %v8800_v36 }
  0xd9   : > { %v746_v54 = vld [vmem:[#allocation5 + $0xc00] sm:$0xff]  ;;  %v8793_v40 = vcombine.high %v618_v30, %v622_v31  ;;  %4147 = vmatprep.subr.bf16.mxu1 %v8929_v29  ;;  %v8792_v50 = vcombine.low %v618_v30, %v622_v31 }
  0xda   : > { %v750_v34 = vld [vmem:[#allocation5 + $0xc20] sm:$0xff]  ;;  %4148 = vmatpush1.bf16.msra.mxu1 %v8928_v39 }
  0xdb   : > { %v330_v59 = vld [vmem:[%s9968_s7 + $0x100] sm:$0xff]  ;;  %v8921_v42 = vcombine.high %v746_v54, %v750_v34  ;;  %4036 = vmatprep.subr.bf16.mxu0 %v8793_v40  ;;  %v8920_v51 = vcombine.low %v746_v54, %v750_v34  ;;  %3982 = vmatmul.mubr.bf16.gmra.mxu1 %v10076_v5 }
  0xdc   : > { %v334_v60 = vld [vmem:[%s9968_s7 + $0x120] sm:$0xff]  ;;  %4037 = vmatpush1.bf16.msra.mxu0 %v8792_v50  ;;  %3991 = vmatprep.mubr.bf16.mxu1 %v10083_v17 }
  0xdd   : > { %v10064_v43 = vcombine.high %v330_v59, %v334_v60  ;;  %v738_v44 = vld [vmem:[#allocation5 + $0xbc0] sm:$0xff]  ;;  %4149 = vmatprep.subr.bf16.mxu1 %v8921_v42  ;;  %v10072_v1 = vcombine.low %v330_v59, %v334_v60  ;;  %v10092_v60 = vcombine.low %v339_v8, %v343_v9 }
  0xde   : > { %v742_v46 = vld [vmem:[#allocation5 + $0xbe0] sm:$0xff]  ;;  %4150 = vmatpush1.bf16.msra.mxu1 %v8920_v51 }
  0xdf   : > { %16470 = vst [vmem:[#allocation32_spill] sm:$0xff] %v10064_v43  ;;  %v866_v48 = vld [vmem:[#allocation5 + $0xfc0] sm:$0xff]  ;;  %v8913_v53 = vcombine.high %v738_v44, %v742_v46  ;;  %3868 = vmatprep.mubr.bf16.mxu0 %v10064_v43  ;;  %16472 = vst [vmem:[#allocation34_spill] sm:$0xff] %v10072_v1  ;;  %v8912_v6 = vcombine.low %v738_v44, %v742_v46 }
  0xe0   : > { %v870_v49 = vld [vmem:[#allocation5 + $0xfe0] sm:$0xff]  ;;  %3869 = vmatmul.mubr.bf16.gmra.mxu0 %v10072_v1  ;;  %16477 = vst [vmem:[#allocation39_spill] sm:$0xff] %v10092_v60 }
  0xe1   : > { %v9041_v56 = vcombine.high %v866_v48, %v870_v49  ;;  %v730_v61 = vld [vmem:[#allocation5 + $0xb80] sm:$0xff]  ;;  %4038 = vmatprep.subr.bf16.mxu0 %v8913_v53  ;;  %v9040_v10 = vcombine.low %v866_v48, %v870_v49  ;;  %v10099_v49 = vcombine.high %v347_v37, %v351_v38 }
  0xe2   : > { %v734_v62 = vld [vmem:[#allocation5 + $0xba0] sm:$0xff]  ;;  %4039 = vmatpush2.bf16.msra.mxu0 %v8912_v6 }
  0xe3   : > { %v858_v0 = vld [vmem:[#allocation5 + $0xf80] sm:$0xff]  ;;  %v8905_v12 = vcombine.high %v730_v61, %v734_v62  ;;  %4151 = vmatprep.subr.bf16.mxu1 %v9041_v56  ;;  %v8904_v23 = vcombine.low %v730_v61, %v734_v62  ;;  %16479 = vst [vmem:[#allocation41_spill] sm:$0xff] %v10099_v49  ;;  %3992 = vmatmul.mubr.bf16.gmra.mxu1 %v10092_v60 }
  0xe4   : > { %v862_v2 = vld [vmem:[#allocation5 + $0xfa0] sm:$0xff]  ;;  %4152 = vmatpush2.bf16.msra.mxu1 %v9040_v10  ;;  %4001 = vmatprep.mubr.bf16.mxu1 %v10099_v49  ;;  %v10108_v10 = vcombine.low %v347_v37, %v351_v38 }
  0xe5   : > { %v338_v3 = vld [vmem:[%s9968_s7 + $0x140] sm:$0xff]  ;;  %v9033_v13 = vcombine.high %v858_v0, %v862_v2  ;;  %4040 = vmatprep.subr.bf16.mxu0 %v8905_v12  ;;  %v9032_v24 = vcombine.low %v858_v0, %v862_v2 }
  0xe6   : > { %v342_v4 = vld [vmem:[%s9968_s7 + $0x160] sm:$0xff]  ;;  %4041 = vmatpush2.bf16.msra.mxu0 %v8904_v23  ;;  %16481 = vst [vmem:[#allocation43_spill] sm:$0xff] %v10108_v10 }
  0xe7   : > { %v10080_v14 = vcombine.high %v338_v3, %v342_v4  ;;  %v722_v15 = vld [vmem:[#allocation5 + $0xb40] sm:$0xff]  ;;  %4153 = vmatprep.subr.bf16.mxu1 %v9033_v13  ;;  %v10088_v31 = vcombine.low %v338_v3, %v342_v4  ;;  %v355_v13 = vld [vmem:[%s9968_s7 + $0x1c8] sm:$0xff] }
  0xe8   : > { %v726_v16 = vld [vmem:[#allocation5 + $0xb60] sm:$0xff]  ;;  %4154 = vmatpush2.bf16.msra.mxu1 %v9032_v24 }
  0xe9   : > { %16474 = vst [vmem:[#allocation36_spill] sm:$0xff] %v10080_v14  ;;  %v850_v19 = vld [vmem:[#allocation5 + $0xf40] sm:$0xff]  ;;  %v8897_v26 = vcombine.high %v722_v15, %v726_v16  ;;  %3878 = vmatprep.mubr.bf16.mxu0 %v10080_v14  ;;  %16476 = vst [vmem:[#allocation38_spill] sm:$0xff] %v10088_v31  ;;  %v8896_v36 = vcombine.low %v722_v15, %v726_v16  ;;  %v359_v15 = vld [vmem:[%s9968_s7 + $0x1e8] sm:$0xff] }
  0xea   : > { %v854_v20 = vld [vmem:[#allocation5 + $0xf60] sm:$0xff]  ;;  %3879 = vmatmul.mubr.bf16.gmra.mxu0 %v10088_v31 }
  0xeb   : > { %v9025_v27 = vcombine.high %v850_v19, %v854_v20  ;;  %v714_v28 = vld [vmem:[#allocation5 + $0xb00] sm:$0xff]  ;;  %4042 = vmatprep.subr.bf16.mxu0 %v8897_v26  ;;  %v9024_v39 = vcombine.low %v850_v19, %v854_v20  ;;  %4002 = vmatmul.mubr.bf16.gmra.mxu1 %v10108_v10 }
  0xec   : > { %v718_v29 = vld [vmem:[#allocation5 + $0xb20] sm:$0xff]  ;;  %4043 = vmatpush2.bf16.msra.mxu0 %v8896_v36 }
  0xed   : > { %v842_v30 = vld [vmem:[#allocation5 + $0xf00] sm:$0xff]  ;;  %v8889_v40 = vcombine.high %v714_v28, %v718_v29  ;;  %4155 = vmatprep.subr.bf16.mxu1 %v9025_v27  ;;  %v8888_v53 = vcombine.low %v714_v28, %v718_v29  ;;  %v10115_v27 = vcombine.high %v355_v13, %v359_v15 }
  0xee   : > { %v846_v54 = vld [vmem:[#allocation5 + $0xf20] sm:$0xff]  ;;  %4156 = vmatpush2.bf16.msra.mxu1 %v9024_v39 }
  0xef   : > { %v346_v34 = vld [vmem:[%s9968_s7 + $0x180] sm:$0xff]  ;;  %v9017_v42 = vcombine.high %v842_v30, %v846_v54  ;;  %4044 = vmatprep.subr.bf16.mxu0 %v8889_v40  ;;  %v9016_v56 = vcombine.low %v842_v30, %v846_v54  ;;  %16483 = vst [vmem:[#allocation45_spill] sm:$0xff] %v10115_v27  ;;  %4011 = vmatprep.mubr.bf16.mxu1 %v10115_v27 }
  0xf0   : > { %v350_v59 = vld [vmem:[%s9968_s7 + $0x1a0] sm:$0xff]  ;;  %4045 = vmatpush2.bf16.msra.mxu0 %v8888_v53  ;;  %v305_v53 = vld [vmem:[%s9968_s7 + $0x38] sm:$0xff] }
  0xf1   : > { %v10096_v44 = vcombine.high %v346_v34, %v350_v59  ;;  %v706_v46 = vld [vmem:[#allocation5 + $0xac0] sm:$0xff]  ;;  %4157 = vmatprep.subr.bf16.mxu1 %v9017_v42  ;;  %v10104_v4 = vcombine.low %v346_v34, %v350_v59  ;;  %v300_v42 = vld [vmem:[%s9968_s7 + $0x10] sm:$0xff] }
  0xf2   : > { %v710_v48 = vld [vmem:[#allocation5 + $0xae0] sm:$0xff]  ;;  %4158 = vmatpush2.bf16.msra.mxu1 %v9016_v56 }
  0xf3   : > { %16478 = vst [vmem:[#allocation40_spill] sm:$0xff] %v10096_v44  ;;  %v834_v50 = vld [vmem:[#allocation5 + $0xec0] sm:$0xff]  ;;  %v8881_v61 = vcombine.high %v706_v46, %v710_v48  ;;  %3888 = vmatprep.mubr.bf16.mxu0 %v10096_v44  ;;  %16480 = vst [vmem:[#allocation42_spill] sm:$0xff] %v10104_v4  ;;  %v8880_v12 = vcombine.low %v706_v46, %v710_v48  ;;  %v304_v46 = vld [vmem:[%s9968_s7 + $0x30] sm:$0xff]  ;;  %v10124_v48 = vcombine.low %v355_v13, %v359_v15 }
  0xf4   : > { %v838_v51 = vld [vmem:[#allocation5 + $0xee0] sm:$0xff]  ;;  %3889 = vmatmul.mubr.bf16.gmra.mxu0 %v10104_v4 }
  0xf5   : > { %v9009_v62 = vcombine.high %v834_v50, %v838_v51  ;;  %v698_v0 = vld [vmem:[#allocation5 + $0xa80] sm:$0xff]  ;;  %4046 = vmatprep.subr.bf16.mxu0 %v8881_v61  ;;  %v9008_v16 = vcombine.low %v834_v50, %v838_v51  ;;  %16485 = vst [vmem:[#allocation47_spill] sm:$0xff] %v10124_v48  ;;  %v301_v51 = vld [vmem:[%s9968_s7 + $0x18] sm:$0xff]  ;;  %4012 = vmatmul.mubr.bf16.gmra.mxu1 %v10124_v48 }
  0xf6   : > { %v702_v2 = vld [vmem:[#allocation5 + $0xaa0] sm:$0xff]  ;;  %4047 = vmatpush2.bf16.msra.mxu0 %v8880_v12 }
  0xf7   : > { %v826_v3 = vld [vmem:[#allocation5 + $0xe80] sm:$0xff]  ;;  %v8873_v19 = vcombine.high %v698_v0, %v702_v2  ;;  %4159 = vmatprep.subr.bf16.mxu1 %v9009_v62  ;;  %v8872_v30 = vcombine.low %v698_v0, %v702_v2  ;;  %v10128_v0 = vcombine.high %v300_v42, %v304_v46  ;;  %v419_v2 = vld [vmem:[#allocation5 + $0x1c8] sm:$0xff] }
  0xf8   : > { %v830_v6 = vld [vmem:[#allocation5 + $0xea0] sm:$0xff]  ;;  %4160 = vmatpush2.bf16.msra.mxu1 %v9008_v16 }
  0xf9   : > { %v354_v8 = vld [vmem:[%s9968_s7 + $0x1c0] sm:$0xff]  ;;  %v9001_v20 = vcombine.high %v826_v3, %v830_v6  ;;  %4048 = vmatprep.subr.bf16.mxu0 %v8873_v19  ;;  %v9000_v54 = vcombine.low %v826_v3, %v830_v6  ;;  %16486 = vst [vmem:[#allocation48_spill] sm:$0xff] %v10128_v0  ;;  %v423_v3 = vld [vmem:[#allocation5 + $0x1e8] sm:$0xff]  ;;  %v10131_v6 = vcombine.high %v301_v51, %v305_v53 }
  0xfa   : > { %v358_v9 = vld [vmem:[%s9968_s7 + $0x1e0] sm:$0xff]  ;;  %4049 = vmatpush2.bf16.msra.mxu0 %v8872_v30  ;;  %v8595_v15 = vcombine.high %v419_v2, %v423_v3  ;;  %v411_v19 = vld [vmem:[#allocation5 + $0x188] sm:$0xff]  ;;  %v312_v30 = vld [vmem:[%s9968_s7 + $0x70] sm:$0xff] }
  0xfb   : > { %v10112_v23 = vcombine.high %v354_v8, %v358_v9  ;;  %v690_v24 = vld [vmem:[#allocation5 + $0xa40] sm:$0xff]  ;;  %4161 = vmatprep.subr.bf16.mxu1 %v9001_v20  ;;  %v10120_v39 = vcombine.low %v354_v8, %v358_v9  ;;  %16487 = vst [vmem:[#allocation49_spill] sm:$0xff] %v10131_v6  ;;  %v547_v8 = vld [vmem:[#allocation5 + $0x5c8] sm:$0xff]  ;;  %4167 = vmatprep.mubr.bf16.mxu1 %v10131_v6 }
  0xfc   : > { %v694_v26 = vld [vmem:[#allocation5 + $0xa60] sm:$0xff]  ;;  %4162 = vmatpush2.bf16.msra.mxu1 %v9000_v54  ;;  %v551_v9 = vld [vmem:[#allocation5 + $0x5e8] sm:$0xff]  ;;  %v10140_v54 = vcombine.low %v301_v51, %v305_v53 }
  0xfd   : > { %16482 = vst [vmem:[#allocation44_spill] sm:$0xff] %v10112_v23  ;;  %v818_v28 = vld [vmem:[#allocation5 + $0xe40] sm:$0xff]  ;;  %v8865_v34 = vcombine.high %v690_v24, %v694_v26  ;;  %3898 = vmatprep.mubr.bf16.mxu0 %v10112_v23  ;;  %16484 = vst [vmem:[#allocation46_spill] sm:$0xff] %v10120_v39  ;;  %v8864_v50 = vcombine.low %v690_v24, %v694_v26  ;;  %v8723_v16 = vcombine.high %v547_v8, %v551_v9  ;;  %v415_v20 = vld [vmem:[#allocation5 + $0x1a8] sm:$0xff] }
  0xfe   : > { %v822_v29 = vld [vmem:[#allocation5 + $0xe60] sm:$0xff]  ;;  %3899 = vmatmul.mubr.bf16.gmra.mxu0 %v10120_v39  ;;  %v539_v24 = vld [vmem:[#allocation5 + $0x588] sm:$0xff]  ;;  %v10135_v26 = vcombine.low %v300_v42, %v304_v46  ;;  %16489 = vst [vmem:[#allocation51_spill] sm:$0xff] %v10140_v54  ;;  %v8586_v53 = vcombine.low %v411_v19, %v415_v20 }
  0xff   : > { %v8993_v59 = vcombine.high %v818_v28, %v822_v29  ;;  %v682_v36 = vld [vmem:[#allocation5 + $0xa00] sm:$0xff]  ;;  %4050 = vmatprep.subr.bf16.mxu0 %v8865_v34  ;;  %v8992_v56 = vcombine.low %v818_v28, %v822_v29  ;;  %4054 = vmatprep.mubr.bf16.mxu0 %v10128_v0  ;;  %v543_v28 = vld [vmem:[#allocation5 + $0x5a8] sm:$0xff]  ;;  %v308_v29 = vld [vmem:[%s9968_s7 + $0x50] sm:$0xff]  ;;  %v8594_v34 = vcombine.low %v419_v2, %v423_v3 }
 0x100   : > { %v686_v37 = vld [vmem:[#allocation5 + $0xa20] sm:$0xff]  ;;  %4051 = vmatpush2.bf16.msra.mxu0 %v8864_v50  ;;  %16488 = vst [vmem:[#allocation50_spill] sm:$0xff] %v10135_v26  ;;  %v10144_v50 = vcombine.high %v308_v29, %v312_v30  ;;  %v403_v42 = vld [vmem:[#allocation5 + $0x148] sm:$0xff] }
 0x101   : > { %v810_v38 = vld [vmem:[#allocation5 + $0xe00] sm:$0xff]  ;;  %v8857_v61 = vcombine.high %v682_v36, %v686_v37  ;;  %4163 = vmatprep.subr.bf16.mxu1 %v8993_v59  ;;  %v8856_v12 = vcombine.low %v682_v36, %v686_v37  ;;  %v309_v59 = vld [vmem:[%s9968_s7 + $0x58] sm:$0xff]  ;;  %v8722_v37 = vcombine.low %v547_v8, %v551_v9  ;;  %v407_v46 = vld [vmem:[#allocation5 + $0x168] sm:$0xff] }
 0x102   : > { %v814_v40 = vld [vmem:[#allocation5 + $0xe20] sm:$0xff]  ;;  %4164 = vmatpush2.bf16.msra.mxu1 %v8992_v56  ;;  %v313_v36 = vld [vmem:[%s9968_s7 + $0x78] sm:$0xff]  ;;  %16490 = vst [vmem:[#allocation52_spill] sm:$0xff] %v10144_v50  ;;  %v535_v51 = vld [vmem:[#allocation5 + $0x568] sm:$0xff]  ;;  %v8579_v2 = vcombine.high %v403_v42, %v407_v46 }
 0x103   : > { %v8985_v62 = vcombine.high %v810_v38, %v814_v40  ;;  %4052 = vmatprep.subr.bf16.mxu0 %v8857_v61  ;;  %v8984_v13 = vcombine.low %v810_v38, %v814_v40  ;;  %v8587_v38 = vcombine.high %v411_v19, %v415_v20  ;;  %v8715_v40 = vcombine.high %v539_v24, %v543_v28  ;;  %v531_v61 = vld [vmem:[#allocation5 + $0x548] sm:$0xff]  ;;  %v320_v19 = vld [vmem:[%s9968_s7 + $0xb0] sm:$0xff] }
 0x104   : > { %4053 = vmatpush2.bf16.msra.mxu0 %v8856_v12  ;;  %v10147_v56 = vcombine.high %v309_v59, %v313_v36  ;;  %v8707_v3 = vcombine.high %v531_v61, %v535_v51  ;;  %v395_v8 = vld [vmem:[#allocation5 + $0x108] sm:$0xff]  ;;  %v10156_v20 = vcombine.low %v309_v59, %v313_v36 }
 0x105   : > { %4165 = vmatprep.subr.bf16.mxu1 %v8985_v62  ;;  %4248 = vmatprep.subr.bf16.mxu0 %v8595_v15  ;;  %v8714_v62 = vcombine.low %v539_v24, %v543_v28  ;;  %v399_v9 = vld [vmem:[#allocation5 + $0x128] sm:$0xff]  ;;  %v8578_v24 = vcombine.low %v403_v42, %v407_v46  ;;  %v317_v28 = vld [vmem:[%s9968_s7 + $0x98] sm:$0xff] }
 0x106   : > { %4166 = vmatpush2.bf16.msra.mxu1 %v8984_v13  ;;  %16491 = vst [vmem:[#allocation53_spill] sm:$0xff] %v10147_v56  ;;  %v523_v12 = vld [vmem:[#allocation5 + $0x508] sm:$0xff]  ;;  %v10152_v13 = vcombine.low %v308_v29, %v312_v30  ;;  %16493 = vst [vmem:[#allocation55_spill] sm:$0xff] %v10156_v20  ;;  %v8570_v36 = vcombine.low %v395_v8, %v399_v9 }
 0x107   : > { %4361 = vmatprep.subr.bf16.mxu1 %v8723_v16  ;;  %4055 = vmatmul.mubr.bf16.vlgmr.msra.gmra.mxu0 %v10135_v26  ;;  %v527_v15 = vld [vmem:[#allocation5 + $0x528] sm:$0xff]  ;;  %v316_v16 = vld [vmem:[%s9968_s7 + $0x90] sm:$0xff] }
 0x108   : > { %4249 = vmatpush1.bf16.msra.mxu0 %v8594_v34  ;;  %4064 = vmatprep.mubr.bf16.mxu0 %v10144_v50  ;;  %16492 = vst [vmem:[#allocation54_spill] sm:$0xff] %v10152_v13  ;;  %v321_v34 = vld [vmem:[%s9968_s7 + $0xb8] sm:$0xff]  ;;  %v10160_v50 = vcombine.high %v316_v16, %v320_v19  ;;  %v391_v29 = vld [vmem:[#allocation5 + $0xe8] sm:$0xff]  ;;  %v8698_v42 = vcombine.low %v523_v12, %v527_v15 }
 0x109   : > { %4168 = vmatmul.mubr.bf16.vlgmr.msra.gmra.mxu1 %v10140_v54  ;;  %4250 = vmatprep.subr.bf16.mxu0 %v8587_v38  ;;  %v8571_v38 = vcombine.high %v395_v8, %v399_v9  ;;  %v10163_v30 = vcombine.high %v317_v28, %v321_v34  ;;  %v519_v59 = vld [vmem:[#allocation5 + $0x4e8] sm:$0xff]  ;;  %v328_v8 = vld [vmem:[%s9968_s7 + $0xf0] sm:$0xff]  ;;  %v10172_v9 = vcombine.low %v317_v28, %v321_v34 }
 0x10a   : > { %4362 = vmatpush1.bf16.msra.mxu1 %v8722_v37  ;;  %4177 = vmatprep.mubr.bf16.mxu1 %v10147_v56  ;;  %v8706_v37 = vcombine.low %v531_v61, %v535_v51  ;;  %16494 = vst [vmem:[#allocation56_spill] sm:$0xff] %v10160_v50  ;;  %v387_v56 = vld [vmem:[#allocation5 + $0xc8] sm:$0xff] }
 0x10b   : > { %4363 = vmatprep.subr.bf16.mxu1 %v8715_v40  ;;  %v8699_v40 = vcombine.high %v523_v12, %v527_v15  ;;  %16495 = vst [vmem:[#allocation57_spill] sm:$0xff] %v10163_v30  ;;  %v8563_v46 = vcombine.high %v387_v56, %v391_v29  ;;  %v379_v51 = vld [vmem:[#allocation5 + $0x88] sm:$0xff]  ;;  %16497 = vst [vmem:[#allocation59_spill] sm:$0xff] %v10172_v9  ;;  %v8562_v12 = vcombine.low %v387_v56, %v391_v29  ;;  %v325_v15 = vld [vmem:[%s9968_s7 + $0xd8] sm:$0xff] }
 0x10c   : > { %4251 = vmatpush1.bf16.msra.mxu0 %v8586_v53  ;;  %v515_v53 = vld [vmem:[#allocation5 + $0x4c8] sm:$0xff] }
 0x10d   : > { %4252 = vmatprep.subr.bf16.mxu0 %v8579_v2  ;;  %v8691_v61 = vcombine.high %v515_v53, %v519_v59  ;;  %v507_v2 = vld [vmem:[#allocation5 + $0x488] sm:$0xff] }
 0x10e   : > { %4364 = vmatpush1.bf16.msra.mxu1 %v8714_v62  ;;  %v383_v62 = vld [vmem:[#allocation5 + $0xa8] sm:$0xff] }
 0x10f   : > { %4365 = vmatprep.subr.bf16.mxu1 %v8707_v3  ;;  %4065 = vmatmul.mubr.bf16.gmra.mxu0 %v10152_v13  ;;  %v10168_v3 = vcombine.low %v316_v16, %v320_v19  ;;  %v375_v16 = vld [vmem:[#allocation5 + $0x68] sm:$0xff]  ;;  %v8554_v56 = vcombine.low %v379_v51, %v383_v62 }
 0x110   : > { %4253 = vmatpush1.bf16.msra.mxu0 %v8578_v24  ;;  %4074 = vmatprep.mubr.bf16.mxu0 %v10160_v50  ;;  %v511_v24 = vld [vmem:[#allocation5 + $0x4a8] sm:$0xff] }
 0x111   : > { %4178 = vmatmul.mubr.bf16.gmra.mxu1 %v10156_v20  ;;  %4254 = vmatprep.subr.bf16.mxu0 %v8571_v38  ;;  %16496 = vst [vmem:[#allocation58_spill] sm:$0xff] %v10168_v3  ;;  %v324_v20 = vld [vmem:[%s9968_s7 + $0xd0] sm:$0xff]  ;;  %v8690_v38 = vcombine.low %v515_v53, %v519_v59  ;;  %v8683_v50 = vcombine.high %v507_v2, %v511_v24  ;;  %v503_v28 = vld [vmem:[#allocation5 + $0x468] sm:$0xff] }
 0x112   : > { %4366 = vmatpush1.bf16.msra.mxu1 %v8706_v37  ;;  %4187 = vmatprep.mubr.bf16.mxu1 %v10163_v30  ;;  %v329_v37 = vld [vmem:[%s9968_s7 + $0xf8] sm:$0xff]  ;;  %v10176_v13 = vcombine.high %v324_v20, %v328_v8  ;;  %v371_v30 = vld [vmem:[#allocation5 + $0x48] sm:$0xff]  ;;  %v8682_v34 = vcombine.low %v507_v2, %v511_v24 }
 0x113   : > { %4367 = vmatprep.subr.bf16.mxu1 %v8699_v40  ;;  %v8555_v40 = vcombine.high %v379_v51, %v383_v62  ;;  %v10179_v19 = vcombine.high %v325_v15, %v329_v37  ;;  %v8547_v29 = vcombine.high %v371_v30, %v375_v16  ;;  %v363_v59 = vld [vmem:[#allocation5 + $0x8] sm:$0xff]  ;;  %v336_v51 = vld [vmem:[%s9968_s7 + $0x130] sm:$0xff]  ;;  %v10188_v62 = vcombine.low %v325_v15, %v329_v37  ;;  %v333_v24 = vld [vmem:[%s9968_s7 + $0x118] sm:$0xff] }
 0x114   : > { %4255 = vmatpush1.bf16.msra.mxu0 %v8570_v36  ;;  %16498 = vst [vmem:[#allocation60_spill] sm:$0xff] %v10176_v13  ;;  %v499_v36 = vld [vmem:[#allocation5 + $0x448] sm:$0xff]  ;;  %v8546_v2 = vcombine.low %v371_v30, %v375_v16 }
 0x115   : > { %4256 = vmatprep.subr.bf16.mxu0 %v8563_v46  ;;  %16499 = vst [vmem:[#allocation61_spill] sm:$0xff] %v10179_v19  ;;  %v8675_v53 = vcombine.high %v499_v36, %v503_v28  ;;  %v491_v46 = vld [vmem:[#allocation5 + $0x408] sm:$0xff]  ;;  %16501 = vst [vmem:[#allocation63_spill] sm:$0xff] %v10188_v62 }
 0x116   : > { %4368 = vmatpush1.bf16.msra.mxu1 %v8698_v42  ;;  %v367_v42 = vld [vmem:[#allocation5 + $0x28] sm:$0xff] }
 0x117   : > { %4369 = vmatprep.subr.bf16.mxu1 %v8691_v61  ;;  %4075 = vmatmul.mubr.bf16.gmra.mxu0 %v10168_v3  ;;  %v10184_v61 = vcombine.low %v324_v20, %v328_v8  ;;  %v487_v20 = vld [vmem:[#allocation5 + $0x3e8] sm:$0xff]  ;;  %v8538_v30 = vcombine.low %v363_v59, %v367_v42 }
 0x118   : > { %4257 = vmatpush1.bf16.msra.mxu0 %v8562_v12  ;;  %4084 = vmatprep.mubr.bf16.mxu0 %v10176_v13  ;;  %v495_v12 = vld [vmem:[#allocation5 + $0x428] sm:$0xff] }
 0x119   : > { %4188 = vmatmul.mubr.bf16.gmra.mxu1 %v10172_v9  ;;  %4258 = vmatprep.subr.bf16.mxu0 %v8555_v40  ;;  %16500 = vst [vmem:[#allocation62_spill] sm:$0xff] %v10184_v61  ;;  %v332_v9 = vld [vmem:[%s9968_s7 + $0x110] sm:$0xff]  ;;  %v8539_v40 = vcombine.high %v363_v59, %v367_v42  ;;  %v8667_v13 = vcombine.high %v491_v46, %v495_v12  ;;  %v615_v15 = vld [vmem:[#allocation5 + $0x7e8] sm:$0xff] }
 0x11a   : > { %4370 = vmatpush1.bf16.msra.mxu1 %v8690_v38  ;;  %4197 = vmatprep.mubr.bf16.mxu1 %v10179_v19  ;;  %v337_v38 = vld [vmem:[%s9968_s7 + $0x138] sm:$0xff]  ;;  %v10192_v3 = vcombine.high %v332_v9, %v336_v51  ;;  %v483_v19 = vld [vmem:[#allocation5 + $0x3c8] sm:$0xff]  ;;  %v8666_v37 = vcombine.low %v491_v46, %v495_v12  ;;  %v344_v59 = vld [vmem:[%s9968_s7 + $0x170] sm:$0xff] }
 0x11b   : > { %4371 = vmatprep.subr.bf16.mxu1 %v8683_v50  ;;  %v8674_v50 = vcombine.low %v499_v36, %v503_v28  ;;  %v10195_v8 = vcombine.high %v333_v24, %v337_v38  ;;  %v8659_v16 = vcombine.high %v483_v19, %v487_v20  ;;  %v475_v28 = vld [vmem:[#allocation5 + $0x388] sm:$0xff]  ;;  %v10204_v42 = vcombine.low %v333_v24, %v337_v38  ;;  %v341_v12 = vld [vmem:[%s9968_s7 + $0x158] sm:$0xff] }
 0x11c   : > { %4259 = vmatpush1.bf16.msra.mxu0 %v8554_v56  ;;  %16502 = vst [vmem:[#allocation64_spill] sm:$0xff] %v10192_v3  ;;  %v611_v56 = vld [vmem:[#allocation5 + $0x7c8] sm:$0xff]  ;;  %v8658_v46 = vcombine.low %v483_v19, %v487_v20 }
 0x11d   : > { %4260 = vmatprep.subr.bf16.mxu0 %v8547_v29  ;;  %16503 = vst [vmem:[#allocation65_spill] sm:$0xff] %v10195_v8  ;;  %v8787_v36 = vcombine.high %v611_v56, %v615_v15  ;;  %v603_v29 = vld [vmem:[#allocation5 + $0x788] sm:$0xff]  ;;  %16505 = vst [vmem:[#allocation67_spill] sm:$0xff] %v10204_v42 }
 0x11e   : > { %4372 = vmatpush1.bf16.msra.mxu1 %v8682_v34  ;;  %v479_v34 = vld [vmem:[#allocation5 + $0x3a8] sm:$0xff] }
 0x11f   : > { %4373 = vmatprep.subr.bf16.mxu1 %v8675_v53  ;;  %4085 = vmatmul.mubr.bf16.gmra.mxu0 %v10184_v61  ;;  %v10200_v53 = vcombine.low %v332_v9, %v336_v51  ;;  %v471_v9 = vld [vmem:[#allocation5 + $0x368] sm:$0xff]  ;;  %v8650_v19 = vcombine.low %v475_v28, %v479_v34 }
 0x120   : > { %4261 = vmatpush1.bf16.msra.mxu0 %v8546_v2  ;;  %4094 = vmatprep.mubr.bf16.mxu0 %v10192_v3  ;;  %v607_v2 = vld [vmem:[#allocation5 + $0x7a8] sm:$0xff] }
 0x121   : > { %4198 = vmatmul.mubr.bf16.gmra.mxu1 %v10188_v62  ;;  %4262 = vmatprep.subr.bf16.mxu0 %v8539_v40  ;;  %16504 = vst [vmem:[#allocation66_spill] sm:$0xff] %v10200_v53  ;;  %v340_v62 = vld [vmem:[%s9968_s7 + $0x150] sm:$0xff]  ;;  %v8651_v40 = vcombine.high %v475_v28, %v479_v34  ;;  %v8779_v3 = vcombine.high %v603_v29, %v607_v2  ;;  %v599_v24 = vld [vmem:[#allocation5 + $0x768] sm:$0xff] }
 0x122   : > { %4374 = vmatpush1.bf16.msra.mxu1 %v8674_v50  ;;  %4207 = vmatprep.mubr.bf16.mxu1 %v10195_v8  ;;  %v345_v50 = vld [vmem:[%s9968_s7 + $0x178] sm:$0xff]  ;;  %v10208_v61 = vcombine.high %v340_v62, %v344_v59  ;;  %v467_v8 = vld [vmem:[#allocation5 + $0x348] sm:$0xff]  ;;  %v8778_v38 = vcombine.low %v603_v29, %v607_v2  ;;  %v352_v28 = vld [vmem:[%s9968_s7 + $0x1b0] sm:$0xff] }
 0x123   : > { %4375 = vmatprep.subr.bf16.mxu1 %v8667_v13  ;;  %v8786_v13 = vcombine.low %v611_v56, %v615_v15  ;;  %v10211_v51 = vcombine.high %v341_v12, %v345_v50  ;;  %v8643_v20 = vcombine.high %v467_v8, %v471_v9  ;;  %v459_v15 = vld [vmem:[#allocation5 + $0x308] sm:$0xff]  ;;  %v10220_v34 = vcombine.low %v341_v12, %v345_v50  ;;  %v349_v2 = vld [vmem:[%s9968_s7 + $0x198] sm:$0xff] }
 0x124   : > { %4263 = vmatpush1.bf16.msra.mxu0 %v8538_v30  ;;  %16506 = vst [vmem:[#allocation68_spill] sm:$0xff] %v10208_v61  ;;  %v595_v30 = vld [vmem:[#allocation5 + $0x748] sm:$0xff]  ;;  %v8642_v29 = vcombine.low %v467_v8, %v471_v9 }
 0x125   : > { %4264 = vmatprep.subr.bf16.mxu0 %v8659_v16  ;;  %16507 = vst [vmem:[#allocation69_spill] sm:$0xff] %v10211_v51  ;;  %v8771_v56 = vcombine.high %v595_v30, %v599_v24  ;;  %v587_v16 = vld [vmem:[#allocation5 + $0x708] sm:$0xff]  ;;  %16509 = vst [vmem:[#allocation71_spill] sm:$0xff] %v10220_v34 }
 0x126   : > { %4376 = vmatpush1.bf16.msra.mxu1 %v8666_v37  ;;  %v463_v37 = vld [vmem:[#allocation5 + $0x328] sm:$0xff] }
 0x127   : > { %4377 = vmatprep.subr.bf16.mxu1 %v8787_v36  ;;  %4095 = vmatmul.mubr.bf16.gmra.mxu0 %v10200_v53  ;;  %v10216_v36 = vcombine.low %v340_v62, %v344_v59  ;;  %v455_v62 = vld [vmem:[#allocation5 + $0x2e8] sm:$0xff]  ;;  %v8634_v8 = vcombine.low %v459_v15, %v463_v37 }
 0x128   : > { %4265 = vmatpush2.bf16.msra.mxu0 %v8658_v46  ;;  %4104 = vmatprep.mubr.bf16.mxu0 %v10208_v61  ;;  %v591_v46 = vld [vmem:[#allocation5 + $0x728] sm:$0xff] }
 0x129   : > { %4208 = vmatmul.mubr.bf16.gmra.mxu1 %v10204_v42  ;;  %4266 = vmatprep.subr.bf16.mxu0 %v8651_v40  ;;  %16508 = vst [vmem:[#allocation70_spill] sm:$0xff] %v10216_v36  ;;  %v348_v42 = vld [vmem:[%s9968_s7 + $0x190] sm:$0xff]  ;;  %v8635_v40 = vcombine.high %v459_v15, %v463_v37  ;;  %v8763_v61 = vcombine.high %v587_v16, %v591_v46  ;;  %v583_v12 = vld [vmem:[#allocation5 + $0x6e8] sm:$0xff] }
 0x12a   : > { %4378 = vmatpush2.bf16.msra.mxu1 %v8786_v13  ;;  %4217 = vmatprep.mubr.bf16.mxu1 %v10211_v51  ;;  %v353_v13 = vld [vmem:[%s9968_s7 + $0x1b8] sm:$0xff]  ;;  %v10224_v53 = vcombine.high %v348_v42, %v352_v28  ;;  %v451_v51 = vld [vmem:[#allocation5 + $0x2c8] sm:$0xff]  ;;  %v8762_v50 = vcombine.low %v587_v16, %v591_v46  ;;  %v360_v15 = vld [vmem:[%s9968_s7 + $0x1f0] sm:$0xff] }
 0x12b   : > { %4379 = vmatprep.subr.bf16.mxu1 %v8779_v3  ;;  %v8770_v3 = vcombine.low %v595_v30, %v599_v24  ;;  %v10227_v59 = vcombine.high %v349_v2, %v353_v13  ;;  %v8627_v9 = vcombine.high %v451_v51, %v455_v62  ;;  %v443_v24 = vld [vmem:[#allocation5 + $0x288] sm:$0xff]  ;;  %v10236_v37 = vcombine.low %v349_v2, %v353_v13  ;;  %v357_v46 = vld [vmem:[%s9968_s7 + $0x1d8] sm:$0xff] }
 0x12c   : > { %4267 = vmatpush2.bf16.msra.mxu0 %v8650_v19  ;;  %16510 = vst [vmem:[#allocation72_spill] sm:$0xff] %v10224_v53  ;;  %v579_v19 = vld [vmem:[#allocation5 + $0x6c8] sm:$0xff]  ;;  %v8626_v16 = vcombine.low %v451_v51, %v455_v62 }
 0x12d   : > { %4268 = vmatprep.subr.bf16.mxu0 %v8643_v20  ;;  %16511 = vst [vmem:[#allocation73_spill] sm:$0xff] %v10227_v59  ;;  %v8755_v30 = vcombine.high %v579_v19, %v583_v12  ;;  %v571_v20 = vld [vmem:[#allocation5 + $0x688] sm:$0xff]  ;;  %16513 = vst [vmem:[#allocation75_spill] sm:$0xff] %v10236_v37 }
 0x12e   : > { %4380 = vmatpush2.bf16.msra.mxu1 %v8778_v38  ;;  %v447_v38 = vld [vmem:[#allocation5 + $0x2a8] sm:$0xff] }
 0x12f   : > { %4381 = vmatprep.subr.bf16.mxu1 %v8771_v56  ;;  %4105 = vmatmul.mubr.bf16.gmra.mxu0 %v10216_v36  ;;  %v10232_v56 = vcombine.low %v348_v42, %v352_v28  ;;  %v439_v42 = vld [vmem:[#allocation5 + $0x268] sm:$0xff]  ;;  %v8618_v51 = vcombine.low %v443_v24, %v447_v38 }
 0x130   : > { %4269 = vmatpush2.bf16.msra.mxu0 %v8642_v29  ;;  %4114 = vmatprep.mubr.bf16.mxu0 %v10224_v53  ;;  %v575_v29 = vld [vmem:[#allocation5 + $0x6a8] sm:$0xff] }
 0x131   : > { %4218 = vmatmul.mubr.bf16.gmra.mxu1 %v10220_v34  ;;  %4270 = vmatprep.subr.bf16.mxu0 %v8635_v40  ;;  %16512 = vst [vmem:[#allocation74_spill] sm:$0xff] %v10232_v56  ;;  %v356_v34 = vld [vmem:[%s9968_s7 + $0x1d0] sm:$0xff]  ;;  %v8619_v40 = vcombine.high %v443_v24, %v447_v38  ;;  %v8747_v53 = vcombine.high %v571_v20, %v575_v29  ;;  %v567_v2 = vld [vmem:[#allocation5 + $0x668] sm:$0xff] }
 0x132   : > { %4382 = vmatpush2.bf16.msra.mxu1 %v8770_v3  ;;  %4227 = vmatprep.mubr.bf16.mxu1 %v10227_v59  ;;  %v361_v3 = vld [vmem:[%s9968_s7 + $0x1f8] sm:$0xff]  ;;  %v10240_v36 = vcombine.high %v356_v34, %v360_v15  ;;  %v435_v59 = vld [vmem:[#allocation5 + $0x248] sm:$0xff]  ;;  %v8746_v13 = vcombine.low %v571_v20, %v575_v29 }
 0x133   : > { %4383 = vmatprep.subr.bf16.mxu1 %v8763_v61  ;;  %v8754_v61 = vcombine.low %v579_v19, %v583_v12  ;;  %v10243_v28 = vcombine.high %v357_v46, %v361_v3  ;;  %v8611_v62 = vcombine.high %v435_v59, %v439_v42  ;;  %v427_v12 = vld [vmem:[#allocation5 + $0x208] sm:$0xff]  ;;  %v8610_v24 = vcombine.low %v435_v59, %v439_v42 }
 0x134   : > { %4271 = vmatpush2.bf16.msra.mxu0 %v8634_v8  ;;  %16514 = vst [vmem:[#allocation76_spill] sm:$0xff] %v10240_v36  ;;  %v563_v8 = vld [vmem:[#allocation5 + $0x648] sm:$0xff] }
 0x135   : > { %4272 = vmatprep.subr.bf16.mxu0 %v8627_v9  ;;  %16515 = vst [vmem:[#allocation77_spill] sm:$0xff] %v10243_v28  ;;  %v8739_v19 = vcombine.high %v563_v8, %v567_v2  ;;  %v10248_v9 = vcombine.low %v356_v34, %v360_v15  ;;  %v8738_v38 = vcombine.low %v563_v8, %v567_v2  ;;  %v675_v29 = vld [vmem:[#allocation5 + $0x9c8] sm:$0xff] }
 0x136   : > { %4384 = vmatpush2.bf16.msra.mxu1 %v8762_v50  ;;  %v431_v50 = vld [vmem:[#allocation5 + $0x228] sm:$0xff] }
 0x137   : > { %4385 = vmatprep.subr.bf16.mxu1 %v8755_v30  ;;  %4115 = vmatmul.mubr.bf16.gmra.mxu0 %v10232_v56  ;;  %16516 = vst [vmem:[#allocation78_spill] sm:$0xff] %v10248_v9  ;;  %v555_v30 = vld [vmem:[#allocation5 + $0x608] sm:$0xff]  ;;  %v8603_v20 = vcombine.high %v427_v12, %v431_v50  ;;  %v8602_v34 = vcombine.low %v427_v12, %v431_v50 }
 0x138   : > { %4273 = vmatpush2.bf16.msra.mxu0 %v8626_v16  ;;  %4124 = vmatprep.mubr.bf16.mxu0 %v10240_v36  ;;  %v559_v56 = vld [vmem:[#allocation5 + $0x628] sm:$0xff] }
 0x139   : > { %4228 = vmatmul.mubr.bf16.gmra.mxu1 %v10236_v37  ;;  %4274 = vmatprep.subr.bf16.mxu0 %v8619_v40  ;;  %v10250_v37 = vcombine.low %v357_v46, %v361_v3  ;;  %v679_v16 = vld [vmem:[#allocation5 + $0x9e8] sm:$0xff]  ;;  %v8730_v15 = vcombine.low %v555_v30, %v559_v56 }
 0x13a   : > { %4386 = vmatpush2.bf16.msra.mxu1 %v8754_v61  ;;  %4237 = vmatprep.mubr.bf16.mxu1 %v10243_v28  ;;  %v803_v61 = vld [vmem:[#allocation5 + $0xdc8] sm:$0xff]  ;;  %v8851_v59 = vcombine.high %v675_v29, %v679_v16 }
 0x13b   : > { %4387 = vmatprep.subr.bf16.mxu1 %v8747_v53  ;;  %16517 = vst [vmem:[#allocation79_spill] sm:$0xff] %v10250_v37  ;;  %v8731_v53 = vcombine.high %v555_v30, %v559_v56  ;;  %v807_v40 = vld [vmem:[#allocation5 + $0xde8] sm:$0xff] }
 0x13c   : > { %4275 = vmatpush2.bf16.msra.mxu0 %v8618_v51  ;;  %v8979_v46 = vcombine.high %v803_v61, %v807_v40  ;;  %v667_v3 = vld [vmem:[#allocation5 + $0x988] sm:$0xff]  ;;  %v8850_v51 = vcombine.low %v675_v29, %v679_v16 }
 0x13d   : > { %4276 = vmatprep.subr.bf16.mxu0 %v8611_v62  ;;  %v671_v42 = vld [vmem:[#allocation5 + $0x9a8] sm:$0xff] }
 0x13e   : > { %4388 = vmatpush2.bf16.msra.mxu1 %v8746_v13  ;;  %v795_v8 = vld [vmem:[#allocation5 + $0xd88] sm:$0xff]  ;;  %v8978_v13 = vcombine.low %v803_v61, %v807_v40  ;;  %v8843_v62 = vcombine.high %v667_v3, %v671_v42 }
 0x13f   : > { %4389 = vmatprep.subr.bf16.mxu1 %v8739_v19  ;;  %4125 = vmatmul.mubr.bf16.gmra.mxu0 %v10248_v9  ;;  %v799_v2 = vld [vmem:[#allocation5 + $0xda8] sm:$0xff] }
 0x140   : > { %4277 = vmatpush2.bf16.msra.mxu0 %v8610_v24  ;;  %4280 = vmatprep.mubr.bf16.mxu0 %v9990_v58  ;;  %v8971_v19 = vcombine.high %v795_v8, %v799_v2  ;;  %v659_v56 = vld [vmem:[#allocation5 + $0x948] sm:$0xff]  ;;  %v8842_v24 = vcombine.low %v667_v3, %v671_v42 }
 0x141   : > { %4238 = vmatmul.mubr.bf16.gmra.mxu1 %v10250_v37  ;;  %4278 = vmatprep.subr.bf16.mxu0 %v8603_v20  ;;  %v663_v12 = vld [vmem:[#allocation5 + $0x968] sm:$0xff] }
 0x142   : > { %4390 = vmatpush2.bf16.msra.mxu1 %v8738_v38  ;;  %4393 = vmatprep.mubr.bf16.mxu1 %v10000_v63  ;;  %v787_v50 = vld [vmem:[#allocation5 + $0xd48] sm:$0xff]  ;;  %v8970_v38 = vcombine.low %v795_v8, %v799_v2  ;;  %v8835_v20 = vcombine.high %v659_v56, %v663_v12 }
 0x143   : > { %4391 = vmatprep.subr.bf16.mxu1 %v8731_v53  ;;  %v791_v30 = vld [vmem:[#allocation5 + $0xd68] sm:$0xff] }
 0x144   : > { %4279 = vmatpush2.bf16.msra.mxu0 %v8602_v34  ;;  %v8963_v53 = vcombine.high %v787_v50, %v791_v30  ;;  %v651_v29 = vld [vmem:[#allocation5 + $0x908] sm:$0xff]  ;;  %v8834_v34 = vcombine.low %v659_v56, %v663_v12 }
 0x145   : > { %4474 = vmatprep.subr.bf16.mxu0 %v8851_v59  ;;  %v655_v16 = vld [vmem:[#allocation5 + $0x928] sm:$0xff] }
 0x146   : > { %4392 = vmatpush2.bf16.msra.mxu1 %v8730_v15  ;;  %v779_v61 = vld [vmem:[#allocation5 + $0xd08] sm:$0xff]  ;;  %v8962_v15 = vcombine.low %v787_v50, %v791_v30  ;;  %v8827_v59 = vcombine.high %v651_v29, %v655_v16 }
 0x147   : > { %4587 = vmatprep.subr.bf16.mxu1 %v8979_v46  ;;  %4281 = vmatmul.mubr.bf16.vlgmr.msra.gmra.mxu0 %v10006_v21  ;;  %v783_v40 = vld [vmem:[#allocation5 + $0xd28] sm:$0xff] }
 0x148   : > { %4475 = vmatpush1.bf16.msra.mxu0 %v8850_v51  ;;  %4290 = vmatprep.mubr.bf16.mxu0 %v10016_v32  ;;  %v8955_v46 = vcombine.high %v779_v61, %v783_v40  ;;  %v643_v3 = vld [vmem:[#allocation5 + $0x8c8] sm:$0xff]  ;;  %v8826_v51 = vcombine.low %v651_v29, %v655_v16 }
 0x149   : > { %4394 = vmatmul.mubr.bf16.vlgmr.msra.gmra.mxu1 %v10012_v25  ;;  %4476 = vmatprep.subr.bf16.mxu0 %v8843_v62  ;;  %v647_v42 = vld [vmem:[#allocation5 + $0x8e8] sm:$0xff] }
 0x14a   : > { %4588 = vmatpush1.bf16.msra.mxu1 %v8978_v13  ;;  %4403 = vmatprep.mubr.bf16.mxu1 %v10019_v33  ;;  %v771_v8 = vld [vmem:[#allocation5 + $0xcc8] sm:$0xff]  ;;  %v8954_v13 = vcombine.low %v779_v61, %v783_v40  ;;  %v8819_v62 = vcombine.high %v643_v3, %v647_v42 }
 0x14b   : > { %4589 = vmatprep.subr.bf16.mxu1 %v8971_v19  ;;  %v775_v2 = vld [vmem:[#allocation5 + $0xce8] sm:$0xff] }
 0x14c   : > { %4477 = vmatpush1.bf16.msra.mxu0 %v8842_v24  ;;  %v8947_v19 = vcombine.high %v771_v8, %v775_v2  ;;  %v635_v56 = vld [vmem:[#allocation5 + $0x888] sm:$0xff]  ;;  %v8818_v24 = vcombine.low %v643_v3, %v647_v42 }
 0x14d   : > { %4478 = vmatprep.subr.bf16.mxu0 %v8835_v20  ;;  %v639_v12 = vld [vmem:[#allocation5 + $0x8a8] sm:$0xff] }
 0x14e   : > { %4590 = vmatpush1.bf16.msra.mxu1 %v8970_v38  ;;  %v763_v50 = vld [vmem:[#allocation5 + $0xc88] sm:$0xff]  ;;  %v8946_v38 = vcombine.low %v771_v8, %v775_v2  ;;  %v8811_v20 = vcombine.high %v635_v56, %v639_v12 }
 0x14f   : > { %4591 = vmatprep.subr.bf16.mxu1 %v8963_v53  ;;  %4291 = vmatmul.mubr.bf16.gmra.mxu0 %v10024_v41  ;;  %v767_v30 = vld [vmem:[#allocation5 + $0xca8] sm:$0xff] }
 0x150   : > { %4479 = vmatpush1.bf16.msra.mxu0 %v8834_v34  ;;  %4300 = vmatprep.mubr.bf16.mxu0 %v10032_v52  ;;  %v8939_v53 = vcombine.high %v763_v50, %v767_v30  ;;  %v627_v29 = vld [vmem:[#allocation5 + $0x848] sm:$0xff]  ;;  %v8810_v34 = vcombine.low %v635_v56, %v639_v12 }
 0x151   : > { %4404 = vmatmul.mubr.bf16.gmra.mxu1 %v10028_v45  ;;  %4480 = vmatprep.subr.bf16.mxu0 %v8827_v59  ;;  %v631_v16 = vld [vmem:[#allocation5 + $0x868] sm:$0xff] }
 0x152   : > { %4592 = vmatpush1.bf16.msra.mxu1 %v8962_v15  ;;  %4413 = vmatprep.mubr.bf16.mxu1 %v10035_v57  ;;  %v755_v61 = vld [vmem:[#allocation5 + $0xc48] sm:$0xff]  ;;  %v8938_v15 = vcombine.low %v763_v50, %v767_v30  ;;  %v8803_v59 = vcombine.high %v627_v29, %v631_v16 }
 0x153   : > { %4593 = vmatprep.subr.bf16.mxu1 %v8955_v46  ;;  %v759_v40 = vld [vmem:[#allocation5 + $0xc68] sm:$0xff] }
 0x154   : > { %4481 = vmatpush1.bf16.msra.mxu0 %v8826_v51  ;;  %v8931_v46 = vcombine.high %v755_v61, %v759_v40  ;;  %v619_v3 = vld [vmem:[#allocation5 + $0x808] sm:$0xff]  ;;  %v8802_v51 = vcombine.low %v627_v29, %v631_v16 }
 0x155   : > { %4482 = vmatprep.subr.bf16.mxu0 %v8819_v62  ;;  %v623_v42 = vld [vmem:[#allocation5 + $0x828] sm:$0xff] }
 0x156   : > { %4594 = vmatpush1.bf16.msra.mxu1 %v8954_v13  ;;  %v747_v8 = vld [vmem:[#allocation5 + $0xc08] sm:$0xff]  ;;  %v8930_v13 = vcombine.low %v755_v61, %v759_v40  ;;  %v8795_v62 = vcombine.high %v619_v3, %v623_v42 }
 0x157   : > { %4595 = vmatprep.subr.bf16.mxu1 %v8947_v19  ;;  %4301 = vmatmul.mubr.bf16.gmra.mxu0 %v10040_v7  ;;  %v751_v2 = vld [vmem:[#allocation5 + $0xc28] sm:$0xff] }
 0x158   : > { %4483 = vmatpush1.bf16.msra.mxu0 %v8818_v24  ;;  %4310 = vmatprep.mubr.bf16.mxu0 %v10048_v18  ;;  %v8923_v19 = vcombine.high %v747_v8, %v751_v2  ;;  %v739_v56 = vld [vmem:[#allocation5 + $0xbc8] sm:$0xff]  ;;  %v8794_v24 = vcombine.low %v619_v3, %v623_v42 }
 0x159   : > { %4414 = vmatmul.mubr.bf16.gmra.mxu1 %v10044_v11  ;;  %4484 = vmatprep.subr.bf16.mxu0 %v8811_v20  ;;  %v743_v12 = vld [vmem:[#allocation5 + $0xbe8] sm:$0xff] }
 0x15a   : > { %4596 = vmatpush1.bf16.msra.mxu1 %v8946_v38  ;;  %4423 = vmatprep.mubr.bf16.mxu1 %v10051_v22  ;;  %v867_v50 = vld [vmem:[#allocation5 + $0xfc8] sm:$0xff]  ;;  %v8922_v38 = vcombine.low %v747_v8, %v751_v2  ;;  %v8915_v20 = vcombine.high %v739_v56, %v743_v12 }
 0x15b   : > { %4597 = vmatprep.subr.bf16.mxu1 %v8939_v53  ;;  %v871_v30 = vld [vmem:[#allocation5 + $0xfe8] sm:$0xff] }
 0x15c   : > { %4485 = vmatpush1.bf16.msra.mxu0 %v8810_v34  ;;  %v9043_v53 = vcombine.high %v867_v50, %v871_v30  ;;  %v731_v29 = vld [vmem:[#allocation5 + $0xb88] sm:$0xff]  ;;  %v8914_v34 = vcombine.low %v739_v56, %v743_v12 }
 0x15d   : > { %4486 = vmatprep.subr.bf16.mxu0 %v8803_v59  ;;  %v735_v16 = vld [vmem:[#allocation5 + $0xba8] sm:$0xff] }
 0x15e   : > { %4598 = vmatpush1.bf16.msra.mxu1 %v8938_v15  ;;  %v859_v61 = vld [vmem:[#allocation5 + $0xf88] sm:$0xff]  ;;  %v9042_v15 = vcombine.low %v867_v50, %v871_v30  ;;  %v8907_v59 = vcombine.high %v731_v29, %v735_v16 }
 0x15f   : > { %4599 = vmatprep.subr.bf16.mxu1 %v8931_v46  ;;  %4311 = vmatmul.mubr.bf16.gmra.mxu0 %v10056_v55  ;;  %v863_v40 = vld [vmem:[#allocation5 + $0xfa8] sm:$0xff] }
 0x160   : > { %4487 = vmatpush1.bf16.msra.mxu0 %v8802_v51  ;;  %4320 = vmatprep.mubr.bf16.mxu0 %v10064_v43  ;;  %v9035_v46 = vcombine.high %v859_v61, %v863_v40  ;;  %v723_v3 = vld [vmem:[#allocation5 + $0xb48] sm:$0xff]  ;;  %v8906_v51 = vcombine.low %v731_v29, %v735_v16  ;;  %v10463_v43 = vld [vmem:[#allocation5 + $0xdb0] sm:$0xff] }
 0x161   : > { %4424 = vmatmul.mubr.bf16.gmra.mxu1 %v10060_v35  ;;  %4488 = vmatprep.subr.bf16.mxu0 %v8795_v62  ;;  %v727_v42 = vld [vmem:[#allocation5 + $0xb68] sm:$0xff] }
 0x162   : > { %4600 = vmatpush1.bf16.msra.mxu1 %v8930_v13  ;;  %4433 = vmatprep.mubr.bf16.mxu1 %v10067_v47  ;;  %v851_v8 = vld [vmem:[#allocation5 + $0xf48] sm:$0xff]  ;;  %v9034_v13 = vcombine.low %v859_v61, %v863_v40  ;;  %v8899_v62 = vcombine.high %v723_v3, %v727_v42  ;;  %v468_v47 = vld [vmem:[#allocation5 + $0x350] sm:$0xff] }
 0x163   : > { %4601 = vmatprep.subr.bf16.mxu1 %v8923_v19  ;;  %v855_v2 = vld [vmem:[#allocation5 + $0xf68] sm:$0xff] }
 0x164   : > { %4489 = vmatpush1.bf16.msra.mxu0 %v8794_v24  ;;  %v9027_v19 = vcombine.high %v851_v8, %v855_v2  ;;  %v715_v56 = vld [vmem:[#allocation5 + $0xb08] sm:$0xff]  ;;  %v8898_v24 = vcombine.low %v723_v3, %v727_v42 }
 0x165   : > { %4490 = vmatprep.subr.bf16.mxu0 %v8915_v20  ;;  %v719_v12 = vld [vmem:[#allocation5 + $0xb28] sm:$0xff] }
 0x166   : > { %4602 = vmatpush1.bf16.msra.mxu1 %v8922_v38  ;;  %v843_v50 = vld [vmem:[#allocation5 + $0xf08] sm:$0xff]  ;;  %v9026_v38 = vcombine.low %v851_v8, %v855_v2  ;;  %v8891_v20 = vcombine.high %v715_v56, %v719_v12 }
 0x167   : > { %4603 = vmatprep.subr.bf16.mxu1 %v9043_v53  ;;  %4321 = vmatmul.mubr.bf16.gmra.mxu0 %v10072_v1  ;;  %v847_v30 = vld [vmem:[#allocation5 + $0xf28] sm:$0xff] }
 0x168   : > { %4491 = vmatpush2.bf16.msra.mxu0 %v8914_v34  ;;  %4330 = vmatprep.mubr.bf16.mxu0 %v10080_v14  ;;  %v9019_v53 = vcombine.high %v843_v50, %v847_v30  ;;  %v707_v29 = vld [vmem:[#allocation5 + $0xac8] sm:$0xff]  ;;  %v8890_v34 = vcombine.low %v715_v56, %v719_v12 }
 0x169   : > { %4434 = vmatmul.mubr.bf16.gmra.mxu1 %v10076_v5  ;;  %4492 = vmatprep.subr.bf16.mxu0 %v8907_v59  ;;  %v711_v16 = vld [vmem:[#allocation5 + $0xae8] sm:$0xff]  ;;  %v480_v5 = vld [vmem:[#allocation5 + $0x3b0] sm:$0xff] }
 0x16a   : > { %4604 = vmatpush2.bf16.msra.mxu1 %v9042_v15  ;;  %4443 = vmatprep.mubr.bf16.mxu1 %v10083_v17  ;;  %v835_v61 = vld [vmem:[#allocation5 + $0xec8] sm:$0xff]  ;;  %v9018_v15 = vcombine.low %v843_v50, %v847_v30  ;;  %v8883_v59 = vcombine.high %v707_v29, %v711_v16  ;;  %v484_v17 = vld [vmem:[#allocation5 + $0x3d0] sm:$0xff] }
 0x16b   : > { %4605 = vmatprep.subr.bf16.mxu1 %v9035_v46  ;;  %v839_v40 = vld [vmem:[#allocation5 + $0xee8] sm:$0xff] }
 0x16c   : > { %4493 = vmatpush2.bf16.msra.mxu0 %v8906_v51  ;;  %v9011_v46 = vcombine.high %v835_v61, %v839_v40  ;;  %v699_v3 = vld [vmem:[#allocation5 + $0xa88] sm:$0xff]  ;;  %v8882_v51 = vcombine.low %v707_v29, %v711_v16 }
 0x16d   : > { %4494 = vmatprep.subr.bf16.mxu0 %v8899_v62  ;;  %v703_v42 = vld [vmem:[#allocation5 + $0xaa8] sm:$0xff] }
 0x16e   : > { %4606 = vmatpush2.bf16.msra.mxu1 %v9034_v13  ;;  %v827_v8 = vld [vmem:[#allocation5 + $0xe88] sm:$0xff]  ;;  %v9010_v13 = vcombine.low %v835_v61, %v839_v40  ;;  %v8875_v62 = vcombine.high %v699_v3, %v703_v42 }
 0x16f   : > { %4607 = vmatprep.subr.bf16.mxu1 %v9027_v19  ;;  %4331 = vmatmul.mubr.bf16.gmra.mxu0 %v10088_v31  ;;  %v831_v2 = vld [vmem:[#allocation5 + $0xea8] sm:$0xff] }
 0x170   : > { %4495 = vmatpush2.bf16.msra.mxu0 %v8898_v24  ;;  %4340 = vmatprep.mubr.bf16.mxu0 %v10096_v44  ;;  %v9003_v19 = vcombine.high %v827_v8, %v831_v2  ;;  %v691_v56 = vld [vmem:[#allocation5 + $0xa48] sm:$0xff]  ;;  %v8874_v24 = vcombine.low %v699_v3, %v703_v42 }
 0x171   : > { %4444 = vmatmul.mubr.bf16.gmra.mxu1 %v10092_v60  ;;  %4496 = vmatprep.subr.bf16.mxu0 %v8891_v20  ;;  %v695_v12 = vld [vmem:[#allocation5 + $0xa68] sm:$0xff]  ;;  %v9002_v20 = vcombine.low %v827_v8, %v831_v2  ;;  %v420_v8 = vld [vmem:[#allocation5 + $0x1d0] sm:$0xff] }
 0x172   : > { %4608 = vmatpush2.bf16.msra.mxu1 %v9026_v38  ;;  %4453 = vmatprep.mubr.bf16.mxu1 %v10099_v49  ;;  %v819_v50 = vld [vmem:[#allocation5 + $0xe48] sm:$0xff]  ;;  %v876_v38 = vlaneseq  ;;  %v424_v2 = vld [vmem:[#allocation5 + $0x1f0] sm:$0xff] }
 0x173   : > { %4609 = vmatprep.subr.bf16.mxu1 %v9019_v53  ;;  %v823_v30 = vld [vmem:[#allocation5 + $0xe68] sm:$0xff]  ;;  %v8867_v53 = vcombine.high %v691_v56, %v695_v12  ;;  %v372_v49 = vld [vmem:[#allocation5 + $0x50] sm:$0xff] }
 0x174   : > { %4497 = vmatpush2.bf16.msra.mxu0 %v8890_v34  ;;  %v8995_v29 = vcombine.high %v819_v50, %v823_v30  ;;  %v683_v16 = vld [vmem:[#allocation5 + $0xa08] sm:$0xff]  ;;  %v368_v60 = vld [vmem:[#allocation5 + $0x30] sm:$0xff] }
 0x175   : > { %4498 = vmatprep.subr.bf16.mxu0 %v8883_v59  ;;  %v687_v61 = vld [vmem:[#allocation5 + $0xa28] sm:$0xff]  ;;  %v10284_v59 = vshrl.u32 %v876_v38, 7  ;;  %v412_v38 = vld [vmem:[#allocation5 + $0x190] sm:$0xff] }
 0x176   : > { %4610 = vmatpush2.bf16.msra.mxu1 %v9018_v15  ;;  %v811_v40 = vld [vmem:[#allocation5 + $0xe08] sm:$0xff]  ;;  %v8866_v15 = vcombine.low %v691_v56, %v695_v12  ;;  %v8859_v3 = vcombine.high %v683_v16, %v687_v61  ;;  %v874_v12 = vld [vmem:[#allocation7] sm:$0xff] }
 0x177   : > { %4611 = vmatprep.subr.bf16.mxu1 %v9011_v46  ;;  %4341 = vmatmul.mubr.bf16.gmra.mxu0 %v10104_v4  ;;  %v815_v34 = vld [vmem:[#allocation5 + $0xe28] sm:$0xff]  ;;  %16518 = vst [vmem:[#allocation80_spill] sm:$0xff] %v10284_v59  ;;  %v8994_v46 = vcombine.low %v819_v50, %v823_v30  ;;  %v8597_v50 = vcombine.high %v420_v8, %v424_v2 }
 0x178   : > { %4499 = vmatpush2.bf16.msra.mxu0 %v8882_v51  ;;  %4350 = vmatprep.mubr.bf16.mxu0 %v10112_v23  ;;  %v8987_v42 = vcombine.high %v811_v40, %v815_v34  ;;  %v548_v51 = vld [vmem:[#allocation5 + $0x5d0] sm:$0xff]  ;;  %v8986_v56 = vcombine.low %v811_v40, %v815_v34  ;;  %v16523_v23 = vld [vmem:[#allocation54_spill] sm:$0xff] }
 0x179   : > { %4454 = vmatmul.mubr.bf16.gmra.mxu1 %v10108_v10  ;;  %4500 = vmatprep.subr.bf16.mxu0 %v8875_v62  ;;  %v8858_v62 = vcombine.low %v683_v16, %v687_v61  ;;  %v8596_v61 = vcombine.low %v420_v8, %v424_v2  ;;  %v384_v10 = vld [vmem:[#allocation5 + $0xb0] sm:$0xff]  ;;  %v16527_v44 = vld [vmem:[#allocation58_spill] sm:$0xff] }
 0x17a   : > { %4612 = vmatpush2.bf16.msra.mxu1 %v9010_v13  ;;  %4463 = vmatprep.mubr.bf16.mxu1 %v10115_v27  ;;  %v552_v13 = vld [vmem:[#allocation5 + $0x5f0] sm:$0xff]  ;;  %v16535_v14 = vld [vmem:[#allocation62_spill] sm:$0xff] }
 0x17b   : > { %4613 = vmatprep.subr.bf16.mxu1 %v9003_v19  ;;  %v10289_v19 = vsub.s32 0, %v10284_v59  ;;  %v8725_v30 = vcombine.high %v548_v51, %v552_v13  ;;  %v8724_v40 = vcombine.low %v548_v51, %v552_v13  ;;  %v388_v27 = vld [vmem:[#allocation5 + $0xd0] sm:$0xff] }
 0x17c   : > { %4501 = vmatpush2.bf16.msra.mxu0 %v8874_v24  ;;  %v10293_v24 = vsub.s32 1, %v10284_v59 }
 0x17d   : > { %4502 = vmatprep.subr.bf16.mxu0 %v8867_v53  ;;  %16519 = vst [vmem:[#allocation81_spill] sm:$0xff] %v10289_v19  ;;  %v540_v53 = vld [vmem:[#allocation5 + $0x590] sm:$0xff]  ;;  %v10297_v16 = vrot.slane %v874_v12, %v10289_v19 }
 0x17e   : > { %4614 = vmatpush2.bf16.msra.mxu1 %v9002_v20  ;;  %16520 = vst [vmem:[#allocation82_spill] sm:$0xff] %v10293_v24  ;;  %v416_v20 = vld [vmem:[#allocation5 + $0x1b0] sm:$0xff] }
 0x17f   : > { %4615 = vmatprep.subr.bf16.mxu1 %v8995_v29  ;;  %4351 = vmatmul.mubr.bf16.gmra.mxu0 %v10120_v39  ;;  %v544_v29 = vld [vmem:[#allocation5 + $0x5b0] sm:$0xff]  ;;  %v8589_v34 = vcombine.high %v412_v38, %v416_v20  ;;  %v8588_v8 = vcombine.low %v412_v38, %v416_v20 }
 0x180   : > { %4503 = vmatpush2.bf16.msra.mxu0 %v8866_v15  ;;  %4506 = vmatprep.mubr.bf16.mxu0 %v10128_v0  ;;  %v10300_v15 = vrot.slane %v874_v12, %v10293_v24  ;;  %v3830_v0 = vpop.f32.mrf.mxu0  ;;  %v8716_v51 = vcombine.low %v540_v53, %v544_v29  ;;  %v524_v38 = vld [vmem:[#allocation5 + $0x510] sm:$0xff] }
 0x181   : > { %4464 = vmatmul.mubr.bf16.gmra.mxu1 %v10124_v48  ;;  %4504 = vmatprep.subr.bf16.mxu0 %v8859_v3  ;;  %v404_v3 = vld [vmem:[#allocation5 + $0x150] sm:$0xff]  ;;  %v3831_v19 = vadd.f32 %v3830_v0, %v10297_v16  ;;  %v3943_v48 = vpop.f32.mrf.mxu1 }
 0x182   : > { %4616 = vmatpush2.bf16.msra.mxu1 %v8994_v46  ;;  %4619 = vmatprep.mubr.bf16.mxu1 %v10131_v6  ;;  %v8717_v46 = vcombine.high %v540_v53, %v544_v29  ;;  %v532_v6 = vld [vmem:[#allocation5 + $0x550] sm:$0xff]  ;;  %v3832_v2 = vpop.f32.mrf.mxu0 }
 0x183   : > { %4617 = vmatprep.subr.bf16.mxu1 %v8987_v42  ;;  %v408_v42 = vld [vmem:[#allocation5 + $0x170] sm:$0xff]  ;;  %v3833_v12 = vadd.f32 %v3832_v2, %v10300_v15 }
 0x184   : > { %4505 = vmatpush2.bf16.msra.mxu0 %v8858_v62  ;;  %v536_v62 = vld [vmem:[#allocation5 + $0x570] sm:$0xff]  ;;  %v8581_v13 = vcombine.high %v404_v3, %v408_v42  ;;  %v3834_v39 = vpop.f32.mrf.mxu0 }
 0x185   : > { %4700 = vmatprep.subr.bf16.mxu0 %v8597_v50  ;;  %v3945_v50 = vpop.f32.mrf.mxu1  ;;  %v8709_v24 = vcombine.high %v532_v6, %v536_v62  ;;  %v396_v0 = vld [vmem:[#allocation5 + $0x110] sm:$0xff]  ;;  %v3835_v53 = vadd.f32 %v3834_v39, %v10297_v16 }
 0x186   : > { %4618 = vmatpush2.bf16.msra.mxu1 %v8986_v56  ;;  %v10305_v56 = vadd.f32 %v3943_v48, %v3831_v19  ;;  %v528_v20 = vld [vmem:[#allocation5 + $0x530] sm:$0xff]  ;;  %v8580_v19 = vcombine.low %v404_v3, %v408_v42  ;;  %v3836_v29 = vpop.f32.mrf.mxu0 }
 0x187   : > { %4813 = vmatprep.subr.bf16.mxu1 %v8725_v30  ;;  %4507 = vmatmul.mubr.bf16.vlgmr.msra.gmra.mxu0 %v10135_v26  ;;  %v16521_v30 = vld [vmem:[#allocation52_spill] sm:$0xff]  ;;  %v400_v26 = vld [vmem:[#allocation5 + $0x130] sm:$0xff]  ;;  %v3947_v48 = vpop.f32.mrf.mxu1  ;;  %v3837_v2 = vadd.f32 %v3836_v29, %v10300_v15 }
 0x188   : > { %4701 = vmatpush1.bf16.msra.mxu0 %v8596_v61  ;;  %4516 = vmatprep.mubr.bf16.mxu0 %v16521_v30  ;;  %v10310_v61 = vadd.f32 %v3945_v50, %v3833_v12  ;;  %v392_v12 = vld [vmem:[#allocation5 + $0xf0] sm:$0xff]  ;;  %v3840_v50 = vpop.f32.mrf.mxu0 }
 0x189   : > { %4620 = vmatmul.mubr.bf16.vlgmr.msra.gmra.mxu1 %v10140_v54  ;;  %4702 = vmatprep.subr.bf16.mxu0 %v8589_v34  ;;  %v16522_v54 = vld [vmem:[#allocation53_spill] sm:$0xff]  ;;  %v8573_v34 = vcombine.high %v396_v0, %v400_v26  ;;  %v3949_v30 = vpop.f32.mrf.mxu1  ;;  %v516_v39 = vld [vmem:[#allocation5 + $0x4d0] sm:$0xff]  ;;  %v3841_v42 = vadd.f32 %v3840_v50, %v10297_v16 }
 0x18a   : > { %4814 = vmatpush1.bf16.msra.mxu1 %v8724_v40  ;;  %4629 = vmatprep.mubr.bf16.mxu1 %v16522_v54  ;;  %v8708_v40 = vcombine.low %v532_v6, %v536_v62  ;;  %v8701_v54 = vcombine.high %v524_v38, %v528_v20  ;;  %v10317_v3 = vadd.f32 %v3949_v30, %v3837_v2  ;;  %v16524_v62 = vld [vmem:[#allocation55_spill] sm:$0xff]  ;;  %v16525_v30 = vld [vmem:[#allocation56_spill] sm:$0xff] }
 0x18b   : > { %4815 = vmatprep.subr.bf16.mxu1 %v8717_v46  ;;  %v10313_v46 = vadd.f32 %v3947_v48, %v3835_v53  ;;  %v3953_v6 = vpop.f32.mrf.mxu1  ;;  %v8565_v53 = vcombine.high %v388_v27, %v392_v12  ;;  %v380_v50 = vld [vmem:[#allocation5 + $0x90] sm:$0xff] }
 0x18c   : > { %4703 = vmatpush1.bf16.msra.mxu0 %v8588_v8  ;;  %v520_v8 = vld [vmem:[#allocation5 + $0x4f0] sm:$0xff]  ;;  %v10321_v48 = vadd.f32 %v3953_v6, %v3841_v42  ;;  %v8557_v42 = vcombine.high %v380_v50, %v384_v10 }
 0x18d   : > { %4704 = vmatprep.subr.bf16.mxu0 %v8581_v13  ;;  %v3842_v13 = vpop.f32.mrf.mxu0  ;;  %v8693_v2 = vcombine.high %v516_v39, %v520_v8 }
 0x18e   : > { %4816 = vmatpush1.bf16.msra.mxu1 %v8716_v51  ;;  %v8572_v51 = vcombine.low %v396_v0, %v400_v26  ;;  %v3843_v29 = vadd.f32 %v3842_v13, %v10300_v15  ;;  %v508_v26 = vld [vmem:[#allocation5 + $0x490] sm:$0xff] }
 0x18f   : > { %4817 = vmatprep.subr.bf16.mxu1 %v8709_v24  ;;  %4517 = vmatmul.mubr.bf16.gmra.mxu0 %v16523_v23  ;;  %v8700_v24 = vcombine.low %v524_v38, %v528_v20  ;;  %v3955_v23 = vpop.f32.mrf.mxu1  ;;  %v3844_v4 = vpop.f32.mrf.mxu0  ;;  %v512_v0 = vld [vmem:[#allocation5 + $0x4b0] sm:$0xff] }
 0x190   : > { %4705 = vmatpush1.bf16.msra.mxu0 %v8580_v19  ;;  %4526 = vmatprep.mubr.bf16.mxu0 %v16525_v30  ;;  %v10326_v19 = vadd.f32 %v3955_v23, %v3843_v29  ;;  %v3845_v38 = vadd.f32 %v3844_v4, %v10297_v16  ;;  %v376_v23 = vld [vmem:[#allocation5 + $0x70] sm:$0xff] }
 0x191   : > { %4630 = vmatmul.mubr.bf16.gmra.mxu1 %v16524_v62  ;;  %4706 = vmatprep.subr.bf16.mxu0 %v8573_v34  ;;  %v16526_v62 = vld [vmem:[#allocation57_spill] sm:$0xff]  ;;  %v3957_v20 = vpop.f32.mrf.mxu1  ;;  %v3846_v34 = vpop.f32.mrf.mxu0  ;;  %v500_v4 = vld [vmem:[#allocation5 + $0x450] sm:$0xff] }
 0x192   : > { %4818 = vmatpush1.bf16.msra.mxu1 %v8708_v40  ;;  %4639 = vmatprep.mubr.bf16.mxu1 %v16526_v62  ;;  %v8564_v40 = vcombine.low %v388_v27, %v392_v12  ;;  %v10329_v6 = vadd.f32 %v3957_v20, %v3845_v38  ;;  %v3847_v13 = vadd.f32 %v3846_v34, %v10300_v15 }
 0x193   : > { %4819 = vmatprep.subr.bf16.mxu1 %v8701_v54  ;;  %v8692_v54 = vcombine.low %v516_v39, %v520_v8  ;;  %v3959_v30 = vpop.f32.mrf.mxu1  ;;  %v8685_v62 = vcombine.high %v508_v26, %v512_v0  ;;  %v3850_v29 = vpop.f32.mrf.mxu0  ;;  %v16529_v8 = vld [vmem:[#allocation59_spill] sm:$0xff]  ;;  %v8549_v38 = vcombine.high %v372_v49, %v376_v23 }
 0x194   : > { %4707 = vmatpush1.bf16.msra.mxu0 %v8572_v51  ;;  %v504_v51 = vld [vmem:[#allocation5 + $0x470] sm:$0xff]  ;;  %v10333_v27 = vadd.f32 %v3959_v30, %v3847_v13  ;;  %v3851_v12 = vadd.f32 %v3850_v29, %v10297_v16  ;;  %v16531_v30 = vld [vmem:[#allocation60_spill] sm:$0xff] }
 0x195   : > { %4708 = vmatprep.subr.bf16.mxu0 %v8565_v53  ;;  %v3963_v39 = vpop.f32.mrf.mxu1  ;;  %v3852_v53 = vpop.f32.mrf.mxu0  ;;  %v8677_v13 = vcombine.high %v500_v4, %v504_v51  ;;  %v364_v29 = vld [vmem:[#allocation5 + $0x10] sm:$0xff] }
 0x196   : > { %4820 = vmatpush1.bf16.msra.mxu1 %v8700_v24  ;;  %16528 = vst [vmem:[#allocation83_spill] sm:$0xff] %v10333_v27  ;;  %v8556_v24 = vcombine.low %v380_v50, %v384_v10  ;;  %v10337_v20 = vadd.f32 %v3963_v39, %v3851_v12  ;;  %v3853_v34 = vadd.f32 %v3852_v53, %v10300_v15  ;;  %v492_v10 = vld [vmem:[#allocation5 + $0x410] sm:$0xff] }
 0x197   : > { %4821 = vmatprep.subr.bf16.mxu1 %v8693_v2  ;;  %4527 = vmatmul.mubr.bf16.gmra.mxu0 %v16527_v44  ;;  %v8684_v2 = vcombine.low %v508_v26, %v512_v0  ;;  %v3965_v44 = vpop.f32.mrf.mxu1  ;;  %v3854_v31 = vpop.f32.mrf.mxu0  ;;  %v496_v50 = vld [vmem:[#allocation5 + $0x430] sm:$0xff]  ;;  %v8541_v12 = vcombine.high %v364_v29, %v368_v60 }
 0x198   : > { %4709 = vmatpush1.bf16.msra.mxu0 %v8564_v40  ;;  %16530 = vst [vmem:[#allocation84_spill] sm:$0xff] %v10337_v20  ;;  %4536 = vmatprep.mubr.bf16.mxu0 %v16531_v30  ;;  %v10342_v40 = vadd.f32 %v3965_v44, %v3853_v34  ;;  %v3855_v26 = vadd.f32 %v3854_v31, %v10297_v16  ;;  %v488_v44 = vld [vmem:[#allocation5 + $0x3f0] sm:$0xff] }
 0x199   : > { %4640 = vmatmul.mubr.bf16.gmra.mxu1 %v16529_v8  ;;  %4710 = vmatprep.subr.bf16.mxu0 %v8557_v42  ;;  %v16532_v8 = vld [vmem:[#allocation61_spill] sm:$0xff]  ;;  %v3967_v0 = vpop.f32.mrf.mxu1  ;;  %v3856_v42 = vpop.f32.mrf.mxu0  ;;  %v612_v31 = vld [vmem:[#allocation5 + $0x7d0] sm:$0xff] }
 0x19a   : > { %4822 = vmatpush1.bf16.msra.mxu1 %v8692_v54  ;;  %4649 = vmatprep.mubr.bf16.mxu1 %v16532_v8  ;;  %16533 = vst [vmem:[#allocation85_spill] sm:$0xff] %v10342_v40  ;;  %v8548_v54 = vcombine.low %v372_v49, %v376_v23  ;;  %v10345_v39 = vadd.f32 %v3967_v0, %v3855_v26  ;;  %v10512_v40 = vld [vmem:[#allocation5 + $0x8f0] sm:$0xff] }
 0x19b   : > { %4823 = vmatprep.subr.bf16.mxu1 %v8685_v62  ;;  %v8676_v62 = vcombine.low %v500_v4, %v504_v51  ;;  %v3857_v53 = vadd.f32 %v3856_v42, %v10300_v15  ;;  %v3969_v30 = vpop.f32.mrf.mxu1  ;;  %v8669_v8 = vcombine.high %v492_v10, %v496_v50  ;;  %v3860_v34 = vpop.f32.mrf.mxu0  ;;  %v16537_v51 = vld [vmem:[#allocation63_spill] sm:$0xff]  ;;  %v8661_v26 = vcombine.high %v484_v17, %v488_v44 }
 0x19c   : > { %4711 = vmatpush1.bf16.msra.mxu0 %v8556_v24  ;;  %16534 = vst [vmem:[#allocation86_spill] sm:$0xff] %v10345_v39  ;;  %v616_v24 = vld [vmem:[#allocation5 + $0x7f0] sm:$0xff]  ;;  %v3861_v23 = vadd.f32 %v3860_v34, %v10297_v16 }
 0x19d   : > { %4712 = vmatprep.subr.bf16.mxu0 %v8549_v38  ;;  %v10349_v49 = vadd.f32 %v3969_v30, %v3857_v53  ;;  %v3973_v4 = vpop.f32.mrf.mxu1  ;;  %v3862_v38 = vpop.f32.mrf.mxu0  ;;  %v16539_v30 = vld [vmem:[#allocation64_spill] sm:$0xff]  ;;  %v8789_v53 = vcombine.high %v612_v31, %v616_v24  ;;  %v476_v34 = vld [vmem:[#allocation5 + $0x390] sm:$0xff] }
 0x19e   : > { %4824 = vmatpush1.bf16.msra.mxu1 %v8684_v2  ;;  %v8540_v2 = vcombine.low %v364_v29, %v368_v60  ;;  %v10353_v0 = vadd.f32 %v3973_v4, %v3861_v23  ;;  %v3863_v42 = vadd.f32 %v3862_v38, %v10300_v15  ;;  %v604_v60 = vld [vmem:[#allocation5 + $0x790] sm:$0xff]  ;;  %v8653_v23 = vcombine.high %v476_v34, %v480_v5 }
 0x19f   : > { %4825 = vmatprep.subr.bf16.mxu1 %v8677_v13  ;;  %4537 = vmatmul.mubr.bf16.gmra.mxu0 %v16535_v14  ;;  %16536 = vst [vmem:[#allocation87_spill] sm:$0xff] %v10349_v49  ;;  %v8668_v13 = vcombine.low %v492_v10, %v496_v50  ;;  %v3975_v14 = vpop.f32.mrf.mxu1  ;;  %v3864_v1 = vpop.f32.mrf.mxu0  ;;  %v608_v29 = vld [vmem:[#allocation5 + $0x7b0] sm:$0xff] }
 0x1a0   : > { %4713 = vmatpush1.bf16.msra.mxu0 %v8548_v54  ;;  %16538 = vst [vmem:[#allocation88_spill] sm:$0xff] %v10353_v0  ;;  %4546 = vmatprep.mubr.bf16.mxu0 %v16539_v30  ;;  %v10358_v54 = vadd.f32 %v3975_v14, %v3863_v42  ;;  %v3865_v10 = vadd.f32 %v3864_v1, %v10297_v16  ;;  %v472_v14 = vld [vmem:[#allocation5 + $0x370] sm:$0xff] }
 0x1a1   : > { %4650 = vmatmul.mubr.bf16.gmra.mxu1 %v16537_v51  ;;  %4714 = vmatprep.subr.bf16.mxu0 %v8541_v12  ;;  %v16540_v51 = vld [vmem:[#allocation65_spill] sm:$0xff]  ;;  %v3977_v50 = vpop.f32.mrf.mxu1  ;;  %v3866_v12 = vpop.f32.mrf.mxu0  ;;  %v596_v1 = vld [vmem:[#allocation5 + $0x750] sm:$0xff] }
 0x1a2   : > { %4826 = vmatpush1.bf16.msra.mxu1 %v8676_v62  ;;  %4659 = vmatprep.mubr.bf16.mxu1 %v16540_v51  ;;  %16541 = vst [vmem:[#allocation89_spill] sm:$0xff] %v10358_v54  ;;  %v8660_v62 = vcombine.low %v484_v17, %v488_v44  ;;  %v10361_v4 = vadd.f32 %v3977_v50, %v3865_v10  ;;  %v16543_v54 = vld [vmem:[#allocation66_spill] sm:$0xff]  ;;  %v10487_v49 = vld [vmem:[#allocation5 + $0xd70] sm:$0xff] }
 0x1a3   : > { %4827 = vmatprep.subr.bf16.mxu1 %v8669_v8  ;;  %v8788_v8 = vcombine.low %v612_v31, %v616_v24  ;;  %v3867_v38 = vadd.f32 %v3866_v12, %v10300_v15  ;;  %v3979_v30 = vpop.f32.mrf.mxu1  ;;  %v8781_v51 = vcombine.high %v604_v60, %v608_v29  ;;  %v3870_v42 = vpop.f32.mrf.mxu0  ;;  %v16545_v24 = vld [vmem:[#allocation67_spill] sm:$0xff]  ;;  %v8645_v10 = vcombine.high %v468_v47, %v472_v14 }
 0x1a4   : > { %4715 = vmatpush1.bf16.msra.mxu0 %v8540_v2  ;;  %16542 = vst [vmem:[#allocation90_spill] sm:$0xff] %v10361_v4  ;;  %v600_v2 = vld [vmem:[#allocation5 + $0x770] sm:$0xff]  ;;  %v3871_v44 = vadd.f32 %v3870_v42, %v10297_v16 }
 0x1a5   : > { %4716 = vmatprep.subr.bf16.mxu0 %v8661_v26  ;;  %v10365_v17 = vadd.f32 %v3979_v30, %v3867_v38  ;;  %v3983_v31 = vpop.f32.mrf.mxu1  ;;  %v3872_v26 = vpop.f32.mrf.mxu0  ;;  %v16547_v30 = vld [vmem:[#allocation68_spill] sm:$0xff]  ;;  %v8773_v38 = vcombine.high %v596_v1, %v600_v2  ;;  %v460_v42 = vld [vmem:[#allocation5 + $0x310] sm:$0xff] }
 0x1a6   : > { %4828 = vmatpush1.bf16.msra.mxu1 %v8668_v13  ;;  %v8652_v13 = vcombine.low %v476_v34, %v480_v5  ;;  %v10369_v50 = vadd.f32 %v3983_v31, %v3871_v44  ;;  %v3873_v12 = vadd.f32 %v3872_v26, %v10300_v15  ;;  %v588_v5 = vld [vmem:[#allocation5 + $0x710] sm:$0xff] }
 0x1a7   : > { %4829 = vmatprep.subr.bf16.mxu1 %v8789_v53  ;;  %4547 = vmatmul.mubr.bf16.gmra.mxu0 %v16543_v54  ;;  %16544 = vst [vmem:[#allocation91_spill] sm:$0xff] %v10365_v17  ;;  %v8780_v53 = vcombine.low %v604_v60, %v608_v29  ;;  %v3985_v54 = vpop.f32.mrf.mxu1  ;;  %v464_v17 = vld [vmem:[#allocation5 + $0x330] sm:$0xff]  ;;  %v3874_v4 = vpop.f32.mrf.mxu0 }
 0x1a8   : > { %4717 = vmatpush2.bf16.msra.mxu0 %v8660_v62  ;;  %16546 = vst [vmem:[#allocation92_spill] sm:$0xff] %v10369_v50  ;;  %4556 = vmatprep.mubr.bf16.mxu0 %v16547_v30  ;;  %v592_v34 = vld [vmem:[#allocation5 + $0x730] sm:$0xff]  ;;  %v10374_v62 = vadd.f32 %v3985_v54, %v3873_v12  ;;  %v3875_v60 = vadd.f32 %v3874_v4, %v10297_v16 }
 0x1a9   : > { %4660 = vmatmul.mubr.bf16.gmra.mxu1 %v16545_v24  ;;  %4718 = vmatprep.subr.bf16.mxu0 %v8653_v23  ;;  %v16548_v24 = vld [vmem:[#allocation69_spill] sm:$0xff]  ;;  %v3987_v29 = vpop.f32.mrf.mxu1  ;;  %v3876_v23 = vpop.f32.mrf.mxu0  ;;  %v8637_v44 = vcombine.high %v460_v42, %v464_v17  ;;  %v452_v50 = vld [vmem:[#allocation5 + $0x2d0] sm:$0xff] }
 0x1aa   : > { %4830 = vmatpush2.bf16.msra.mxu1 %v8788_v8  ;;  %4669 = vmatprep.mubr.bf16.mxu1 %v16548_v24  ;;  %16549 = vst [vmem:[#allocation93_spill] sm:$0xff] %v10374_v62  ;;  %v8644_v8 = vcombine.low %v468_v47, %v472_v14  ;;  %v10377_v31 = vadd.f32 %v3987_v29, %v3875_v60  ;;  %v456_v54 = vld [vmem:[#allocation5 + $0x2f0] sm:$0xff]  ;;  %v16551_v62 = vld [vmem:[#allocation70_spill] sm:$0xff] }
 0x1ab   : > { %4831 = vmatprep.subr.bf16.mxu1 %v8781_v51  ;;  %v8772_v51 = vcombine.low %v596_v1, %v600_v2  ;;  %v3877_v26 = vadd.f32 %v3876_v23, %v10300_v15  ;;  %v3989_v30 = vpop.f32.mrf.mxu1  ;;  %v8765_v24 = vcombine.high %v588_v5, %v592_v34  ;;  %v3880_v12 = vpop.f32.mrf.mxu0  ;;  %v580_v4 = vld [vmem:[#allocation5 + $0x6d0] sm:$0xff]  ;;  %v8629_v60 = vcombine.high %v452_v50, %v456_v54 }
 0x1ac   : > { %4719 = vmatpush2.bf16.msra.mxu0 %v8652_v13  ;;  %16550 = vst [vmem:[#allocation94_spill] sm:$0xff] %v10377_v31  ;;  %v584_v13 = vld [vmem:[#allocation5 + $0x6f0] sm:$0xff]  ;;  %v3881_v14 = vadd.f32 %v3880_v12, %v10297_v16 }
 0x1ad   : > { %4720 = vmatprep.subr.bf16.mxu0 %v8645_v10  ;;  %v10381_v47 = vadd.f32 %v3989_v30, %v3877_v26  ;;  %v3993_v1 = vpop.f32.mrf.mxu1  ;;  %v16553_v2 = vld [vmem:[#allocation71_spill] sm:$0xff]  ;;  %v3882_v10 = vpop.f32.mrf.mxu0  ;;  %v16555_v30 = vld [vmem:[#allocation72_spill] sm:$0xff]  ;;  %v8757_v26 = vcombine.high %v580_v4, %v584_v13 }
 0x1ae   : > { %4832 = vmatpush2.bf16.msra.mxu1 %v8780_v53  ;;  %v8636_v53 = vcombine.low %v460_v42, %v464_v17  ;;  %v10385_v29 = vadd.f32 %v3993_v1, %v3881_v14  ;;  %v3883_v23 = vadd.f32 %v3882_v10, %v10300_v15  ;;  %v10389_v12 = vld [vmem:[#allocation5 + $0x290] sm:$0xff]  ;;  %v16556_v17 = vld [vmem:[#allocation73_spill] sm:$0xff] }
 0x1af   : > { %4833 = vmatprep.subr.bf16.mxu1 %v8773_v38  ;;  %4557 = vmatmul.mubr.bf16.gmra.mxu0 %v16551_v62  ;;  %16552 = vst [vmem:[#allocation95_spill] sm:$0xff] %v10381_v47  ;;  %v8764_v38 = vcombine.low %v588_v5, %v592_v34  ;;  %v3995_v62 = vpop.f32.mrf.mxu1  ;;  %v10391_v47 = vld [vmem:[#allocation5 + $0x2b0] sm:$0xff] }
 0x1b0   : > { %4721 = vmatpush2.bf16.msra.mxu0 %v8644_v8  ;;  %16554 = vst [vmem:[#allocation96_spill] sm:$0xff] %v10385_v29  ;;  %4566 = vmatprep.mubr.bf16.mxu0 %v16555_v30  ;;  %v3884_v8 = vpop.f32.mrf.mxu0  ;;  %v10394_v42 = vld [vmem:[#allocation5 + $0x690] sm:$0xff]  ;;  %v10398_v34 = vadd.f32 %v3995_v62, %v3883_v23  ;;  %v8756_v30 = vcombine.low %v580_v4, %v584_v13  ;;  %v16559_v13 = vld [vmem:[#allocation74_spill] sm:$0xff] }
 0x1b1   : > { %4670 = vmatmul.mubr.bf16.gmra.mxu1 %v16553_v2  ;;  %4722 = vmatprep.subr.bf16.mxu0 %v8637_v44  ;;  %v10396_v5 = vld [vmem:[#allocation5 + $0x6b0] sm:$0xff]  ;;  %v3997_v44 = vpop.f32.mrf.mxu1 }
 0x1b2   : > { %4834 = vmatpush2.bf16.msra.mxu1 %v8772_v51  ;;  %4679 = vmatprep.mubr.bf16.mxu1 %v16556_v17  ;;  %16557 = vst [vmem:[#allocation97_spill] sm:$0xff] %v10398_v34  ;;  %v3885_v51 = vadd.f32 %v3884_v8, %v10297_v16  ;;  %v10401_v14 = vld [vmem:[#allocation5 + $0x250] sm:$0xff]  ;;  %v3886_v10 = vpop.f32.mrf.mxu0  ;;  %v8621_v17 = vcombine.high %v10389_v12, %v10391_v47 }
 0x1b3   : > { %4835 = vmatprep.subr.bf16.mxu1 %v8765_v24  ;;  %v8628_v24 = vcombine.low %v452_v50, %v456_v54  ;;  %v10403_v1 = vld [vmem:[#allocation5 + $0x270] sm:$0xff]  ;;  %v3887_v23 = vadd.f32 %v3886_v10, %v10300_v15  ;;  %v3999_v8 = vpop.f32.mrf.mxu1  ;;  %v8749_v50 = vcombine.high %v10394_v42, %v10396_v5 }
 0x1b4   : > { %4723 = vmatpush2.bf16.msra.mxu0 %v8636_v53  ;;  %v10407_v2 = vld [vmem:[#allocation5 + $0x650] sm:$0xff]  ;;  %v10409_v62 = vadd.f32 %v3997_v44, %v3885_v51  ;;  %v3890_v4 = vpop.f32.mrf.mxu0  ;;  %v8748_v51 = vcombine.low %v10394_v42, %v10396_v5 }
 0x1b5   : > { %4724 = vmatprep.subr.bf16.mxu0 %v8629_v60  ;;  %v10414_v54 = vld [vmem:[#allocation5 + $0x670] sm:$0xff]  ;;  %v8620_v60 = vcombine.low %v10389_v12, %v10391_v47  ;;  %v10429_v10 = vadd.f32 %v3999_v8, %v3887_v23  ;;  %v4003_v34 = vpop.f32.mrf.mxu1 }
 0x1b6   : > { %4836 = vmatpush2.bf16.msra.mxu1 %v8764_v38  ;;  %16558 = vst [vmem:[#allocation98_spill] sm:$0xff] %v10409_v62  ;;  %v10416_v53 = vld [vmem:[#allocation5 + $0x210] sm:$0xff]  ;;  %v3891_v62 = vadd.f32 %v3890_v4, %v10297_v16  ;;  %v3892_v5 = vpop.f32.mrf.mxu0  ;;  %v8741_v8 = vcombine.high %v10407_v2, %v10414_v54 }
 0x1b7   : > { %4837 = vmatprep.subr.bf16.mxu1 %v8757_v26  ;;  %v10418_v38 = vld [vmem:[#allocation5 + $0x230] sm:$0xff]  ;;  %4567 = vmatmul.mubr.bf16.gmra.mxu0 %v16559_v13  ;;  %v8613_v26 = vcombine.high %v10401_v14, %v10403_v1  ;;  %16560 = vst [vmem:[#allocation99_spill] sm:$0xff] %v10429_v10 }
 0x1b8   : > { %v10427_v44 = vld [vmem:[#allocation5 + $0x610] sm:$0xff]  ;;  %4725 = vmatpush2.bf16.msra.mxu0 %v8628_v24  ;;  %v10453_v10 = vadd.f32 %v4003_v34, %v3891_v62  ;;  %4576 = vmatprep.mubr.bf16.mxu0 %v10240_v36  ;;  %v3894_v0 = vpop.f32.mrf.mxu0 }
 0x1b9   : > { %v16561_v29 = vld [vmem:[#allocation75_spill] sm:$0xff]  ;;  %4726 = vmatprep.subr.bf16.mxu0 %v8621_v17  ;;  %v4005_v17 = vpop.f32.mrf.mxu1 }
 0x1ba   : > { %4680 = vmatmul.mubr.bf16.gmra.mxu1 %v16561_v29  ;;  %v10435_v47 = vld [vmem:[#allocation5 + $0x630] sm:$0xff]  ;;  %16562 = vst [vmem:[#allocation100_spill] sm:$0xff] %v10453_v10  ;;  %v3896_v22 = vpop.f32.mrf.mxu0 }
 0x1bb   : > { %v10437_v12 = vld [vmem:[#allocation5 + $0x9d0] sm:$0xff]  ;;  %4838 = vmatpush2.bf16.msra.mxu1 %v8756_v30  ;;  %v3893_v30 = vadd.f32 %v3892_v5, %v10300_v15  ;;  %4689 = vmatprep.mubr.bf16.mxu1 %v10243_v28  ;;  %v8733_v62 = vcombine.high %v10427_v44, %v10435_v47  ;;  %v3895_v28 = vadd.f32 %v3894_v0, %v10297_v16  ;;  %v4007_v34 = vpop.f32.mrf.mxu1 }
 0x1bc   : > { %v10439_v42 = vld [vmem:[#allocation5 + $0x9f0] sm:$0xff]  ;;  %4839 = vmatprep.subr.bf16.mxu1 %v8749_v50  ;;  %4727 = vmatpush2.bf16.msra.mxu0 %v8620_v60  ;;  %v3897_v50 = vadd.f32 %v3896_v22, %v10300_v15  ;;  %v16566_v22 = vcombine.low %v10401_v14, %v10403_v1 }
 0x1bd   : > { %v10447_v4 = vld [vmem:[#allocation5 + $0xdd0] sm:$0xff]  ;;  %v10480_v35 = vadd.f32 %v4005_v17, %v3893_v30  ;;  %4728 = vmatprep.subr.bf16.mxu0 %v8613_v26  ;;  %v10501_v55 = vadd.f32 %v4007_v34, %v3895_v28 }
 0x1be   : > { %v10449_v13 = vld [vmem:[#allocation5 + $0xdf0] sm:$0xff]  ;;  %v3900_v30 = vpop.f32.mrf.mxu0 }
 0x1bf   : > { %v10451_v29 = vld [vmem:[#allocation5 + $0x990] sm:$0xff]  ;;  %16563 = vst [vmem:[#allocation101_spill] sm:$0xff] %v10480_v35  ;;  %4840 = vmatpush2.bf16.msra.mxu1 %v8748_v51  ;;  %16564 = vst [vmem:[#allocation102_spill] sm:$0xff] %v10501_v55  ;;  %v4009_v35 = vpop.f32.mrf.mxu1  ;;  %4577 = vmatmul.mubr.bf16.gmra.mxu0 %v10248_v9  ;;  %v3901_v55 = vadd.f32 %v3900_v30, %v10297_v16  ;;  %v16570_v30 = vcombine.high %v10416_v53, %v10418_v38 }
 0x1c0   : > { %v10459_v31 = vld [vmem:[#allocation5 + $0x9b0] sm:$0xff]  ;;  %4841 = vmatprep.subr.bf16.mxu1 %v8741_v8  ;;  %v10525_v51 = vadd.f32 %v4009_v35, %v3897_v50  ;;  %4729 = vmatpush2.bf16.msra.mxu0 %v16566_v22  ;;  %v16569_v35 = vcombine.low %v10407_v2, %v10414_v54  ;;  %v3902_v50 = vpop.f32.mrf.mxu0 }
 0x1c1   : > { %v10461_v24 = vld [vmem:[#allocation5 + $0xd90] sm:$0xff]  ;;  %v4013_v18 = vpop.f32.mrf.mxu1  ;;  %4730 = vmatprep.subr.bf16.mxu0 %v16570_v30  ;;  %4732 = vmatprep.mubr.bf16.mxu0 %v9990_v58 }
 0x1c2   : > { %v10474_v23 = vld [vmem:[#allocation5 + $0x950] sm:$0xff]  ;;  %16565 = vst [vmem:[#allocation103_spill] sm:$0xff] %v10525_v51  ;;  %4690 = vmatmul.mubr.bf16.gmra.mxu1 %v10250_v37  ;;  %v10558_v54 = vadd.f32 %v4013_v18, %v3901_v55  ;;  %v3904_v11 = vpop.f32.mrf.mxu0  ;;  %v16573_v55 = vcombine.low %v10416_v53, %v10418_v38  ;;  %v16575_v53 = vcombine.high %v10437_v12, %v10439_v42 }
 0x1c3   : > { %v10476_v36 = vld [vmem:[#allocation5 + $0x970] sm:$0xff]  ;;  %4842 = vmatpush2.bf16.msra.mxu1 %v16569_v35  ;;  %v3903_v35 = vadd.f32 %v3902_v50, %v10300_v15  ;;  %v4015_v30 = vpop.f32.mrf.mxu1  ;;  %4845 = vmatprep.mubr.bf16.mxu1 %v10000_v63  ;;  %v3905_v63 = vadd.f32 %v3904_v11, %v10297_v16  ;;  %v16574_v11 = vcombine.low %v10427_v44, %v10435_v47 }
 0x1c4   : > { %v10478_v10 = vld [vmem:[#allocation5 + $0xd50] sm:$0xff]  ;;  %16571 = vst [vmem:[#allocation106_spill] sm:$0xff] %v10558_v54  ;;  %4843 = vmatprep.subr.bf16.mxu1 %v8733_v62  ;;  %4731 = vmatpush2.bf16.msra.mxu0 %v16573_v55  ;;  %v3906_v16 = vpop.f32.mrf.mxu0 }
 0x1c5   : > { %v10489_v5 = vld [vmem:[#allocation5 + $0x910] sm:$0xff]  ;;  %v10585_v20 = vadd.f32 %v4015_v30, %v3903_v35  ;;  %v4017_v18 = vpop.f32.mrf.mxu1  ;;  %4926 = vmatprep.subr.bf16.mxu0 %v16575_v53  ;;  %v3907_v44 = vadd.f32 %v3906_v16, %v10300_v15  ;;  %v16581_v15 = vcombine.low %v10437_v12, %v10439_v42  ;;  %v16587_v12 = vcombine.high %v10461_v24, %v10463_v43 }
 0x1c6   : > { %v10491_v39 = vld [vmem:[#allocation5 + $0x930] sm:$0xff]  ;;  %v10615_v62 = vadd.f32 %v4017_v18, %v3905_v63 }
 0x1c7   : > { %v10499_v17 = vld [vmem:[#allocation5 + $0xd10] sm:$0xff]  ;;  %16572 = vst [vmem:[#allocation107_spill] sm:$0xff] %v10585_v20  ;;  %4844 = vmatpush2.bf16.msra.mxu1 %v16574_v11  ;;  %v4019_v47 = vpop.f32.mrf.mxu1  ;;  %v16577_v11 = vcombine.high %v10447_v4, %v10449_v13  ;;  %v4056_v63 = vpop.f32.mrf.mxu0  ;;  %4733 = vmatmul.mubr.bf16.vlgmr.msra.gmra.mxu0 %v10006_v21 }
 0x1c8   : > { %v10508_v0 = vld [vmem:[#allocation5 + $0xd30] sm:$0xff]  ;;  %16576 = vst [vmem:[#allocation108_spill] sm:$0xff] %v10615_v62  ;;  %v10642_v53 = vadd.f32 %v4019_v47, %v3907_v44  ;;  %v4057_v62 = vadd.f32 %v4056_v63, %v10305_v56  ;;  %4927 = vmatpush1.bf16.msra.mxu0 %v16581_v15  ;;  %v16585_v44 = vcombine.low %v10447_v4, %v10449_v13 }
 0x1c9   : > { %v10510_v60 = vld [vmem:[#allocation5 + $0x8d0] sm:$0xff]  ;;  %5039 = vmatprep.subr.bf16.mxu1 %v16577_v11  ;;  %v4169_v20 = vpop.f32.mrf.mxu1  ;;  %v4058_v56 = vpop.f32.mrf.mxu0  ;;  %v16586_v47 = vcombine.high %v10451_v29, %v10459_v31  ;;  %4742 = vmatprep.mubr.bf16.mxu0 %v10016_v32 }
 0x1ca   : > { %v10523_v26 = vld [vmem:[#allocation5 + $0xcd0] sm:$0xff]  ;;  %16580 = vst [vmem:[#allocation111_spill] sm:$0xff] %v10642_v53  ;;  %4846 = vmatmul.mubr.bf16.vlgmr.msra.gmra.mxu1 %v10012_v25  ;;  %v10675_v4 = vadd.f32 %v4169_v20, %v4057_v62  ;;  %v16590_v62 = vcombine.low %v10451_v29, %v10459_v31  ;;  %v16593_v31 = vcombine.high %v10474_v23, %v10476_v36 }
 0x1cb   : > { %v10534_v8 = vld [vmem:[#allocation5 + $0xcf0] sm:$0xff]  ;;  %5040 = vmatpush1.bf16.msra.mxu1 %v16585_v44  ;;  %4928 = vmatprep.subr.bf16.mxu0 %v16586_v47  ;;  %v4059_v44 = vadd.f32 %v4058_v56, %v10310_v61  ;;  %v4171_v47 = vpop.f32.mrf.mxu1  ;;  %v4060_v20 = vpop.f32.mrf.mxu0 }
 0x1cc   : > { %v10536_v9 = vld [vmem:[#allocation5 + $0x890] sm:$0xff]  ;;  %5041 = vmatprep.subr.bf16.mxu1 %v16587_v12  ;;  %4855 = vmatprep.mubr.bf16.mxu1 %v10019_v33  ;;  %v4061_v33 = vadd.f32 %v4060_v20, %v10313_v46  ;;  %v16592_v46 = vcombine.low %v10461_v24, %v10463_v43 }
 0x1cd   : > { %16567 = vst [vmem:[#allocation104_spill] sm:$0xff] %v10536_v9  ;;  %v10538_v34 = vld [vmem:[#allocation5 + $0x8b0] sm:$0xff]  ;;  %v4173_v61 = vpop.f32.mrf.mxu1  ;;  %4929 = vmatpush1.bf16.msra.mxu0 %v16590_v62 }
 0x1ce   : > { %16568 = vst [vmem:[#allocation105_spill] sm:$0xff] %v10538_v34  ;;  %v10552_v28 = vld [vmem:[#allocation5 + $0xc90] sm:$0xff]  ;;  %4930 = vmatprep.subr.bf16.mxu0 %v16593_v31  ;;  %v10737_v43 = vadd.f32 %v4173_v61, %v4061_v33 }
 0x1cf   : > { %v10554_v37 = vld [vmem:[#allocation5 + $0xcb0] sm:$0xff]  ;;  %5042 = vmatpush1.bf16.msra.mxu1 %v16592_v46  ;;  %v4175_v24 = vpop.f32.mrf.mxu1  ;;  %v16597_v46 = vcombine.high %v10478_v10, %v10487_v49  ;;  %4743 = vmatmul.mubr.bf16.gmra.mxu0 %v10024_v41 }
 0x1d0   : > { %v10556_v2 = vld [vmem:[#allocation5 + $0x850] sm:$0xff]  ;;  %16596 = vst [vmem:[#allocation120_spill] sm:$0xff] %v10737_v43  ;;  %4752 = vmatprep.mubr.bf16.mxu0 %v10032_v52  ;;  %v10825_v52 = vld [vmem:[#allocation5 + $0x198] sm:$0xff] }
 0x1d1   : > { %v10564_v1 = vld [vmem:[#allocation5 + $0x870] sm:$0xff]  ;;  %5043 = vmatprep.subr.bf16.mxu1 %v16597_v46  ;;  %v16603_v46 = vcombine.high %v10489_v5, %v10491_v39  ;;  %16612 = vst [vmem:[#allocation131_spill] sm:$0xff] %v10825_v52 }
 0x1d2   : > { %v10566_v22 = vld [vmem:[#allocation5 + $0xc50] sm:$0xff]  ;;  %4856 = vmatmul.mubr.bf16.gmra.mxu1 %v10028_v45 }
 0x1d3   : > { %v10568_v51 = vld [vmem:[#allocation5 + $0xc70] sm:$0xff]  ;;  %4865 = vmatprep.mubr.bf16.mxu1 %v10035_v57  ;;  %v16614_v57 = vcombine.low %v10489_v5, %v10491_v39  ;;  %v16618_v39 = vcombine.high %v10510_v60, %v10512_v40  ;;  %v9565_v5 = vld [vmem:[#allocation7] sm:$0xff] }
 0x1d4   : > { %v10579_v14 = vld [vmem:[#allocation5 + $0x810] sm:$0xff] }
 0x1d5   : > { %v10581_v58 = vld [vmem:[#allocation5 + $0x830] sm:$0xff] }
 0x1d6   : > { %v10583_v54 = vld [vmem:[#allocation5 + $0xc10] sm:$0xff] }
 0x1d7   : > { %v10595_v34 = vld [vmem:[#allocation5 + $0xc30] sm:$0xff]  ;;  %4753 = vmatmul.mubr.bf16.gmra.mxu0 %v10040_v7 }
 0x1d8   : > { %v10597_v9 = vld [vmem:[#allocation5 + $0xbd0] sm:$0xff] }
 0x1d9   : > { %v10599_v27 = vld [vmem:[#allocation5 + $0xbf0] sm:$0xff] }
 0x1da   : > { %v10613_v55 = vld [vmem:[#allocation5 + $0xfd0] sm:$0xff] }
 0x1db   : > { %v10625_v35 = vld [vmem:[#allocation5 + $0xff0] sm:$0xff] }
 0x1dc   : > { %v10627_v30 = vld [vmem:[#allocation5 + $0xb90] sm:$0xff] }
 0x1dd   : > { %16578 = vst [vmem:[#allocation109_spill] sm:$0xff] %v10627_v30  ;;  %v10629_v50 = vld [vmem:[#allocation5 + $0xbb0] sm:$0xff]  ;;  %v10705_v30 = vadd.f32 %v4171_v47, %v4059_v44  ;;  %v4062_v44 = vpop.f32.mrf.mxu0 }
 0x1de   : > { %16579 = vst [vmem:[#allocation110_spill] sm:$0xff] %v10629_v50  ;;  %v10640_v38 = vld [vmem:[#allocation5 + $0xf90] sm:$0xff]  ;;  %v4063_v33 = vadd.f32 %v4062_v44, %v10317_v3  ;;  %v16598_v3 = vcombine.low %v10474_v23, %v10476_v36  ;;  %v16602_v23 = vcombine.low %v10478_v10, %v10487_v49  ;;  %v10812_v44 = vsub.s32 3, %v10284_v59 }
 0x1df   : > { %v10651_v16 = vld [vmem:[#allocation5 + $0xfb0] sm:$0xff]  ;;  %v4066_v61 = vpop.f32.mrf.mxu0 }
 0x1e0   : > { %16582 = vst [vmem:[#allocation112_spill] sm:$0xff] %v10651_v16  ;;  %v10653_v21 = vld [vmem:[#allocation5 + $0xb50] sm:$0xff]  ;;  %4931 = vmatpush1.bf16.msra.mxu0 %v16598_v3  ;;  %v10780_v45 = vadd.f32 %v4175_v24, %v4063_v33  ;;  %v4067_v36 = vadd.f32 %v4066_v61, %v10321_v48  ;;  %5044 = vmatpush1.bf16.msra.mxu1 %v16602_v23  ;;  %v10796_v24 = vld [vmem:[#allocation5 + $0x1d8] sm:$0xff]  ;;  %16610 = vst [vmem:[#allocation129_spill] sm:$0xff] %v10812_v44 }
 0x1e1   : > { %16583 = vst [vmem:[#allocation113_spill] sm:$0xff] %v10653_v21  ;;  %v10655_v11 = vld [vmem:[#allocation5 + $0xb70] sm:$0xff]  ;;  %v4068_v3 = vpop.f32.mrf.mxu0  ;;  %4932 = vmatprep.subr.bf16.mxu0 %v16603_v46  ;;  %16606 = vst [vmem:[#allocation126_spill] sm:$0xff] %v10796_v24  ;;  %v10798_v48 = vld [vmem:[#allocation5 + $0x1f8] sm:$0xff]  ;;  %v16608_v33 = vcombine.high %v10499_v17, %v10508_v0 }
 0x1e2   : > { %16584 = vst [vmem:[#allocation114_spill] sm:$0xff] %v10655_v11  ;;  %v10669_v15 = vld [vmem:[#allocation5 + $0xf50] sm:$0xff]  ;;  %16601 = vst [vmem:[#allocation123_spill] sm:$0xff] %v10780_v45  ;;  %v4069_v49 = vadd.f32 %v4068_v3, %v10326_v19  ;;  %v10809_v23 = vld [vmem:[#allocation5 + $0x5d8] sm:$0xff] }
 0x1e3   : > { %v10671_v18 = vld [vmem:[#allocation5 + $0xf70] sm:$0xff]  ;;  %16607 = vst [vmem:[#allocation127_spill] sm:$0xff] %v10798_v48  ;;  %5045 = vmatprep.subr.bf16.mxu1 %v16608_v33  ;;  %16609 = vst [vmem:[#allocation128_spill] sm:$0xff] %v10809_v23  ;;  %v4070_v19 = vpop.f32.mrf.mxu0  ;;  %v10823_v46 = vld [vmem:[#allocation5 + $0x5f8] sm:$0xff] }
 0x1e4   : > { %v10673_v13 = vld [vmem:[#allocation5 + $0xb10] sm:$0xff]  ;;  %16611 = vst [vmem:[#allocation130_spill] sm:$0xff] %v10823_v46  ;;  %4933 = vmatpush1.bf16.msra.mxu0 %v16614_v57  ;;  %v10856_v33 = vld [vmem:[#allocation5 + $0x158] sm:$0xff] }
 0x1e5   : > { %v10684_v42 = vld [vmem:[#allocation5 + $0xb30] sm:$0xff]  ;;  %v4072_v57 = vpop.f32.mrf.mxu0  ;;  %4934 = vmatprep.subr.bf16.mxu0 %v16618_v39  ;;  %16620 = vst [vmem:[#allocation136_spill] sm:$0xff] %v10856_v33  ;;  %v10872_v61 = vld [vmem:[#allocation5 + $0x558] sm:$0xff]  ;;  %v16660_v33 = vcombine.high %v10566_v22, %v10568_v51 }
 0x1e6   : > { %v10686_v25 = vld [vmem:[#allocation5 + $0xf10] sm:$0xff]  ;;  %16624 = vst [vmem:[#allocation139_spill] sm:$0xff] %v10872_v61  ;;  %v10887_v39 = vld [vmem:[#allocation5 + $0x138] sm:$0xff] }
 0x1e7   : > { %v10688_v53 = vld [vmem:[#allocation5 + $0xf30] sm:$0xff]  ;;  %v4076_v48 = vpop.f32.mrf.mxu0  ;;  %16627 = vst [vmem:[#allocation142_spill] sm:$0xff] %v10887_v39  ;;  %v10937_v61 = vld [vmem:[#allocation5 + $0x4b8] sm:$0xff] }
 0x1e8   : > { %16588 = vst [vmem:[#allocation115_spill] sm:$0xff] %v10688_v53  ;;  %v10699_v63 = vld [vmem:[#allocation5 + $0xad0] sm:$0xff]  ;;  %16647 = vst [vmem:[#allocation148_spill] sm:$0xff] %v10937_v61  ;;  %v11072_v61 = vld [vmem:[#allocation5 + $0x358] sm:$0xff] }
 0x1e9   : > { %v10701_v32 = vld [vmem:[#allocation5 + $0xaf0] sm:$0xff]  ;;  %16682 = vst [vmem:[#allocation161_spill] sm:$0xff] %v11072_v61  ;;  %v16697_v61 = vld [vmem:[#allocation110_spill] sm:$0xff] }
 0x1ea   : > { %16589 = vst [vmem:[#allocation116_spill] sm:$0xff] %v10701_v32  ;;  %v10703_v50 = vld [vmem:[#allocation5 + $0xed0] sm:$0xff]  ;;  %v4179_v32 = vpop.f32.mrf.mxu1 }
 0x1eb   : > { %v10715_v11 = vld [vmem:[#allocation5 + $0xef0] sm:$0xff] }
 0x1ec   : > { %16591 = vst [vmem:[#allocation117_spill] sm:$0xff] %v10715_v11  ;;  %v10717_v21 = vld [vmem:[#allocation5 + $0xa90] sm:$0xff]  ;;  %v4181_v10 = vpop.f32.mrf.mxu1 }
 0x1ed   : > { %v10719_v16 = vld [vmem:[#allocation5 + $0xab0] sm:$0xff] }
 0x1ee   : > { %v10733_v62 = vld [vmem:[#allocation5 + $0xe90] sm:$0xff] }
 0x1ef   : > { %16594 = vst [vmem:[#allocation118_spill] sm:$0xff] %v10733_v62  ;;  %v10735_v56 = vld [vmem:[#allocation5 + $0xeb0] sm:$0xff]  ;;  %v10814_v62 = vadd.f32 %v4179_v32, %v4067_v36  ;;  %v10829_v32 = vadd.f32 %v4181_v10, %v4069_v49  ;;  %v4183_v36 = vpop.f32.mrf.mxu1  ;;  %v4071_v49 = vadd.f32 %v4070_v19, %v10329_v6  ;;  %v16617_v10 = vcombine.low %v10499_v17, %v10508_v0  ;;  %v10885_v19 = vld [vmem:[#allocation5 + $0x118] sm:$0xff] }
 0x1f0   : > { %16595 = vst [vmem:[#allocation119_spill] sm:$0xff] %v10735_v56  ;;  %v10748_v47 = vld [vmem:[#allocation5 + $0xa50] sm:$0xff]  ;;  %v10794_v56 = vsub.s32 2, %v10284_v59  ;;  %v10827_v59 = vld [vmem:[#allocation5 + $0x1b8] sm:$0xff]  ;;  %v16622_v0 = vcombine.high %v10523_v26, %v10534_v8  ;;  %16626 = vst [vmem:[#allocation141_spill] sm:$0xff] %v10885_v19 }
 0x1f1   : > { %v10750_v12 = vld [vmem:[#allocation5 + $0xa70] sm:$0xff]  ;;  %16613 = vst [vmem:[#allocation132_spill] sm:$0xff] %v10827_v59  ;;  %5046 = vmatpush1.bf16.msra.mxu1 %v16617_v10  ;;  %v4185_v6 = vpop.f32.mrf.mxu1  ;;  %v10868_v10 = vrot.slane %v9565_v5, %v10812_v44  ;;  %v10889_v44 = vld [vmem:[#allocation5 + $0x518] sm:$0xff] }
 0x1f2   : > { %v10760_v53 = vld [vmem:[#allocation5 + $0xe50] sm:$0xff]  ;;  %16605 = vst [vmem:[#allocation125_spill] sm:$0xff] %v10794_v56  ;;  %v10852_v3 = vrot.slane %v9565_v5, %v10794_v56  ;;  %5047 = vmatprep.subr.bf16.mxu1 %v16622_v0  ;;  %v10874_v56 = vld [vmem:[#allocation5 + $0x578] sm:$0xff]  ;;  %16628 = vst [vmem:[#allocation143_spill] sm:$0xff] %v10889_v44  ;;  %v16632_v0 = vcombine.low %v10510_v60, %v10512_v40  ;;  %v16643_v40 = vcombine.high %v10552_v28, %v10554_v37 }
 0x1f3   : > { %v10762_v20 = vld [vmem:[#allocation5 + $0xe70] sm:$0xff]  ;;  %16623 = vst [vmem:[#allocation138_spill] sm:$0xff] %v10868_v10  ;;  %16625 = vst [vmem:[#allocation140_spill] sm:$0xff] %v10874_v56  ;;  %v16630_v10 = vld [vmem:[#allocation84_spill] sm:$0xff]  ;;  %v4189_v7 = vpop.f32.mrf.mxu1 }
 0x1f4   : > { %v10774_v31 = vld [vmem:[#allocation5 + $0xa10] sm:$0xff]  ;;  %16619 = vst [vmem:[#allocation135_spill] sm:$0xff] %v10852_v3  ;;  %v10876_v3 = vadd.f32 %v4183_v36, %v4071_v49  ;;  %v4077_v46 = vadd.f32 %v4076_v48, %v16630_v10  ;;  %4935 = vmatpush1.bf16.msra.mxu0 %v16632_v0  ;;  %v10899_v5 = vld [vmem:[#allocation5 + $0x538] sm:$0xff]  ;;  %v4078_v48 = vpop.f32.mrf.mxu0 }
 0x1f5   : > { %16599 = vst [vmem:[#allocation121_spill] sm:$0xff] %v10774_v31  ;;  %v10776_v41 = vld [vmem:[#allocation5 + $0xa30] sm:$0xff]  ;;  %v10842_v31 = vld [vmem:[#allocation5 + $0x5b8] sm:$0xff] }
 0x1f6   : > { %16600 = vst [vmem:[#allocation122_spill] sm:$0xff] %v10776_v41  ;;  %v10778_v11 = vld [vmem:[#allocation5 + $0xe10] sm:$0xff]  ;;  %v10840_v41 = vld [vmem:[#allocation5 + $0x598] sm:$0xff]  ;;  %16616 = vst [vmem:[#allocation134_spill] sm:$0xff] %v10842_v31 }
 0x1f7   : > { %v10791_v29 = vld [vmem:[#allocation5 + $0xe30] sm:$0xff]  ;;  %16615 = vst [vmem:[#allocation133_spill] sm:$0xff] %v10840_v41  ;;  %v10901_v31 = vld [vmem:[#allocation5 + $0xd8] sm:$0xff] }
 0x1f8   : > { %16604 = vst [vmem:[#allocation124_spill] sm:$0xff] %v10791_v29  ;;  %v10858_v29 = vld [vmem:[#allocation5 + $0x178] sm:$0xff]  ;;  %v16629_v36 = vld [vmem:[#allocation83_spill] sm:$0xff]  ;;  %16634 = vst [vmem:[#allocation84_spill] sm:$0xff] %v10901_v31  ;;  %v16669_v31 = vcombine.high %v10579_v14, %v10581_v58 }
 0x1f9   : > { %16621 = vst [vmem:[#allocation137_spill] sm:$0xff] %v10858_v29  ;;  %v4073_v49 = vadd.f32 %v4072_v57, %v16629_v36  ;;  %v16631_v23 = vld [vmem:[#allocation27_spill] sm:$0xff]  ;;  %16633 = vst [vmem:[#allocation83_spill] sm:$0xff] %v10899_v5  ;;  %v10903_v41 = vld [vmem:[#allocation5 + $0xf8] sm:$0xff]  ;;  %v16636_v57 = vcombine.low %v10523_v26, %v10534_v8 }
 0x1fa   : > { %4866 = vmatmul.mubr.bf16.gmra.mxu1 %v16631_v23  ;;  %16635 = vst [vmem:[#allocation144_spill] sm:$0xff] %v10903_v41  ;;  %v16637_v10 = vld [vmem:[#allocation104_spill] sm:$0xff]  ;;  %v16638_v36 = vld [vmem:[#allocation105_spill] sm:$0xff]  ;;  %v16662_v41 = vld [vmem:[#allocation30_spill] sm:$0xff] }
 0x1fb   : > { %5048 = vmatpush1.bf16.msra.mxu1 %v16636_v57  ;;  %v16639_v23 = vcombine.high %v16637_v10, %v16638_v36  ;;  %v10917_v17 = vld [vmem:[#allocation5 + $0x4d8] sm:$0xff]  ;;  %v10923_v8 = vadd.f32 %v4185_v6, %v4073_v49  ;;  %v10925_v57 = vadd.f32 %v4189_v7, %v4077_v46  ;;  %v16648_v6 = vld [vmem:[#allocation85_spill] sm:$0xff]  ;;  %v4080_v7 = vpop.f32.mrf.mxu0  ;;  %v16651_v24 = vcombine.low %v16637_v10, %v16638_v36  ;;  %v16690_v44 = vld [vmem:[#allocation35_spill] sm:$0xff] }
 0x1fc   : > { %16640 = vst [vmem:[#allocation104_spill] sm:$0xff] %v10917_v17  ;;  %v10919_v59 = vld [vmem:[#allocation5 + $0x4f8] sm:$0xff]  ;;  %5049 = vmatprep.subr.bf16.mxu1 %v16643_v40  ;;  %v4079_v49 = vadd.f32 %v4078_v48, %v16648_v6  ;;  %v16649_v46 = vld [vmem:[#allocation29_spill] sm:$0xff]  ;;  %v16656_v36 = vcombine.high %v10556_v2, %v10564_v1  ;;  %v16661_v40 = vld [vmem:[#allocation87_spill] sm:$0xff] }
 0x1fd   : > { %4936 = vmatprep.subr.bf16.mxu0 %v16639_v23  ;;  %16641 = vst [vmem:[#allocation105_spill] sm:$0xff] %v10919_v59  ;;  %v10921_v26 = vld [vmem:[#allocation5 + $0x98] sm:$0xff]  ;;  %v4191_v23 = vpop.f32.mrf.mxu1  ;;  %4875 = vmatprep.mubr.bf16.mxu1 %v16649_v46  ;;  %v4082_v10 = vpop.f32.mrf.mxu0 }
 0x1fe   : > { %16642 = vst [vmem:[#allocation145_spill] sm:$0xff] %v10921_v26  ;;  %v16644_v29 = vld [vmem:[#allocation28_spill] sm:$0xff]  ;;  %4937 = vmatpush1.bf16.msra.mxu0 %v16651_v24  ;;  %v16655_v24 = vcombine.low %v10552_v28, %v10554_v37  ;;  %v5732_v37 = vmul.f32 %v10675_v4, %v10675_v4  ;;  %v10984_v28 = vadd.f32 %v4191_v23, %v4079_v49 }
 0x1ff   : > { %4762 = vmatprep.mubr.bf16.mxu0 %v16644_v29  ;;  %v10933_v0 = vld [vmem:[#allocation5 + $0xb8] sm:$0xff]  ;;  %v4193_v52 = vpop.f32.mrf.mxu1  ;;  %4938 = vmatprep.subr.bf16.mxu0 %v16656_v36  ;;  %v4086_v26 = vpop.f32.mrf.mxu0 }
 0x200   : > { %16645 = vst [vmem:[#allocation146_spill] sm:$0xff] %v10933_v0  ;;  %v10935_v56 = vld [vmem:[#allocation5 + $0x498] sm:$0xff]  ;;  %5050 = vmatpush1.bf16.msra.mxu1 %v16655_v24  ;;  %v16659_v24 = vld [vmem:[#allocation86_spill] sm:$0xff]  ;;  %v4083_v0 = vadd.f32 %v4082_v10, %v16661_v40  ;;  %4763 = vmatmul.mubr.bf16.gmra.mxu0 %v16662_v41 }
 0x201   : > { %16646 = vst [vmem:[#allocation147_spill] sm:$0xff] %v10935_v56  ;;  %v10947_v29 = vld [vmem:[#allocation5 + $0x58] sm:$0xff]  ;;  %v4081_v36 = vadd.f32 %v4080_v7, %v16659_v24  ;;  %v4195_v17 = vpop.f32.mrf.mxu1  ;;  %5051 = vmatprep.subr.bf16.mxu1 %v16660_v33  ;;  %v16663_v24 = vld [vmem:[#allocation31_spill] sm:$0xff]  ;;  %v16664_v33 = vcombine.low %v10556_v2, %v10564_v1  ;;  %v4088_v10 = vpop.f32.mrf.mxu0 }
 0x202   : > { %16650 = vst [vmem:[#allocation85_spill] sm:$0xff] %v10947_v29  ;;  %v10960_v60 = vld [vmem:[#allocation5 + $0x78] sm:$0xff]  ;;  %4876 = vmatmul.mubr.bf16.gmra.mxu1 %v16663_v24  ;;  %v5733_v24 = vmul.f32 %v10705_v30, %v10705_v30  ;;  %v11020_v2 = vadd.f32 %v4195_v17, %v4083_v0  ;;  %v5740_v17 = vmul.f32 %v10737_v43, %v10737_v43 }
 0x203   : > { %16652 = vst [vmem:[#allocation149_spill] sm:$0xff] %v10960_v60  ;;  %v10962_v46 = vld [vmem:[#allocation5 + $0x458] sm:$0xff]  ;;  %v4199_v7 = vpop.f32.mrf.mxu1  ;;  %4939 = vmatpush1.bf16.msra.mxu0 %v16664_v33  ;;  %v11018_v1 = vadd.f32 %v4193_v52, %v4081_v36  ;;  %v16668_v33 = vcombine.low %v10566_v22, %v10568_v51  ;;  %v5860_v52 = vmul.f32 %v5732_v37, %v10675_v4  ;;  %v4090_v37 = vpop.f32.mrf.mxu0 }
 0x204   : > { %16653 = vst [vmem:[#allocation150_spill] sm:$0xff] %v10962_v46  ;;  %v10964_v5 = vld [vmem:[#allocation5 + $0x478] sm:$0xff]  ;;  %4940 = vmatprep.subr.bf16.mxu0 %v16669_v31  ;;  %v16674_v22 = vcombine.high %v10583_v54, %v10595_v34  ;;  %v16679_v60 = vcombine.low %v10579_v14, %v10581_v58  ;;  %v5861_v58 = vmul.f32 %v5733_v24, %v10705_v30 }
 0x205   : > { %16654 = vst [vmem:[#allocation151_spill] sm:$0xff] %v10964_v5  ;;  %v10978_v6 = vld [vmem:[#allocation5 + $0x18] sm:$0xff]  ;;  %5052 = vmatpush1.bf16.msra.mxu1 %v16668_v33  ;;  %v11038_v51 = vpop.f32.mrf.mxu1  ;;  %v5741_v33 = vmul.f32 %v10780_v45, %v10780_v45  ;;  %v16676_v5 = vld [vmem:[#allocation33_spill] sm:$0xff]  ;;  %v5749_v14 = vmul.f32 %v10829_v32, %v10829_v32  ;;  %v16683_v29 = vcombine.low %v10583_v54, %v10595_v34  ;;  %v5988_v24 = vmul.f32 0.044715, %v5860_v52  ;;  %v16689_v52 = vld [vmem:[#allocation34_spill] sm:$0xff] }
 0x206   : > { %16657 = vst [vmem:[#allocation152_spill] sm:$0xff] %v10978_v6  ;;  %v10980_v59 = vld [vmem:[#allocation5 + $0x38] sm:$0xff]  ;;  %5053 = vmatprep.subr.bf16.mxu1 %v16674_v22  ;;  %v5748_v6 = vmul.f32 %v10814_v62, %v10814_v62  ;;  %4885 = vmatprep.mubr.bf16.mxu1 %v16676_v5  ;;  %v16688_v34 = vcombine.high %v10613_v55, %v10625_v35  ;;  %v5989_v56 = vmul.f32 0.044715, %v5861_v58  ;;  %v16699_v58 = vld [vmem:[#allocation90_spill] sm:$0xff] }
 0x207   : > { %16658 = vst [vmem:[#allocation153_spill] sm:$0xff] %v10980_v59  ;;  %v11010_v23 = vld [vmem:[#allocation5 + $0x418] sm:$0xff]  ;;  %4941 = vmatpush1.bf16.msra.mxu0 %v16679_v60  ;;  %v16691_v54 = vcombine.low %v10597_v9, %v10599_v27 }
 0x208   : > { %16665 = vst [vmem:[#allocation86_spill] sm:$0xff] %v11010_v23  ;;  %v11012_v48 = vld [vmem:[#allocation5 + $0x438] sm:$0xff] }
 0x209   : > { %16666 = vst [vmem:[#allocation87_spill] sm:$0xff] %v11012_v48  ;;  %v11014_v49 = vld [vmem:[#allocation5 + $0x3d8] sm:$0xff]  ;;  %5054 = vmatpush1.bf16.msra.mxu1 %v16683_v29 }
 0x20a   : > { %16667 = vst [vmem:[#allocation154_spill] sm:$0xff] %v11014_v49  ;;  %v11028_v40 = vld [vmem:[#allocation5 + $0x3f8] sm:$0xff]  ;;  %5055 = vmatprep.subr.bf16.mxu1 %v16688_v34  ;;  %4886 = vmatmul.mubr.bf16.gmra.mxu1 %v16690_v44  ;;  %v5877_v44 = vmul.f32 %v5749_v14, %v10829_v32 }
 0x20b   : > { %16670 = vst [vmem:[#allocation155_spill] sm:$0xff] %v11028_v40  ;;  %v11030_v41 = vld [vmem:[#allocation5 + $0x7d8] sm:$0xff]  ;;  %v5868_v40 = vmul.f32 %v5740_v17, %v10737_v43 }
 0x20c   : > { %16671 = vst [vmem:[#allocation156_spill] sm:$0xff] %v11030_v41  ;;  %v11032_v59 = vld [vmem:[#allocation5 + $0x7f8] sm:$0xff] }
 0x20d   : > { %16672 = vst [vmem:[#allocation157_spill] sm:$0xff] %v11032_v59  ;;  %v16673_v0 = vld [vmem:[#allocation88_spill] sm:$0xff] }
 0x20e   : > { %v4087_v36 = vadd.f32 %v4086_v26, %v16673_v0  ;;  %v16675_v31 = vld [vmem:[#allocation32_spill] sm:$0xff]  ;;  %v4092_v26 = vpop.f32.mrf.mxu0  ;;  %v16684_v0 = vcombine.high %v10597_v9, %v10599_v27  ;;  %v5756_v9 = vmul.f32 %v10876_v3, %v10876_v3  ;;  %v16694_v27 = vld [vmem:[#allocation89_spill] sm:$0xff] }
 0x20f   : > { %4772 = vmatprep.mubr.bf16.mxu0 %v16675_v31  ;;  %v11053_v46 = vld [vmem:[#allocation5 + $0x398] sm:$0xff]  ;;  %v4203_v31 = vpop.f32.mrf.mxu1 }
 0x210   : > { %16677 = vst [vmem:[#allocation88_spill] sm:$0xff] %v11053_v46  ;;  %v11055_v22 = vld [vmem:[#allocation5 + $0x3b8] sm:$0xff]  ;;  %v11077_v60 = vadd.f32 %v4199_v7, %v4087_v36  ;;  %4942 = vmatprep.subr.bf16.mxu0 %v16684_v0  ;;  %v5869_v36 = vmul.f32 %v5741_v33, %v10780_v45  ;;  %v5876_v0 = vmul.f32 %v5748_v6, %v10814_v62  ;;  %v4096_v49 = vpop.f32.mrf.mxu0 }
 0x211   : > { %16678 = vst [vmem:[#allocation158_spill] sm:$0xff] %v11055_v22  ;;  %v11068_v48 = vld [vmem:[#allocation5 + $0x798] sm:$0xff]  ;;  %v11092_v7 = vpop.f32.mrf.mxu1  ;;  %4773 = vmatmul.mubr.bf16.gmra.mxu0 %v16689_v52  ;;  %v16695_v33 = vcombine.low %v10613_v55, %v10625_v35  ;;  %v4091_v22 = vadd.f32 %v4090_v37, %v16699_v58  ;;  %v16705_v35 = vld [vmem:[#allocation91_spill] sm:$0xff] }
 0x212   : > { %16680 = vst [vmem:[#allocation159_spill] sm:$0xff] %v11068_v48  ;;  %v11070_v23 = vld [vmem:[#allocation5 + $0x7b8] sm:$0xff]  ;;  %4943 = vmatpush2.bf16.msra.mxu0 %v16691_v54  ;;  %v4089_v54 = vadd.f32 %v4088_v10, %v16694_v27  ;;  %v4098_v6 = vpop.f32.mrf.mxu0  ;;  %v5996_v48 = vmul.f32 0.044715, %v5868_v40  ;;  %v5997_v55 = vmul.f32 0.044715, %v5869_v36  ;;  %v4093_v36 = vadd.f32 %v4092_v26, %v16705_v35 }
 0x213   : > { %16681 = vst [vmem:[#allocation160_spill] sm:$0xff] %v11070_v23  ;;  %v11085_v5 = vld [vmem:[#allocation5 + $0x378] sm:$0xff]  ;;  %v4209_v34 = vpop.f32.mrf.mxu1  ;;  %5056 = vmatpush2.bf16.msra.mxu1 %v16695_v33  ;;  %v6116_v23 = vadd.f32 %v5988_v24, %v10675_v4  ;;  %v6004_v33 = vmul.f32 0.044715, %v5876_v0  ;;  %v16703_v40 = vld [vmem:[#allocation37_spill] sm:$0xff]  ;;  %v11154_v58 = vadd.f32 %v4203_v31, %v4091_v22  ;;  %v5884_v22 = vmul.f32 %v5756_v9, %v10876_v3 }
 0x214   : > { %16685 = vst [vmem:[#allocation162_spill] sm:$0xff] %v11085_v5  ;;  %v11087_v59 = vld [vmem:[#allocation5 + $0x758] sm:$0xff]  ;;  %v16696_v5 = vld [vmem:[#allocation109_spill] sm:$0xff]  ;;  %v11144_v24 = vpop.f32.mrf.mxu0  ;;  %4895 = vmatprep.mubr.bf16.mxu1 %v16703_v40  ;;  %v6005_v31 = vmul.f32 0.044715, %v5877_v44  ;;  %v5765_v44 = vmul.f32 %v10984_v28, %v10984_v28  ;;  %v6125_v9 = vadd.f32 %v5997_v55, %v10780_v45 }
 0x215   : > { %16686 = vst [vmem:[#allocation163_spill] sm:$0xff] %v11087_v59  ;;  %v11089_v41 = vld [vmem:[#allocation5 + $0x778] sm:$0xff]  ;;  %v16698_v29 = vcombine.high %v16696_v5, %v16697_v61  ;;  %v11134_v14 = vpop.f32.mrf.mxu1  ;;  %v16707_v59 = vcombine.low %v16696_v5, %v16697_v61  ;;  %v16713_v61 = vld [vmem:[#allocation114_spill] sm:$0xff]  ;;  %v6244_v35 = vmul.f32 0.7978846, %v6116_v23  ;;  %v16731_v5 = vld [vmem:[#allocation41_spill] sm:$0xff] }
 0x216   : > { %16687 = vst [vmem:[#allocation164_spill] sm:$0xff] %v11089_v41  ;;  %v11118_v17 = vld [vmem:[#allocation5 + $0x318] sm:$0xff]  ;;  %v11174_v26 = vpop.f32.mrf.mxu0  ;;  %v6012_v23 = vmul.f32 0.044715, %v5884_v22 }
 0x217   : > { %16692 = vst [vmem:[#allocation165_spill] sm:$0xff] %v11118_v17  ;;  %v11120_v52 = vld [vmem:[#allocation5 + $0x338] sm:$0xff]  ;;  %4944 = vmatprep.subr.bf16.mxu0 %v16698_v29  ;;  %v5764_v29 = vmul.f32 %v10925_v57, %v10925_v57  ;;  %v11158_v41 = vpop.f32.mrf.mxu1  ;;  %9277 = vtanh.f32 %v6244_v35  ;;  %v5772_v35 = vmul.f32 %v11018_v1, %v11018_v1 }
 0x218   : > { %16693 = vst [vmem:[#allocation166_spill] sm:$0xff] %v11120_v52  ;;  %v16700_v46 = vld [vmem:[#allocation112_spill] sm:$0xff]  ;;  %4945 = vmatpush2.bf16.msra.mxu0 %v16707_v59  ;;  %v6132_v52 = vadd.f32 %v6004_v33, %v10814_v62 }
 0x219   : > { %v16701_v39 = vcombine.high %v10640_v38, %v16700_v46  ;;  %v16702_v10 = vld [vmem:[#allocation36_spill] sm:$0xff]  ;;  %v5892_v17 = vmul.f32 %v5764_v29, %v10925_v57 }
 0x21a   : > { %4782 = vmatprep.mubr.bf16.mxu0 %v16702_v10  ;;  %v11149_v27 = vld [vmem:[#allocation5 + $0x718] sm:$0xff] }
 0x21b   : > { %5057 = vmatprep.subr.bf16.mxu1 %v16701_v39  ;;  %16704 = vst [vmem:[#allocation89_spill] sm:$0xff] %v11149_v27  ;;  %v11152_v39 = vadd.f32 %v11038_v51, %v4089_v54  ;;  %v16706_v0 = vld [vmem:[#allocation92_spill] sm:$0xff]  ;;  %v6117_v51 = vadd.f32 %v5989_v56, %v10705_v30  ;;  %v16712_v54 = vld [vmem:[#allocation113_spill] sm:$0xff]  ;;  %v5757_v56 = vmul.f32 %v10923_v8, %v10923_v8 }
 0x21c   : > { %v4097_v10 = vadd.f32 %v4096_v49, %v16706_v0  ;;  %v11163_v40 = vld [vmem:[#allocation5 + $0x738] sm:$0xff]  ;;  %v16711_v49 = vcombine.low %v10640_v38, %v16700_v46  ;;  %v16714_v59 = vcombine.high %v16712_v54, %v16713_v61  ;;  %v6124_v0 = vadd.f32 %v5996_v48, %v10737_v43  ;;  %v11186_v38 = vpop.f32.mrf.mxu1 }
 0x21d   : > { %16708 = vst [vmem:[#allocation109_spill] sm:$0xff] %v11163_v40  ;;  %v11165_v37 = vld [vmem:[#allocation5 + $0x2d8] sm:$0xff]  ;;  %v16715_v46 = vcombine.high %v10669_v15, %v10671_v18  ;;  %v6245_v48 = vmul.f32 0.7978846, %v6117_v51  ;;  %v6133_v43 = vadd.f32 %v6005_v31, %v10829_v32  ;;  %v16720_v40 = vld [vmem:[#allocation93_spill] sm:$0xff]  ;;  %v16721_v33 = vcombine.low %v16712_v54, %v16713_v61 }
 0x21e   : > { %16709 = vst [vmem:[#allocation110_spill] sm:$0xff] %v11165_v37  ;;  %v11167_v19 = vld [vmem:[#allocation5 + $0x2f8] sm:$0xff]  ;;  %5058 = vmatpush2.bf16.msra.mxu1 %v16711_v49  ;;  %4946 = vmatprep.subr.bf16.mxu0 %v16714_v59  ;;  %v11192_v49 = vpop.f32.mrf.mxu0  ;;  %v16716_v59 = vld [vmem:[#allocation38_spill] sm:$0xff]  ;;  %v11206_v55 = vadd.f32 %v4209_v34, %v4097_v10  ;;  %v11208_v45 = vpop.f32.mrf.mxu1  ;;  %v4099_v27 = vadd.f32 %v4098_v6, %v16720_v40  ;;  %v6252_v10 = vmul.f32 0.7978846, %v6124_v0 }
 0x21f   : > { %16710 = vst [vmem:[#allocation90_spill] sm:$0xff] %v11167_v19  ;;  %5059 = vmatprep.subr.bf16.mxu1 %v16715_v46  ;;  %4783 = vmatmul.mubr.bf16.gmra.mxu0 %v16716_v59  ;;  %v11204_v46 = vadd.f32 %v11092_v7, %v4093_v36  ;;  %v16719_v59 = vld [vmem:[#allocation39_spill] sm:$0xff]  ;;  %v11218_v7 = vld [vmem:[#allocation5 + $0x6d8] sm:$0xff]  ;;  %v5885_v36 = vmul.f32 %v5757_v56, %v10923_v8  ;;  %v6253_v61 = vmul.f32 0.7978846, %v6125_v9  ;;  %9279 = vtanh.f32 %v6245_v48  ;;  %v16805_v19 = vld [vmem:[#allocation133_spill] sm:$0xff] }
 0x220   : > { %16718 = vst [vmem:[#allocation91_spill] sm:$0xff] %v11206_v55  ;;  %4896 = vmatmul.mubr.bf16.gmra.mxu1 %v16719_v59  ;;  %4947 = vmatpush2.bf16.msra.mxu0 %v16721_v33  ;;  %v11216_v29 = vpop.f32.mrf.mxu0  ;;  %16722 = vst [vmem:[#allocation92_spill] sm:$0xff] %v11218_v7  ;;  %v11220_v34 = vld [vmem:[#allocation5 + $0x6f8] sm:$0xff]  ;;  %v5893_v51 = vmul.f32 %v5765_v44, %v10984_v28  ;;  %v16724_v31 = vcombine.low %v10669_v15, %v10671_v18  ;;  %v11227_v6 = vpop.f32.mrf.mxu1  ;;  %v16728_v18 = vld [vmem:[#allocation115_spill] sm:$0xff]  ;;  %9281 = vtanh.f32 %v6252_v10 }
 0x221   : > { %16717 = vst [vmem:[#allocation112_spill] sm:$0xff] %v11204_v46  ;;  %16723 = vst [vmem:[#allocation113_spill] sm:$0xff] %v11220_v34  ;;  %v16725_v40 = vcombine.high %v10673_v13, %v10684_v42  ;;  %v11232_v22 = vld [vmem:[#allocation5 + $0x298] sm:$0xff]  ;;  %v5780_v0 = vmul.f32 %v11077_v60, %v11077_v60  ;;  %v16729_v15 = vcombine.high %v10686_v25, %v16728_v18  ;;  %4905 = vmatprep.mubr.bf16.mxu1 %v16731_v5 }
 0x222   : > { %5060 = vmatpush2.bf16.msra.mxu1 %v16724_v31  ;;  %16726 = vst [vmem:[#allocation114_spill] sm:$0xff] %v11232_v22  ;;  %v11234_v54 = vld [vmem:[#allocation5 + $0x2b8] sm:$0xff]  ;;  %v11240_v56 = vpop.f32.mrf.mxu0  ;;  %v6260_v31 = vmul.f32 0.7978846, %v6132_v52  ;;  %v11248_v9 = vpop.f32.mrf.mxu1  ;;  %v6261_v46 = vmul.f32 0.7978846, %v6133_v43  ;;  %v11268_v43 = vadd.f32 %v11134_v14, %v4099_v27  ;;  %v16735_v48 = vcombine.low %v10686_v25, %v16728_v18 }
 0x223   : > { %4948 = vmatprep.subr.bf16.mxu0 %v16725_v40  ;;  %16727 = vst [vmem:[#allocation93_spill] sm:$0xff] %v11234_v54  ;;  %5061 = vmatprep.subr.bf16.mxu1 %v16729_v15  ;;  %v16730_v44 = vld [vmem:[#allocation40_spill] sm:$0xff]  ;;  %v6020_v40 = vmul.f32 0.044715, %v5892_v17  ;;  %v6140_v15 = vadd.f32 %v6012_v23, %v10876_v3  ;;  %v6013_v59 = vmul.f32 0.044715, %v5885_v36  ;;  %9283 = vtanh.f32 %v6253_v61 }
 0x224   : > { %4792 = vmatprep.mubr.bf16.mxu0 %v16730_v44  ;;  %v16732_v44 = vcombine.low %v10673_v13, %v10684_v42  ;;  %v11259_v52 = vpop.f32.mrf.mxu0  ;;  %v11263_v33 = vld [vmem:[#allocation5 + $0x698] sm:$0xff]  ;;  %v6021_v55 = vmul.f32 0.044715, %v5893_v51  ;;  %v11273_v42 = vpop.f32.mrf.mxu1  ;;  %v5900_v10 = vmul.f32 %v5772_v35, %v11018_v1  ;;  %v5773_v14 = vmul.f32 %v11020_v2, %v11020_v2  ;;  %v16740_v36 = vld [vmem:[#allocation42_spill] sm:$0xff]  ;;  %v16741_v51 = vld [vmem:[#allocation117_spill] sm:$0xff] }
 0x225   : > { %16733 = vst [vmem:[#allocation115_spill] sm:$0xff] %v11263_v33  ;;  %v11265_v5 = vld [vmem:[#allocation5 + $0x6b8] sm:$0xff]  ;;  %v5908_v27 = vmul.f32 %v5780_v0, %v11077_v60  ;;  %v16742_v18 = vcombine.high %v10703_v50, %v16741_v51  ;;  %9285 = vtanh.f32 %v6260_v31  ;;  %v16743_v61 = vld [vmem:[#allocation43_spill] sm:$0xff]  ;;  %v6141_v0 = vadd.f32 %v6013_v59, %v10923_v8 }
 0x226   : > { %4949 = vmatpush2.bf16.msra.mxu0 %v16732_v44  ;;  %16734 = vst [vmem:[#allocation167_spill] sm:$0xff] %v11265_v5  ;;  %5062 = vmatpush2.bf16.msra.mxu1 %v16735_v48  ;;  %v16736_v13 = vld [vmem:[#allocation116_spill] sm:$0xff]  ;;  %v11286_v25 = vpop.f32.mrf.mxu0  ;;  %v6148_v48 = vadd.f32 %v6020_v40, %v10925_v57  ;;  %9287 = vtanh.f32 %v6261_v46  ;;  %v16746_v40 = vld [vmem:[#allocation45_spill] sm:$0xff]  ;;  %v6149_v34 = vadd.f32 %v6021_v55, %v10984_v28  ;;  %v16747_v46 = vld [vmem:[#allocation94_spill] sm:$0xff] }
 0x227   : > { %v16737_v23 = vcombine.high %v10699_v63, %v16736_v13  ;;  %v11278_v44 = vld [vmem:[#allocation5 + $0x258] sm:$0xff]  ;;  %4793 = vmatmul.mubr.bf16.gmra.mxu0 %v16740_v36  ;;  %5063 = vmatprep.subr.bf16.mxu1 %v16742_v18  ;;  %v6268_v36 = vmul.f32 0.7978846, %v6140_v15  ;;  %v16745_v18 = vcombine.low %v10699_v63, %v16736_v13  ;;  %v4101_v15 = vadd.f32 %v11144_v24, %v16747_v46  ;;  %v16748_v54 = vld [vmem:[#allocation95_spill] sm:$0xff] }
 0x228   : > { %16738 = vst [vmem:[#allocation116_spill] sm:$0xff] %v11278_v44  ;;  %v11280_v17 = vld [vmem:[#allocation5 + $0x278] sm:$0xff]  ;;  %4906 = vmatmul.mubr.bf16.gmra.mxu1 %v16743_v61  ;;  %v11304_v31 = vpop.f32.mrf.mxu0  ;;  %v4103_v63 = vadd.f32 %v11174_v26, %v16748_v54  ;;  %v16749_v13 = vcombine.low %v10703_v50, %v16741_v51  ;;  %v5901_v59 = vmul.f32 %v5773_v14, %v11020_v2  ;;  %v6036_v55 = vmul.f32 0.044715, %v5908_v27  ;;  %v16754_v50 = vld [vmem:[#allocation118_spill] sm:$0xff]  ;;  %v16755_v54 = vld [vmem:[#allocation119_spill] sm:$0xff] }
 0x229   : > { %4950 = vmatprep.subr.bf16.mxu0 %v16737_v23  ;;  %16739 = vst [vmem:[#allocation168_spill] sm:$0xff] %v11280_v17  ;;  %v11293_v23 = vpop.f32.mrf.mxu1  ;;  %v16744_v35 = vld [vmem:[#allocation44_spill] sm:$0xff]  ;;  %4915 = vmatprep.mubr.bf16.mxu1 %v16746_v40  ;;  %v16753_v26 = vcombine.high %v10717_v21, %v10719_v16  ;;  %v16756_v51 = vcombine.high %v16754_v50, %v16755_v54  ;;  %9289 = vtanh.f32 %v6268_v36 }
 0x22a   : > { %4802 = vmatprep.mubr.bf16.mxu0 %v16744_v35  ;;  %4951 = vmatpush2.bf16.msra.mxu0 %v16745_v18  ;;  %v11322_v61 = vld [vmem:[#allocation5 + $0x658] sm:$0xff]  ;;  %v6028_v35 = vmul.f32 0.044715, %v5900_v10  ;;  %v11329_v46 = vpop.f32.mrf.mxu0  ;;  %v6276_v10 = vmul.f32 0.7978846, %v6148_v48  ;;  %v5781_v14 = vmul.f32 %v11152_v39, %v11152_v39 }
 0x22b   : > { %5064 = vmatpush2.bf16.msra.mxu1 %v16749_v13  ;;  %v11320_v18 = vpop.f32.mrf.mxu1  ;;  %16750 = vst [vmem:[#allocation117_spill] sm:$0xff] %v11322_v61  ;;  %v11324_v40 = vld [vmem:[#allocation5 + $0x678] sm:$0xff]  ;;  %4952 = vmatprep.subr.bf16.mxu0 %v16753_v26  ;;  %v5788_v26 = vmul.f32 %v11154_v58, %v11154_v58  ;;  %v6029_v36 = vmul.f32 0.044715, %v5901_v59  ;;  %v16766_v59 = vld [vmem:[#allocation97_spill] sm:$0xff] }
 0x22c   : > { %16751 = vst [vmem:[#allocation94_spill] sm:$0xff] %v11324_v40  ;;  %v16752_v5 = vld [vmem:[#allocation96_spill] sm:$0xff]  ;;  %5065 = vmatprep.subr.bf16.mxu1 %v16756_v51  ;;  %v16759_v51 = vcombine.low %v10717_v21, %v10719_v16  ;;  %v11356_v22 = vpop.f32.mrf.mxu0  ;;  %v16761_v21 = vcombine.high %v10748_v47, %v10750_v12  ;;  %9291 = vtanh.f32 %v6276_v10  ;;  %v16770_v10 = vld [vmem:[#allocation99_spill] sm:$0xff] }
 0x22d   : > { %v4107_v24 = vadd.f32 %v11192_v49, %v16752_v5  ;;  %v11337_v13 = vld [vmem:[#allocation5 + $0x218] sm:$0xff]  ;;  %v11344_v5 = vadd.f32 %v11158_v41, %v4101_v15  ;;  %v11347_v49 = vadd.f32 %v11186_v38, %v4103_v63  ;;  %v11349_v27 = vpop.f32.mrf.mxu1  ;;  %v6277_v15 = vmul.f32 0.7978846, %v6149_v34  ;;  %v9278_v41 = vpop.eup %9277 }
 0x22e   : > { %16757 = vst [vmem:[#allocation95_spill] sm:$0xff] %v11337_v13  ;;  %v11339_v33 = vld [vmem:[#allocation5 + $0x238] sm:$0xff]  ;;  %4953 = vmatpush2.bf16.msra.mxu0 %v16759_v51  ;;  %v16760_v63 = vcombine.low %v16754_v50, %v16755_v54  ;;  %v6269_v38 = vmul.f32 0.7978846, %v6141_v0  ;;  %v6156_v34 = vadd.f32 %v6028_v35, %v11018_v1  ;;  %v6164_v50 = vadd.f32 %v6036_v55, %v11077_v60  ;;  %v11378_v54 = vpop.f32.mrf.mxu0  ;;  %v16769_v13 = vld [vmem:[#allocation98_spill] sm:$0xff] }
 0x22f   : > { %16758 = vst [vmem:[#allocation96_spill] sm:$0xff] %v11339_v33  ;;  %v11367_v7 = vpop.f32.mrf.mxu1  ;;  %4954 = vmatprep.subr.bf16.mxu0 %v16761_v21  ;;  %v16763_v21 = vcombine.high %v10760_v53, %v10762_v20  ;;  %v11384_v48 = vld [vmem:[#allocation5 + $0x618] sm:$0xff]  ;;  %v5909_v0 = vmul.f32 %v5781_v14, %v11152_v39  ;;  %v11390_v35 = vadd.f32 %v11208_v45, %v4107_v24  ;;  %9293 = vtanh.f32 %v6277_v15 }
 0x230   : > { %5066 = vmatpush2.bf16.msra.mxu1 %v16760_v63  ;;  %v16762_v63 = vld [vmem:[#allocation46_spill] sm:$0xff]  ;;  %16764 = vst [vmem:[#allocation118_spill] sm:$0xff] %v11384_v48  ;;  %v11386_v16 = vld [vmem:[#allocation5 + $0x638] sm:$0xff]  ;;  %v4109_v55 = vadd.f32 %v11216_v29, %v16766_v59  ;;  %v4111_v40 = vadd.f32 %v11240_v56, %v16769_v13  ;;  %v4113_v14 = vadd.f32 %v11259_v52, %v16770_v10  ;;  %v11408_v24 = vpop.f32.mrf.mxu0  ;;  %v9280_v59 = vpop.eup %9279  ;;  %v16774_v13 = vld [vmem:[#allocation121_spill] sm:$0xff]  ;;  %9295 = vtanh.f32 %v6269_v38 }
 0x231   : > { %4803 = vmatmul.mubr.bf16.gmra.mxu0 %v16762_v63  ;;  %5067 = vmatprep.subr.bf16.mxu1 %v16763_v21  ;;  %16765 = vst [vmem:[#allocation119_spill] sm:$0xff] %v11386_v16  ;;  %v11394_v51 = vpop.f32.mrf.mxu1  ;;  %v16767_v63 = vld [vmem:[#allocation47_spill] sm:$0xff]  ;;  %v16768_v33 = vld [vmem:[#allocation48_spill] sm:$0xff]  ;;  %v5916_v21 = vmul.f32 %v5788_v26, %v11154_v58  ;;  %v16772_v29 = vcombine.low %v10748_v47, %v10750_v12  ;;  %v16775_v52 = vld [vmem:[#allocation122_spill] sm:$0xff]  ;;  %v9282_v47 = vpop.eup %9281  ;;  %v6037_v12 = vmul.f32 0.044715, %v5909_v0 }
 0x232   : > { %4916 = vmatmul.mubr.bf16.gmra.mxu1 %v16767_v63  ;;  %4958 = vmatprep.mubr.bf16.mxu0 %v16768_v33  ;;  %v16771_v61 = vld [vmem:[#allocation100_spill] sm:$0xff]  ;;  %v6500_v63 = vadd.f32 1.0, %v9278_v41  ;;  %v16773_v26 = vcombine.low %v10760_v53, %v10762_v20  ;;  %v16776_v10 = vcombine.high %v16774_v13, %v16775_v52  ;;  %v6157_v41 = vadd.f32 %v6029_v36, %v11020_v2  ;;  %v11429_v20 = vpop.f32.mrf.mxu0 }
 0x233   : > { %v4117_v45 = vadd.f32 %v11286_v25, %v16771_v61  ;;  %4955 = vmatpush2.bf16.msra.mxu0 %v16772_v29  ;;  %v11413_v56 = vpop.f32.mrf.mxu1  ;;  %v6284_v61 = vmul.f32 0.7978846, %v6156_v34  ;;  %v11424_v15 = vadd.f32 %v11227_v6, %v4109_v55  ;;  %v11427_v53 = vadd.f32 %v11248_v9, %v4111_v40  ;;  %v16777_v29 = vld [vmem:[#allocation124_spill] sm:$0xff]  ;;  %v9284_v25 = vpop.eup %9283 }
 0x234   : > { %5068 = vmatpush2.bf16.msra.mxu1 %v16773_v26  ;;  %4956 = vmatprep.subr.bf16.mxu0 %v16776_v10  ;;  %v16778_v26 = vcombine.high %v10778_v11, %v16777_v29  ;;  %v16779_v10 = vld [vmem:[#allocation49_spill] sm:$0xff]  ;;  %v11436_v34 = vadd.f32 %v11273_v42, %v4113_v14  ;;  %v9286_v9 = vpop.eup %9285  ;;  %v5604_v40 = vmul.f32 0.5, %v10675_v4  ;;  %v6501_v55 = vadd.f32 1.0, %v9280_v59  ;;  %v11447_v38 = vpop.f32.mrf.mxu0  ;;  %v16782_v14 = vld [vmem:[#allocation120_spill] sm:$0xff]  ;;  %v16786_v59 = vld [vmem:[#allocation127_spill] sm:$0xff] }
 0x235   : > { %5071 = vmatprep.mubr.bf16.mxu1 %v16779_v10  ;;  %v11439_v6 = vadd.f32 %v11293_v23, %v4117_v45  ;;  %v11441_v36 = vpop.f32.mrf.mxu1  ;;  %v6292_v33 = vmul.f32 0.7978846, %v6164_v50  ;;  %v6044_v16 = vmul.f32 0.044715, %v5916_v21  ;;  %v9288_v0 = vpop.eup %9287  ;;  %v5605_v42 = vmul.f32 0.5, %v10705_v30  ;;  %v16783_v45 = vld [vmem:[#allocation123_spill] sm:$0xff] }
 0x236   : > { %5069 = vmatprep.subr.bf16.mxu1 %v16778_v26  ;;  %v16781_v26 = vcombine.low %v16774_v13, %v16775_v52  ;;  %v5612_v23 = vmul.f32 0.5, %v16782_v14  ;;  %v11452_v10 = vmul.f32 0.5, %v16783_v45  ;;  %v5620_v48 = vmul.f32 0.5, %v10814_v62  ;;  %v16785_v21 = vld [vmem:[#allocation126_spill] sm:$0xff]  ;;  %v11467_v14 = vpop.f32.mrf.mxu0  ;;  %v16788_v62 = vld [vmem:[#allocation128_spill] sm:$0xff] }
 0x237   : > { %16780 = vst [vmem:[#allocation97_spill] sm:$0xff] %v11439_v6  ;;  %v16784_v4 = vcombine.low %v10778_v11, %v16777_v29  ;;  %v11458_v50 = vpop.f32.mrf.mxu1  ;;  %v16787_v13 = vcombine.high %v16785_v21, %v16786_v59  ;;  %v5621_v52 = vmul.f32 0.5, %v10829_v32  ;;  %v11465_v30 = vmul.f32 0.5, %v10876_v3  ;;  %v16789_v45 = vld [vmem:[#allocation130_spill] sm:$0xff] }
 0x238   : > { %4957 = vmatpush2.bf16.msra.mxu0 %v16781_v26  ;;  %9297 = vtanh.f32 %v6284_v61  ;;  %v6285_v26 = vmul.f32 0.7978846, %v6157_v41  ;;  %v16790_v17 = vcombine.high %v16788_v62, %v16789_v45  ;;  %v11472_v11 = vmul.f32 %v6500_v63, %v5604_v40  ;;  %v16792_v61 = vld [vmem:[#allocation50_spill] sm:$0xff]  ;;  %v16795_v40 = vld [vmem:[#allocation51_spill] sm:$0xff] }
 0x239   : > { %5070 = vmatpush2.bf16.msra.mxu1 %v16784_v4  ;;  %5152 = vmatprep.subr.bf16.mxu0 %v16787_v13  ;;  %v11475_v29 = vmul.f32 0.5, %v10923_v8  ;;  %v11478_v4 = vmul.f32 0.5, %v10925_v57  ;;  %v6165_v32 = vadd.f32 %v6037_v12, %v11152_v39  ;;  %v11481_v3 = vpop.f32.mrf.mxu1  ;;  %v11484_v41 = vmul.f32 %v6501_v55, %v5605_v42  ;;  %v11493_v57 = vpop.f32.mrf.mxu0  ;;  %v16800_v42 = vld [vmem:[#allocation131_spill] sm:$0xff] }
 0x23a   : > { %5265 = vmatprep.subr.bf16.mxu1 %v16790_v17  ;;  %16791 = vst [vmem:[#allocation98_spill] sm:$0xff] %v11472_v11  ;;  %9299 = vtanh.f32 %v6292_v33  ;;  %v6172_v13 = vadd.f32 %v6044_v16, %v11154_v58  ;;  %v16794_v17 = vld [vmem:[#allocation112_spill] sm:$0xff]  ;;  %v16796_v8 = vcombine.low %v16785_v21, %v16786_v59  ;;  %16797 = vst [vmem:[#allocation100_spill] sm:$0xff] %v11493_v57  ;;  %v6508_v12 = vadd.f32 1.0, %v9282_v47  ;;  %v9290_v59 = vpop.eup %9289 }
 0x23b   : > { %4959 = vmatmul.mubr.bf16.vlgmr.msra.gmra.mxu0 %v16792_v61  ;;  %16793 = vst [vmem:[#allocation99_spill] sm:$0xff] %v11484_v41  ;;  %v5789_v63 = vmul.f32 %v16794_v17, %v16794_v17  ;;  %v6516_v44 = vadd.f32 1.0, %v9286_v9  ;;  %v11496_v61 = vmul.f32 0.5, %v10984_v28  ;;  %v11499_v33 = vmul.f32 0.5, %v11018_v1  ;;  %v11504_v55 = vpop.f32.mrf.mxu1  ;;  %v16803_v28 = vld [vmem:[#allocation91_spill] sm:$0xff]  ;;  %v11514_v9 = vpop.f32.mrf.mxu0 }
 0x23c   : > { %5072 = vmatmul.mubr.bf16.vlgmr.msra.gmra.mxu1 %v16795_v40  ;;  %5153 = vmatpush1.bf16.msra.mxu0 %v16796_v8  ;;  %v16798_v16 = vcombine.low %v16788_v62, %v16789_v45  ;;  %16799 = vst [vmem:[#allocation121_spill] sm:$0xff] %v11504_v55  ;;  %v16801_v40 = vld [vmem:[#allocation132_spill] sm:$0xff]  ;;  %v6517_v8 = vadd.f32 1.0, %v9288_v0  ;;  %v11510_v47 = vmul.f32 0.5, %v11020_v2  ;;  %9301 = vtanh.f32 %v6285_v26  ;;  %16804 = vst [vmem:[#allocation122_spill] sm:$0xff] %v11514_v9  ;;  %v16806_v62 = vld [vmem:[#allocation134_spill] sm:$0xff]  ;;  %v9292_v9 = vpop.eup %9291 }
 0x23d   : > { %v16802_v21 = vcombine.high %v16800_v42, %v16801_v40  ;;  %v5796_v1 = vmul.f32 %v16803_v28, %v16803_v28  ;;  %v16807_v45 = vcombine.high %v16805_v19, %v16806_v62  ;;  %v6509_v0 = vadd.f32 1.0, %v9284_v25  ;;  %v16810_v2 = vld [vmem:[#allocation101_spill] sm:$0xff]  ;;  %v11526_v6 = vpop.f32.mrf.mxu1 }
 0x23e   : > { %5266 = vmatpush1.bf16.msra.mxu1 %v16798_v16  ;;  %v16808_v16 = vld [vmem:[#allocation52_spill] sm:$0xff]  ;;  %v6293_v37 = vmul.f32 0.7978846, %v6165_v32  ;;  %v4119_v26 = vadd.f32 %v11304_v31, %v16810_v2  ;;  %v16811_v55 = vld [vmem:[#allocation53_spill] sm:$0xff]  ;;  %v11531_v57 = vmul.f32 %v11484_v41, %v11484_v41  ;;  %v16813_v25 = vcombine.low %v16800_v42, %v16801_v40  ;;  %v11539_v31 = vpop.f32.mrf.mxu0 }
 0x23f   : > { %5154 = vmatprep.subr.bf16.mxu0 %v16802_v21  ;;  %5267 = vmatprep.subr.bf16.mxu1 %v16807_v45  ;;  %v11522_v21 = vmul.f32 %v11472_v11, %v11472_v11  ;;  %v6300_v45 = vmul.f32 0.7978846, %v6172_v13  ;;  %v11541_v32 = vmul.f32 %v6508_v12, %v5612_v23  ;;  %v11543_v2 = vmul.f32 %v6516_v44, %v5620_v48  ;;  %v16817_v40 = vld [vmem:[#allocation136_spill] sm:$0xff]  ;;  %v16818_v42 = vld [vmem:[#allocation137_spill] sm:$0xff]  ;;  %v9294_v23 = vpop.eup %9293 }
 0x240   : > { %4968 = vmatprep.mubr.bf16.mxu0 %v16808_v16  ;;  %5081 = vmatprep.mubr.bf16.mxu1 %v16811_v55  ;;  %16812 = vst [vmem:[#allocation120_spill] sm:$0xff] %v11531_v57  ;;  %v5917_v16 = vmul.f32 %v5789_v63, %v16794_v17  ;;  %v11546_v11 = vmul.f32 0.5, %v11077_v60  ;;  %v11549_v13 = vadd.f32 %v11320_v18, %v4119_v26  ;;  %v11554_v57 = vpop.f32.mrf.mxu1  ;;  %v16821_v60 = vld [vmem:[#allocation102_spill] sm:$0xff]  ;;  %v16822_v18 = vld [vmem:[#allocation103_spill] sm:$0xff]  ;;  %9303 = vtanh.f32 %v6293_v37 }
 0x241   : > { %16809 = vst [vmem:[#allocation124_spill] sm:$0xff] %v11522_v21  ;;  %v5797_v21 = vmul.f32 %v11268_v43, %v11268_v43  ;;  %5155 = vmatpush1.bf16.msra.mxu0 %v16813_v25  ;;  %16814 = vst [vmem:[#allocation123_spill] sm:$0xff] %v11541_v32  ;;  %v16816_v63 = vcombine.low %v16805_v19, %v16806_v62  ;;  %v16819_v25 = vcombine.high %v16817_v40, %v16818_v42  ;;  %v11566_v32 = vpop.f32.mrf.mxu0  ;;  %v16823_v19 = vld [vmem:[#allocation139_spill] sm:$0xff]  ;;  %v16824_v62 = vld [vmem:[#allocation140_spill] sm:$0xff] }
 0x242   : > { %16815 = vst [vmem:[#allocation126_spill] sm:$0xff] %v11543_v2  ;;  %v11559_v12 = vmul.f32 %v6517_v8, %v5621_v52  ;;  %v5924_v44 = vmul.f32 %v5796_v1, %v16803_v28  ;;  %v4121_v48 = vadd.f32 %v11329_v46, %v16821_v60  ;;  %v4123_v26 = vadd.f32 %v11356_v22, %v16822_v18  ;;  %v11574_v8 = vpop.f32.mrf.mxu1  ;;  %v16827_v1 = vld [vmem:[#allocation54_spill] sm:$0xff]  ;;  %v9296_v46 = vpop.eup %9295  ;;  %v16828_v55 = vld [vmem:[#allocation55_spill] sm:$0xff] }
 0x243   : > { %5268 = vmatpush1.bf16.msra.mxu1 %v16816_v63  ;;  %5156 = vmatprep.subr.bf16.mxu0 %v16819_v25  ;;  %v16825_v63 = vcombine.high %v16823_v19, %v16824_v62  ;;  %v11572_v41 = vmul.f32 %v6509_v0, %v11452_v10  ;;  %v6524_v25 = vadd.f32 1.0, %v9290_v59  ;;  %v6532_v52 = vadd.f32 1.0, %v9292_v9  ;;  %v11585_v59 = vpop.f32.mrf.mxu0 }
 0x244   : > { %16820 = vst [vmem:[#allocation127_spill] sm:$0xff] %v11559_v12  ;;  %4969 = vmatmul.mubr.bf16.gmra.mxu0 %v16827_v1  ;;  %9305 = vtanh.f32 %v6300_v45  ;;  %v6045_v60 = vmul.f32 0.044715, %v5917_v16  ;;  %v5925_v22 = vmul.f32 %v5797_v21, %v11268_v43  ;;  %v11579_v18 = vadd.f32 %v11349_v27, %v4121_v48  ;;  %5082 = vmatmul.mubr.bf16.gmra.mxu1 %v16828_v55  ;;  %v11600_v0 = vpop.f32.mrf.mxu1  ;;  %v16832_v45 = vld [vmem:[#allocation141_spill] sm:$0xff] }
 0x245   : > { %5269 = vmatprep.subr.bf16.mxu1 %v16825_v63  ;;  %16826 = vst [vmem:[#allocation128_spill] sm:$0xff] %v11572_v41  ;;  %v16829_v10 = vcombine.low %v16817_v40, %v16818_v42  ;;  %v11589_v37 = vmul.f32 %v11543_v2, %v11543_v2  ;;  %v6533_v9 = vadd.f32 1.0, %v9294_v23  ;;  %v11592_v16 = vmul.f32 0.5, %v11152_v39  ;;  %v16833_v40 = vld [vmem:[#allocation142_spill] sm:$0xff]  ;;  %v11614_v63 = vpop.f32.mrf.mxu0  ;;  %v16842_v2 = vld [vmem:[#allocation57_spill] sm:$0xff] }
 0x246   : > { %v11595_v21 = vmul.f32 0.5, %v11154_v58  ;;  %v16831_v27 = vcombine.low %v16823_v19, %v16824_v62  ;;  %v16834_v42 = vcombine.high %v16832_v45, %v16833_v40  ;;  %v11607_v48 = vmul.f32 %v11559_v12, %v11559_v12  ;;  %v16836_v19 = vld [vmem:[#allocation143_spill] sm:$0xff]  ;;  %v16841_v12 = vld [vmem:[#allocation106_spill] sm:$0xff]  ;;  %5091 = vmatprep.mubr.bf16.mxu1 %v16842_v2 }
 0x247   : > { %5157 = vmatpush1.bf16.msra.mxu0 %v16829_v10  ;;  %16830 = vst [vmem:[#allocation130_spill] sm:$0xff] %v11589_v37  ;;  %v6052_v23 = vmul.f32 0.044715, %v5924_v44  ;;  %v5804_v39 = vmul.f32 %v11344_v5, %v11344_v5  ;;  %v11612_v58 = vadd.f32 %v11367_v7, %v4123_v26  ;;  %v16837_v62 = vld [vmem:[#allocation83_spill] sm:$0xff]  ;;  %v11621_v37 = vmul.f32 %v6524_v25, %v11465_v30  ;;  %v11627_v26 = vpop.f32.mrf.mxu1 }
 0x248   : > { %5270 = vmatpush1.bf16.msra.mxu1 %v16831_v27  ;;  %5158 = vmatprep.subr.bf16.mxu0 %v16834_v42  ;;  %16835 = vst [vmem:[#allocation112_spill] sm:$0xff] %v11607_v48  ;;  %v16838_v10 = vcombine.high %v16836_v19, %v16837_v62  ;;  %v16839_v27 = vld [vmem:[#allocation56_spill] sm:$0xff]  ;;  %v9298_v42 = vpop.eup %9297  ;;  %v6525_v48 = vadd.f32 1.0, %v9296_v46  ;;  %v5805_v44 = vmul.f32 %v11347_v49, %v11347_v49  ;;  %v6053_v55 = vmul.f32 0.044715, %v5925_v22  ;;  %v11639_v46 = vpop.f32.mrf.mxu0 }
 0x249   : > { %4978 = vmatprep.mubr.bf16.mxu0 %v16839_v27  ;;  %16840 = vst [vmem:[#allocation131_spill] sm:$0xff] %v11621_v37  ;;  %v4127_v7 = vadd.f32 %v11378_v54, %v16841_v12  ;;  %v11631_v41 = vmul.f32 %v6532_v52, %v11478_v4  ;;  %v5812_v30 = vmul.f32 %v11390_v35, %v11390_v35  ;;  %v9300_v54 = vpop.eup %9299  ;;  %v11645_v2 = vmul.f32 0.5, %v16794_v17  ;;  %v16847_v52 = vld [vmem:[#allocation107_spill] sm:$0xff] }
 0x24a   : > { %5271 = vmatprep.subr.bf16.mxu1 %v16838_v10  ;;  %v6173_v10 = vadd.f32 %v6045_v60, %v16794_v17  ;;  %v16844_v25 = vcombine.low %v16832_v45, %v16833_v40  ;;  %v11642_v12 = vmul.f32 %v6533_v9, %v11496_v61  ;;  %v4129_v60 = vadd.f32 %v11408_v24, %v16847_v52  ;;  %v11655_v45 = vpop.f32.mrf.mxu1  ;;  %v16849_v40 = vld [vmem:[#allocation84_spill] sm:$0xff]  ;;  %v16854_v52 = vld [vmem:[#allocation105_spill] sm:$0xff] }
 0x24b   : > { %16843 = vst [vmem:[#allocation132_spill] sm:$0xff] %v11631_v41  ;;  %16846 = vst [vmem:[#allocation133_spill] sm:$0xff] %v11645_v2  ;;  %v11648_v4 = vadd.f32 %v11394_v51, %v4127_v7  ;;  %v16848_v22 = vcombine.low %v16836_v19, %v16837_v62  ;;  %v6540_v61 = vadd.f32 1.0, %v9298_v42  ;;  %v11661_v17 = vmul.f32 0.5, %v16803_v28  ;;  %v11665_v7 = vpop.f32.mrf.mxu0  ;;  %v16853_v24 = vld [vmem:[#allocation104_spill] sm:$0xff]  ;;  %v9302_v62 = vpop.eup %9301 }
 0x24c   : > { %5159 = vmatpush1.bf16.msra.mxu0 %v16844_v25  ;;  %16845 = vst [vmem:[#allocation91_spill] sm:$0xff] %v11642_v12  ;;  %v16850_v25 = vld [vmem:[#allocation144_spill] sm:$0xff]  ;;  %v6180_v51 = vadd.f32 %v6052_v23, %v16803_v28  ;;  %v5932_v9 = vmul.f32 %v5804_v39, %v11344_v5  ;;  %v16855_v19 = vcombine.high %v16853_v24, %v16854_v52  ;;  %v11681_v23 = vpop.f32.mrf.mxu1  ;;  %v16858_v39 = vld [vmem:[#allocation58_spill] sm:$0xff]  ;;  %v6548_v1 = vadd.f32 1.0, %v9300_v54 }
 0x24d   : > { %5272 = vmatpush1.bf16.msra.mxu1 %v16848_v22  ;;  %v16851_v27 = vcombine.high %v16849_v40, %v16850_v25  ;;  %16852 = vst [vmem:[#allocation134_spill] sm:$0xff] %v11661_v17  ;;  %v11672_v22 = vmul.f32 %v11621_v37, %v11621_v37  ;;  %v5933_v42 = vmul.f32 %v5805_v44, %v11347_v49  ;;  %v6301_v2 = vmul.f32 0.7978846, %v6173_v10  ;;  %v16859_v37 = vld [vmem:[#allocation59_spill] sm:$0xff] }
 0x24e   : > { %5273 = vmatprep.subr.bf16.mxu1 %v16855_v19  ;;  %v11679_v28 = vadd.f32 %v11413_v56, %v4129_v60  ;;  %4979 = vmatmul.mubr.bf16.gmra.mxu0 %v16858_v39  ;;  %v6181_v19 = vadd.f32 %v6053_v55, %v11268_v43  ;;  %v5940_v17 = vmul.f32 %v5812_v30, %v11390_v35  ;;  %v11701_v55 = vmul.f32 0.5, %v11268_v43  ;;  %v11708_v54 = vpop.f32.mrf.mxu1  ;;  %v16865_v60 = vld [vmem:[#allocation145_spill] sm:$0xff] }
 0x24f   : > { %5160 = vmatprep.subr.bf16.mxu0 %v16851_v27  ;;  %16856 = vst [vmem:[#allocation101_spill] sm:$0xff] %v11672_v22  ;;  %v11675_v27 = vmul.f32 %v6525_v48, %v11475_v29  ;;  %5092 = vmatmul.mubr.bf16.gmra.mxu1 %v16859_v37  ;;  %v16860_v29 = vcombine.low %v16849_v40, %v16850_v25  ;;  %v11690_v48 = vpop.f32.mrf.mxu0  ;;  %v16866_v40 = vld [vmem:[#allocation146_spill] sm:$0xff]  ;;  %v6541_v22 = vadd.f32 1.0, %v9302_v62  ;;  %v6060_v43 = vmul.f32 0.044715, %v5932_v9  ;;  %v16873_v37 = vld [vmem:[#allocation108_spill] sm:$0xff]  ;;  %v9304_v62 = vpop.eup %9303 }
 0x250   : > { %v11694_v56 = vmul.f32 %v11631_v41, %v11631_v41  ;;  %v11698_v44 = vmul.f32 %v11642_v12, %v11642_v12  ;;  %16863 = vst [vmem:[#allocation103_spill] sm:$0xff] %v11701_v55  ;;  %v5813_v10 = vmul.f32 %v11424_v15, %v11424_v15  ;;  %v16864_v30 = vcombine.low %v16853_v24, %v16854_v52  ;;  %v16869_v12 = vld [vmem:[#allocation147_spill] sm:$0xff]  ;;  %v16870_v41 = vld [vmem:[#allocation148_spill] sm:$0xff]  ;;  %v16875_v9 = vld [vmem:[#allocation61_spill] sm:$0xff] }
 0x251   : > { %16857 = vst [vmem:[#allocation136_spill] sm:$0xff] %v11675_v27  ;;  %5161 = vmatpush1.bf16.msra.mxu0 %v16860_v29  ;;  %v16867_v25 = vcombine.high %v16865_v60, %v16866_v40  ;;  %v11714_v29 = vmul.f32 %v6540_v61, %v11499_v33  ;;  %v16871_v27 = vcombine.high %v16869_v12, %v16870_v41  ;;  %v16872_v24 = vld [vmem:[#allocation60_spill] sm:$0xff]  ;;  %v6061_v52 = vmul.f32 0.044715, %v5933_v42  ;;  %v16874_v33 = vld [vmem:[#allocation111_spill] sm:$0xff] }
 0x252   : > { %16861 = vst [vmem:[#allocation137_spill] sm:$0xff] %v11694_v56  ;;  %16862 = vst [vmem:[#allocation102_spill] sm:$0xff] %v11698_v44  ;;  %5274 = vmatpush1.bf16.msra.mxu1 %v16864_v30  ;;  %v6308_v44 = vmul.f32 0.7978846, %v6180_v51  ;;  %v11716_v56 = vpop.f32.mrf.mxu0  ;;  %4988 = vmatprep.mubr.bf16.mxu0 %v16872_v24  ;;  %v5820_v30 = vmul.f32 %v11427_v53, %v11427_v53  ;;  %v4133_v61 = vadd.f32 %v11447_v38, %v16874_v33  ;;  %v11728_v51 = vpop.f32.mrf.mxu1 }
 0x253   : > { %5162 = vmatprep.subr.bf16.mxu0 %v16867_v25  ;;  %16868 = vst [vmem:[#allocation139_spill] sm:$0xff] %v11714_v29  ;;  %5275 = vmatprep.subr.bf16.mxu1 %v16871_v27  ;;  %v4131_v25 = vadd.f32 %v11429_v20, %v16873_v37  ;;  %v11732_v39 = vmul.f32 %v6548_v1, %v11546_v11  ;;  %9307 = vtanh.f32 %v6301_v2  ;;  %v6309_v27 = vmul.f32 0.7978846, %v6181_v19  ;;  %v9306_v20 = vpop.eup %9305  ;;  %v16880_v19 = vld [vmem:[#allocation149_spill] sm:$0xff] }
 0x254   : > { %5101 = vmatprep.mubr.bf16.mxu1 %v16875_v9  ;;  %v6068_v42 = vmul.f32 0.044715, %v5940_v17  ;;  %v16877_v24 = vcombine.low %v16865_v60, %v16866_v40  ;;  %v11737_v55 = vpop.f32.mrf.mxu0  ;;  %v11740_v38 = vmul.f32 0.5, %v11344_v5  ;;  %v5941_v37 = vmul.f32 %v5813_v10, %v11424_v15  ;;  %v11752_v1 = vpop.f32.mrf.mxu1  ;;  %v16879_v17 = vld [vmem:[#allocation85_spill] sm:$0xff] }
 0x255   : > { %16876 = vst [vmem:[#allocation140_spill] sm:$0xff] %v11732_v39  ;;  %v11744_v33 = vadd.f32 %v11441_v36, %v4131_v25  ;;  %v11747_v11 = vadd.f32 %v11458_v50, %v4133_v61  ;;  %v16878_v2 = vcombine.low %v16869_v12, %v16870_v41  ;;  %v16881_v60 = vcombine.high %v16879_v17, %v16880_v19  ;;  %v16884_v50 = vld [vmem:[#allocation135_spill] sm:$0xff]  ;;  %v16885_v12 = vld [vmem:[#allocation150_spill] sm:$0xff] }
 0x256   : > { %5163 = vmatpush1.bf16.msra.mxu0 %v16877_v24  ;;  %v11759_v40 = vmul.f32 %v11714_v29, %v11714_v29  ;;  %v6188_v36 = vadd.f32 %v6060_v43, %v11344_v5  ;;  %v11763_v10 = vmul.f32 0.5, %v11347_v49  ;;  %v4283_v24 = vadd.f32 %v11467_v14, %v16884_v50  ;;  %v11767_v41 = vpop.f32.mrf.mxu0  ;;  %v16886_v25 = vld [vmem:[#allocation151_spill] sm:$0xff]  ;;  %v11774_v29 = vpop.f32.mrf.mxu1  ;;  %v16888_v5 = vld [vmem:[#allocation62_spill] sm:$0xff] }
 0x257   : > { %5276 = vmatpush1.bf16.msra.mxu1 %v16878_v2  ;;  %5164 = vmatprep.subr.bf16.mxu0 %v16881_v60  ;;  %v16887_v61 = vcombine.high %v16885_v12, %v16886_v25  ;;  %v6549_v2 = vadd.f32 1.0, %v9304_v62  ;;  %9309 = vtanh.f32 %v6308_v44  ;;  %v6189_v60 = vadd.f32 %v6061_v52, %v11347_v49 }
 0x258   : > { %16882 = vst [vmem:[#allocation141_spill] sm:$0xff] %v11759_v40  ;;  %16883 = vst [vmem:[#allocation142_spill] sm:$0xff] %v11763_v10  ;;  %v5948_v40 = vmul.f32 %v5820_v30, %v11427_v53  ;;  %4989 = vmatmul.mubr.bf16.gmra.mxu0 %v16888_v5  ;;  %v11778_v43 = vmul.f32 %v6541_v22, %v11510_v47  ;;  %v6556_v14 = vadd.f32 1.0, %v9306_v20  ;;  %9311 = vtanh.f32 %v6309_v27  ;;  %v16890_v10 = vld [vmem:[#allocation63_spill] sm:$0xff]  ;;  %v11785_v49 = vpop.f32.mrf.mxu0  ;;  %v11800_v27 = vpop.f32.mrf.mxu1  ;;  %v16897_v20 = vld [vmem:[#allocation153_spill] sm:$0xff] }
 0x259   : > { %5277 = vmatprep.subr.bf16.mxu1 %v16887_v61  ;;  %v6196_v9 = vadd.f32 %v6068_v42, %v11390_v35  ;;  %5102 = vmatmul.mubr.bf16.gmra.mxu1 %v16890_v10  ;;  %v16891_v44 = vcombine.low %v16879_v17, %v16880_v19  ;;  %v11789_v52 = vmul.f32 %v11732_v39, %v11732_v39  ;;  %v11792_v30 = vmul.f32 0.5, %v11390_v35  ;;  %v16896_v42 = vld [vmem:[#allocation152_spill] sm:$0xff] }
 0x25a   : > { %16889 = vst [vmem:[#allocation143_spill] sm:$0xff] %v11778_v43  ;;  %v11795_v47 = vmul.f32 0.5, %v11424_v15  ;;  %v6069_v22 = vmul.f32 0.044715, %v5941_v37  ;;  %v16895_v62 = vcombine.low %v16885_v12, %v16886_v25  ;;  %v16898_v17 = vcombine.high %v16896_v42, %v16897_v20  ;;  %v11812_v39 = vpop.f32.mrf.mxu0  ;;  %v16901_v12 = vld [vmem:[#allocation86_spill] sm:$0xff]  ;;  %v16902_v25 = vld [vmem:[#allocation87_spill] sm:$0xff] }
 0x25b   : > { %5165 = vmatpush1.bf16.msra.mxu0 %v16891_v44  ;;  %16892 = vst [vmem:[#allocation83_spill] sm:$0xff] %v11789_v52  ;;  %16893 = vst [vmem:[#allocation106_spill] sm:$0xff] %v11792_v30  ;;  %v6316_v19 = vmul.f32 0.7978846, %v6188_v36  ;;  %v5821_v61 = vmul.f32 %v11436_v34, %v11436_v34  ;;  %v11808_v35 = vadd.f32 %v11481_v3, %v4283_v24  ;;  %v16899_v44 = vld [vmem:[#allocation138_spill] sm:$0xff]  ;;  %v16900_v52 = vld [vmem:[#allocation100_spill] sm:$0xff]  ;;  %v11825_v3 = vpop.f32.mrf.mxu1 }
 0x25c   : > { %16894 = vst [vmem:[#allocation107_spill] sm:$0xff] %v11795_v47  ;;  %5278 = vmatpush1.bf16.msra.mxu1 %v16895_v62  ;;  %5166 = vmatprep.subr.bf16.mxu0 %v16898_v17  ;;  %v4285_v37 = vadd.f32 %v16900_v52, %v16899_v44  ;;  %v16903_v62 = vcombine.high %v16901_v12, %v16902_v25  ;;  %v11820_v17 = vmul.f32 0.7978846, %v6189_v60  ;;  %v11823_v36 = vmul.f32 0.5, %v11427_v53  ;;  %v16905_v24 = vld [vmem:[#allocation64_spill] sm:$0xff]  ;;  %v16906_v52 = vld [vmem:[#allocation65_spill] sm:$0xff] }
 0x25d   : > { %v11818_v43 = vmul.f32 %v6549_v2, %v11592_v16  ;;  %v6076_v10 = vmul.f32 0.044715, %v5948_v40  ;;  %4998 = vmatprep.mubr.bf16.mxu0 %v16905_v24  ;;  %5111 = vmatprep.mubr.bf16.mxu1 %v16906_v52  ;;  %v11830_v5 = vmul.f32 %v6556_v14, %v11595_v21  ;;  %v6324_v47 = vmul.f32 0.7978846, %v6196_v9  ;;  %v16909_v16 = vld [vmem:[#allocation122_spill] sm:$0xff]  ;;  %v11840_v40 = vpop.f32.mrf.mxu0 }
 0x25e   : > { %5279 = vmatprep.subr.bf16.mxu1 %v16903_v62  ;;  %v16908_v62 = vld [vmem:[#allocation121_spill] sm:$0xff]  ;;  %v4287_v2 = vadd.f32 %v16909_v16, %v16884_v50  ;;  %v16910_v60 = vcombine.low %v16896_v42, %v16897_v20  ;;  %v6197_v24 = vadd.f32 %v6069_v22, %v11424_v15  ;;  %v4289_v52 = vadd.f32 %v11539_v31, %v16899_v44 }
 0x25f   : > { %16904 = vst [vmem:[#allocation84_spill] sm:$0xff] %v11818_v43  ;;  %16907 = vst [vmem:[#allocation144_spill] sm:$0xff] %v11830_v5  ;;  %v11833_v30 = vadd.f32 %v16908_v62, %v4285_v37  ;;  %v4293_v21 = vadd.f32 %v11566_v32, %v16884_v50  ;;  %v4295_v9 = vadd.f32 %v11585_v59, %v16899_v44  ;;  %v11852_v37 = vpop.f32.mrf.mxu1  ;;  %v16912_v20 = vld [vmem:[#allocation97_spill] sm:$0xff]  ;;  %v4322_v22 = vpop.f32.mrf.mxu0  ;;  %v16913_v59 = vld [vmem:[#allocation154_spill] sm:$0xff]  ;;  %9313 = vtanh.f32 %v6316_v19 }
 0x260   : > { %5167 = vmatpush1.bf16.msra.mxu0 %v16910_v60  ;;  %v16911_v14 = vcombine.low %v16901_v12, %v16902_v25  ;;  %v11855_v42 = vmul.f32 %v5821_v61, %v11436_v34  ;;  %v5828_v15 = vmul.f32 %v16912_v20, %v16912_v20  ;;  %v11860_v31 = vadd.f32 %v11526_v6, %v4287_v2  ;;  %v16914_v62 = vld [vmem:[#allocation155_spill] sm:$0xff]  ;;  %v16918_v60 = vld [vmem:[#allocation66_spill] sm:$0xff] }
 0x261   : > { %v4297_v32 = vadd.f32 %v11614_v63, %v16884_v50  ;;  %v16915_v16 = vcombine.high %v16913_v59, %v16914_v62  ;;  %v11868_v12 = vadd.f32 %v6076_v10, %v11427_v53  ;;  %v11871_v61 = vadd.f32 %v11554_v57, %v4289_v52  ;;  %v4435_v2 = vpop.f32.mrf.mxu1  ;;  %4999 = vmatmul.mubr.bf16.gmra.mxu0 %v16918_v60  ;;  %v16920_v57 = vld [vmem:[#allocation67_spill] sm:$0xff]  ;;  %v16922_v52 = vld [vmem:[#allocation157_spill] sm:$0xff] }
 0x262   : > { %5280 = vmatpush1.bf16.msra.mxu1 %v16911_v14  ;;  %v11874_v25 = vadd.f32 %v11574_v8, %v4293_v21  ;;  %v11877_v6 = vadd.f32 %v11600_v0, %v4295_v9  ;;  %v5829_v63 = vmul.f32 %v11549_v13, %v11549_v13  ;;  %v5836_v53 = vmul.f32 %v11579_v18, %v11579_v18  ;;  %v16921_v8 = vld [vmem:[#allocation156_spill] sm:$0xff]  ;;  %v4324_v0 = vpop.f32.mrf.mxu0  ;;  %v11891_v9 = vpop.eup %9307 }
 0x263   : > { %5168 = vmatprep.subr.bf16.mxu0 %v16915_v16  ;;  %v11885_v10 = vadd.f32 %v11627_v26, %v4297_v32  ;;  %5112 = vmatmul.mubr.bf16.gmra.mxu1 %v16920_v57  ;;  %v16923_v21 = vcombine.high %v16921_v8, %v16922_v52  ;;  %v4299_v19 = vadd.f32 %v11639_v46, %v16899_v44  ;;  %9315 = vtanh.f32 %v6324_v47 }
 0x264   : > { %16916 = vst [vmem:[#allocation104_spill] sm:$0xff] %v11874_v25  ;;  %16917 = vst [vmem:[#allocation105_spill] sm:$0xff] %v11877_v6  ;;  %v4303_v14 = vadd.f32 %v11665_v7, %v16884_v50  ;;  %v4305_v16 = vadd.f32 %v11690_v48, %v16899_v44  ;;  %v4307_v26 = vadd.f32 %v11716_v56, %v16884_v50  ;;  %v4326_v60 = vpop.f32.mrf.mxu0  ;;  %v16926_v56 = vld [vmem:[#allocation88_spill] sm:$0xff]  ;;  %v11930_v25 = vpop.eup %9309 }
 0x265   : > { %16919 = vst [vmem:[#allocation145_spill] sm:$0xff] %v11885_v10  ;;  %5281 = vmatprep.subr.bf16.mxu1 %v16923_v21  ;;  %v16924_v32 = vcombine.low %v16913_v59, %v16914_v62  ;;  %v4437_v21 = vpop.f32.mrf.mxu1  ;;  %v5956_v57 = vmul.f32 %v5828_v15, %v16912_v20  ;;  %v5837_v46 = vmul.f32 %v11612_v58, %v11612_v58  ;;  %v16927_v10 = vld [vmem:[#allocation158_spill] sm:$0xff]  ;;  %v11915_v59 = vmul.f32 0.7978846, %v6197_v24 }
 0x266   : > { %v4309_v7 = vadd.f32 %v11737_v55, %v16899_v44  ;;  %v16925_v48 = vcombine.low %v16921_v8, %v16922_v52  ;;  %v16928_v6 = vcombine.high %v16926_v56, %v16927_v10  ;;  %v11918_v47 = vadd.f32 %v11655_v45, %v4299_v19  ;;  %v16930_v8 = vld [vmem:[#allocation160_spill] sm:$0xff]  ;;  %v16934_v19 = vld [vmem:[#allocation69_spill] sm:$0xff] }
 0x267   : > { %5169 = vmatpush2.bf16.msra.mxu0 %v16924_v32  ;;  %v11921_v15 = vadd.f32 %v11681_v23, %v4303_v14  ;;  %v11924_v62 = vadd.f32 %v11708_v54, %v4305_v16  ;;  %v4439_v55 = vpop.f32.mrf.mxu1  ;;  %v16929_v32 = vld [vmem:[#allocation159_spill] sm:$0xff]  ;;  %v5957_v24 = vmul.f32 %v5829_v63, %v11549_v13  ;;  %v5964_v45 = vmul.f32 %v5836_v53, %v11579_v18  ;;  %v4328_v54 = vpop.f32.mrf.mxu0 }
 0x268   : > { %5282 = vmatpush2.bf16.msra.mxu1 %v16925_v48  ;;  %5170 = vmatprep.subr.bf16.mxu0 %v16928_v6  ;;  %v16931_v52 = vcombine.high %v16929_v32, %v16930_v8  ;;  %v16932_v48 = vld [vmem:[#allocation68_spill] sm:$0xff]  ;;  %v5844_v23 = vmul.f32 %v11648_v4, %v11648_v4  ;;  %v11937_v6 = vadd.f32 %v11728_v51, %v4307_v26  ;;  %v11940_v14 = vpop.eup %9311  ;;  %9317 = vtanh.f32 %v11915_v59 }
 0x269   : > { %5008 = vmatprep.mubr.bf16.mxu0 %v16932_v48  ;;  %5121 = vmatprep.mubr.bf16.mxu1 %v16934_v19  ;;  %v11943_v16 = vadd.f32 %v11752_v1, %v4309_v7  ;;  %v4315_v63 = vadd.f32 %v11785_v49, %v16899_v44  ;;  %v4317_v53 = vadd.f32 %v11812_v39, %v16884_v50  ;;  %v4441_v26 = vpop.f32.mrf.mxu1  ;;  %v4332_v39 = vpop.f32.mrf.mxu0  ;;  %v6084_v48 = vmul.f32 0.044715, %v5956_v57 }
 0x26a   : > { %5283 = vmatprep.subr.bf16.mxu1 %v16931_v52  ;;  %16933 = vst [vmem:[#allocation146_spill] sm:$0xff] %v11937_v6  ;;  %v4313_v52 = vadd.f32 %v11767_v41, %v16884_v50  ;;  %v16936_v51 = vcombine.low %v16926_v56, %v16927_v10  ;;  %v5965_v19 = vmul.f32 %v5837_v46, %v11612_v58  ;;  %9319 = vtanh.f32 %v11820_v17  ;;  %v16967_v17 = vld [vmem:[#allocation75_spill] sm:$0xff] }
 0x26b   : > { %16935 = vst [vmem:[#allocation147_spill] sm:$0xff] %v11943_v16  ;;  %v5845_v1 = vmul.f32 %v11679_v28, %v11679_v28  ;;  %v4319_v7 = vadd.f32 %v11840_v40, %v16899_v44  ;;  %v4323_v41 = vadd.f32 %v4322_v22, %v16884_v50  ;;  %v16937_v49 = vcombine.low %v16929_v32, %v16930_v8  ;;  %v16938_v16 = vld [vmem:[#allocation70_spill] sm:$0xff]  ;;  %v16939_v40 = vld [vmem:[#allocation161_spill] sm:$0xff]  ;;  %v16942_v8 = vld [vmem:[#allocation71_spill] sm:$0xff] }
 0x26c   : > { %5171 = vmatpush2.bf16.msra.mxu0 %v16936_v51  ;;  %v11964_v10 = vadd.f32 %v11774_v29, %v4313_v52  ;;  %v11967_v56 = vadd.f32 %v11800_v27, %v4315_v63  ;;  %v11970_v46 = vadd.f32 %v11825_v3, %v4317_v53  ;;  %v4445_v51 = vpop.f32.mrf.mxu1  ;;  %v16940_v22 = vld [vmem:[#allocation162_spill] sm:$0xff]  ;;  %v4325_v29 = vadd.f32 %v4324_v0, %v16899_v44  ;;  %v4334_v3 = vpop.f32.mrf.mxu0 }
 0x26d   : > { %5284 = vmatpush2.bf16.msra.mxu1 %v16937_v49  ;;  %5009 = vmatmul.mubr.bf16.gmra.mxu0 %v16938_v16  ;;  %v16941_v6 = vcombine.high %v16939_v40, %v16940_v22  ;;  %v11977_v32 = vadd.f32 %v11852_v37, %v4319_v7  ;;  %v11979_v57 = vadd.f32 %v4435_v2, %v4323_v41  ;;  %v6085_v52 = vmul.f32 0.044715, %v5957_v24  ;;  %v16944_v16 = vld [vmem:[#allocation164_spill] sm:$0xff] }
 0x26e   : > { %v4327_v27 = vadd.f32 %v4326_v60, %v16884_v50  ;;  %5122 = vmatmul.mubr.bf16.gmra.mxu1 %v16942_v8  ;;  %v5972_v63 = vmul.f32 %v5844_v23, %v11648_v4  ;;  %v4329_v53 = vadd.f32 %v4328_v54, %v16899_v44  ;;  %v4333_v49 = vadd.f32 %v4332_v39, %v16884_v50  ;;  %v4447_v0 = vpop.f32.mrf.mxu1  ;;  %v4336_v54 = vpop.f32.mrf.mxu0  ;;  %v16948_v39 = vld [vmem:[#allocation165_spill] sm:$0xff]  ;;  %v16949_v8 = vld [vmem:[#allocation166_spill] sm:$0xff] }
 0x26f   : > { %5172 = vmatprep.subr.bf16.mxu0 %v16941_v6  ;;  %v16943_v6 = vld [vmem:[#allocation163_spill] sm:$0xff]  ;;  %v16946_v2 = vcombine.low %v16939_v40, %v16940_v22  ;;  %v6092_v60 = vmul.f32 0.044715, %v5964_v45  ;;  %v11993_v7 = vadd.f32 %v4437_v21, %v4325_v29  ;;  %v4335_v23 = vadd.f32 %v4334_v3, %v16899_v44  ;;  %v16951_v29 = vld [vmem:[#allocation89_spill] sm:$0xff] }
 0x270   : > { %v16945_v37 = vcombine.high %v16943_v6, %v16944_v16  ;;  %v11995_v41 = vadd.f32 %v4439_v55, %v4327_v27  ;;  %v16947_v24 = vcombine.low %v16943_v6, %v16944_v16  ;;  %v6077_v40 = vmul.f32 0.044715, %v11855_v42  ;;  %v4449_v55 = vpop.f32.mrf.mxu1  ;;  %v16952_v27 = vld [vmem:[#allocation109_spill] sm:$0xff]  ;;  %v4338_v42 = vpop.f32.mrf.mxu0 }
 0x271   : > { %5173 = vmatpush2.bf16.msra.mxu0 %v16946_v2  ;;  %v6212_v22 = vadd.f32 %v6084_v48, %v16912_v20  ;;  %v12006_v45 = vadd.f32 %v4441_v26, %v4329_v53  ;;  %v12008_v21 = vadd.f32 %v4445_v51, %v4333_v49  ;;  %v16953_v16 = vcombine.high %v16951_v29, %v16952_v27  ;;  %v16956_v48 = vld [vmem:[#allocation73_spill] sm:$0xff]  ;;  %v12020_v26 = vpop.eup %9313 }
 0x272   : > { %5285 = vmatprep.subr.bf16.mxu1 %v16945_v37  ;;  %v16950_v37 = vcombine.high %v16948_v39, %v16949_v8  ;;  %v6332_v3 = vmul.f32 0.7978846, %v11868_v12  ;;  %v5973_v6 = vmul.f32 %v5845_v1, %v11679_v28  ;;  %v12015_v2 = vadd.f32 %v4447_v0, %v4335_v23  ;;  %5131 = vmatprep.mubr.bf16.mxu1 %v16956_v48  ;;  %v4451_v49 = vpop.f32.mrf.mxu1  ;;  %v16961_v48 = vld [vmem:[#allocation90_spill] sm:$0xff] }
 0x273   : > { %5286 = vmatpush2.bf16.msra.mxu1 %v16947_v24  ;;  %v4337_v24 = vadd.f32 %v4336_v54, %v16884_v50  ;;  %v6213_v51 = vadd.f32 %v6085_v52, %v11549_v13  ;;  %v6093_v53 = vmul.f32 0.044715, %v5965_v19  ;;  %v16957_v12 = vcombine.low %v16948_v39, %v16949_v8  ;;  %v4342_v19 = vpop.f32.mrf.mxu0  ;;  %v16960_v52 = vld [vmem:[#allocation110_spill] sm:$0xff]  ;;  %v12039_v39 = vpop.eup %9315 }
 0x274   : > { %5174 = vmatprep.subr.bf16.mxu0 %v16950_v37  ;;  %5287 = vmatprep.subr.bf16.mxu1 %v16953_v16  ;;  %16954 = vst [vmem:[#allocation148_spill] sm:$0xff] %v12015_v2  ;;  %v16955_v37 = vld [vmem:[#allocation72_spill] sm:$0xff]  ;;  %v4339_v1 = vadd.f32 %v4338_v42, %v16899_v44  ;;  %v6220_v0 = vadd.f32 %v6092_v60, %v11579_v18  ;;  %v6100_v23 = vmul.f32 0.044715, %v5972_v63  ;;  %v16963_v42 = vld [vmem:[#allocation74_spill] sm:$0xff]  ;;  %9321 = vtanh.f32 %v6332_v3 }
 0x275   : > { %5018 = vmatprep.mubr.bf16.mxu0 %v16955_v37  ;;  %5175 = vmatpush2.bf16.msra.mxu0 %v16957_v12  ;;  %v5852_v54 = vmul.f32 %v11744_v33, %v11744_v33  ;;  %v12031_v16 = vadd.f32 %v4449_v55, %v4337_v24  ;;  %v16959_v59 = vcombine.low %v16951_v29, %v16952_v27  ;;  %v4455_v24 = vpop.f32.mrf.mxu1  ;;  %v16964_v29 = vld [vmem:[#allocation92_spill] sm:$0xff]  ;;  %v16965_v27 = vld [vmem:[#allocation113_spill] sm:$0xff]  ;;  %v6101_v37 = vmul.f32 0.044715, %v5973_v6 }
 0x276   : > { %v16962_v8 = vcombine.high %v16960_v52, %v16961_v48  ;;  %v5853_v63 = vmul.f32 %v11747_v11, %v11747_v11  ;;  %v12044_v60 = vadd.f32 %v4451_v49, %v4339_v1  ;;  %v4343_v55 = vadd.f32 %v4342_v19, %v16884_v50  ;;  %5019 = vmatmul.mubr.bf16.gmra.mxu0 %v16963_v42  ;;  %v16968_v2 = vld [vmem:[#allocation76_spill] sm:$0xff] }
 0x277   : > { %16958 = vst [vmem:[#allocation108_spill] sm:$0xff] %v12031_v16  ;;  %5288 = vmatpush2.bf16.msra.mxu1 %v16959_v59  ;;  %v16966_v12 = vcombine.high %v16964_v29, %v16965_v27  ;;  %v6205_v59 = vadd.f32 %v6077_v40, %v11436_v34  ;;  %v4344_v16 = vpop.f32.mrf.mxu0  ;;  %5028 = vmatprep.mubr.bf16.mxu0 %v16968_v2  ;;  %v6341_v1 = vmul.f32 0.7978846, %v6213_v51  ;;  %v16971_v40 = vld [vmem:[#allocation77_spill] sm:$0xff]  ;;  %v12067_v6 = vmul.f32 0.5, %v11436_v34 }
 0x278   : > { %5176 = vmatprep.subr.bf16.mxu0 %v16962_v8  ;;  %v6340_v8 = vmul.f32 0.7978846, %v6212_v22  ;;  %5132 = vmatmul.mubr.bf16.gmra.mxu1 %v16967_v17  ;;  %v6221_v49 = vadd.f32 %v6093_v53, %v11612_v58  ;;  %v12055_v19 = vadd.f32 %v4455_v24, %v4343_v55  ;;  %v16970_v42 = vcombine.low %v16960_v52, %v16961_v48  ;;  %v16975_v55 = vld [vmem:[#allocation93_spill] sm:$0xff]  ;;  %v16979_v17 = vld [vmem:[#allocation167_spill] sm:$0xff] }
 0x279   : > { %5289 = vmatprep.subr.bf16.mxu1 %v16966_v12  ;;  %v4345_v3 = vadd.f32 %v4344_v16, %v16899_v44  ;;  %v4457_v12 = vpop.f32.mrf.mxu1  ;;  %5141 = vmatprep.mubr.bf16.mxu1 %v16971_v40  ;;  %v12064_v22 = vmul.f32 %v11818_v43, %v11818_v43  ;;  %v6228_v51 = vadd.f32 %v6100_v23, %v11648_v4  ;;  %v4346_v52 = vpop.f32.mrf.mxu0  ;;  %v16974_v16 = vld [vmem:[#allocation114_spill] sm:$0xff]  ;;  %v16978_v23 = vld [vmem:[#allocation115_spill] sm:$0xff] }
 0x27a   : > { %16969 = vst [vmem:[#allocation111_spill] sm:$0xff] %v12055_v19  ;;  %5177 = vmatpush2.bf16.msra.mxu0 %v16970_v42  ;;  %v5980_v53 = vmul.f32 %v5852_v54, %v11744_v33  ;;  %v16973_v48 = vcombine.low %v16964_v29, %v16965_v27  ;;  %v16976_v24 = vcombine.high %v16974_v16, %v16975_v55  ;;  %v6348_v42 = vmul.f32 0.7978846, %v6220_v0 }
 0x27b   : > { %16972 = vst [vmem:[#allocation85_spill] sm:$0xff] %v12064_v22  ;;  %v5981_v43 = vmul.f32 %v5853_v63, %v11747_v11  ;;  %v12078_v22 = vadd.f32 %v4457_v12, %v4345_v3  ;;  %v4347_v34 = vadd.f32 %v4346_v52, %v16884_v50  ;;  %v4459_v40 = vpop.f32.mrf.mxu1  ;;  %v16980_v54 = vcombine.high %v16978_v23, %v16979_v17  ;;  %v4348_v2 = vpop.f32.mrf.mxu0 }
 0x27c   : > { %5290 = vmatpush2.bf16.msra.mxu1 %v16973_v48  ;;  %5178 = vmatprep.subr.bf16.mxu0 %v16976_v24  ;;  %v6564_v29 = vadd.f32 1.0, %v11930_v25  ;;  %v6333_v27 = vmul.f32 0.7978846, %v6205_v59  ;;  %9323 = vtanh.f32 %v6340_v8  ;;  %v6229_v48 = vadd.f32 %v6101_v37, %v11679_v28 }
 0x27d   : > { %16977 = vst [vmem:[#allocation149_spill] sm:$0xff] %v12078_v22  ;;  %5291 = vmatprep.subr.bf16.mxu1 %v16980_v54  ;;  %9325 = vtanh.f32 %v6341_v1  ;;  %v6349_v0 = vmul.f32 0.7978846, %v6221_v49  ;;  %v12086_v24 = vadd.f32 %v4459_v40, %v4347_v34  ;;  %v16982_v63 = vcombine.low %v16974_v16, %v16975_v55  ;;  %v4461_v12 = vpop.f32.mrf.mxu1  ;;  %v4352_v1 = vpop.f32.mrf.mxu0  ;;  %v16984_v49 = vld [vmem:[#allocation116_spill] sm:$0xff] }
 0x27e   : > { %v4349_v3 = vadd.f32 %v4348_v2, %v16899_v44  ;;  %v6557_v52 = vadd.f32 1.0, %v11891_v9  ;;  %v12094_v25 = vmul.f32 0.5, %v16912_v20  ;;  %v6356_v59 = vmul.f32 0.7978846, %v6228_v51  ;;  %v16985_v40 = vld [vmem:[#allocation168_spill] sm:$0xff]  ;;  %v16988_v20 = vld [vmem:[#allocation78_spill] sm:$0xff] }
 0x27f   : > { %16981 = vst [vmem:[#allocation135_spill] sm:$0xff] %v12086_v24  ;;  %5179 = vmatpush2.bf16.msra.mxu0 %v16982_v63  ;;  %v6108_v8 = vmul.f32 0.044715, %v5980_v53  ;;  %v16983_v37 = vcombine.low %v16978_v23, %v16979_v17  ;;  %v16986_v34 = vcombine.high %v16984_v49, %v16985_v40  ;;  %9327 = vtanh.f32 %v6348_v42  ;;  %v4465_v55 = vpop.f32.mrf.mxu1  ;;  %v16989_v51 = vld [vmem:[#allocation117_spill] sm:$0xff]  ;;  %v16990_v53 = vld [vmem:[#allocation94_spill] sm:$0xff]  ;;  %v12109_v17 = vld [vmem:[#allocation5 + $0x9d8] sm:$0xff] }
 0x280   : > { %v6109_v16 = vmul.f32 0.044715, %v5981_v43  ;;  %v12102_v2 = vadd.f32 %v4461_v12, %v4349_v3  ;;  %v4353_v9 = vadd.f32 %v4352_v1, %v16884_v50  ;;  %5029 = vmatmul.mubr.bf16.gmra.mxu0 %v16988_v20  ;;  %v16991_v54 = vcombine.high %v16989_v51, %v16990_v53  ;;  %v12111_v23 = vld [vmem:[#allocation5 + $0x9f8] sm:$0xff]  ;;  %v16993_v43 = vld [vmem:[#allocation134_spill] sm:$0xff]  ;;  %v16995_v12 = vld [vmem:[#allocation79_spill] sm:$0xff] }
 0x281   : > { %5292 = vmatpush2.bf16.msra.mxu1 %v16983_v37  ;;  %5180 = vmatprep.subr.bf16.mxu0 %v16986_v34  ;;  %v12115_v63 = vmul.f32 %v11830_v5, %v11830_v5  ;;  %v12118_v42 = vmul.f32 %v6564_v29, %v16993_v43  ;;  %9329 = vtanh.f32 %v6333_v27  ;;  %v6357_v3 = vmul.f32 0.7978846, %v6229_v48  ;;  %v4354_v37 = vpop.f32.mrf.mxu0  ;;  %v16996_v1 = vld [vmem:[#allocation16_spill] sm:$0xff]  ;;  %v4467_v48 = vpop.f32.mrf.mxu1  ;;  %v16999_v43 = vld [vmem:[#allocation17_spill] sm:$0xff] }
 0x282   : > { %16987 = vst [vmem:[#allocation150_spill] sm:$0xff] %v12102_v2  ;;  %5293 = vmatprep.subr.bf16.mxu1 %v16991_v54  ;;  %5142 = vmatmul.mubr.bf16.gmra.mxu1 %v16995_v12  ;;  %v12122_v34 = vld [vmem:[#allocation5 + $0xdd8] sm:$0xff]  ;;  %v6565_v20 = vadd.f32 1.0, %v11940_v14  ;;  %9331 = vtanh.f32 %v6349_v0  ;;  %v12127_v2 = vadd.f32 %v4465_v55, %v4353_v9  ;;  %v16998_v29 = vcombine.low %v16984_v49, %v16985_v40  ;;  %v17003_v9 = vld [vmem:[#allocation95_spill] sm:$0xff] }
 0x283   : > { %16992 = vst [vmem:[#allocation151_spill] sm:$0xff] %v12115_v63  ;;  %16994 = vst [vmem:[#allocation152_spill] sm:$0xff] %v12118_v42  ;;  %5184 = vmatprep.mubr.bf16.mxu0 %v16996_v1  ;;  %v12124_v54 = vld [vmem:[#allocation5 + $0xdf8] sm:$0xff]  ;;  %v4355_v27 = vadd.f32 %v4354_v37, %v16899_v44  ;;  %5297 = vmatprep.mubr.bf16.mxu1 %v16999_v43  ;;  %v9318_v63 = vpop.eup %9317  ;;  %v17000_v1 = vld [vmem:[#allocation133_spill] sm:$0xff]  ;;  %9333 = vtanh.f32 %v6356_v59  ;;  %v6236_v12 = vadd.f32 %v6108_v8, %v11744_v33  ;;  %v4356_v0 = vpop.f32.mrf.mxu0 }
 0x284   : > { %16997 = vst [vmem:[#allocation153_spill] sm:$0xff] %v12127_v2  ;;  %5181 = vmatpush2.bf16.msra.mxu0 %v16998_v29  ;;  %v12135_v5 = vmul.f32 %v6557_v52, %v17000_v1  ;;  %v17002_v14 = vcombine.low %v16989_v51, %v16990_v53  ;;  %v17004_v49 = vld [vmem:[#allocation96_spill] sm:$0xff]  ;;  %v8855_v55 = vcombine.high %v12109_v17, %v12111_v23  ;;  %v4469_v59 = vpop.f32.mrf.mxu1  ;;  %v17007_v8 = vld [vmem:[#allocation118_spill] sm:$0xff]  ;;  %v17008_v43 = vld [vmem:[#allocation119_spill] sm:$0xff]  ;;  %9335 = vtanh.f32 %v6357_v3 }
 0x285   : > { %v17005_v40 = vcombine.high %v17003_v9, %v17004_v49  ;;  %v6237_v37 = vadd.f32 %v6109_v16, %v11747_v11  ;;  %v12147_v29 = vadd.f32 %v4467_v48, %v4355_v27  ;;  %v4357_v52 = vadd.f32 %v4356_v0, %v16884_v50  ;;  %v12155_v53 = vld [vmem:[#allocation5 + $0x998] sm:$0xff]  ;;  %v4358_v48 = vpop.f32.mrf.mxu0 }
 0x286   : > { %17001 = vst [vmem:[#allocation138_spill] sm:$0xff] %v12135_v5  ;;  %5294 = vmatpush2.bf16.msra.mxu1 %v17002_v14  ;;  %v17009_v1 = vcombine.high %v17007_v8, %v17008_v43  ;;  %v8983_v51 = vcombine.high %v12122_v34, %v12124_v54  ;;  %v12157_v14 = vld [vmem:[#allocation5 + $0x9b8] sm:$0xff]  ;;  %v12161_v16 = vmul.f32 %v12118_v42, %v12118_v42  ;;  %v6572_v27 = vadd.f32 1.0, %v12020_v26 }
 0x287   : > { %5182 = vmatprep.subr.bf16.mxu0 %v17005_v40  ;;  %17006 = vst [vmem:[#allocation100_spill] sm:$0xff] %v12147_v29  ;;  %v9320_v40 = vpop.eup %9319  ;;  %v6580_v50 = vadd.f32 1.0, %v12039_v39  ;;  %v12165_v0 = vld [vmem:[#allocation5 + $0xd98] sm:$0xff]  ;;  %v17011_v29 = vld [vmem:[#allocation103_spill] sm:$0xff]  ;;  %v12172_v24 = vadd.f32 %v4469_v59, %v4357_v52  ;;  %v17013_v42 = vcombine.low %v17003_v9, %v17004_v49  ;;  %v4359_v26 = vadd.f32 %v4358_v48, %v16899_v44  ;;  %v17018_v52 = vld [vmem:[#allocation18_spill] sm:$0xff] }
 0x288   : > { %5295 = vmatprep.subr.bf16.mxu1 %v17009_v1  ;;  %17010 = vst [vmem:[#allocation86_spill] sm:$0xff] %v12161_v16  ;;  %v12167_v1 = vld [vmem:[#allocation5 + $0xdb8] sm:$0xff]  ;;  %v9322_v5 = vpop.eup %9321  ;;  %v12170_v2 = vmul.f32 %v6565_v20, %v17011_v29  ;;  %v4471_v16 = vpop.f32.mrf.mxu1  ;;  %v8854_v39 = vcombine.low %v12109_v17, %v12111_v23  ;;  %v6581_v3 = vadd.f32 1.0, %v9318_v63  ;;  %v6364_v22 = vmul.f32 0.7978846, %v6236_v12  ;;  %v17020_v48 = vld [vmem:[#allocation107_spill] sm:$0xff] }
 0x289   : > { %5183 = vmatpush2.bf16.msra.mxu0 %v17013_v42  ;;  %v17014_v19 = vcombine.low %v17007_v8, %v17008_v43  ;;  %v4508_v20 = vpop.f32.mrf.mxu0  ;;  %v8982_v29 = vcombine.low %v12122_v34, %v12124_v54  ;;  %v8847_v42 = vcombine.high %v12155_v53, %v12157_v14  ;;  %v6365_v9 = vmul.f32 0.7978846, %v6237_v37  ;;  %v12192_v63 = vld [vmem:[#allocation5 + $0x958] sm:$0xff]  ;;  %v17016_v54 = vld [vmem:[#allocation106_spill] sm:$0xff]  ;;  %v9324_v43 = vpop.eup %9323 }
 0x28a   : > { %17012 = vst [vmem:[#allocation87_spill] sm:$0xff] %v12170_v2  ;;  %5378 = vmatprep.subr.bf16.mxu0 %v8855_v55  ;;  %v12187_v44 = vadd.f32 %v4471_v16, %v4359_v26  ;;  %v4509_v49 = vadd.f32 %v4508_v20, %v11808_v35  ;;  %v4621_v17 = vpop.f32.mrf.mxu1  ;;  %v8975_v23 = vcombine.high %v12165_v0, %v12167_v1  ;;  %v6573_v34 = vadd.f32 1.0, %v9320_v40  ;;  %v12203_v59 = vld [vmem:[#allocation5 + $0xd58] sm:$0xff] }
 0x28b   : > { %5296 = vmatpush2.bf16.msra.mxu1 %v17014_v19  ;;  %v12194_v19 = vld [vmem:[#allocation5 + $0x978] sm:$0xff]  ;;  %v12197_v12 = vmul.f32 %v6572_v27, %v11740_v38  ;;  %v12200_v55 = vmul.f32 %v6580_v50, %v17016_v54  ;;  %v6588_v37 = vadd.f32 1.0, %v9322_v5  ;;  %v4510_v35 = vpop.f32.mrf.mxu0  ;;  %v17019_v38 = vld [vmem:[#allocation19_spill] sm:$0xff]  ;;  %v8846_v5 = vcombine.low %v12155_v53, %v12157_v14  ;;  %v9326_v50 = vpop.eup %9325  ;;  %v17027_v54 = vld [vmem:[#allocation21_spill] sm:$0xff] }
 0x28c   : > { %5491 = vmatprep.subr.bf16.mxu1 %v8983_v51  ;;  %5185 = vmatmul.mubr.bf16.vlgmr.msra.gmra.mxu0 %v17018_v52  ;;  %v12205_v8 = vld [vmem:[#allocation5 + $0xd78] sm:$0xff]  ;;  %v12208_v51 = vmul.f32 0.5, %v11549_v13  ;;  %v12210_v16 = vadd.f32 %v4621_v17, %v4509_v49  ;;  %v4511_v40 = vadd.f32 %v4510_v35, %v11833_v30  ;;  %v4623_v27 = vpop.f32.mrf.mxu1  ;;  %v12217_v26 = vmul.f32 %v6581_v3, %v17020_v48 }
 0x28d   : > { %17015 = vst [vmem:[#allocation121_spill] sm:$0xff] %v12197_v12  ;;  %17017 = vst [vmem:[#allocation122_spill] sm:$0xff] %v12200_v55  ;;  %5379 = vmatpush1.bf16.msra.mxu0 %v8854_v39  ;;  %9337 = vtanh.f32 %v6364_v22  ;;  %v4512_v20 = vpop.f32.mrf.mxu0  ;;  %v8974_v13 = vcombine.low %v12165_v0, %v12167_v1  ;;  %v8839_v39 = vcombine.high %v12192_v63, %v12194_v19  ;;  %v17022_v14 = vld [vmem:[#allocation20_spill] sm:$0xff]  ;;  %v9328_v0 = vpop.eup %9327  ;;  %v6596_v17 = vadd.f32 1.0, %v9324_v43 }
 0x28e   : > { %5298 = vmatmul.mubr.bf16.vlgmr.msra.gmra.mxu1 %v17019_v38  ;;  %17021 = vst [vmem:[#allocation97_spill] sm:$0xff] %v12217_v26  ;;  %5380 = vmatprep.subr.bf16.mxu0 %v8847_v42  ;;  %9339 = vtanh.f32 %v6365_v9  ;;  %v12223_v30 = vadd.f32 %v4623_v27, %v4511_v40  ;;  %v4513_v49 = vadd.f32 %v4512_v20, %v11860_v31  ;;  %v4625_v53 = vpop.f32.mrf.mxu1  ;;  %v12229_v3 = vld [vmem:[#allocation5 + $0x918] sm:$0xff]  ;;  %v17024_v42 = vld [vmem:[#allocation142_spill] sm:$0xff]  ;;  %v9330_v38 = vpop.eup %9329  ;;  %v6597_v27 = vadd.f32 1.0, %v9326_v50 }
 0x28f   : > { %5492 = vmatpush1.bf16.msra.mxu1 %v8982_v29  ;;  %5194 = vmatprep.mubr.bf16.mxu0 %v17022_v14  ;;  %v8967_v22 = vcombine.high %v12203_v59, %v12205_v8  ;;  %v12231_v29 = vld [vmem:[#allocation5 + $0x938] sm:$0xff]  ;;  %v12235_v1 = vmul.f32 %v12170_v2, %v12170_v2  ;;  %v12238_v9 = vmul.f32 %v6573_v34, %v17024_v42  ;;  %v5708_v43 = vmul.f32 0.5, %v11579_v18 }
 0x290   : > { %5493 = vmatprep.subr.bf16.mxu1 %v8975_v23  ;;  %v12241_v31 = vmul.f32 %v6588_v37, %v11823_v36  ;;  %v4514_v23 = vpop.f32.mrf.mxu0  ;;  %5307 = vmatprep.mubr.bf16.mxu1 %v17027_v54  ;;  %v12244_v52 = vld [vmem:[#allocation5 + $0xd18] sm:$0xff]  ;;  %v12250_v40 = vmul.f32 %v12197_v12, %v12197_v12  ;;  %v12252_v48 = vadd.f32 %v4625_v53, %v4513_v49  ;;  %v4627_v34 = vpop.f32.mrf.mxu1  ;;  %v6604_v18 = vadd.f32 1.0, %v9328_v0  ;;  %v17034_v54 = vld [vmem:[#allocation22_spill] sm:$0xff]  ;;  %v17065_v12 = vld [vmem:[#allocation35_spill] sm:$0xff] }
 0x291   : > { %17023 = vst [vmem:[#allocation154_spill] sm:$0xff] %v12235_v1  ;;  %17025 = vst [vmem:[#allocation155_spill] sm:$0xff] %v12238_v9  ;;  %v12246_v35 = vld [vmem:[#allocation5 + $0xd38] sm:$0xff]  ;;  %5381 = vmatpush1.bf16.msra.mxu0 %v8846_v5  ;;  %v8838_v36 = vcombine.low %v12192_v63, %v12194_v19  ;;  %v9332_v37 = vpop.eup %9331  ;;  %v4515_v20 = vadd.f32 %v4514_v23, %v11871_v61  ;;  %v8966_v42 = vcombine.low %v12203_v59, %v12205_v8 }
 0x292   : > { %17026 = vst [vmem:[#allocation156_spill] sm:$0xff] %v12241_v31  ;;  %17028 = vst [vmem:[#allocation157_spill] sm:$0xff] %v12250_v40  ;;  %v4518_v14 = vpop.f32.mrf.mxu0  ;;  %5382 = vmatprep.subr.bf16.mxu0 %v8839_v39  ;;  %v8831_v50 = vcombine.high %v12229_v3, %v12231_v29  ;;  %v9334_v49 = vpop.eup %9333  ;;  %v12264_v5 = vmul.f32 %v12200_v55, %v12200_v55  ;;  %v12268_v63 = vmul.f32 %v12217_v26, %v12217_v26  ;;  %v12274_v59 = vld [vmem:[#allocation5 + $0x8f8] sm:$0xff] }
 0x293   : > { %5494 = vmatpush1.bf16.msra.mxu1 %v8974_v13  ;;  %v4631_v19 = vpop.f32.mrf.mxu1  ;;  %v8959_v61 = vcombine.high %v12244_v52, %v12246_v35  ;;  %v12272_v13 = vld [vmem:[#allocation5 + $0x8d8] sm:$0xff]  ;;  %v12278_v8 = vmul.f32 %v12241_v31, %v12241_v31  ;;  %v12281_v39 = vmul.f32 %v6596_v17, %v12094_v25  ;;  %v12283_v53 = vadd.f32 %v4627_v34, %v4515_v20  ;;  %v9336_v40 = vpop.eup %9335  ;;  %v17037_v25 = vld [vmem:[#allocation105_spill] sm:$0xff] }
 0x294   : > { %17029 = vst [vmem:[#allocation88_spill] sm:$0xff] %v12264_v5  ;;  %17030 = vst [vmem:[#allocation158_spill] sm:$0xff] %v12268_v63  ;;  %5495 = vmatprep.subr.bf16.mxu1 %v8967_v22  ;;  %v17033_v23 = vld [vmem:[#allocation104_spill] sm:$0xff]  ;;  %5195 = vmatmul.mubr.bf16.gmra.mxu0 %v17034_v54  ;;  %v4520_v22 = vpop.f32.mrf.mxu0  ;;  %v6589_v26 = vadd.f32 1.0, %v9330_v38  ;;  %v12292_v55 = vmul.f32 %v6597_v27, %v12208_v51  ;;  %v8830_v20 = vcombine.low %v12229_v3, %v12231_v29 }
 0x295   : > { %17031 = vst [vmem:[#allocation159_spill] sm:$0xff] %v12278_v8  ;;  %17032 = vst [vmem:[#allocation160_spill] sm:$0xff] %v12281_v39  ;;  %v4519_v0 = vadd.f32 %v4518_v14, %v17033_v23  ;;  %v12287_v63 = vld [vmem:[#allocation5 + $0xcd8] sm:$0xff]  ;;  %v17036_v8 = vld [vmem:[#allocation23_spill] sm:$0xff]  ;;  %5383 = vmatpush1.bf16.msra.mxu0 %v8838_v36  ;;  %v4521_v17 = vadd.f32 %v4520_v22, %v17037_v25  ;;  %v4633_v34 = vpop.f32.mrf.mxu1  ;;  %v5709_v14 = vmul.f32 0.5, %v11612_v58  ;;  %v5716_v36 = vmul.f32 0.5, %v11648_v4 }
 0x296   : > { %v12289_v5 = vld [vmem:[#allocation5 + $0xcf8] sm:$0xff]  ;;  %17035 = vst [vmem:[#allocation161_spill] sm:$0xff] %v12292_v55  ;;  %5308 = vmatmul.mubr.bf16.gmra.mxu1 %v17036_v8  ;;  %v4522_v54 = vpop.f32.mrf.mxu0  ;;  %5384 = vmatprep.subr.bf16.mxu0 %v8831_v50  ;;  %v8958_v51 = vcombine.low %v12244_v52, %v12246_v35  ;;  %v8823_v38 = vcombine.high %v12272_v13, %v12274_v59  ;;  %v6605_v52 = vadd.f32 1.0, %v9332_v37  ;;  %v6612_v35 = vadd.f32 1.0, %v9334_v49  ;;  %v17041_v4 = vld [vmem:[#allocation25_spill] sm:$0xff] }
 0x297   : > { %v12299_v23 = vadd.f32 %v4631_v19, %v4519_v0  ;;  %5496 = vmatpush1.bf16.msra.mxu1 %v8966_v42  ;;  %v12305_v27 = vmul.f32 %v6604_v18, %v5708_v43  ;;  %v12308_v8 = vadd.f32 %v4633_v34, %v4521_v17  ;;  %v4635_v3 = vpop.f32.mrf.mxu1  ;;  %v17039_v58 = vld [vmem:[#allocation24_spill] sm:$0xff]  ;;  %v8951_v29 = vcombine.high %v12287_v63, %v12289_v5  ;;  %v17040_v43 = vld [vmem:[#allocation145_spill] sm:$0xff] }
 0x298   : > { %5497 = vmatprep.subr.bf16.mxu1 %v8959_v61  ;;  %5204 = vmatprep.mubr.bf16.mxu0 %v17039_v58  ;;  %v12313_v42 = vld [vmem:[#allocation5 + $0x898] sm:$0xff]  ;;  %v6613_v19 = vadd.f32 1.0, %v9336_v40  ;;  %v4523_v18 = vadd.f32 %v4522_v54, %v17040_v43  ;;  %v4524_v0 = vpop.f32.mrf.mxu0  ;;  %v12324_v25 = vmul.f32 %v6589_v26, %v12067_v6  ;;  %v12328_v17 = vmul.f32 %v12281_v39, %v12281_v39 }
 0x299   : > { %17038 = vst [vmem:[#allocation162_spill] sm:$0xff] %v12305_v27  ;;  %v12315_v50 = vld [vmem:[#allocation5 + $0x8b8] sm:$0xff]  ;;  %5317 = vmatprep.mubr.bf16.mxu1 %v17041_v4  ;;  %v12332_v37 = vmul.f32 %v12292_v55, %v12292_v55  ;;  %5385 = vmatpush1.bf16.msra.mxu0 %v8830_v20  ;;  %v4637_v40 = vpop.f32.mrf.mxu1  ;;  %v8822_v49 = vcombine.low %v12272_v13, %v12274_v59  ;;  %v5717_v34 = vmul.f32 0.5, %v11679_v28 }
 0x29a   : > { %v12319_v22 = vld [vmem:[#allocation5 + $0xc98] sm:$0xff]  ;;  %17042 = vst [vmem:[#allocation163_spill] sm:$0xff] %v12324_v25  ;;  %17043 = vst [vmem:[#allocation164_spill] sm:$0xff] %v12328_v17  ;;  %v12337_v54 = vadd.f32 %v4635_v3, %v4523_v18  ;;  %v4528_v6 = vpop.f32.mrf.mxu0  ;;  %5386 = vmatprep.subr.bf16.mxu0 %v8823_v38  ;;  %v8950_v26 = vcombine.low %v12287_v63, %v12289_v5  ;;  %v8815_v58 = vcombine.high %v12313_v42, %v12315_v50  ;;  %v9338_v43 = vpop.eup %9337 }
 0x29b   : > { %v12321_v61 = vld [vmem:[#allocation5 + $0xcb8] sm:$0xff]  ;;  %17044 = vst [vmem:[#allocation165_spill] sm:$0xff] %v12332_v37  ;;  %5498 = vmatpush1.bf16.msra.mxu1 %v8958_v51  ;;  %v5734_v20 = vmul.f32 %v12210_v16, %v12210_v16  ;;  %v4525_v4 = vadd.f32 %v4524_v0, %v11918_v47  ;;  %v4529_v13 = vadd.f32 %v4528_v6, %v11921_v15  ;;  %v4641_v28 = vpop.f32.mrf.mxu1  ;;  %v9340_v5 = vpop.eup %9339  ;;  %v17049_v15 = vld [vmem:[#allocation26_spill] sm:$0xff]  ;;  %v5724_v37 = vmul.f32 0.5, %v11744_v33 }
 0x29c   : > { %5499 = vmatprep.subr.bf16.mxu1 %v8951_v29  ;;  %v8943_v59 = vcombine.high %v12319_v22, %v12321_v61  ;;  %v12349_v51 = vld [vmem:[#allocation5 + $0x858] sm:$0xff]  ;;  %v12355_v63 = vmul.f32 %v12305_v27, %v12305_v27  ;;  %v12357_v3 = vmul.f32 %v6605_v52, %v5709_v14  ;;  %v12359_v18 = vmul.f32 %v6612_v35, %v5716_v36  ;;  %v4530_v29 = vpop.f32.mrf.mxu0 }
 0x29d   : > { %v12351_v38 = vld [vmem:[#allocation5 + $0x878] sm:$0xff]  ;;  %v12361_v47 = vmul.f32 %v6613_v19, %v5717_v34  ;;  %5205 = vmatmul.mubr.bf16.gmra.mxu0 %v17049_v15  ;;  %v12369_v17 = vadd.f32 %v4637_v40, %v4525_v4  ;;  %v12371_v55 = vadd.f32 %v4641_v28, %v4529_v13  ;;  %v4643_v14 = vpop.f32.mrf.mxu1  ;;  %v8814_v36 = vcombine.low %v12313_v42, %v12315_v50 }
 0x29e   : > { %17045 = vst [vmem:[#allocation166_spill] sm:$0xff] %v12355_v63  ;;  %17046 = vst [vmem:[#allocation89_spill] sm:$0xff] %v12357_v3  ;;  %v12364_v0 = vld [vmem:[#allocation5 + $0xc58] sm:$0xff]  ;;  %v17050_v63 = vld [vmem:[#allocation27_spill] sm:$0xff]  ;;  %5387 = vmatpush1.bf16.msra.mxu0 %v8822_v49  ;;  %v5725_v52 = vmul.f32 0.5, %v11747_v11  ;;  %v4531_v35 = vadd.f32 %v4530_v29, %v11924_v62  ;;  %v4532_v19 = vpop.f32.mrf.mxu0  ;;  %v8942_v33 = vcombine.low %v12319_v22, %v12321_v61  ;;  %v6620_v34 = vadd.f32 1.0, %v9338_v43 }
 0x29f   : > { %17047 = vst [vmem:[#allocation109_spill] sm:$0xff] %v12359_v18  ;;  %17048 = vst [vmem:[#allocation110_spill] sm:$0xff] %v12361_v47  ;;  %v12366_v6 = vld [vmem:[#allocation5 + $0xc78] sm:$0xff]  ;;  %5318 = vmatmul.mubr.bf16.gmra.mxu1 %v17050_v63  ;;  %5388 = vmatprep.subr.bf16.mxu0 %v8815_v58  ;;  %v8807_v40 = vcombine.high %v12349_v51, %v12351_v38  ;;  %v6621_v4 = vadd.f32 1.0, %v9340_v5  ;;  %v5862_v49 = vmul.f32 %v5734_v20, %v12210_v16  ;;  %v4645_v13 = vpop.f32.mrf.mxu1  ;;  %v17054_v20 = vld [vmem:[#allocation29_spill] sm:$0xff] }
 0x2a0   : > { %5500 = vmatpush1.bf16.msra.mxu1 %v8950_v26  ;;  %v17051_v42 = vld [vmem:[#allocation28_spill] sm:$0xff]  ;;  %v8935_v11 = vcombine.high %v12364_v0, %v12366_v6  ;;  %v12392_v22 = vmul.f32 %v12359_v18, %v12359_v18  ;;  %v12396_v61 = vmul.f32 %v12361_v47, %v12361_v47  ;;  %v5735_v26 = vmul.f32 %v12223_v30, %v12223_v30  ;;  %v4534_v43 = vpop.f32.mrf.mxu0  ;;  %v17055_v63 = vld [vmem:[#allocation146_spill] sm:$0xff] }
 0x2a1   : > { %5501 = vmatprep.subr.bf16.mxu1 %v8943_v59  ;;  %5214 = vmatprep.mubr.bf16.mxu0 %v17051_v42  ;;  %v12386_v62 = vld [vmem:[#allocation5 + $0x818] sm:$0xff]  ;;  %v5742_v58 = vmul.f32 %v12252_v48, %v12252_v48  ;;  %v12407_v5 = vadd.f32 %v4643_v14, %v4531_v35  ;;  %v4533_v15 = vadd.f32 %v4532_v19, %v17055_v63  ;;  %v4647_v29 = vpop.f32.mrf.mxu1  ;;  %v5990_v19 = vmul.f32 0.044715, %v5862_v49 }
 0x2a2   : > { %v12388_v50 = vld [vmem:[#allocation5 + $0x838] sm:$0xff]  ;;  %17052 = vst [vmem:[#allocation90_spill] sm:$0xff] %v12392_v22  ;;  %17053 = vst [vmem:[#allocation92_spill] sm:$0xff] %v12396_v61  ;;  %5327 = vmatprep.mubr.bf16.mxu1 %v17054_v20  ;;  %5389 = vmatpush1.bf16.msra.mxu0 %v8814_v36  ;;  %v8806_v42 = vcombine.low %v12349_v51, %v12351_v38  ;;  %v8934_v61 = vcombine.low %v12364_v0, %v12366_v6  ;;  %v17056_v20 = vld [vmem:[#allocation147_spill] sm:$0xff]  ;;  %v4538_v18 = vpop.f32.mrf.mxu0 }
 0x2a3   : > { %v12403_v28 = vld [vmem:[#allocation5 + $0xc18] sm:$0xff]  ;;  %v5743_v22 = vmul.f32 %v12283_v53, %v12283_v53  ;;  %v4535_v47 = vadd.f32 %v4534_v43, %v17056_v20  ;;  %5390 = vmatprep.subr.bf16.mxu0 %v8807_v40  ;;  %v8799_v14 = vcombine.high %v12386_v62, %v12388_v50  ;;  %v12419_v35 = vmul.f32 %v6620_v34, %v5724_v37  ;;  %v4651_v51 = vpop.f32.mrf.mxu1  ;;  %v17060_v20 = vld [vmem:[#allocation31_spill] sm:$0xff] }
 0x2a4   : > { %v12405_v59 = vld [vmem:[#allocation5 + $0xc38] sm:$0xff]  ;;  %5502 = vmatpush1.bf16.msra.mxu1 %v8942_v33  ;;  %v12421_v36 = vmul.f32 %v6621_v4, %v5725_v52  ;;  %v5863_v33 = vmul.f32 %v5735_v26, %v12223_v30  ;;  %v5870_v40 = vmul.f32 %v5742_v58, %v12252_v48  ;;  %v12431_v43 = vadd.f32 %v4645_v13, %v4533_v15  ;;  %v17059_v52 = vld [vmem:[#allocation30_spill] sm:$0xff]  ;;  %v4540_v34 = vpop.f32.mrf.mxu0 }
 0x2a5   : > { %17057 = vst [vmem:[#allocation113_spill] sm:$0xff] %v12419_v35  ;;  %5503 = vmatprep.subr.bf16.mxu1 %v8935_v11  ;;  %v8927_v38 = vcombine.high %v12403_v28, %v12405_v59  ;;  %v12425_v0 = vld [vmem:[#allocation5 + $0xbd8] sm:$0xff]  ;;  %v12433_v37 = vadd.f32 %v4647_v29, %v4535_v47  ;;  %5215 = vmatmul.mubr.bf16.gmra.mxu0 %v17059_v52  ;;  %v4653_v26 = vpop.f32.mrf.mxu1 }
 0x2a6   : > { %17058 = vst [vmem:[#allocation114_spill] sm:$0xff] %v12421_v36  ;;  %v12427_v6 = vld [vmem:[#allocation5 + $0xbf8] sm:$0xff]  ;;  %v5750_v11 = vmul.f32 %v12299_v23, %v12299_v23  ;;  %v4539_v63 = vadd.f32 %v4538_v18, %v11964_v10  ;;  %5391 = vmatpush1.bf16.msra.mxu0 %v8806_v42  ;;  %v8798_v47 = vcombine.low %v12386_v62, %v12388_v50  ;;  %v4542_v58 = vpop.f32.mrf.mxu0  ;;  %v5998_v36 = vmul.f32 0.044715, %v5870_v40 }
 0x2a7   : > { %v12436_v4 = vld [vmem:[#allocation5 + $0xfd8] sm:$0xff]  ;;  %5328 = vmatmul.mubr.bf16.gmra.mxu1 %v17060_v20  ;;  %v5871_v13 = vmul.f32 %v5743_v22, %v12283_v53  ;;  %5392 = vmatprep.subr.bf16.mxu0 %v8799_v14  ;;  %v8926_v15 = vcombine.low %v12403_v28, %v12405_v59  ;;  %v8919_v29 = vcombine.high %v12425_v0, %v12427_v6  ;;  %v4655_v22 = vpop.f32.mrf.mxu1  ;;  %v5991_v20 = vmul.f32 0.044715, %v5863_v33 }
 0x2a8   : > { %v12438_v49 = vld [vmem:[#allocation5 + $0xff8] sm:$0xff]  ;;  %5504 = vmatpush1.bf16.msra.mxu1 %v8934_v61  ;;  %v12459_v62 = vmul.f32 %v12419_v35, %v12419_v35  ;;  %v6118_v50 = vadd.f32 %v5990_v19, %v12210_v16  ;;  %v12471_v3 = vadd.f32 %v4651_v51, %v4539_v63  ;;  %v17063_v35 = vld [vmem:[#allocation33_spill] sm:$0xff]  ;;  %v8918_v19 = vcombine.low %v12425_v0, %v12427_v6 }
 0x2a9   : > { %v12451_v52 = vld [vmem:[#allocation5 + $0xb98] sm:$0xff]  ;;  %5505 = vmatprep.subr.bf16.mxu1 %v8927_v38  ;;  %v9047_v28 = vcombine.high %v12436_v4, %v12438_v49  ;;  %5337 = vmatprep.mubr.bf16.mxu1 %v17063_v35  ;;  %v5878_v27 = vmul.f32 %v5750_v11, %v12299_v23  ;;  %v5751_v39 = vmul.f32 %v12308_v8, %v12308_v8  ;;  %v4657_v33 = vpop.f32.mrf.mxu1  ;;  %v5999_v40 = vmul.f32 0.044715, %v5871_v13 }
 0x2aa   : > { %v12453_v10 = vld [vmem:[#allocation5 + $0xbb8] sm:$0xff]  ;;  %17061 = vst [vmem:[#allocation93_spill] sm:$0xff] %v12459_v62  ;;  %v4544_v62 = vpop.f32.mrf.mxu0  ;;  %5393 = vmatpush1.bf16.msra.mxu0 %v8798_v47  ;;  %v9046_v51 = vcombine.low %v12436_v4, %v12438_v49  ;;  %v6246_v47 = vmul.f32 0.7978846, %v6118_v50  ;;  %v5758_v4 = vmul.f32 %v12337_v54, %v12337_v54 }
 0x2ab   : > { %v12455_v18 = vld [vmem:[#allocation5 + $0xf98] sm:$0xff]  ;;  %v8910_v35 = vcombine.low %v12451_v52, %v12453_v10  ;;  %5394 = vmatprep.subr.bf16.mxu0 %v8919_v29  ;;  %v8911_v6 = vcombine.high %v12451_v52, %v12453_v10  ;;  %v12493_v25 = vpop.f32.mrf.mxu1  ;;  %v6126_v29 = vadd.f32 %v5998_v36, %v12252_v48  ;;  %v4541_v52 = vadd.f32 %v4540_v34, %v11967_v56 }
 0x2ac   : > { %v17062_v61 = vld [vmem:[#allocation32_spill] sm:$0xff]  ;;  %5506 = vmatpush1.bf16.msra.mxu1 %v8926_v15  ;;  %v4548_v0 = vpop.f32.mrf.mxu0  ;;  %v6119_v15 = vadd.f32 %v5991_v20, %v12223_v30  ;;  %v4543_v10 = vadd.f32 %v4542_v58, %v11970_v46  ;;  %v4545_v31 = vadd.f32 %v4544_v62, %v11977_v32  ;;  %v6127_v56 = vadd.f32 %v5999_v40, %v12283_v53 }
 0x2ad   : > { %5224 = vmatprep.mubr.bf16.mxu0 %v17062_v61  ;;  %v12465_v59 = vld [vmem:[#allocation5 + $0xfb8] sm:$0xff]  ;;  %5507 = vmatprep.subr.bf16.mxu1 %v9047_v28  ;;  %v6006_v28 = vmul.f32 0.044715, %v5878_v27  ;;  %v12511_v20 = vpop.f32.mrf.mxu1  ;;  %v5759_v46 = vmul.f32 %v12369_v17, %v12369_v17  ;;  %v12516_v36 = vadd.f32 %v4653_v26, %v4541_v52  ;;  %v4549_v58 = vadd.f32 %v4548_v0, %v11979_v57 }
 0x2ae   : > { %v12467_v42 = vld [vmem:[#allocation5 + $0xb58] sm:$0xff]  ;;  %v9038_v11 = vcombine.low %v12455_v18, %v12465_v59  ;;  %v9039_v63 = vcombine.high %v12455_v18, %v12465_v59  ;;  %v17064_v18 = vld [vmem:[#allocation34_spill] sm:$0xff]  ;;  %v4550_v50 = vpop.f32.mrf.mxu0  ;;  %v5879_v59 = vmul.f32 %v5751_v39, %v12308_v8  ;;  %5395 = vmatpush2.bf16.msra.mxu0 %v8918_v19  ;;  %v12523_v32 = vadd.f32 %v4655_v22, %v4543_v10 }
 0x2af   : > { %v12469_v14 = vld [vmem:[#allocation5 + $0xb78] sm:$0xff]  ;;  %5225 = vmatmul.mubr.bf16.gmra.mxu0 %v17064_v18  ;;  %5338 = vmatmul.mubr.bf16.gmra.mxu1 %v17065_v12  ;;  %v12525_v12 = vadd.f32 %v4657_v33, %v4545_v31  ;;  %v12528_v62 = vpop.f32.mrf.mxu1  ;;  %9341 = vtanh.f32 %v6246_v47  ;;  %v6247_v22 = vmul.f32 0.7978846, %v6119_v15  ;;  %v5766_v31 = vmul.f32 %v12371_v55, %v12371_v55  ;;  %v17070_v33 = vld [vmem:[#allocation37_spill] sm:$0xff] }
 0x2b0   : > { %v12476_v38 = vld [vmem:[#allocation5 + $0xf58] sm:$0xff]  ;;  %v8903_v49 = vcombine.high %v12467_v42, %v12469_v14  ;;  %5508 = vmatpush2.bf16.msra.mxu1 %v9046_v51  ;;  %v12518_v27 = vpop.f32.mrf.mxu0  ;;  %5396 = vmatprep.subr.bf16.mxu0 %v8911_v6  ;;  %v6254_v18 = vmul.f32 0.7978846, %v6126_v29  ;;  %v6134_v47 = vadd.f32 %v6006_v28, %v12299_v23  ;;  %v6007_v15 = vmul.f32 0.044715, %v5879_v59 }
 0x2b1   : > { %v12478_v61 = vld [vmem:[#allocation5 + $0xf78] sm:$0xff]  ;;  %5509 = vmatprep.subr.bf16.mxu1 %v9039_v63  ;;  %5347 = vmatprep.mubr.bf16.mxu1 %v17070_v33  ;;  %v12555_v1 = vpop.f32.mrf.mxu1  ;;  %v12558_v33 = vmul.f32 0.5, %v12210_v16  ;;  %v6255_v59 = vmul.f32 0.7978846, %v6127_v56  ;;  %9343 = vtanh.f32 %v6247_v22  ;;  %v4551_v56 = vadd.f32 %v4550_v50, %v11993_v7 }
 0x2b2   : > { %v9031_v13 = vcombine.high %v12476_v38, %v12478_v61  ;;  %v17066_v39 = vld [vmem:[#allocation80_spill] sm:$0xff]  ;;  %v12542_v57 = vpop.f32.mrf.mxu0  ;;  %v9030_v0 = vcombine.low %v12476_v38, %v12478_v61  ;;  %5397 = vmatpush2.bf16.msra.mxu0 %v8910_v35  ;;  %v5887_v38 = vmul.f32 %v5759_v46, %v12369_v17  ;;  %v12577_v46 = vadd.f32 %v12493_v25, %v4549_v58 }
 0x2b3   : > { %v12521_v34 = vsub.s32 4, %v17066_v39  ;;  %v17068_v19 = vld [vmem:[#allocation36_spill] sm:$0xff]  ;;  %v12538_v6 = vsub.s32 5, %v17066_v39  ;;  %5398 = vmatprep.subr.bf16.mxu0 %v8903_v49  ;;  %v5894_v49 = vmul.f32 %v5766_v31, %v12371_v55  ;;  %9345 = vtanh.f32 %v6254_v18 }
 0x2b4   : > { %5234 = vmatprep.mubr.bf16.mxu0 %v17068_v19  ;;  %v12531_v26 = vld [vmem:[#allocation5 + $0xb18] sm:$0xff]  ;;  %v5886_v19 = vmul.f32 %v5758_v4, %v12337_v54  ;;  %5510 = vmatpush2.bf16.msra.mxu1 %v9038_v11  ;;  %v12561_v61 = vpop.f32.mrf.mxu0  ;;  %v12567_v4 = vpop.f32.mrf.mxu1  ;;  %v17072_v11 = vld [vmem:[#allocation39_spill] sm:$0xff]  ;;  %v17073_v25 = vcombine.low %v12467_v42, %v12469_v14  ;;  %v6015_v31 = vmul.f32 0.044715, %v5887_v38  ;;  %v5767_v18 = vmul.f32 %v12407_v5, %v12407_v5 }
 0x2b5   : > { %17067 = vst [vmem:[#allocation115_spill] sm:$0xff] %v12521_v34  ;;  %v12533_v51 = vld [vmem:[#allocation5 + $0xb38] sm:$0xff]  ;;  %17069 = vst [vmem:[#allocation167_spill] sm:$0xff] %v12538_v6  ;;  %5511 = vmatprep.subr.bf16.mxu1 %v9031_v13  ;;  %v12608_v14 = vmul.f32 0.5, %v12223_v30  ;;  %9347 = vtanh.f32 %v6255_v59  ;;  %v17076_v30 = vld [vmem:[#allocation41_spill] sm:$0xff] }
 0x2b6   : > { %v12535_v40 = vld [vmem:[#allocation5 + $0xf18] sm:$0xff]  ;;  %v8894_v29 = vcombine.low %v12531_v26, %v12533_v51  ;;  %v8895_v28 = vcombine.high %v12531_v26, %v12533_v51  ;;  %v17071_v26 = vld [vmem:[#allocation38_spill] sm:$0xff]  ;;  %v12581_v13 = vpop.f32.mrf.mxu0  ;;  %v6014_v22 = vmul.f32 0.044715, %v5886_v19  ;;  %5399 = vmatpush2.bf16.msra.mxu0 %v17073_v25  ;;  %v12592_v7 = vpop.f32.mrf.mxu1  ;;  %v5774_v19 = vmul.f32 %v12431_v43, %v12431_v43 }
 0x2b7   : > { %v12547_v63 = vld [vmem:[#allocation5 + $0xf38] sm:$0xff]  ;;  %5235 = vmatmul.mubr.bf16.gmra.mxu0 %v17071_v26  ;;  %5348 = vmatmul.mubr.bf16.gmra.mxu1 %v17072_v11 }
 0x2b8   : > { %v12549_v52 = vld [vmem:[#allocation5 + $0xad8] sm:$0xff]  ;;  %v9022_v16 = vcombine.low %v12535_v40, %v12547_v63  ;;  %v9023_v35 = vcombine.high %v12535_v40, %v12547_v63  ;;  %v6262_v40 = vmul.f32 0.7978846, %v6134_v47  ;;  %v6135_v63 = vadd.f32 %v6007_v15, %v12308_v8  ;;  %5512 = vmatpush2.bf16.msra.mxu1 %v9030_v0  ;;  %v12603_v15 = vpop.f32.mrf.mxu0  ;;  %5400 = vmatprep.subr.bf16.mxu0 %v8895_v28  ;;  %v12612_v38 = vpop.f32.mrf.mxu1 }
 0x2b9   : > { %v12551_v10 = vld [vmem:[#allocation5 + $0xaf8] sm:$0xff]  ;;  %v12601_v47 = vadd.f32 %v12511_v20, %v4551_v56  ;;  %v12618_v0 = vmul.f32 0.5, %v12252_v48  ;;  %v6022_v28 = vmul.f32 0.044715, %v5894_v49  ;;  %5357 = vmatprep.mubr.bf16.mxu1 %v17076_v30  ;;  %v6142_v25 = vadd.f32 %v6014_v22, %v12337_v54 }
 0x2ba   : > { %v12583_v51 = vld [vmem:[#allocation5 + $0xed8] sm:$0xff]  ;;  %v8887_v42 = vcombine.high %v12549_v52, %v12551_v10  ;;  %5513 = vmatprep.subr.bf16.mxu1 %v9023_v35  ;;  %v12620_v56 = vpop.f32.mrf.mxu0  ;;  %9349 = vtanh.f32 %v6262_v40  ;;  %v6263_v35 = vmul.f32 0.7978846, %v6135_v63  ;;  %5401 = vmatpush2.bf16.msra.mxu0 %v8894_v29  ;;  %v12633_v49 = vmul.f32 0.5, %v12283_v53 }
 0x2bb   : > { %v12585_v9 = vld [vmem:[#allocation5 + $0xef8] sm:$0xff]  ;;  %17074 = vst [vmem:[#allocation116_spill] sm:$0xff] %v12601_v47  ;;  %v6143_v30 = vadd.f32 %v6015_v31, %v12369_v17  ;;  %v12642_v29 = vmul.f32 0.5, %v12299_v23  ;;  %v12645_v63 = vmul.f32 0.5, %v12308_v8  ;;  %v12648_v53 = vmul.f32 0.5, %v12337_v54 }
 0x2bc   : > { %v12594_v50 = vld [vmem:[#allocation5 + $0xa98] sm:$0xff]  ;;  %v9015_v20 = vcombine.high %v12583_v51, %v12585_v9  ;;  %v9014_v59 = vcombine.low %v12583_v51, %v12585_v9  ;;  %v5895_v9 = vmul.f32 %v5767_v18, %v12407_v5  ;;  %v4553_v51 = vadd.f32 %v12518_v27, %v11995_v41  ;;  %5514 = vmatpush2.bf16.msra.mxu1 %v9022_v16  ;;  %v12639_v40 = vpop.f32.mrf.mxu0  ;;  %v17078_v16 = vld [vmem:[#allocation42_spill] sm:$0xff]  ;;  %v9342_v18 = vpop.eup %9341 }
 0x2bd   : > { %v12596_v58 = vld [vmem:[#allocation5 + $0xab8] sm:$0xff]  ;;  %5402 = vmatprep.subr.bf16.mxu0 %v8887_v42  ;;  %v5902_v22 = vmul.f32 %v5774_v19, %v12431_v43  ;;  %v6150_v27 = vadd.f32 %v6022_v28, %v12371_v55  ;;  %v5775_v23 = vmul.f32 %v12433_v37, %v12433_v37  ;;  %v4555_v54 = vadd.f32 %v12542_v57, %v12006_v45 }
 0x2be   : > { %v17075_v11 = vld [vmem:[#allocation40_spill] sm:$0xff]  ;;  %v8878_v26 = vcombine.low %v12594_v50, %v12596_v58  ;;  %v8879_v48 = vcombine.high %v12594_v50, %v12596_v58  ;;  %5515 = vmatprep.subr.bf16.mxu1 %v9015_v20  ;;  %v12661_v8 = vadd.f32 %v12528_v62, %v4553_v51  ;;  %v12666_v31 = vpop.f32.mrf.mxu0  ;;  %9351 = vtanh.f32 %v6263_v35  ;;  %v17080_v62 = vld [vmem:[#allocation43_spill] sm:$0xff] }
 0x2bf   : > { %5244 = vmatprep.mubr.bf16.mxu0 %v17075_v11  ;;  %v12628_v11 = vpop.f32.mrf.mxu1  ;;  %v12653_v58 = vld [vmem:[#allocation5 + $0xe98] sm:$0xff]  ;;  %v12669_v42 = vmul.f32 0.5, %v12369_v17  ;;  %v5782_v19 = vmul.f32 %v12471_v3, %v12471_v3  ;;  %v4559_v20 = vadd.f32 %v12561_v61, %v12008_v21  ;;  %5358 = vmatmul.mubr.bf16.gmra.mxu1 %v17080_v62  ;;  %v17081_v45 = vcombine.low %v12549_v52, %v12551_v10 }
 0x2c0   : > { %v12655_v41 = vld [vmem:[#allocation5 + $0xeb8] sm:$0xff]  ;;  %17077 = vst [vmem:[#allocation168_spill] sm:$0xff] %v12661_v8  ;;  %5245 = vmatmul.mubr.bf16.gmra.mxu0 %v17078_v16  ;;  %v6270_v28 = vmul.f32 0.7978846, %v6142_v25  ;;  %v6271_v51 = vmul.f32 0.7978846, %v6143_v30  ;;  %5516 = vmatpush2.bf16.msra.mxu1 %v9014_v59  ;;  %v12681_v17 = vpop.f32.mrf.mxu0  ;;  %v12686_v21 = vadd.f32 %v12555_v1, %v4555_v54 }
 0x2c1   : > { %v12651_v50 = vpop.f32.mrf.mxu1  ;;  %17079 = vst [vmem:[#allocation117_spill] sm:$0xff] %v12669_v42  ;;  %5403 = vmatpush2.bf16.msra.mxu0 %v17081_v45  ;;  %v6023_v35 = vmul.f32 0.044715, %v5895_v9  ;;  %v6030_v2 = vmul.f32 0.044715, %v5902_v22  ;;  %v12689_v61 = vadd.f32 %v12567_v4, %v4559_v20  ;;  %v17082_v52 = vld [vmem:[#allocation148_spill] sm:$0xff]  ;;  %v5903_v22 = vmul.f32 %v5775_v23, %v12433_v37  ;;  %v9344_v4 = vpop.eup %9343 }
 0x2c2   : > { %5404 = vmatprep.subr.bf16.mxu0 %v8879_v48  ;;  %v4561_v10 = vadd.f32 %v12581_v13, %v17082_v52  ;;  %v17083_v30 = vld [vmem:[#allocation44_spill] sm:$0xff]  ;;  %v6502_v59 = vadd.f32 1.0, %v9342_v18  ;;  %v12697_v48 = vmul.f32 0.5, %v12371_v55  ;;  %v6278_v9 = vmul.f32 0.7978846, %v6150_v27  ;;  %v12700_v62 = vpop.f32.mrf.mxu0  ;;  %v17085_v1 = vld [vmem:[#allocation45_spill] sm:$0xff]  ;;  %v9346_v23 = vpop.eup %9345 }
 0x2c3   : > { %v12679_v57 = vpop.f32.mrf.mxu1  ;;  %5254 = vmatprep.mubr.bf16.mxu0 %v17083_v30  ;;  %5367 = vmatprep.mubr.bf16.mxu1 %v17085_v1  ;;  %v12704_v54 = vmul.f32 0.5, %v12407_v5  ;;  %v12707_v13 = vmul.f32 0.5, %v12431_v43  ;;  %v12710_v20 = vmul.f32 0.5, %v12433_v37  ;;  %v5910_v55 = vmul.f32 %v5782_v19, %v12471_v3  ;;  %v17090_v19 = vld [vmem:[#allocation108_spill] sm:$0xff] }
 0x2c4   : > { %17084 = vst [vmem:[#allocation94_spill] sm:$0xff] %v12697_v48  ;;  %9353 = vtanh.f32 %v6270_v28  ;;  %v6151_v18 = vadd.f32 %v6023_v35, %v12407_v5  ;;  %v5783_v45 = vmul.f32 %v12516_v36, %v12516_v36  ;;  %v12719_v52 = vadd.f32 %v12592_v7, %v4561_v10  ;;  %v12721_v30 = vpop.f32.mrf.mxu0  ;;  %v9348_v5 = vpop.eup %9347  ;;  %v17092_v10 = vld [vmem:[#allocation46_spill] sm:$0xff] }
 0x2c5   : > { %v12693_v25 = vpop.f32.mrf.mxu1  ;;  %17086 = vst [vmem:[#allocation134_spill] sm:$0xff] %v12704_v54  ;;  %17087 = vst [vmem:[#allocation16_spill] sm:$0xff] %v12707_v13  ;;  %5405 = vmatpush2.bf16.msra.mxu0 %v8878_v26  ;;  %9355 = vtanh.f32 %v6271_v51  ;;  %v6158_v1 = vadd.f32 %v6030_v2, %v12431_v43  ;;  %v5790_v26 = vmul.f32 %v12523_v32, %v12523_v32  ;;  %v6503_v39 = vadd.f32 1.0, %v9344_v4 }
 0x2c6   : > { %17088 = vst [vmem:[#allocation17_spill] sm:$0xff] %v12710_v20  ;;  %17089 = vst [vmem:[#allocation133_spill] sm:$0xff] %v12719_v52  ;;  %v4563_v16 = vadd.f32 %v12603_v15, %v17090_v19  ;;  %v12731_v35 = vmul.f32 %v6502_v59, %v12558_v33  ;;  %9357 = vtanh.f32 %v6278_v9  ;;  %v6031_v7 = vmul.f32 0.044715, %v5903_v22  ;;  %v12734_v51 = vpop.f32.mrf.mxu0  ;;  %v17094_v19 = vld [vmem:[#allocation47_spill] sm:$0xff]  ;;  %v17095_v33 = vld [vmem:[#allocation48_spill] sm:$0xff] }
 0x2c7   : > { %v12713_v27 = vpop.f32.mrf.mxu1  ;;  %v6510_v2 = vadd.f32 1.0, %v9346_v23  ;;  %v6038_v43 = vmul.f32 0.044715, %v5910_v55  ;;  %v4565_v15 = vadd.f32 %v12620_v56, %v12044_v60  ;;  %5368 = vmatmul.mubr.bf16.gmra.mxu1 %v17094_v19  ;;  %v9350_v59 = vpop.eup %9349  ;;  %v6279_v9 = vmul.f32 0.7978846, %v6151_v18  ;;  %v17096_v55 = vld [vmem:[#allocation111_spill] sm:$0xff] }
 0x2c8   : > { %17091 = vst [vmem:[#allocation95_spill] sm:$0xff] %v12731_v35  ;;  %5255 = vmatmul.mubr.bf16.gmra.mxu0 %v17092_v10  ;;  %v12737_v20 = vadd.f32 %v12612_v38, %v4563_v16  ;;  %v5911_v22 = vmul.f32 %v5783_v45, %v12516_v36  ;;  %v5791_v4 = vmul.f32 %v12525_v12, %v12525_v12  ;;  %v12750_v16 = vpop.f32.mrf.mxu0  ;;  %v17097_v23 = vld [vmem:[#allocation49_spill] sm:$0xff]  ;;  %v6511_v60 = vadd.f32 1.0, %v9348_v5 }
 0x2c9   : > { %v12728_v28 = vpop.f32.mrf.mxu1  ;;  %5410 = vmatprep.mubr.bf16.mxu0 %v17095_v33  ;;  %v4569_v38 = vadd.f32 %v12639_v40, %v17096_v55  ;;  %5523 = vmatprep.mubr.bf16.mxu1 %v17097_v23  ;;  %v6286_v56 = vmul.f32 0.7978846, %v6158_v1  ;;  %v5918_v10 = vmul.f32 %v5790_v26, %v12523_v32  ;;  %v12755_v19 = vadd.f32 %v12628_v11, %v4565_v15 }
 0x2ca   : > { %17093 = vst [vmem:[#allocation96_spill] sm:$0xff] %v12737_v20  ;;  %v6159_v45 = vadd.f32 %v6031_v7, %v12433_v37  ;;  %v12761_v33 = vmul.f32 0.5, %v12471_v3  ;;  %v5798_v40 = vmul.f32 %v12577_v46, %v12577_v46  ;;  %v12768_v5 = vpop.f32.mrf.mxu0  ;;  %v12771_v1 = vmul.f32 %v6503_v39, %v12608_v14 }
 0x2cb   : > { %v12742_v13 = vpop.f32.mrf.mxu1  ;;  %v12766_v55 = vadd.f32 %v12651_v50, %v4569_v38  ;;  %v6518_v11 = vadd.f32 1.0, %v9350_v59  ;;  %v6166_v26 = vadd.f32 %v6038_v43, %v12471_v3  ;;  %v5799_v37 = vmul.f32 %v12601_v47, %v12601_v47  ;;  %v9352_v15 = vpop.eup %9351 }
 0x2cc   : > { %17098 = vst [vmem:[#allocation118_spill] sm:$0xff] %v12761_v33  ;;  %17099 = vst [vmem:[#allocation119_spill] sm:$0xff] %v12771_v1  ;;  %v12779_v23 = vmul.f32 %v6510_v2, %v12618_v0  ;;  %9359 = vtanh.f32 %v6279_v9  ;;  %v6039_v50 = vmul.f32 0.044715, %v5911_v22  ;;  %v5919_v38 = vmul.f32 %v5791_v4, %v12525_v12  ;;  %v12782_v35 = vpop.f32.mrf.mxu0  ;;  %v17105_v1 = vld [vmem:[#allocation149_spill] sm:$0xff] }
 0x2cd   : > { %v12757_v18 = vpop.f32.mrf.mxu1  ;;  %v12785_v39 = vmul.f32 %v6511_v60, %v12633_v49  ;;  %9361 = vtanh.f32 %v6286_v56  ;;  %v6046_v3 = vmul.f32 0.044715, %v5918_v10  ;;  %v5806_v14 = vmul.f32 %v12661_v8, %v12661_v8 }
 0x2ce   : > { %17100 = vst [vmem:[#allocation103_spill] sm:$0xff] %v12779_v23  ;;  %v6287_v59 = vmul.f32 0.7978846, %v6159_v45  ;;  %v12792_v0 = vmul.f32 0.5, %v12516_v36  ;;  %v12795_v2 = vmul.f32 0.5, %v12523_v32  ;;  %v5926_v9 = vmul.f32 %v5798_v40, %v12577_v46  ;;  %v12798_v22 = vpop.f32.mrf.mxu0 }
 0x2cf   : > { %v12776_v7 = vpop.f32.mrf.mxu1  ;;  %17101 = vst [vmem:[#allocation106_spill] sm:$0xff] %v12785_v39  ;;  %v12801_v49 = vmul.f32 %v6518_v11, %v12642_v29  ;;  %v6519_v4 = vadd.f32 1.0, %v9352_v15  ;;  %v6294_v60 = vmul.f32 0.7978846, %v6166_v26  ;;  %v5927_v56 = vmul.f32 %v5799_v37, %v12601_v47  ;;  %v17106_v26 = vld [vmem:[#allocation135_spill] sm:$0xff] }
 0x2d0   : > { %17102 = vst [vmem:[#allocation18_spill] sm:$0xff] %v12792_v0  ;;  %17103 = vst [vmem:[#allocation19_spill] sm:$0xff] %v12795_v2  ;;  %v6167_v45 = vadd.f32 %v6039_v50, %v12516_v36  ;;  %v6047_v39 = vmul.f32 0.044715, %v5919_v38  ;;  %v5807_v23 = vmul.f32 %v12686_v21, %v12686_v21  ;;  %v4571_v40 = vadd.f32 %v12666_v31, %v17105_v1  ;;  %v12811_v2 = vpop.f32.mrf.mxu0 }
 0x2d1   : > { %v12789_v43 = vpop.f32.mrf.mxu1  ;;  %17104 = vst [vmem:[#allocation107_spill] sm:$0xff] %v12801_v49  ;;  %v9354_v0 = vpop.eup %9353  ;;  %v6174_v29 = vadd.f32 %v6046_v3, %v12523_v32  ;;  %v5934_v11 = vmul.f32 %v5806_v14, %v12661_v8  ;;  %v4573_v37 = vadd.f32 %v12681_v17, %v17106_v26  ;;  %v9007_v36 = vcombine.high %v12653_v58, %v12655_v41  ;;  %v17108_v32 = vld [vmem:[#allocation150_spill] sm:$0xff] }
 0x2d2   : > { %v12821_v50 = vpop.eup %9355  ;;  %v6054_v38 = vmul.f32 0.044715, %v5926_v9  ;;  %v5814_v31 = vmul.f32 %v12689_v61, %v12689_v61  ;;  %v12826_v1 = vadd.f32 %v12679_v57, %v4571_v40  ;;  %v4575_v3 = vadd.f32 %v12700_v62, %v17108_v32  ;;  %v12830_v14 = vpop.f32.mrf.mxu0  ;;  %v693_v32 = vld [vmem:[#allocation5 + $0xa58] sm:$0xff] }
 0x2d3   : > { %v12804_v10 = vpop.f32.mrf.mxu1  ;;  %17107 = vst [vmem:[#allocation20_spill] sm:$0xff] %v12821_v50  ;;  %v12832_v17 = vpop.eup %9357  ;;  %9363 = vtanh.f32 %v6287_v59  ;;  %v6055_v26 = vmul.f32 0.044715, %v5927_v56  ;;  %v5815_v49 = vmul.f32 %v12719_v52, %v12719_v52  ;;  %v12837_v9 = vadd.f32 %v12693_v25, %v4573_v37  ;;  %5517 = vmatprep.subr.bf16.mxu1 %v9007_v36  ;;  %v697_v25 = vld [vmem:[#allocation5 + $0xa78] sm:$0xff] }
 0x2d4   : > { %17109 = vst [vmem:[#allocation142_spill] sm:$0xff] %v12832_v17  ;;  %v12842_v57 = vmul.f32 0.5, %v12525_v12  ;;  %v6175_v62 = vadd.f32 %v6047_v39, %v12525_v12  ;;  %v5935_v40 = vmul.f32 %v5807_v23, %v12686_v21  ;;  %v17111_v59 = vcombine.low %v12653_v58, %v12655_v41  ;;  %v12852_v37 = vpop.f32.mrf.mxu0 }
 0x2d5   : > { %v12819_v15 = vpop.f32.mrf.mxu1  ;;  %v12850_v56 = vadd.f32 %v12713_v27, %v4575_v3  ;;  %v12855_v36 = vmul.f32 %v6519_v4, %v12645_v63  ;;  %9365 = vtanh.f32 %v6294_v60  ;;  %v5822_v12 = vmul.f32 %v12737_v20, %v12737_v20  ;;  %v821_v3 = vld [vmem:[#allocation5 + $0xe58] sm:$0xff]  ;;  %v17113_v60 = vld [vmem:[#allocation153_spill] sm:$0xff] }
 0x2d6   : > { %17110 = vst [vmem:[#allocation21_spill] sm:$0xff] %v12842_v57  ;;  %5518 = vmatpush2.bf16.msra.mxu1 %v17111_v59  ;;  %v6062_v57 = vmul.f32 0.044715, %v5934_v11  ;;  %v6295_v39 = vmul.f32 0.7978846, %v6167_v45  ;;  %v6182_v41 = vadd.f32 %v6054_v38, %v12577_v46  ;;  %v5942_v27 = vmul.f32 %v5814_v31, %v12689_v61  ;;  %v825_v59 = vld [vmem:[#allocation5 + $0xe78] sm:$0xff]  ;;  %v12863_v54 = vpop.f32.mrf.mxu0 }
 0x2d7   : > { %v12839_v33 = vpop.f32.mrf.mxu1  ;;  %17112 = vst [vmem:[#allocation104_spill] sm:$0xff] %v12855_v36  ;;  %v6302_v58 = vmul.f32 0.7978846, %v6174_v29  ;;  %v6183_v63 = vadd.f32 %v6055_v26, %v12601_v47  ;;  %v5943_v4 = vmul.f32 %v5815_v49, %v12719_v52  ;;  %v4579_v11 = vadd.f32 %v12721_v30, %v17113_v60 }
 0x2d8   : > { %v8870_v36 = vcombine.low %v693_v32, %v697_v25  ;;  %v6303_v45 = vmul.f32 0.7978846, %v6175_v62  ;;  %v6063_v29 = vmul.f32 0.044715, %v5935_v40  ;;  %v5823_v38 = vmul.f32 %v12755_v19, %v12755_v19  ;;  %v12873_v42 = vpop.f32.mrf.mxu0 }
 0x2d9   : > { %v12859_v23 = vpop.f32.mrf.mxu1  ;;  %v8871_v31 = vcombine.high %v693_v32, %v697_v25  ;;  %v12875_v17 = vpop.eup %9359  ;;  %v6190_v26 = vadd.f32 %v6062_v57, %v12661_v8  ;;  %v5950_v49 = vmul.f32 %v5822_v12, %v12737_v20  ;;  %v12880_v47 = vadd.f32 %v12728_v28, %v4579_v11 }
 0x2da   : > { %17114 = vst [vmem:[#allocation22_spill] sm:$0xff] %v12875_v17  ;;  %v8998_v30 = vcombine.low %v821_v3, %v825_v59  ;;  %v12884_v62 = vpop.eup %9361  ;;  %9367 = vtanh.f32 %v6295_v39  ;;  %v6310_v40 = vmul.f32 0.7978846, %v6182_v41  ;;  %v6070_v50 = vmul.f32 0.044715, %v5942_v27  ;;  %v12886_v25 = vpop.f32.mrf.mxu0  ;;  %v17115_v39 = vld [vmem:[#allocation100_spill] sm:$0xff] }
 0x2db   : > { %v12869_v48 = vpop.f32.mrf.mxu1  ;;  %5406 = vmatprep.subr.bf16.mxu0 %v8871_v31  ;;  %v8999_v32 = vcombine.high %v821_v3, %v825_v59  ;;  %v12888_v17 = vadd.f32 1.0, %v9354_v0  ;;  %9369 = vtanh.f32 %v6302_v58  ;;  %v6311_v57 = vmul.f32 0.7978846, %v6183_v63  ;;  %v685_v59 = vld [vmem:[#allocation5 + $0xa18] sm:$0xff] }
 0x2dc   : > { %v6071_v12 = vmul.f32 0.044715, %v5943_v4  ;;  %5407 = vmatpush2.bf16.msra.mxu0 %v8870_v36  ;;  %9371 = vtanh.f32 %v6303_v45  ;;  %v6191_v11 = vadd.f32 %v6063_v29, %v12686_v21  ;;  %v5951_v8 = vmul.f32 %v5823_v38, %v12755_v19  ;;  %v12896_v27 = vpop.f32.mrf.mxu0  ;;  %v689_v63 = vld [vmem:[#allocation5 + $0xa38] sm:$0xff] }
 0x2dd   : > { %v12882_v60 = vpop.f32.mrf.mxu1  ;;  %5519 = vmatprep.subr.bf16.mxu1 %v8999_v32  ;;  %v4581_v41 = vadd.f32 %v12734_v51, %v17115_v39  ;;  %v6318_v3 = vmul.f32 0.7978846, %v6190_v26  ;;  %v6078_v0 = vmul.f32 0.044715, %v5950_v49  ;;  %v5830_v58 = vmul.f32 %v12766_v55, %v12766_v55  ;;  %v813_v26 = vld [vmem:[#allocation5 + $0xe18] sm:$0xff] }
 0x2de   : > { %5520 = vmatpush2.bf16.msra.mxu1 %v8998_v30  ;;  %v4583_v36 = vadd.f32 %v12750_v16, %v12172_v24  ;;  %v12905_v45 = vmul.f32 0.5, %v12577_v46  ;;  %9373 = vtanh.f32 %v6310_v40  ;;  %v6198_v51 = vadd.f32 %v6070_v50, %v12689_v61  ;;  %v12910_v38 = vpop.f32.mrf.mxu0  ;;  %v817_v46 = vld [vmem:[#allocation5 + $0xe38] sm:$0xff] }
 0x2df   : > { %v12890_v28 = vpop.f32.mrf.mxu1  ;;  %v5831_v29 = vmul.f32 %v12826_v1, %v12826_v1  ;;  %9375 = vtanh.f32 %v6311_v57  ;;  %v6199_v31 = vadd.f32 %v6071_v12, %v12719_v52  ;;  %v12914_v24 = vadd.f32 %v12742_v13, %v4581_v41 }
 0x2e0   : > { %17116 = vst [vmem:[#allocation23_spill] sm:$0xff] %v12905_v45  ;;  %v12917_v16 = vadd.f32 %v12757_v18, %v4583_v36  ;;  %v12921_v30 = vpop.eup %9363  ;;  %v6319_v50 = vmul.f32 0.7978846, %v6191_v11  ;;  %v6079_v40 = vmul.f32 0.044715, %v5951_v8  ;;  %v8862_v32 = vcombine.low %v685_v59, %v689_v63  ;;  %v12923_v45 = vpop.f32.mrf.mxu0 }
 0x2e1   : > { %v12902_v4 = vpop.f32.mrf.mxu1  ;;  %v8863_v39 = vcombine.high %v685_v59, %v689_v63  ;;  %9377 = vtanh.f32 %v6318_v3  ;;  %v6206_v57 = vadd.f32 %v6078_v0, %v12737_v20  ;;  %v5958_v13 = vmul.f32 %v5830_v58, %v12766_v55 }
 0x2e2   : > { %v5838_v18 = vmul.f32 %v12837_v9, %v12837_v9  ;;  %v12931_v41 = vpop.eup %9365  ;;  %v6326_v36 = vmul.f32 0.7978846, %v6198_v51  ;;  %v5959_v11 = vmul.f32 %v5831_v29, %v12826_v1  ;;  %v8990_v8 = vcombine.low %v813_v26, %v817_v46  ;;  %v12934_v63 = vpop.f32.mrf.mxu0  ;;  %v12945_v29 = vld [vmem:[#allocation7] sm:$0xff] }
 0x2e3   : > { %v12919_v49 = vpop.f32.mrf.mxu1  ;;  %5408 = vmatprep.subr.bf16.mxu0 %v8863_v39  ;;  %v8991_v59 = vcombine.high %v813_v26, %v817_v46  ;;  %v6327_v3 = vmul.f32 0.7978846, %v6199_v31  ;;  %v5839_v0 = vmul.f32 %v12850_v56, %v12850_v56  ;;  %v5846_v58 = vmul.f32 %v12880_v47, %v12880_v47  ;;  %17117 = vst [vmem:[#allocation105_spill] sm:$0xff] %v12945_v29 }
 0x2e4   : > { %5409 = vmatpush2.bf16.msra.mxu0 %v8862_v32  ;;  %v4585_v20 = vadd.f32 %v12768_v5, %v12187_v44  ;;  %9379 = vtanh.f32 %v6319_v50  ;;  %v6207_v51 = vadd.f32 %v6079_v40, %v12755_v19  ;;  %v12949_v31 = vrot.slane %v12945_v29, %v12521_v34  ;;  %v12955_v46 = vpop.f32.mrf.mxu0  ;;  %v17118_v34 = vld [vmem:[#allocation50_spill] sm:$0xff] }
 0x2e5   : > { %v12929_v12 = vpop.f32.mrf.mxu1  ;;  %5521 = vmatprep.subr.bf16.mxu1 %v8991_v59  ;;  %v12953_v26 = vrot.slane %v12945_v29, %v12538_v6  ;;  %v6334_v32 = vmul.f32 0.7978846, %v6206_v57  ;;  %v6086_v44 = vmul.f32 0.044715, %v5958_v13  ;;  %v5966_v5 = vmul.f32 %v5838_v18, %v12837_v9 }
 0x2e6   : > { %5522 = vmatpush2.bf16.msra.mxu1 %v8990_v8  ;;  %v12959_v50 = vadd.f32 %v12776_v7, %v4585_v20  ;;  %9381 = vtanh.f32 %v6326_v36  ;;  %v6087_v39 = vmul.f32 0.044715, %v5959_v11  ;;  %v4735_v59 = vadd.f32 %v12782_v35, %v12949_v31  ;;  %v12968_v57 = vpop.f32.mrf.mxu0  ;;  %v17120_v36 = vld [vmem:[#allocation52_spill] sm:$0xff]  ;;  %v17121_v8 = vld [vmem:[#allocation51_spill] sm:$0xff] }
 0x2e7   : > { %v12942_v52 = vpop.f32.mrf.mxu1  ;;  %5411 = vmatmul.mubr.bf16.vlgmr.msra.gmra.mxu0 %v17118_v34  ;;  %v4737_v6 = vadd.f32 %v12798_v22, %v12953_v26  ;;  %v12970_v13 = vpop.eup %9367  ;;  %v12974_v20 = vmul.f32 %v12888_v17, %v12648_v53  ;;  %9383 = vtanh.f32 %v6327_v3  ;;  %v5967_v7 = vmul.f32 %v5839_v0, %v12850_v56 }
 0x2e8   : > { %v5974_v18 = vmul.f32 %v5846_v58, %v12880_v47  ;;  %5420 = vmatprep.mubr.bf16.mxu0 %v17120_v36  ;;  %v12981_v34 = vpop.eup %9369  ;;  %v6335_v22 = vmul.f32 0.7978846, %v6207_v51  ;;  %v12984_v11 = vadd.f32 %v12789_v43, %v4735_v59  ;;  %v4739_v17 = vadd.f32 %v12811_v2, %v12949_v31  ;;  %v4768_v3 = vpop.f32.mrf.mxu0  ;;  %v17122_v43 = vld [vmem:[#allocation53_spill] sm:$0xff] }
 0x2e9   : > { %v12961_v40 = vpop.f32.mrf.mxu1  ;;  %17119 = vst [vmem:[#allocation24_spill] sm:$0xff] %v12974_v20  ;;  %5524 = vmatmul.mubr.bf16.vlgmr.msra.gmra.mxu1 %v17121_v8  ;;  %v12988_v53 = vadd.f32 %v12804_v10, %v4737_v6  ;;  %v12992_v0 = vpop.eup %9371  ;;  %9385 = vtanh.f32 %v6334_v32  ;;  %v6214_v58 = vadd.f32 %v6086_v44, %v12766_v55  ;;  %v6094_v36 = vmul.f32 0.044715, %v5966_v5 }
 0x2ea   : > { %v4741_v51 = vadd.f32 %v12830_v14, %v12953_v26  ;;  %5533 = vmatprep.mubr.bf16.mxu1 %v17122_v43  ;;  %v6215_v8 = vadd.f32 %v6087_v39, %v12826_v1  ;;  %v13000_v6 = vadd.f32 %v12819_v15, %v4739_v17  ;;  %v4745_v2 = vadd.f32 %v12852_v37, %v12949_v31  ;;  %v4770_v32 = vpop.f32.mrf.mxu0 }
 0x2eb   : > { %v12979_v35 = vpop.f32.mrf.mxu1  ;;  %v4747_v10 = vadd.f32 %v12863_v54, %v12953_v26  ;;  %v13006_v44 = vpop.eup %9373  ;;  %v6095_v5 = vmul.f32 0.044715, %v5967_v7  ;;  %v6102_v20 = vmul.f32 0.044715, %v5974_v18  ;;  %v4749_v39 = vadd.f32 %v12873_v42, %v12949_v31 }
 0x2ec   : > { %v13009_v14 = vadd.f32 %v12839_v33, %v4741_v51  ;;  %v13013_v15 = vpop.eup %9375  ;;  %9387 = vtanh.f32 %v6335_v22  ;;  %v5847_v37 = vmul.f32 %v12914_v24, %v12914_v24  ;;  %v13018_v54 = vadd.f32 %v12859_v23, %v4745_v2  ;;  %v4774_v7 = vpop.f32.mrf.mxu0  ;;  %v17125_v2 = vld [vmem:[#allocation54_spill] sm:$0xff] }
 0x2ed   : > { %v4881_v59 = vpop.f32.mrf.mxu1  ;;  %v13021_v17 = vadd.f32 %v12869_v48, %v4747_v10  ;;  %v6342_v18 = vmul.f32 0.7978846, %v6214_v58  ;;  %v5854_v33 = vmul.f32 %v12917_v16, %v12917_v16  ;;  %v13026_v42 = vadd.f32 %v12882_v60, %v4749_v39 }
 0x2ee   : > { %17123 = vst [vmem:[#allocation145_spill] sm:$0xff] %v13009_v14  ;;  %v4751_v22 = vadd.f32 %v12886_v25, %v12953_v26  ;;  %v13030_v14 = vpop.eup %9377  ;;  %v6343_v29 = vmul.f32 0.7978846, %v6215_v8  ;;  %v6222_v23 = vadd.f32 %v6094_v36, %v12837_v9  ;;  %v4755_v48 = vadd.f32 %v12896_v27, %v12949_v31  ;;  %v4776_v10 = vpop.f32.mrf.mxu0  ;;  %v17127_v27 = vld [vmem:[#allocation55_spill] sm:$0xff] }
 0x2ef   : > { %v4883_v43 = vpop.f32.mrf.mxu1  ;;  %17124 = vst [vmem:[#allocation25_spill] sm:$0xff] %v13026_v42  ;;  %5421 = vmatmul.mubr.bf16.gmra.mxu0 %v17125_v2  ;;  %v4757_v58 = vadd.f32 %v12910_v38, %v12953_v26  ;;  %v6223_v60 = vadd.f32 %v6095_v5, %v12850_v56  ;;  %v6230_v39 = vadd.f32 %v6102_v20, %v12880_v47  ;;  %v17126_v42 = vld [vmem:[#allocation56_spill] sm:$0xff]  ;;  %9389 = vtanh.f32 %v6342_v18 }
 0x2f0   : > { %v13041_v25 = vadd.f32 %v12890_v28, %v4751_v22  ;;  %5430 = vmatprep.mubr.bf16.mxu0 %v17126_v42  ;;  %v4759_v36 = vadd.f32 %v12923_v45, %v12949_v31  ;;  %v5975_v2 = vmul.f32 %v5847_v37, %v12914_v24  ;;  %v13049_v38 = vadd.f32 %v12902_v4, %v4755_v48  ;;  %v4778_v20 = vpop.f32.mrf.mxu0  ;;  %v17130_v45 = vld [vmem:[#allocation57_spill] sm:$0xff] }
 0x2f1   : > { %v4887_v51 = vpop.f32.mrf.mxu1  ;;  %5534 = vmatmul.mubr.bf16.gmra.mxu1 %v17127_v27  ;;  %v13052_v5 = vadd.f32 %v12919_v49, %v4757_v58  ;;  %v4761_v28 = vadd.f32 %v12934_v63, %v12953_v26  ;;  %v13056_v22 = vpop.eup %9379  ;;  %v5982_v42 = vmul.f32 %v5854_v33, %v12917_v16  ;;  %v4765_v4 = vadd.f32 %v12955_v46, %v12949_v31 }
 0x2f2   : > { %17128 = vst [vmem:[#allocation26_spill] sm:$0xff] %v13049_v38  ;;  %5543 = vmatprep.mubr.bf16.mxu1 %v17130_v45  ;;  %v13061_v37 = vadd.f32 %v12929_v12, %v4759_v36  ;;  %v4767_v49 = vadd.f32 %v12968_v57, %v12953_v26  ;;  %v4769_v63 = vadd.f32 %v4768_v3, %v12949_v31  ;;  %v4780_v45 = vpop.f32.mrf.mxu0  ;;  %v6103_v38 = vmul.f32 0.044715, %v5975_v2  ;;  %v17136_v2 = vld [vmem:[#allocation60_spill] sm:$0xff] }
 0x2f3   : > { %v4889_v8 = vpop.f32.mrf.mxu1  ;;  %17129 = vst [vmem:[#allocation27_spill] sm:$0xff] %v13052_v5  ;;  %v13068_v58 = vadd.f32 %v12942_v52, %v4761_v28  ;;  %v4771_v27 = vadd.f32 %v4770_v32, %v12953_v26  ;;  %v4775_v33 = vadd.f32 %v4774_v7, %v12949_v31  ;;  %v13073_v5 = vpop.eup %9381  ;;  %v5855_v12 = vmul.f32 %v12959_v50, %v12959_v50 }
 0x2f4   : > { %17131 = vst [vmem:[#allocation28_spill] sm:$0xff] %v13061_v37  ;;  %v13078_v46 = vadd.f32 %v12961_v40, %v4765_v4  ;;  %v13081_v57 = vadd.f32 %v12979_v35, %v4767_v49  ;;  %v4777_v52 = vadd.f32 %v4776_v10, %v12953_v26  ;;  %v13084_v3 = vpop.eup %9383  ;;  %v13086_v32 = vadd.f32 %v4881_v59, %v4769_v63  ;;  %v4784_v37 = vpop.f32.mrf.mxu0 }
 0x2f5   : > { %v4891_v48 = vpop.f32.mrf.mxu1  ;;  %17132 = vst [vmem:[#allocation29_spill] sm:$0xff] %v13068_v58  ;;  %v13088_v7 = vadd.f32 %v4883_v43, %v4771_v27  ;;  %v13090_v28 = vadd.f32 %v4887_v51, %v4775_v33  ;;  %v4779_v58 = vadd.f32 %v4778_v20, %v12949_v31  ;;  %v4781_v35 = vadd.f32 %v4780_v45, %v12953_v26  ;;  %v17134_v43 = vld [vmem:[#allocation58_spill] sm:$0xff] }
 0x2f6   : > { %v13093_v40 = vadd.f32 %v4889_v8, %v4777_v52  ;;  %v4785_v4 = vadd.f32 %v4784_v37, %v12949_v31  ;;  %v13097_v49 = vpop.eup %9385  ;;  %v6350_v59 = vmul.f32 0.7978846, %v6222_v23  ;;  %v6110_v63 = vmul.f32 0.044715, %v5982_v42  ;;  %v4786_v27 = vpop.f32.mrf.mxu0  ;;  %v17139_v52 = vld [vmem:[#allocation20_spill] sm:$0xff]  ;;  %v17140_v23 = vld [vmem:[#allocation142_spill] sm:$0xff] }
 0x2f7   : > { %v4893_v36 = vpop.f32.mrf.mxu1  ;;  %5431 = vmatmul.mubr.bf16.gmra.mxu0 %v17134_v43  ;;  %v13100_v51 = vadd.f32 %v4891_v48, %v4779_v58  ;;  %v5983_v20 = vmul.f32 %v5855_v12, %v12959_v50  ;;  %v4787_v37 = vadd.f32 %v4786_v27, %v12953_v26  ;;  %v6527_v18 = vadd.f32 1.0, %v17139_v52  ;;  %v17141_v48 = vld [vmem:[#allocation59_spill] sm:$0xff] }
 0x2f8   : > { %17133 = vst [vmem:[#allocation146_spill] sm:$0xff] %v13093_v40  ;;  %5440 = vmatprep.mubr.bf16.mxu0 %v17136_v2  ;;  %v13104_v8 = vadd.f32 %v4893_v36, %v4781_v35  ;;  %v6534_v42 = vadd.f32 1.0, %v17140_v23  ;;  %9391 = vtanh.f32 %v6343_v29  ;;  %v6351_v43 = vmul.f32 0.7978846, %v6223_v60  ;;  %v4788_v58 = vpop.f32.mrf.mxu0  ;;  %v17142_v35 = vld [vmem:[#allocation61_spill] sm:$0xff]  ;;  %v17144_v2 = vld [vmem:[#allocation22_spill] sm:$0xff] }
 0x2f9   : > { %v4897_v10 = vpop.f32.mrf.mxu1  ;;  %17135 = vst [vmem:[#allocation147_spill] sm:$0xff] %v13100_v51  ;;  %5544 = vmatmul.mubr.bf16.gmra.mxu1 %v17141_v48  ;;  %v13112_v51 = vpop.eup %9387  ;;  %v6358_v12 = vmul.f32 0.7978846, %v6230_v39  ;;  %v6231_v36 = vadd.f32 %v6103_v38, %v12914_v24  ;;  %v6535_v52 = vadd.f32 1.0, %v17144_v2  ;;  %v6542_v29 = vadd.f32 1.0, %v12884_v62  ;;  %v17145_v60 = vld [vmem:[#allocation116_spill] sm:$0xff] }
 0x2fa   : > { %17137 = vst [vmem:[#allocation30_spill] sm:$0xff] %v13104_v8  ;;  %v13106_v33 = vadd.f32 %v4897_v10, %v4785_v4  ;;  %5553 = vmatprep.mubr.bf16.mxu1 %v17142_v35  ;;  %v4789_v10 = vadd.f32 %v4788_v58, %v12949_v31  ;;  %v13122_v23 = vmul.f32 0.5, %v17145_v60  ;;  %9393 = vtanh.f32 %v6350_v59  ;;  %v4790_v48 = vpop.f32.mrf.mxu0  ;;  %v17147_v35 = vld [vmem:[#allocation117_spill] sm:$0xff] }
 0x2fb   : > { %v4899_v45 = vpop.f32.mrf.mxu1  ;;  %v6238_v39 = vadd.f32 %v6110_v63, %v12917_v16  ;;  %v13129_v58 = vmul.f32 %v6527_v18, %v17147_v35  ;;  %v6543_v62 = vadd.f32 1.0, %v12921_v30  ;;  %9395 = vtanh.f32 %v6351_v43  ;;  %v17157_v30 = vld [vmem:[#allocation62_spill] sm:$0xff] }
 0x2fc   : > { %17138 = vst [vmem:[#allocation31_spill] sm:$0xff] %v13106_v33  ;;  %v13116_v4 = vadd.f32 %v4899_v45, %v4787_v37  ;;  %v6111_v33 = vmul.f32 0.044715, %v5983_v20  ;;  %v4791_v37 = vadd.f32 %v4790_v48, %v12953_v26  ;;  %v4794_v60 = vpop.f32.mrf.mxu0  ;;  %9397 = vtanh.f32 %v6358_v12  ;;  %v17154_v48 = vld [vmem:[#allocation16_spill] sm:$0xff] }
 0x2fd   : > { %v4901_v27 = vpop.f32.mrf.mxu1  ;;  %17148 = vst [vmem:[#allocation34_spill] sm:$0xff] %v13129_v58  ;;  %v6359_v59 = vmul.f32 0.7978846, %v6231_v36  ;;  %v4795_v63 = vadd.f32 %v4794_v60, %v12949_v31  ;;  %v13142_v18 = vmul.f32 %v6542_v29, %v17154_v48  ;;  %v6366_v12 = vmul.f32 0.7978846, %v6238_v39  ;;  %v17160_v29 = vld [vmem:[#allocation17_spill] sm:$0xff] }
 0x2fe   : > { %17143 = vst [vmem:[#allocation32_spill] sm:$0xff] %v13116_v4  ;;  %v13125_v38 = vadd.f32 %v4901_v27, %v4789_v10  ;;  %v17149_v4 = vld [vmem:[#allocation94_spill] sm:$0xff]  ;;  %v4796_v43 = vpop.f32.mrf.mxu0  ;;  %v6239_v36 = vadd.f32 %v6111_v33, %v12959_v50  ;;  %v5679_v48 = vmul.f32 0.5, %v12686_v21  ;;  %v17162_v39 = vld [vmem:[#allocation63_spill] sm:$0xff]  ;;  %v6559_v21 = vadd.f32 1.0, %v12992_v0 }
 0x2ff   : > { %v4903_v45 = vpop.f32.mrf.mxu1  ;;  %v13132_v2 = vmul.f32 %v6534_v42, %v17149_v4  ;;  %v17152_v10 = vld [vmem:[#allocation134_spill] sm:$0xff]  ;;  %17155 = vst [vmem:[#allocation38_spill] sm:$0xff] %v13142_v18  ;;  %v6550_v42 = vadd.f32 1.0, %v12931_v41  ;;  %v17156_v4 = vld [vmem:[#allocation168_spill] sm:$0xff]  ;;  %5441 = vmatmul.mubr.bf16.gmra.mxu0 %v17157_v30  ;;  %v6551_v41 = vadd.f32 1.0, %v12970_v13  ;;  %v6558_v30 = vadd.f32 1.0, %v12981_v34 }
 0x300   : > { %17146 = vst [vmem:[#allocation33_spill] sm:$0xff] %v13125_v38  ;;  %v13135_v8 = vadd.f32 %v4903_v45, %v4791_v37  ;;  %v13139_v27 = vmul.f32 %v6535_v52, %v17152_v10  ;;  %v13146_v35 = vmul.f32 0.5, %v17156_v4  ;;  %v17158_v37 = vld [vmem:[#allocation64_spill] sm:$0xff]  ;;  %v4797_v52 = vadd.f32 %v4796_v43, %v12953_v26  ;;  %v4798_v33 = vpop.f32.mrf.mxu0  ;;  %v17172_v38 = vld [vmem:[#allocation19_spill] sm:$0xff] }
 0x301   : > { %17150 = vst [vmem:[#allocation35_spill] sm:$0xff] %v13132_v2  ;;  %v4907_v20 = vpop.f32.mrf.mxu1  ;;  %5450 = vmatprep.mubr.bf16.mxu0 %v17158_v37  ;;  %v13155_v10 = vmul.f32 %v6543_v62, %v17160_v29  ;;  %v13160_v4 = vmul.f32 0.5, %v12689_v61  ;;  %5554 = vmatmul.mubr.bf16.gmra.mxu1 %v17162_v39  ;;  %9399 = vtanh.f32 %v6359_v59  ;;  %v4799_v62 = vadd.f32 %v4798_v33, %v12949_v31  ;;  %v17165_v37 = vld [vmem:[#allocation118_spill] sm:$0xff]  ;;  %v17167_v29 = vld [vmem:[#allocation133_spill] sm:$0xff] }
 0x302   : > { %17151 = vst [vmem:[#allocation36_spill] sm:$0xff] %v13135_v8  ;;  %17153 = vst [vmem:[#allocation37_spill] sm:$0xff] %v13139_v27  ;;  %v13151_v45 = vadd.f32 %v4907_v20, %v4795_v63  ;;  %v17163_v63 = vld [vmem:[#allocation65_spill] sm:$0xff]  ;;  %v13169_v13 = vmul.f32 %v6550_v42, %v17165_v37  ;;  %v6566_v61 = vadd.f32 1.0, %v13006_v44  ;;  %v5687_v39 = vmul.f32 0.5, %v17167_v29  ;;  %v9390_v8 = vpop.eup %9389  ;;  %v17169_v33 = vld [vmem:[#allocation18_spill] sm:$0xff] }
 0x303   : > { %v4909_v60 = vpop.f32.mrf.mxu1  ;;  %17161 = vst [vmem:[#allocation40_spill] sm:$0xff] %v13155_v10  ;;  %5563 = vmatprep.mubr.bf16.mxu1 %v17163_v63  ;;  %9401 = vtanh.f32 %v6366_v12  ;;  %v6367_v34 = vmul.f32 0.7978846, %v6239_v36  ;;  %v13178_v63 = vmul.f32 %v6551_v41, %v17169_v33  ;;  %v6567_v42 = vadd.f32 1.0, %v13013_v15  ;;  %v17171_v37 = vld [vmem:[#allocation96_spill] sm:$0xff]  ;;  %v17174_v41 = vld [vmem:[#allocation21_spill] sm:$0xff] }
 0x304   : > { %17159 = vst [vmem:[#allocation39_spill] sm:$0xff] %v13151_v45  ;;  %v13165_v20 = vadd.f32 %v4909_v60, %v4797_v52  ;;  %17166 = vst [vmem:[#allocation42_spill] sm:$0xff] %v13169_v13  ;;  %v4800_v45 = vpop.f32.mrf.mxu0  ;;  %v5694_v0 = vmul.f32 0.5, %v17171_v37  ;;  %v5695_v44 = vmul.f32 0.5, %v12755_v19  ;;  %v13184_v40 = vmul.f32 %v6558_v30, %v17172_v38  ;;  %v17176_v15 = vld [vmem:[#allocation23_spill] sm:$0xff] }
 0x305   : > { %v4911_v43 = vpop.f32.mrf.mxu1  ;;  %v4801_v52 = vadd.f32 %v4800_v45, %v12953_v26  ;;  %17170 = vst [vmem:[#allocation148_spill] sm:$0xff] %v13178_v63  ;;  %v9392_v29 = vpop.eup %9391  ;;  %v6574_v12 = vadd.f32 1.0, %v13030_v14  ;;  %v13194_v33 = vmul.f32 %v6566_v61, %v17176_v15  ;;  %v6575_v19 = vadd.f32 1.0, %v13056_v22 }
 0x306   : > { %17164 = vst [vmem:[#allocation41_spill] sm:$0xff] %v13165_v20  ;;  %v13174_v59 = vadd.f32 %v4911_v43, %v4799_v62  ;;  %v4804_v20 = vpop.f32.mrf.mxu0  ;;  %17173 = vst [vmem:[#allocation44_spill] sm:$0xff] %v13184_v40  ;;  %v13191_v43 = vmul.f32 %v6559_v21, %v17174_v41  ;;  %v5702_v37 = vmul.f32 0.5, %v12766_v55  ;;  %v5703_v14 = vmul.f32 0.5, %v12826_v1  ;;  %v17181_v41 = vld [vmem:[#allocation67_spill] sm:$0xff] }
 0x307   : > { %v4913_v60 = vpop.f32.mrf.mxu1  ;;  %v4805_v45 = vadd.f32 %v4804_v20, %v12949_v31  ;;  %17177 = vst [vmem:[#allocation108_spill] sm:$0xff] %v13194_v33  ;;  %v9394_v30 = vpop.eup %9393  ;;  %9403 = vtanh.f32 %v6367_v34  ;;  %v13205_v61 = vmul.f32 %v6567_v42, %v13122_v23  ;;  %v6582_v22 = vadd.f32 1.0, %v13073_v5 }
 0x308   : > { %17168 = vst [vmem:[#allocation43_spill] sm:$0xff] %v13174_v59  ;;  %v13187_v36 = vadd.f32 %v4913_v60, %v4801_v52  ;;  %17175 = vst [vmem:[#allocation45_spill] sm:$0xff] %v13191_v43  ;;  %v17178_v59 = vld [vmem:[#allocation66_spill] sm:$0xff]  ;;  %v4806_v38 = vpop.f32.mrf.mxu0  ;;  %v17179_v52 = vld [vmem:[#allocation68_spill] sm:$0xff]  ;;  %v6583_v55 = vadd.f32 1.0, %v13084_v3  ;;  %v9396_v34 = vpop.eup %9395  ;;  %v13212_v15 = vmul.f32 %v6574_v12, %v13146_v35  ;;  %v13219_v3 = vmul.f32 %v6575_v19, %v5679_v48 }
 0x309   : > { %v4917_v62 = vpop.f32.mrf.mxu1  ;;  %5451 = vmatmul.mubr.bf16.gmra.mxu0 %v17178_v59  ;;  %v4807_v21 = vadd.f32 %v4806_v38, %v12953_v26  ;;  %17180 = vst [vmem:[#allocation46_spill] sm:$0xff] %v13205_v61  ;;  %v5710_v59 = vmul.f32 0.5, %v12837_v9  ;;  %5564 = vmatmul.mubr.bf16.gmra.mxu1 %v17181_v41  ;;  %v9398_v42 = vpop.eup %9397  ;;  %v6590_v9 = vadd.f32 1.0, %v13097_v49  ;;  %v5718_v41 = vmul.f32 0.5, %v12880_v47  ;;  %v17221_v61 = vld [vmem:[#allocation75_spill] sm:$0xff] }
 0x30a   : > { %5460 = vmatprep.mubr.bf16.mxu0 %v17179_v52  ;;  %v13201_v20 = vadd.f32 %v4917_v62, %v4805_v45  ;;  %v4808_v1 = vpop.f32.mrf.mxu0  ;;  %17182 = vst [vmem:[#allocation47_spill] sm:$0xff] %v13212_v15  ;;  %v5711_v45 = vmul.f32 0.5, %v12850_v56  ;;  %v17183_v62 = vld [vmem:[#allocation69_spill] sm:$0xff]  ;;  %17184 = vst [vmem:[#allocation48_spill] sm:$0xff] %v13219_v3  ;;  %v6591_v52 = vadd.f32 1.0, %v13112_v51  ;;  %v6598_v12 = vadd.f32 1.0, %v9390_v8 }
 0x30b   : > { %v4919_v60 = vpop.f32.mrf.mxu1  ;;  %5573 = vmatprep.mubr.bf16.mxu1 %v17183_v62  ;;  %v4809_v23 = vadd.f32 %v4808_v1, %v12949_v31  ;;  %v6599_v15 = vadd.f32 1.0, %v9392_v29  ;;  %v13228_v31 = vmul.f32 %v6582_v22, %v13160_v4  ;;  %v13230_v1 = vmul.f32 %v6583_v55, %v5687_v39  ;;  %v17189_v39 = vld [vmem:[#allocation70_spill] sm:$0xff]  ;;  %v17192_v55 = vld [vmem:[#allocation72_spill] sm:$0xff] }
 0x30c   : > { %v13216_v38 = vadd.f32 %v4919_v60, %v4807_v21  ;;  %v4810_v35 = vpop.f32.mrf.mxu0  ;;  %v6606_v48 = vadd.f32 1.0, %v9394_v30  ;;  %v6607_v19 = vadd.f32 1.0, %v9396_v34  ;;  %v6614_v49 = vadd.f32 1.0, %v9398_v42  ;;  %v17220_v3 = vld [vmem:[#allocation112_spill] sm:$0xff] }
 0x30d   : > { %v4921_v5 = vpop.f32.mrf.mxu1  ;;  %v4811_v21 = vadd.f32 %v4810_v35, %v12953_v26  ;;  %17185 = vst [vmem:[#allocation111_spill] sm:$0xff] %v13228_v31  ;;  %17186 = vst [vmem:[#allocation49_spill] sm:$0xff] %v13230_v1  ;;  %v5719_v51 = vmul.f32 0.5, %v12914_v24  ;;  %v13234_v47 = vmul.f32 0.5, %v12917_v16  ;;  %v13240_v26 = vmul.f32 %v6591_v52, %v5695_v44  ;;  %v17216_v1 = vld [vmem:[#allocation126_spill] sm:$0xff] }
 0x30e   : > { %v13224_v56 = vadd.f32 %v4921_v5, %v4809_v23  ;;  %v4960_v29 = vpop.f32.mrf.mxu0  ;;  %v9400_v62 = vpop.eup %9399  ;;  %v13238_v23 = vmul.f32 %v6590_v9, %v5694_v0  ;;  %v13243_v4 = vmul.f32 0.5, %v12959_v50  ;;  %v13247_v24 = vmul.f32 %v6598_v12, %v5702_v37  ;;  %v17193_v5 = vld [vmem:[#allocation80_spill] sm:$0xff]  ;;  %v17200_v12 = vld [vmem:[#allocation73_spill] sm:$0xff] }
 0x30f   : > { %v4923_v60 = vpop.f32.mrf.mxu1  ;;  %17188 = vst [vmem:[#allocation135_spill] sm:$0xff] %v13240_v26  ;;  %v4961_v30 = vadd.f32 %v4960_v29, %v12984_v11  ;;  %v13249_v16 = vmul.f32 %v6599_v15, %v5703_v14  ;;  %v13253_v0 = vsub.s32 6, %v17193_v5  ;;  %v13256_v44 = vsub.s32 7, %v17193_v5  ;;  %v17198_v11 = vld [vmem:[#allocation71_spill] sm:$0xff] }
 0x310   : > { %v13236_v8 = vadd.f32 %v4923_v60, %v4811_v21  ;;  %17187 = vst [vmem:[#allocation149_spill] sm:$0xff] %v13238_v23  ;;  %17190 = vst [vmem:[#allocation150_spill] sm:$0xff] %v13247_v24  ;;  %v4962_v34 = vpop.f32.mrf.mxu0  ;;  %v9402_v50 = vpop.eup %9401  ;;  %v13258_v42 = vmul.f32 %v6606_v48, %v5710_v59  ;;  %v13260_v9 = vmul.f32 %v6607_v19, %v5711_v45  ;;  %v6615_v35 = vadd.f32 1.0, %v9400_v62  ;;  %v17201_v60 = vld [vmem:[#allocation98_spill] sm:$0xff]  ;;  %v17202_v29 = vld [vmem:[#allocation99_spill] sm:$0xff] }
 0x311   : > { %5461 = vmatmul.mubr.bf16.gmra.mxu0 %v17189_v39  ;;  %v5073_v22 = vpop.f32.mrf.mxu1  ;;  %17191 = vst [vmem:[#allocation153_spill] sm:$0xff] %v13249_v16  ;;  %17194 = vst [vmem:[#allocation100_spill] sm:$0xff] %v13253_v0  ;;  %5574 = vmatmul.mubr.bf16.gmra.mxu1 %v17198_v11  ;;  %v4963_v14 = vadd.f32 %v4962_v34, %v12988_v53  ;;  %v13266_v52 = vmul.f32 %v6614_v49, %v5718_v41  ;;  %v17203_v59 = vld [vmem:[#allocation95_spill] sm:$0xff]  ;;  %v17205_v41 = vld [vmem:[#allocation128_spill] sm:$0xff]  ;;  %v6622_v62 = vadd.f32 1.0, %v9402_v50 }
 0x312   : > { %5470 = vmatprep.mubr.bf16.mxu0 %v17192_v55  ;;  %17195 = vst [vmem:[#allocation50_spill] sm:$0xff] %v13256_v44  ;;  %17196 = vst [vmem:[#allocation52_spill] sm:$0xff] %v13258_v42  ;;  %v13263_v37 = vadd.f32 %v5073_v22, %v4961_v30  ;;  %5583 = vmatprep.mubr.bf16.mxu1 %v17200_v12  ;;  %v4964_v21 = vpop.f32.mrf.mxu0  ;;  %v6756_v39 = vadd.f32 %v17202_v29, %v17201_v60  ;;  %v17204_v22 = vld [vmem:[#allocation119_spill] sm:$0xff]  ;;  %v17206_v34 = vld [vmem:[#allocation105_spill] sm:$0xff] }
 0x313   : > { %17197 = vst [vmem:[#allocation51_spill] sm:$0xff] %v13260_v9  ;;  %v5075_v15 = vpop.f32.mrf.mxu1  ;;  %17199 = vst [vmem:[#allocation53_spill] sm:$0xff] %v13266_v52  ;;  %v6918_v45 = vmul.f32 %v17203_v59, %v17203_v59  ;;  %v4965_v19 = vadd.f32 %v4964_v21, %v13000_v6  ;;  %v6919_v53 = vmul.f32 %v17204_v22, %v17204_v22  ;;  %v17209_v9 = vld [vmem:[#allocation123_spill] sm:$0xff]  ;;  %v17212_v16 = vld [vmem:[#allocation145_spill] sm:$0xff] }
 0x314   : > { %v13273_v48 = vadd.f32 %v5075_v15, %v4963_v14  ;;  %v6925_v49 = vmul.f32 %v17205_v41, %v17205_v41  ;;  %v4966_v55 = vpop.f32.mrf.mxu0  ;;  %v13282_v5 = vrot.slane %v17206_v34, %v13253_v0  ;;  %v13286_v11 = vrot.slane %v17206_v34, %v13256_v44  ;;  %v17207_v14 = vld [vmem:[#allocation124_spill] sm:$0xff]  ;;  %v9404_v12 = vpop.eup %9403  ;;  %v17210_v52 = vld [vmem:[#allocation103_spill] sm:$0xff] }
 0x315   : > { %v5077_v30 = vpop.f32.mrf.mxu1  ;;  %v17208_v15 = vld [vmem:[#allocation120_spill] sm:$0xff]  ;;  %v6757_v60 = vadd.f32 %v6756_v39, %v17203_v59  ;;  %v6924_v50 = vmul.f32 %v17209_v9, %v17209_v9  ;;  %v6926_v0 = vmul.f32 %v17210_v52, %v17210_v52  ;;  %v13297_v42 = vmul.f32 %v6615_v35, %v5719_v51  ;;  %v17213_v24 = vld [vmem:[#allocation107_spill] sm:$0xff] }
 0x316   : > { %v7044_v6 = vadd.f32 %v17208_v15, %v17207_v14  ;;  %v13290_v21 = vadd.f32 %v5077_v30, %v4965_v19  ;;  %v4967_v34 = vadd.f32 %v4966_v55, %v17212_v16  ;;  %v4970_v44 = vpop.f32.mrf.mxu0  ;;  %v6934_v14 = vmul.f32 %v17213_v24, %v17213_v24  ;;  %v17214_v19 = vld [vmem:[#allocation74_spill] sm:$0xff]  ;;  %v17217_v51 = vld [vmem:[#allocation127_spill] sm:$0xff]  ;;  %v17218_v16 = vld [vmem:[#allocation76_spill] sm:$0xff] }
 0x317   : > { %v5079_v29 = vpop.f32.mrf.mxu1  ;;  %17211 = vst [vmem:[#allocation54_spill] sm:$0xff] %v13297_v42  ;;  %v17215_v15 = vld [vmem:[#allocation106_spill] sm:$0xff]  ;;  %v7053_v59 = vadd.f32 %v6925_v49, %v6924_v50  ;;  %v6765_v23 = vadd.f32 %v17205_v41, %v17209_v9  ;;  %v6774_v35 = vadd.f32 %v17217_v51, %v17216_v1  ;;  %v6623_v42 = vadd.f32 1.0, %v9404_v12  ;;  %v17222_v51 = vld [vmem:[#allocation77_spill] sm:$0xff] }
 0x318   : > { %v7045_v26 = vadd.f32 %v7044_v6, %v6918_v45  ;;  %v6927_v39 = vmul.f32 %v17215_v15, %v17215_v15  ;;  %v13310_v45 = vadd.f32 %v5079_v29, %v4967_v34  ;;  %v4971_v55 = vadd.f32 %v4970_v44, %v13018_v54  ;;  %v4972_v6 = vpop.f32.mrf.mxu0  ;;  %v17223_v54 = vld [vmem:[#allocation104_spill] sm:$0xff] }
 0x319   : > { %5471 = vmatmul.mubr.bf16.gmra.mxu0 %v17214_v19  ;;  %v5083_v30 = vpop.f32.mrf.mxu1  ;;  %v17219_v19 = vld [vmem:[#allocation130_spill] sm:$0xff]  ;;  %5584 = vmatmul.mubr.bf16.gmra.mxu1 %v17221_v61  ;;  %v4973_v49 = vadd.f32 %v4972_v6, %v13021_v17  ;;  %v7054_v41 = vadd.f32 %v7053_v59, %v6926_v0  ;;  %v6766_v9 = vadd.f32 %v6765_v23, %v17210_v52 }
 0x31a   : > { %5480 = vmatprep.mubr.bf16.mxu0 %v17218_v16  ;;  %v7062_v31 = vadd.f32 %v17220_v3, %v17219_v19  ;;  %v6775_v12 = vadd.f32 %v6774_v35, %v17213_v24  ;;  %5593 = vmatprep.mubr.bf16.mxu1 %v17222_v51  ;;  %v13320_v29 = vadd.f32 %v5083_v30, %v4971_v55  ;;  %v4974_v34 = vpop.f32.mrf.mxu0  ;;  %v17224_v3 = vld [vmem:[#allocation131_spill] sm:$0xff]  ;;  %v17225_v19 = vld [vmem:[#allocation136_spill] sm:$0xff]  ;;  %v17230_v35 = vld [vmem:[#allocation25_spill] sm:$0xff] }
 0x31b   : > { %v5085_v50 = vpop.f32.mrf.mxu1  ;;  %v6935_v44 = vmul.f32 %v17223_v54, %v17223_v54  ;;  %v6783_v61 = vadd.f32 %v17225_v19, %v17224_v3  ;;  %v13327_v17 = vmul.f32 %v6622_v62, %v13234_v47  ;;  %v13332_v59 = vadd.f32 %v6757_v60, %v17204_v22  ;;  %v17235_v60 = vld [vmem:[#allocation132_spill] sm:$0xff]  ;;  %v17240_v3 = vld [vmem:[#allocation78_spill] sm:$0xff]  ;;  %v17249_v22 = vld [vmem:[#allocation27_spill] sm:$0xff] }
 0x31c   : > { %v7063_v16 = vadd.f32 %v7062_v31, %v6934_v14  ;;  %v13329_v0 = vadd.f32 %v5085_v50, %v4973_v49  ;;  %v13334_v51 = vadd.f32 %v7045_v26, %v6919_v53  ;;  %v13337_v30 = vmul.f32 %v6623_v42, %v13243_v4  ;;  %v4976_v31 = vpop.f32.mrf.mxu0  ;;  %v17231_v14 = vld [vmem:[#allocation24_spill] sm:$0xff]  ;;  %v17236_v4 = vld [vmem:[#allocation91_spill] sm:$0xff] }
 0x31d   : > { %17226 = vst [vmem:[#allocation56_spill] sm:$0xff] %v13327_v17  ;;  %v5087_v23 = vpop.f32.mrf.mxu1  ;;  %17227 = vst [vmem:[#allocation55_spill] sm:$0xff] %v13332_v59  ;;  %v4975_v55 = vadd.f32 %v4974_v34, %v17230_v35  ;;  %v6784_v6 = vadd.f32 %v6783_v61, %v17231_v14  ;;  %v6941_v47 = vmul.f32 %v17225_v19, %v17225_v19  ;;  %v17238_v19 = vld [vmem:[#allocation137_spill] sm:$0xff] }
 0x31e   : > { %17228 = vst [vmem:[#allocation57_spill] sm:$0xff] %v13334_v51  ;;  %17229 = vst [vmem:[#allocation58_spill] sm:$0xff] %v13337_v30  ;;  %v13343_v49 = vadd.f32 %v7054_v41, %v6927_v39  ;;  %v13346_v50 = vadd.f32 %v6766_v9, %v17215_v15  ;;  %v13349_v26 = vadd.f32 %v6775_v12, %v17223_v54  ;;  %v4980_v34 = vpop.f32.mrf.mxu0  ;;  %v17239_v41 = vld [vmem:[#allocation102_spill] sm:$0xff]  ;;  %v17247_v15 = vld [vmem:[#allocation140_spill] sm:$0xff] }
 0x31f   : > { %v5089_v62 = vpop.f32.mrf.mxu1  ;;  %v6792_v42 = vadd.f32 %v17236_v4, %v17235_v60  ;;  %v13353_v53 = vadd.f32 %v5087_v23, %v4975_v55  ;;  %v13355_v35 = vadd.f32 %v7063_v16, %v6935_v44  ;;  %v6942_v61 = vmul.f32 %v17231_v14, %v17231_v14  ;;  %v17241_v12 = vld [vmem:[#allocation26_spill] sm:$0xff]  ;;  %v17242_v55 = vld [vmem:[#allocation143_spill] sm:$0xff]  ;;  %v17251_v30 = vld [vmem:[#allocation85_spill] sm:$0xff] }
 0x320   : > { %17232 = vst [vmem:[#allocation60_spill] sm:$0xff] %v13343_v49  ;;  %17233 = vst [vmem:[#allocation20_spill] sm:$0xff] %v13346_v50  ;;  %v7080_v39 = vadd.f32 %v17239_v41, %v17238_v19  ;;  %v4977_v9 = vadd.f32 %v4976_v31, %v13041_v25  ;;  %v4981_v54 = vadd.f32 %v4980_v34, %v17241_v12  ;;  %v4982_v16 = vpop.f32.mrf.mxu0  ;;  %v17244_v19 = vld [vmem:[#allocation101_spill] sm:$0xff]  ;;  %v17246_v31 = vld [vmem:[#allocation79_spill] sm:$0xff] }
 0x321   : > { %17234 = vst [vmem:[#allocation142_spill] sm:$0xff] %v13349_v26  ;;  %17237 = vst [vmem:[#allocation59_spill] sm:$0xff] %v13355_v35  ;;  %5481 = vmatmul.mubr.bf16.gmra.mxu0 %v17240_v3  ;;  %v5093_v24 = vpop.f32.mrf.mxu1  ;;  %v6950_v23 = vmul.f32 %v13132_v2, %v13132_v2  ;;  %v6957_v44 = vmul.f32 %v17242_v55, %v17242_v55  ;;  %v13369_v4 = vadd.f32 %v6784_v6, %v13129_v58  ;;  %v17245_v3 = vld [vmem:[#allocation139_spill] sm:$0xff]  ;;  %v17248_v6 = vld [vmem:[#allocation84_spill] sm:$0xff] }
 0x322   : > { %v6793_v60 = vadd.f32 %v6792_v42, %v13132_v2  ;;  %v7071_v41 = vadd.f32 %v6941_v47, %v17244_v19  ;;  %v6801_v25 = vadd.f32 %v17242_v55, %v17245_v3  ;;  %5594 = vmatmul.mubr.bf16.gmra.mxu1 %v17246_v31  ;;  %v13376_v34 = vadd.f32 %v5089_v62, %v4977_v9  ;;  %v4984_v2 = vpop.f32.mrf.mxu0  ;;  %v17250_v19 = vld [vmem:[#allocation83_spill] sm:$0xff]  ;;  %v17252_v3 = vld [vmem:[#allocation144_spill] sm:$0xff]  ;;  %v17253_v31 = vld [vmem:[#allocation138_spill] sm:$0xff] }
 0x323   : > { %17243 = vst [vmem:[#allocation61_spill] sm:$0xff] %v13369_v4  ;;  %v13378_v12 = vadd.f32 %v5093_v24, %v4981_v54  ;;  %v5095_v14 = vpop.f32.mrf.mxu1  ;;  %v6943_v1 = vmul.f32 %v13129_v58, %v13129_v58  ;;  %v6810_v52 = vadd.f32 %v17248_v6, %v17247_v15  ;;  %v4983_v42 = vadd.f32 %v4982_v16, %v17249_v22  ;;  %v17254_v6 = vld [vmem:[#allocation141_spill] sm:$0xff]  ;;  %v17256_v16 = vld [vmem:[#allocation152_spill] sm:$0xff]  ;;  %v17262_v26 = vld [vmem:[#allocation86_spill] sm:$0xff] }
 0x324   : > { %v7072_v47 = vadd.f32 %v7071_v41, %v6942_v61  ;;  %v7098_v55 = vadd.f32 %v17251_v30, %v17250_v19  ;;  %v13389_v62 = vadd.f32 %v17253_v31, %v17252_v3  ;;  %v6951_v54 = vmul.f32 %v13139_v27, %v13139_v27  ;;  %v4986_v61 = vpop.f32.mrf.mxu0  ;;  %v17257_v41 = vld [vmem:[#allocation87_spill] sm:$0xff] }
 0x325   : > { %v5097_v24 = vpop.f32.mrf.mxu1  ;;  %v7081_v9 = vadd.f32 %v7080_v39, %v6950_v23  ;;  %v6958_v58 = vmul.f32 %v13142_v18, %v13142_v18  ;;  %v7089_v15 = vadd.f32 %v6957_v44, %v17254_v6  ;;  %v5744_v22 = vmul.f32 %v13290_v21, %v13290_v21  ;;  %v17258_v23 = vld [vmem:[#allocation28_spill] sm:$0xff]  ;;  %v17259_v6 = vld [vmem:[#allocation155_spill] sm:$0xff] }
 0x326   : > { %v13399_v30 = vadd.f32 %v6793_v60, %v13139_v27  ;;  %v13403_v19 = vadd.f32 %v17257_v41, %v17256_v16  ;;  %v6973_v3 = vmul.f32 %v17253_v31, %v17253_v31  ;;  %v13407_v39 = vadd.f32 %v5095_v14, %v4983_v42  ;;  %v17260_v27 = vld [vmem:[#allocation29_spill] sm:$0xff]  ;;  %v4990_v41 = vpop.f32.mrf.mxu0  ;;  %v17263_v31 = vld [vmem:[#allocation154_spill] sm:$0xff] }
 0x327   : > { %v4985_v17 = vadd.f32 %v4984_v2, %v17258_v23  ;;  %v5099_v4 = vpop.f32.mrf.mxu1  ;;  %v6802_v44 = vadd.f32 %v6801_v25, %v13142_v18  ;;  %v6989_v35 = vmul.f32 %v17259_v6, %v17259_v6  ;;  %v5736_v60 = vmul.f32 %v13263_v37, %v13263_v37  ;;  %v17266_v18 = vld [vmem:[#allocation121_spill] sm:$0xff] }
 0x328   : > { %17255 = vst [vmem:[#allocation22_spill] sm:$0xff] %v13399_v30  ;;  %v4987_v30 = vadd.f32 %v4986_v61, %v17260_v27  ;;  %v13416_v16 = vadd.f32 %v7072_v47, %v6943_v1  ;;  %v13420_v14 = vadd.f32 %v17263_v31, %v17262_v26  ;;  %v13422_v2 = vadd.f32 %v7081_v9, %v6951_v54  ;;  %v4992_v47 = vpop.f32.mrf.mxu0  ;;  %v17268_v26 = vld [vmem:[#allocation151_spill] sm:$0xff] }
 0x329   : > { %v5103_v42 = vpop.f32.mrf.mxu1  ;;  %v6959_v25 = vmul.f32 %v13155_v10, %v13155_v10  ;;  %v7090_v23 = vadd.f32 %v7089_v15, %v6958_v58  ;;  %v13428_v51 = vadd.f32 %v17259_v6, %v17266_v18  ;;  %v5872_v27 = vmul.f32 %v5744_v22, %v13290_v21  ;;  %v17271_v58 = vld [vmem:[#allocation122_spill] sm:$0xff]  ;;  %v17272_v15 = vld [vmem:[#allocation97_spill] sm:$0xff] }
 0x32a   : > { %17261 = vst [vmem:[#allocation116_spill] sm:$0xff] %v13416_v16  ;;  %17264 = vst [vmem:[#allocation117_spill] sm:$0xff] %v13420_v14  ;;  %v13431_v61 = vadd.f32 %v5097_v24, %v4985_v17  ;;  %v13433_v1 = vadd.f32 %v5099_v4, %v4987_v30  ;;  %v13436_v31 = vadd.f32 %v6973_v3, %v17268_v26  ;;  %v17274_v18 = vld [vmem:[#allocation157_spill] sm:$0xff]  ;;  %v4994_v4 = vpop.f32.mrf.mxu0  ;;  %v17276_v24 = vld [vmem:[#allocation88_spill] sm:$0xff] }
 0x32b   : > { %17265 = vst [vmem:[#allocation94_spill] sm:$0xff] %v13422_v2  ;;  %17267 = vst [vmem:[#allocation134_spill] sm:$0xff] %v13428_v51  ;;  %v4991_v54 = vadd.f32 %v4990_v41, %v13078_v46  ;;  %v5105_v9 = vpop.f32.mrf.mxu1  ;;  %v13440_v2 = vadd.f32 %v6802_v44, %v13155_v10  ;;  %v13444_v6 = vadd.f32 %v17272_v15, %v17271_v58  ;;  %v17277_v30 = vld [vmem:[#allocation158_spill] sm:$0xff]  ;;  %v17279_v41 = vld [vmem:[#allocation156_spill] sm:$0xff]  ;;  %v6000_v16 = vmul.f32 0.044715, %v5872_v27 }
 0x32c   : > { %17269 = vst [vmem:[#allocation16_spill] sm:$0xff] %v13436_v31  ;;  %v13447_v22 = vadd.f32 %v6989_v35, %v17274_v18  ;;  %v5864_v17 = vmul.f32 %v5736_v60, %v13263_v37  ;;  %v6966_v3 = vmul.f32 %v13169_v13, %v13169_v13  ;;  %v13454_v46 = vadd.f32 %v17277_v30, %v17276_v24  ;;  %v17280_v44 = vld [vmem:[#allocation163_spill] sm:$0xff]  ;;  %v17283_v60 = vld [vmem:[#allocation160_spill] sm:$0xff]  ;;  %v17284_v10 = vld [vmem:[#allocation161_spill] sm:$0xff] }
 0x32d   : > { %17270 = vst [vmem:[#allocation168_spill] sm:$0xff] %v13440_v2  ;;  %17273 = vst [vmem:[#allocation62_spill] sm:$0xff] %v13444_v6  ;;  %v13458_v26 = vadd.f32 %v17280_v44, %v17279_v41  ;;  %v5737_v15 = vmul.f32 %v13273_v48, %v13273_v48  ;;  %v5107_v58 = vpop.f32.mrf.mxu1  ;;  %v6811_v18 = vadd.f32 %v6810_v52, %v13169_v13 }
 0x32e   : > { %17275 = vst [vmem:[#allocation64_spill] sm:$0xff] %v13447_v22  ;;  %17278 = vst [vmem:[#allocation17_spill] sm:$0xff] %v13454_v46  ;;  %v13463_v35 = vadd.f32 %v7090_v23, %v6959_v25  ;;  %v13467_v2 = vadd.f32 %v17284_v10, %v17283_v60  ;;  %v5752_v24 = vmul.f32 %v13320_v29, %v13320_v29  ;;  %v17286_v10 = vld [vmem:[#allocation164_spill] sm:$0xff]  ;;  %v17287_v60 = vld [vmem:[#allocation165_spill] sm:$0xff]  ;;  %v5992_v13 = vmul.f32 0.044715, %v5864_v17 }
 0x32f   : > { %17281 = vst [vmem:[#allocation63_spill] sm:$0xff] %v13458_v26  ;;  %v13471_v30 = vadd.f32 %v5103_v42, %v4991_v54  ;;  %v4993_v41 = vadd.f32 %v4992_v47, %v13081_v57  ;;  %v4996_v26 = vpop.f32.mrf.mxu0  ;;  %v5760_v46 = vmul.f32 %v13353_v53, %v13353_v53  ;;  %v4995_v52 = vadd.f32 %v4994_v4, %v13086_v32  ;;  %v5109_v25 = vpop.f32.mrf.mxu1  ;;  %v17289_v47 = vld [vmem:[#allocation162_spill] sm:$0xff]  ;;  %v17290_v54 = vld [vmem:[#allocation89_spill] sm:$0xff] }
 0x330   : > { %17282 = vst [vmem:[#allocation65_spill] sm:$0xff] %v13463_v35  ;;  %17285 = vst [vmem:[#allocation118_spill] sm:$0xff] %v13467_v2  ;;  %v7005_v23 = vmul.f32 %v17280_v44, %v17280_v44  ;;  %v13481_v27 = vadd.f32 %v17287_v60, %v17286_v10  ;;  %v6967_v42 = vmul.f32 %v13178_v63, %v13178_v63  ;;  %v13490_v32 = vmul.f32 0.5, %v13263_v37 }
 0x331   : > { %v5000_v35 = vpop.f32.mrf.mxu0  ;;  %v7099_v57 = vadd.f32 %v7098_v55, %v6966_v3  ;;  %v13487_v2 = vadd.f32 %v17290_v54, %v17289_v47  ;;  %v5865_v4 = vmul.f32 %v5737_v15, %v13273_v48  ;;  %v5745_v44 = vmul.f32 %v13310_v45, %v13310_v45  ;;  %v5113_v17 = vpop.f32.mrf.mxu1 }
 0x332   : > { %17288 = vst [vmem:[#allocation133_spill] sm:$0xff] %v13481_v27  ;;  %v13495_v10 = vadd.f32 %v5105_v9, %v4993_v41  ;;  %v6128_v60 = vadd.f32 %v6000_v16, %v13290_v21  ;;  %v5880_v27 = vmul.f32 %v5752_v24, %v13320_v29  ;;  %v13499_v55 = vadd.f32 %v5107_v58, %v4995_v52  ;;  %v17293_v9 = vld [vmem:[#allocation159_spill] sm:$0xff] }
 0x333   : > { %17291 = vst [vmem:[#allocation18_spill] sm:$0xff] %v13487_v2  ;;  %v4997_v3 = vadd.f32 %v4996_v26, %v13088_v7  ;;  %v5002_v47 = vpop.f32.mrf.mxu0  ;;  %v5753_v54 = vmul.f32 %v13329_v0, %v13329_v0  ;;  %v5888_v15 = vmul.f32 %v5760_v46, %v13353_v53  ;;  %v5115_v2 = vpop.f32.mrf.mxu1  ;;  %v13506_v22 = vadd.f32 %v6811_v18, %v13178_v63 }
 0x334   : > { %v13509_v41 = vadd.f32 %v7005_v23, %v17293_v9  ;;  %v6120_v16 = vadd.f32 %v5992_v13, %v13263_v37  ;;  %v13513_v58 = vmul.f32 0.5, %v13273_v48  ;;  %v13515_v7 = vadd.f32 %v7099_v57, %v6967_v42 }
 0x335   : > { %17292 = vst [vmem:[#allocation96_spill] sm:$0xff] %v13506_v22  ;;  %v5004_v24 = vpop.f32.mrf.mxu0  ;;  %v6820_v26 = vadd.f32 %v13389_v62, %v13184_v40  ;;  %v5993_v52 = vmul.f32 0.044715, %v5865_v4  ;;  %v5768_v46 = vmul.f32 %v13378_v12, %v13378_v12  ;;  %v13521_v18 = vadd.f32 %v5109_v25, %v4997_v3  ;;  %v5117_v9 = vpop.f32.mrf.mxu1 }
 0x336   : > { %17294 = vst [vmem:[#allocation19_spill] sm:$0xff] %v13509_v41  ;;  %17295 = vst [vmem:[#allocation21_spill] sm:$0xff] %v13513_v58  ;;  %v5001_v23 = vadd.f32 %v5000_v35, %v13090_v28  ;;  %v6256_v63 = vmul.f32 0.7978846, %v6128_v60  ;;  %v5873_v13 = vmul.f32 %v5745_v44, %v13310_v45  ;;  %v6008_v37 = vmul.f32 0.044715, %v5880_v27 }
 0x337   : > { %17296 = vst [vmem:[#allocation23_spill] sm:$0xff] %v13515_v7  ;;  %v5006_v22 = vpop.f32.mrf.mxu0  ;;  %v13527_v42 = vmul.f32 %v13184_v40, %v13184_v40  ;;  %v13530_v62 = vmul.f32 0.5, %v13290_v21  ;;  %v5881_v57 = vmul.f32 %v5753_v54, %v13329_v0  ;;  %v6016_v4 = vmul.f32 0.044715, %v5888_v15  ;;  %v5119_v28 = vpop.f32.mrf.mxu1  ;;  %v17299_v54 = vld [vmem:[#allocation146_spill] sm:$0xff]  ;;  %v17300_v7 = vld [vmem:[#allocation147_spill] sm:$0xff] }
 0x338   : > { %v5761_v25 = vmul.f32 %v13376_v34, %v13376_v34  ;;  %v6248_v35 = vmul.f32 0.7978846, %v6120_v16  ;;  %v5776_v44 = vmul.f32 %v13431_v61, %v13431_v61  ;;  %v13537_v27 = vadd.f32 %v5113_v17, %v5001_v23 }
 0x339   : > { %17297 = vst [vmem:[#allocation66_spill] sm:$0xff] %v13527_v42  ;;  %v5010_v60 = vpop.f32.mrf.mxu0  ;;  %v13540_v3 = vadd.f32 %v6820_v26, %v13191_v43  ;;  %v6121_v21 = vadd.f32 %v5993_v52, %v13273_v48  ;;  %v5896_v40 = vmul.f32 %v5768_v46, %v13378_v12  ;;  %v5003_v15 = vadd.f32 %v5002_v47, %v17299_v54  ;;  %v5123_v6 = vpop.f32.mrf.mxu1 }
 0x33a   : > { %v5005_v41 = vadd.f32 %v5004_v24, %v17300_v7  ;;  %9405 = vtanh.f32 %v6256_v63  ;;  %v6001_v16 = vmul.f32 0.044715, %v5873_v13  ;;  %v6136_v51 = vadd.f32 %v6008_v37, %v13320_v29  ;;  %v17301_v7 = vld [vmem:[#allocation30_spill] sm:$0xff] }
 0x33b   : > { %17298 = vst [vmem:[#allocation68_spill] sm:$0xff] %v13540_v3  ;;  %v5769_v17 = vmul.f32 %v13407_v39, %v13407_v39  ;;  %v5012_v23 = vpop.f32.mrf.mxu0  ;;  %v6009_v14 = vmul.f32 0.044715, %v5881_v57  ;;  %v6144_v26 = vadd.f32 %v6016_v4, %v13353_v53  ;;  %v5889_v48 = vmul.f32 %v5761_v25, %v13376_v34  ;;  %v5125_v46 = vpop.f32.mrf.mxu1 }
 0x33c   : > { %v13551_v52 = vadd.f32 %v5115_v2, %v5003_v15  ;;  %v5904_v47 = vmul.f32 %v5776_v44, %v13431_v61  ;;  %v5784_v63 = vmul.f32 %v13471_v30, %v13471_v30  ;;  %v13556_v24 = vadd.f32 %v5117_v9, %v5005_v41 }
 0x33d   : > { %v5007_v13 = vadd.f32 %v5006_v22, %v17301_v7  ;;  %v5014_v37 = vpop.f32.mrf.mxu0  ;;  %v13560_v54 = vmul.f32 0.5, %v13310_v45  ;;  %v6024_v57 = vmul.f32 0.044715, %v5896_v40  ;;  %v5127_v4 = vpop.f32.mrf.mxu1  ;;  %v13564_v2 = vadd.f32 %v13403_v19, %v13194_v33 }
 0x33e   : > { %v13568_v25 = vmul.f32 %v13191_v43, %v13191_v43  ;;  %v6249_v44 = vmul.f32 0.7978846, %v6121_v21  ;;  %v6129_v41 = vadd.f32 %v6001_v16, %v13310_v45  ;;  %v13572_v9 = vmul.f32 0.5, %v13320_v29  ;;  %v17304_v16 = vld [vmem:[#allocation31_spill] sm:$0xff] }
 0x33f   : > { %17302 = vst [vmem:[#allocation67_spill] sm:$0xff] %v13564_v2  ;;  %v5897_v22 = vmul.f32 %v5769_v17, %v13407_v39  ;;  %v5016_v15 = vpop.f32.mrf.mxu0  ;;  %9407 = vtanh.f32 %v6248_v35  ;;  %v6264_v40 = vmul.f32 0.7978846, %v6136_v51  ;;  %v6137_v7 = vadd.f32 %v6009_v14, %v13329_v0  ;;  %v5129_v19 = vpop.f32.mrf.mxu1  ;;  %v17305_v35 = vld [vmem:[#allocation32_spill] sm:$0xff] }
 0x340   : > { %17303 = vst [vmem:[#allocation69_spill] sm:$0xff] %v13568_v25  ;;  %v6017_v3 = vmul.f32 0.044715, %v5889_v48  ;;  %v6272_v31 = vmul.f32 0.7978846, %v6144_v26  ;;  %v5912_v43 = vmul.f32 %v5784_v63, %v13471_v30  ;;  %v13577_v25 = vadd.f32 %v5119_v28, %v5007_v13  ;;  %v17307_v13 = vld [vmem:[#allocation33_spill] sm:$0xff] }
 0x341   : > { %v6032_v42 = vmul.f32 0.044715, %v5904_v47  ;;  %v5020_v21 = vpop.f32.mrf.mxu0  ;;  %v6152_v45 = vadd.f32 %v6024_v57, %v13378_v12  ;;  %v5777_v29 = vmul.f32 %v13433_v1, %v13433_v1  ;;  %v5011_v17 = vadd.f32 %v5010_v60, %v17304_v16  ;;  %v5133_v2 = vpop.f32.mrf.mxu1 }
 0x342   : > { %v5013_v51 = vadd.f32 %v5012_v23, %v17305_v35  ;;  %9409 = vtanh.f32 %v6249_v44  ;;  %v6257_v14 = vmul.f32 0.7978846, %v6129_v41  ;;  %v13585_v26 = vmul.f32 0.5, %v13329_v0 }
 0x343   : > { %v6025_v48 = vmul.f32 0.044715, %v5897_v22  ;;  %v5022_v47 = vpop.f32.mrf.mxu0  ;;  %9411 = vtanh.f32 %v6264_v40  ;;  %v13587_v28 = vadd.f32 %v5123_v6, %v5011_v17  ;;  %v5015_v57 = vadd.f32 %v5014_v37, %v17307_v13  ;;  %v5135_v33 = vpop.f32.mrf.mxu1 }
 0x344   : > { %17306 = vst [vmem:[#allocation70_spill] sm:$0xff] %v13585_v26  ;;  %v13589_v63 = vadd.f32 %v5125_v46, %v5013_v51  ;;  %v6265_v49 = vmul.f32 0.7978846, %v6137_v7  ;;  %9413 = vtanh.f32 %v6272_v31  ;;  %v6160_v60 = vadd.f32 %v6032_v42, %v13431_v61 }
 0x345   : > { %v6040_v23 = vmul.f32 0.044715, %v5912_v43  ;;  %v5024_v44 = vpop.f32.mrf.mxu0  ;;  %v6145_v41 = vadd.f32 %v6017_v3, %v13376_v34  ;;  %v6280_v0 = vmul.f32 0.7978846, %v6152_v45  ;;  %v5905_v22 = vmul.f32 %v5777_v29, %v13433_v1  ;;  %v5137_v40 = vpop.f32.mrf.mxu1  ;;  %v17309_v29 = vld [vmem:[#allocation36_spill] sm:$0xff] }
 0x346   : > { %v5785_v6 = vmul.f32 %v13495_v10, %v13495_v10  ;;  %v13598_v46 = vmul.f32 0.5, %v13353_v53  ;;  %v13601_v37 = vmul.f32 0.5, %v13376_v34  ;;  %v13604_v31 = vmul.f32 0.5, %v13378_v12 }
 0x347   : > { %v6153_v43 = vadd.f32 %v6025_v48, %v13407_v39  ;;  %v5026_v42 = vpop.f32.mrf.mxu0  ;;  %v9406_v3 = vpop.eup %9405  ;;  %9415 = vtanh.f32 %v6257_v14  ;;  %v5792_v7 = vmul.f32 %v13499_v55, %v13499_v55  ;;  %v13609_v45 = vadd.f32 %v5127_v4, %v5015_v57 }
 0x348   : > { %17308 = vst [vmem:[#allocation72_spill] sm:$0xff] %v13601_v37  ;;  %v5017_v16 = vadd.f32 %v5016_v15, %v17309_v29  ;;  %v13612_v53 = vpop.f32.mrf.mxu1  ;;  %9417 = vtanh.f32 %v6265_v49  ;;  %v13615_v34 = vmul.f32 0.5, %v13407_v39  ;;  %v6288_v12 = vmul.f32 0.7978846, %v6160_v60 }
 0x349   : > { %v6168_v17 = vadd.f32 %v6040_v23, %v13471_v30  ;;  %v5030_v35 = vpop.f32.mrf.mxu0  ;;  %v6273_v51 = vmul.f32 0.7978846, %v6145_v41  ;;  %9419 = vtanh.f32 %v6280_v0  ;;  %v6033_v14 = vmul.f32 0.044715, %v5905_v22  ;;  %v17311_v41 = vld [vmem:[#allocation39_spill] sm:$0xff]  ;;  %v17312_v22 = vld [vmem:[#allocation41_spill] sm:$0xff] }
 0x34a   : > { %17310 = vst [vmem:[#allocation80_spill] sm:$0xff] %v13615_v34  ;;  %v5913_v48 = vmul.f32 %v5785_v6, %v13495_v10  ;;  %v13619_v13 = vpop.f32.mrf.mxu1  ;;  %v6281_v4 = vmul.f32 0.7978846, %v6153_v43  ;;  %v13622_v15 = vmul.f32 0.5, %v13431_v61  ;;  %v5793_v49 = vmul.f32 %v13521_v18, %v13521_v18 }
 0x34b   : > { %v13626_v39 = vadd.f32 %v5129_v19, %v5017_v16  ;;  %v5032_v57 = vpop.f32.mrf.mxu0  ;;  %v5920_v60 = vmul.f32 %v5792_v7, %v13499_v55  ;;  %v5800_v23 = vmul.f32 %v13537_v27, %v13537_v27  ;;  %v5021_v0 = vadd.f32 %v5020_v21, %v17311_v41 }
 0x34c   : > { %v5023_v6 = vadd.f32 %v5022_v47, %v17312_v22  ;;  %v13633_v29 = vpop.f32.mrf.mxu1  ;;  %v13635_v43 = vpop.eup %9407  ;;  %v6512_v61 = vadd.f32 1.0, %v9406_v3  ;;  %9421 = vtanh.f32 %v6288_v12  ;;  %v6296_v34 = vmul.f32 0.7978846, %v6168_v17  ;;  %v17313_v17 = vld [vmem:[#allocation43_spill] sm:$0xff] }
 0x34d   : > { %v5801_v19 = vmul.f32 %v13551_v52, %v13551_v52  ;;  %v13639_v16 = vpop.f32.mrf.mxu0  ;;  %9423 = vtanh.f32 %v6273_v51  ;;  %v6161_v7 = vadd.f32 %v6033_v14, %v13433_v1  ;;  %v6041_v37 = vmul.f32 0.044715, %v5913_v48 }
 0x34e   : > { %v13642_v26 = vadd.f32 %v5133_v2, %v5021_v0  ;;  %v13644_v21 = vpop.f32.mrf.mxu1  ;;  %v5921_v47 = vmul.f32 %v5793_v49, %v13521_v18  ;;  %v5808_v3 = vmul.f32 %v13556_v24, %v13556_v24  ;;  %v13649_v12 = vadd.f32 %v5135_v33, %v5023_v6 }
 0x34f   : > { %v5025_v41 = vadd.f32 %v5024_v44, %v17313_v17  ;;  %v13652_v22 = vpop.f32.mrf.mxu0  ;;  %v13654_v59 = vpop.eup %9409  ;;  %9425 = vtanh.f32 %v6281_v4  ;;  %v13657_v51 = vmul.f32 0.5, %v13433_v1  ;;  %v6048_v2 = vmul.f32 0.044715, %v5920_v60 }
 0x350   : > { %v5928_v14 = vmul.f32 %v5800_v23, %v13537_v27  ;;  %v13660_v48 = vpop.f32.mrf.mxu1  ;;  %v9412_v49 = vpop.eup %9411  ;;  %v13663_v0 = vmul.f32 %v6512_v61, %v13530_v62  ;;  %v13666_v33 = vmul.f32 0.5, %v13471_v30  ;;  %9427 = vtanh.f32 %v6296_v34 }
 0x351   : > { %17314 = vst [vmem:[#allocation71_spill] sm:$0xff] %v13657_v51  ;;  %v5929_v44 = vmul.f32 %v5801_v19, %v13551_v52  ;;  %v9414_v6 = vpop.eup %9413  ;;  %v6289_v4 = vmul.f32 0.7978846, %v6161_v7  ;;  %v13670_v1 = vmul.f32 0.5, %v13495_v10  ;;  %v13672_v60 = vadd.f32 %v5137_v40, %v5025_v41  ;;  %v13675_v17 = vpop.f32.mrf.mxu0 }
 0x352   : > { %17315 = vst [vmem:[#allocation73_spill] sm:$0xff] %v13663_v0  ;;  %v5027_v23 = vadd.f32 %v5026_v42, %v13187_v36  ;;  %v6169_v62 = vadd.f32 %v6041_v37, %v13495_v10  ;;  %v6049_v61 = vmul.f32 0.044715, %v5921_v47  ;;  %v5936_v30 = vmul.f32 %v5808_v3, %v13556_v24  ;;  %v13680_v51 = vpop.f32.mrf.mxu1 }
 0x353   : > { %17316 = vst [vmem:[#allocation105_spill] sm:$0xff] %v13670_v1  ;;  %v5031_v34 = vadd.f32 %v5030_v35, %v13201_v20  ;;  %v6520_v19 = vadd.f32 1.0, %v9412_v49  ;;  %v13683_v7 = vmul.f32 0.5, %v13499_v55  ;;  %v6176_v40 = vadd.f32 %v6048_v2, %v13499_v55  ;;  %v13686_v1 = vpop.f32.mrf.mxu0 }
 0x354   : > { %v6056_v41 = vmul.f32 0.044715, %v5928_v14  ;;  %v13688_v36 = vpop.eup %9415  ;;  %v6528_v42 = vadd.f32 1.0, %v9414_v6  ;;  %v6057_v10 = vmul.f32 0.044715, %v5929_v44  ;;  %v5816_v37 = vmul.f32 %v13587_v28, %v13587_v28  ;;  %v13695_v35 = vpop.f32.mrf.mxu1 }
 0x355   : > { %v13693_v20 = vadd.f32 %v13612_v53, %v5027_v23  ;;  %v13697_v47 = vpop.eup %9417  ;;  %9429 = vtanh.f32 %v6289_v4  ;;  %v5809_v55 = vmul.f32 %v13577_v25, %v13577_v25  ;;  %v13702_v3 = vadd.f32 %v13619_v13, %v5031_v34  ;;  %v13705_v14 = vpop.f32.mrf.mxu0 }
 0x356   : > { %17317 = vst [vmem:[#allocation124_spill] sm:$0xff] %v13697_v47  ;;  %v5033_v2 = vadd.f32 %v5032_v57, %v13216_v38  ;;  %v9420_v49 = vpop.eup %9419  ;;  %v6297_v44 = vmul.f32 0.7978846, %v6169_v62  ;;  %v13708_v53 = vmul.f32 0.5, %v13521_v18  ;;  %v6177_v6 = vadd.f32 %v6049_v61, %v13521_v18  ;;  %v13711_v50 = vpop.f32.mrf.mxu1 }
 0x357   : > { %v6064_v23 = vmul.f32 0.044715, %v5936_v30  ;;  %v13714_v4 = vmul.f32 %v6520_v19, %v13572_v9  ;;  %v6304_v47 = vmul.f32 0.7978846, %v6176_v40  ;;  %v13717_v13 = vmul.f32 0.5, %v13537_v27  ;;  %v5192_v57 = vpop.f32.mrf.mxu0 }
 0x358   : > { %17318 = vst [vmem:[#allocation120_spill] sm:$0xff] %v13708_v53  ;;  %v6184_v38 = vadd.f32 %v6056_v41, %v13537_v27  ;;  %v13721_v62 = vmul.f32 %v6528_v42, %v13598_v46  ;;  %v6185_v34 = vadd.f32 %v6057_v10, %v13551_v52  ;;  %v5944_v18 = vmul.f32 %v5816_v37, %v13587_v28  ;;  %v13728_v30 = vpop.f32.mrf.mxu1 }
 0x359   : > { %17319 = vst [vmem:[#allocation145_spill] sm:$0xff] %v13714_v4  ;;  %v13726_v61 = vadd.f32 %v13633_v29, %v5033_v2  ;;  %v9422_v9 = vpop.eup %9421  ;;  %v6536_v19 = vadd.f32 1.0, %v9420_v49  ;;  %v5937_v40 = vmul.f32 %v5809_v55, %v13577_v25  ;;  %v5824_v27 = vmul.f32 %v13609_v45, %v13609_v45  ;;  %v5196_v41 = vpop.f32.mrf.mxu0 }
 0x35a   : > { %17320 = vst [vmem:[#allocation74_spill] sm:$0xff] %v13721_v62  ;;  %v5035_v46 = vadd.f32 %v13639_v16, %v13224_v56  ;;  %v13735_v42 = vpop.eup %9423  ;;  %9431 = vtanh.f32 %v6297_v44  ;;  %v6305_v10 = vmul.f32 0.7978846, %v6177_v6  ;;  %v13738_v29 = vmul.f32 0.5, %v13551_v52  ;;  %v5309_v2 = vpop.f32.mrf.mxu1 }
 0x35b   : > { %17321 = vst [vmem:[#allocation76_spill] sm:$0xff] %v13735_v42  ;;  %v6192_v37 = vadd.f32 %v6064_v23, %v13556_v24  ;;  %9433 = vtanh.f32 %v6304_v47  ;;  %v6312_v49 = vmul.f32 0.7978846, %v6184_v38  ;;  %v13742_v55 = vmul.f32 0.5, %v13556_v24  ;;  %v5198_v56 = vpop.f32.mrf.mxu0 }
 0x35c   : > { %17322 = vst [vmem:[#allocation130_spill] sm:$0xff] %v13738_v29  ;;  %v13745_v53 = vadd.f32 %v13644_v21, %v5035_v46  ;;  %v13747_v16 = vpop.eup %9425  ;;  %v6544_v62 = vadd.f32 1.0, %v9422_v9  ;;  %v6313_v44 = vmul.f32 0.7978846, %v6185_v34  ;;  %v6072_v6 = vmul.f32 0.044715, %v5944_v18  ;;  %v5311_v29 = vpop.f32.mrf.mxu1 }
 0x35d   : > { %17323 = vst [vmem:[#allocation112_spill] sm:$0xff] %v13747_v16  ;;  %v5037_v52 = vadd.f32 %v13652_v22, %v13236_v8  ;;  %v9428_v23 = vpop.eup %9427  ;;  %v13752_v47 = vmul.f32 %v6536_v19, %v13604_v31  ;;  %v6065_v38 = vmul.f32 0.044715, %v5937_v40  ;;  %v5817_v24 = vmul.f32 %v13589_v63, %v13589_v63  ;;  %v5200_v46 = vpop.f32.mrf.mxu0 }
 0x35e   : > { %v5952_v21 = vmul.f32 %v5824_v27, %v13609_v45  ;;  %9435 = vtanh.f32 %v6305_v10  ;;  %v6320_v16 = vmul.f32 0.7978846, %v6192_v37  ;;  %v13758_v34 = vmul.f32 0.5, %v13577_v25  ;;  %v5313_v8 = vpop.f32.mrf.mxu1 }
 0x35f   : > { %17324 = vst [vmem:[#allocation75_spill] sm:$0xff] %v13752_v47  ;;  %v13761_v18 = vadd.f32 %v13660_v48, %v5037_v52  ;;  %9437 = vtanh.f32 %v6312_v49  ;;  %v13764_v31 = vmul.f32 0.5, %v13587_v28  ;;  %v13767_v22 = vmul.f32 0.5, %v13589_v63  ;;  %v5202_v19 = vpop.f32.mrf.mxu0 }
 0x360   : > { %17325 = vst [vmem:[#allocation77_spill] sm:$0xff] %v13758_v34  ;;  %v5832_v9 = vmul.f32 %v13642_v26, %v13642_v26  ;;  %v13772_v40 = vmul.f32 %v6544_v62, %v13622_v15  ;;  %v13774_v27 = vadd.f32 1.0, %v9428_v23  ;;  %9439 = vtanh.f32 %v6313_v44  ;;  %v5315_v10 = vpop.f32.mrf.mxu1 }
 0x361   : > { %17326 = vst [vmem:[#allocation25_spill] sm:$0xff] %v13767_v22  ;;  %v6200_v48 = vadd.f32 %v6072_v6, %v13587_v28  ;;  %v6193_v37 = vadd.f32 %v6065_v38, %v13577_v25  ;;  %v5945_v49 = vmul.f32 %v5817_v24, %v13589_v63  ;;  %v6080_v52 = vmul.f32 0.044715, %v5952_v21  ;;  %v5206_v34 = vpop.f32.mrf.mxu0 }
 0x362   : > { %17327 = vst [vmem:[#allocation137_spill] sm:$0xff] %v13772_v40  ;;  %v5840_v22 = vmul.f32 %v13672_v60, %v13672_v60  ;;  %v13781_v47 = vpop.eup %9429  ;;  %9441 = vtanh.f32 %v6320_v16  ;;  %v5848_v15 = vmul.f32 %v13702_v3, %v13702_v3  ;;  %v5191_v62 = vadd.f32 %v13705_v14, %v13282_v5  ;;  %v5319_v44 = vpop.f32.mrf.mxu1 }
 0x363   : > { %17328 = vst [vmem:[#allocation102_spill] sm:$0xff] %v13781_v47  ;;  %v5193_v28 = vadd.f32 %v5192_v57, %v13286_v11  ;;  %v13789_v25 = vmul.f32 0.5, %v13609_v45  ;;  %v5825_v6 = vmul.f32 %v13626_v39, %v13626_v39  ;;  %v5960_v23 = vmul.f32 %v5832_v9, %v13642_v26  ;;  %v5208_v16 = vpop.f32.mrf.mxu0 }
 0x364   : > { %v5197_v38 = vadd.f32 %v5196_v41, %v13282_v5  ;;  %v6328_v24 = vmul.f32 0.7978846, %v6200_v48  ;;  %v13796_v21 = vadd.f32 %v13711_v50, %v5191_v62  ;;  %v5199_v57 = vadd.f32 %v5198_v56, %v13286_v11  ;;  %v5321_v40 = vpop.f32.mrf.mxu1 }
 0x365   : > { %v13799_v14 = vadd.f32 %v13728_v30, %v5193_v28  ;;  %v6208_v47 = vadd.f32 %v6080_v52, %v13609_v45  ;;  %v5968_v42 = vmul.f32 %v5840_v22, %v13672_v60  ;;  %v5201_v9 = vadd.f32 %v5200_v46, %v13282_v5  ;;  %v5210_v41 = vpop.f32.mrf.mxu0 }
 0x366   : > { %v13804_v4 = vadd.f32 %v5309_v2, %v5197_v38  ;;  %v5976_v48 = vmul.f32 %v5848_v15, %v13702_v3  ;;  %v13808_v58 = vadd.f32 %v5311_v29, %v5199_v57  ;;  %v5203_v50 = vadd.f32 %v5202_v19, %v13286_v11  ;;  %v5323_v62 = vpop.f32.mrf.mxu1 }
 0x367   : > { %v5207_v30 = vadd.f32 %v5206_v34, %v13282_v5  ;;  %v13812_v56 = vpop.eup %9431  ;;  %v6088_v28 = vmul.f32 0.044715, %v5960_v23  ;;  %v13814_v45 = vadd.f32 %v5313_v8, %v5201_v9  ;;  %v5209_v2 = vadd.f32 %v5208_v16, %v13286_v11  ;;  %v5212_v46 = vpop.f32.mrf.mxu0 }
 0x368   : > { %17329 = vst [vmem:[#allocation78_spill] sm:$0xff] %v13808_v58  ;;  %v5211_v22 = vadd.f32 %v5210_v41, %v13282_v5  ;;  %v9434_v52 = vpop.eup %9433  ;;  %v5953_v15 = vmul.f32 %v5825_v6, %v13626_v39  ;;  %v5833_v29 = vmul.f32 %v13649_v12, %v13649_v12  ;;  %v13821_v19 = vadd.f32 %v5315_v10, %v5203_v50  ;;  %v5325_v38 = vpop.f32.mrf.mxu1 }
 0x369   : > { %17330 = vst [vmem:[#allocation26_spill] sm:$0xff] %v13814_v45  ;;  %v13823_v34 = vadd.f32 %v5319_v44, %v5207_v30  ;;  %v6096_v57 = vmul.f32 0.044715, %v5968_v42  ;;  %v13825_v23 = vadd.f32 %v5321_v40, %v5209_v2  ;;  %v5213_v16 = vadd.f32 %v5212_v46, %v13286_v11  ;;  %v5216_v9 = vpop.f32.mrf.mxu0 }
 0x36a   : > { %v13827_v8 = vadd.f32 %v5323_v62, %v5211_v22  ;;  %v6321_v41 = vmul.f32 0.7978846, %v6193_v37  ;;  %v6104_v45 = vmul.f32 0.044715, %v5976_v48  ;;  %v5856_v6 = vmul.f32 %v13745_v53, %v13745_v53  ;;  %v5329_v10 = vpop.f32.mrf.mxu1 }
 0x36b   : > { %v5217_v58 = vadd.f32 %v5216_v9, %v13282_v5  ;;  %v13833_v50 = vpop.eup %9435  ;;  %v6073_v44 = vmul.f32 0.044715, %v5945_v49  ;;  %v6336_v30 = vmul.f32 0.7978846, %v6208_v47  ;;  %v6216_v42 = vadd.f32 %v6088_v28, %v13642_v26  ;;  %v5218_v62 = vpop.f32.mrf.mxu0 }
 0x36c   : > { %17331 = vst [vmem:[#allocation101_spill] sm:$0xff] %v13827_v8  ;;  %v13836_v40 = vadd.f32 %v5325_v38, %v5213_v16  ;;  %v9438_v2 = vpop.eup %9437  ;;  %9443 = vtanh.f32 %v6328_v24  ;;  %v6081_v22 = vmul.f32 0.044715, %v5953_v15  ;;  %v5219_v48 = vadd.f32 %v5218_v62, %v13286_v11  ;;  %v5331_v46 = vpop.f32.mrf.mxu1 }
 0x36d   : > { %v13838_v37 = vadd.f32 %v5329_v10, %v5217_v58  ;;  %v13841_v8 = vpop.eup %9439  ;;  %v13845_v9 = vmul.f32 %v13774_v27, %v13666_v33  ;;  %v5961_v47 = vmul.f32 %v5833_v29, %v13649_v12  ;;  %v6224_v49 = vadd.f32 %v6096_v57, %v13672_v60  ;;  %v5220_v24 = vpop.f32.mrf.mxu0 }
 0x36e   : > { %17332 = vst [vmem:[#allocation79_spill] sm:$0xff] %v13836_v40  ;;  %v5841_v28 = vmul.f32 %v13693_v20, %v13693_v20  ;;  %v6232_v58 = vadd.f32 %v6104_v45, %v13702_v3  ;;  %v5984_v15 = vmul.f32 %v5856_v6, %v13745_v53  ;;  %v13853_v38 = vadd.f32 %v5331_v46, %v5219_v48  ;;  %v5333_v10 = vpop.f32.mrf.mxu1 }
 0x36f   : > { %17333 = vst [vmem:[#allocation27_spill] sm:$0xff] %v13838_v37  ;;  %17334 = vst [vmem:[#allocation83_spill] sm:$0xff] %v13845_v9  ;;  %v5221_v16 = vadd.f32 %v5220_v24, %v13282_v5  ;;  %v9442_v62 = vpop.eup %9441  ;;  %v6560_v33 = vadd.f32 1.0, %v9434_v52  ;;  %v6201_v27 = vadd.f32 %v6073_v44, %v13589_v63  ;;  %9445 = vtanh.f32 %v6336_v30  ;;  %v5222_v57 = vpop.f32.mrf.mxu0 }
 0x370   : > { %17335 = vst [vmem:[#allocation85_spill] sm:$0xff] %v13853_v38  ;;  %v6344_v29 = vmul.f32 0.7978846, %v6216_v42  ;;  %9447 = vtanh.f32 %v6321_v41  ;;  %v6209_v37 = vadd.f32 %v6081_v22, %v13626_v39  ;;  %v5223_v45 = vadd.f32 %v5222_v57, %v13286_v11  ;;  %v5335_v6 = vpop.f32.mrf.mxu1 }
 0x371   : > { %v13858_v40 = vadd.f32 %v5333_v10, %v5221_v16  ;;  %v13862_v48 = vmul.f32 0.5, %v13626_v39  ;;  %v6089_v46 = vmul.f32 0.044715, %v5961_v47  ;;  %v6352_v24 = vmul.f32 0.7978846, %v6224_v49  ;;  %v5226_v38 = vpop.f32.mrf.mxu0 }
 0x372   : > { %v5969_v52 = vmul.f32 %v5841_v28, %v13693_v20  ;;  %v6360_v63 = vmul.f32 0.7978846, %v6232_v58  ;;  %v6112_v44 = vmul.f32 0.044715, %v5984_v15  ;;  %v13865_v30 = vadd.f32 %v5335_v6, %v5223_v45  ;;  %v5339_v42 = vpop.f32.mrf.mxu1 }
 0x373   : > { %17336 = vst [vmem:[#allocation141_spill] sm:$0xff] %v13858_v40  ;;  %v5227_v41 = vadd.f32 %v5226_v38, %v13282_v5  ;;  %v13869_v22 = vmul.f32 %v6560_v33, %v13683_v7  ;;  %v6329_v16 = vmul.f32 0.7978846, %v6201_v27  ;;  %9449 = vtanh.f32 %v6344_v29  ;;  %v5228_v47 = vpop.f32.mrf.mxu0 }
 0x374   : > { %17337 = vst [vmem:[#allocation28_spill] sm:$0xff] %v13865_v30  ;;  %v5849_v39 = vmul.f32 %v13726_v61, %v13726_v61  ;;  %v6568_v49 = vadd.f32 1.0, %v9438_v2  ;;  %v6337_v10 = vmul.f32 0.7978846, %v6209_v37  ;;  %v5229_v58 = vadd.f32 %v5228_v47, %v13286_v11  ;;  %v5341_v15 = vpop.f32.mrf.mxu1 }
 0x375   : > { %17338 = vst [vmem:[#allocation29_spill] sm:$0xff] %v13869_v22  ;;  %v13873_v28 = vadd.f32 %v5339_v42, %v5227_v41  ;;  %v6217_v57 = vadd.f32 %v6089_v46, %v13649_v12  ;;  %9451 = vtanh.f32 %v6352_v24  ;;  %v6097_v38 = vmul.f32 0.044715, %v5969_v52  ;;  %v5230_v33 = vpop.f32.mrf.mxu0 }
 0x376   : > { %v5857_v7 = vmul.f32 %v13761_v18, %v13761_v18  ;;  %9453 = vtanh.f32 %v6360_v63  ;;  %v6240_v27 = vadd.f32 %v6112_v44, %v13745_v53  ;;  %v13880_v29 = vadd.f32 %v5341_v15, %v5229_v58  ;;  %v5343_v37 = vpop.f32.mrf.mxu1 }
 0x377   : > { %17339 = vst [vmem:[#allocation86_spill] sm:$0xff] %v13873_v28  ;;  %v5231_v2 = vadd.f32 %v5230_v33, %v13282_v5  ;;  %v6576_v45 = vadd.f32 1.0, %v9442_v62  ;;  %9455 = vtanh.f32 %v6329_v16  ;;  %v13884_v6 = vmul.f32 0.5, %v13642_v26  ;;  %v5232_v24 = vpop.f32.mrf.mxu0  ;;  %v17430_v28 = vld [vmem:[#allocation110_spill] sm:$0xff] }
 0x378   : > { %17340 = vst [vmem:[#allocation154_spill] sm:$0xff] %v13880_v29  ;;  %v5977_v46 = vmul.f32 %v5849_v39, %v13726_v61  ;;  %v13888_v52 = vmul.f32 0.5, %v13649_v12  ;;  %v13891_v63 = vmul.f32 0.5, %v13672_v60  ;;  %v5233_v41 = vadd.f32 %v5232_v24, %v13286_v11  ;;  %v5345_v42 = vpop.f32.mrf.mxu1 }
 0x379   : > { %v13893_v44 = vadd.f32 %v5343_v37, %v5231_v2  ;;  %v9444_v47 = vpop.eup %9443  ;;  %v13897_v62 = vmul.f32 %v6568_v49, %v13717_v13  ;;  %v6345_v26 = vmul.f32 0.7978846, %v6217_v57  ;;  %v6225_v16 = vadd.f32 %v6097_v38, %v13693_v20  ;;  %v5236_v58 = vpop.f32.mrf.mxu0 }
 0x37a   : > { %v5985_v39 = vmul.f32 %v5857_v7, %v13761_v18  ;;  %9457 = vtanh.f32 %v6337_v10  ;;  %v6368_v12 = vmul.f32 0.7978846, %v6240_v27  ;;  %v13901_v15 = vadd.f32 %v5345_v42, %v5233_v41  ;;  %v5349_v33 = vpop.f32.mrf.mxu1 }
 0x37b   : > { %17341 = vst [vmem:[#allocation151_spill] sm:$0xff] %v13893_v44  ;;  %17342 = vst [vmem:[#allocation157_spill] sm:$0xff] %v13897_v62  ;;  %v5237_v60 = vadd.f32 %v5236_v58, %v13282_v5  ;;  %v13905_v2 = vmul.f32 %v6576_v45, %v13742_v55  ;;  %v13908_v37 = vmul.f32 0.5, %v13693_v20  ;;  %v13911_v13 = vmul.f32 0.5, %v13702_v3  ;;  %v5238_v57 = vpop.f32.mrf.mxu0  ;;  %v17389_v44 = vld [vmem:[#allocation61_spill] sm:$0xff] }
 0x37c   : > { %17343 = vst [vmem:[#allocation88_spill] sm:$0xff] %v13901_v15  ;;  %v6105_v49 = vmul.f32 0.044715, %v5977_v46  ;;  %v9446_v38 = vpop.eup %9445  ;;  %v6584_v7 = vadd.f32 1.0, %v9444_v47  ;;  %v13914_v10 = vmul.f32 0.5, %v13726_v61  ;;  %v5239_v24 = vadd.f32 %v5238_v57, %v13286_v11  ;;  %v5351_v41 = vpop.f32.mrf.mxu1  ;;  %v17386_v15 = vld [vmem:[#allocation72_spill] sm:$0xff] }
 0x37d   : > { %17344 = vst [vmem:[#allocation158_spill] sm:$0xff] %v13905_v2  ;;  %v13916_v27 = vadd.f32 %v5349_v33, %v5237_v60  ;;  %v13919_v55 = vpop.eup %9447  ;;  %9459 = vtanh.f32 %v6345_v26  ;;  %v6353_v20 = vmul.f32 0.7978846, %v6225_v16  ;;  %v6113_v45 = vmul.f32 0.044715, %v5985_v39  ;;  %v5240_v46 = vpop.f32.mrf.mxu0 }
 0x37e   : > { %17345 = vst [vmem:[#allocation164_spill] sm:$0xff] %v13914_v10  ;;  %v5187_v3 = vadd.f32 %v13675_v17, %v13282_v5  ;;  %9461 = vtanh.f32 %v6368_v12  ;;  %v5189_v42 = vadd.f32 %v13686_v1, %v13286_v11  ;;  %v13925_v47 = vadd.f32 %v5351_v41, %v5239_v24  ;;  %v5353_v60 = vpop.f32.mrf.mxu1 }
 0x37f   : > { %17346 = vst [vmem:[#allocation165_spill] sm:$0xff] %v13916_v27  ;;  %v5241_v58 = vadd.f32 %v5240_v46, %v13282_v5  ;;  %v6592_v33 = vadd.f32 1.0, %v9446_v38  ;;  %v6233_v57 = vadd.f32 %v6105_v49, %v13726_v61  ;;  %v13930_v26 = vmul.f32 0.5, %v13745_v53  ;;  %v5242_v16 = vpop.f32.mrf.mxu0 }
 0x380   : > { %17347 = vst [vmem:[#allocation159_spill] sm:$0xff] %v13925_v47  ;;  %v6504_v39 = vadd.f32 1.0, %v13635_v43  ;;  %v9450_v17 = vpop.eup %9449  ;;  %v13934_v12 = vmul.f32 %v6584_v7, %v13764_v31  ;;  %v5243_v1 = vadd.f32 %v5242_v16, %v13286_v11  ;;  %v5355_v24 = vpop.f32.mrf.mxu1  ;;  %v6513_v41 = vadd.f32 1.0, %v13688_v36  ;;  %v17385_v47 = vld [vmem:[#allocation59_spill] sm:$0xff] }
 0x381   : > { %v13936_v10 = vadd.f32 %v5353_v60, %v5241_v58  ;;  %9463 = vtanh.f32 %v6353_v20  ;;  %v6241_v61 = vadd.f32 %v6113_v45, %v13761_v18  ;;  %v13942_v53 = vadd.f32 %v13680_v51, %v5187_v3  ;;  %v5246_v49 = vpop.f32.mrf.mxu0 }
 0x382   : > { %17348 = vst [vmem:[#allocation146_spill] sm:$0xff] %v13934_v12  ;;  %v6505_v43 = vadd.f32 1.0, %v13654_v59  ;;  %v9452_v38 = vpop.eup %9451  ;;  %v13946_v31 = vmul.f32 0.5, %v13761_v18  ;;  %v13949_v7 = vadd.f32 %v13695_v35, %v5189_v42  ;;  %v13951_v46 = vadd.f32 %v5355_v24, %v5243_v1  ;;  %v5359_v20 = vpop.f32.mrf.mxu1  ;;  %v17356_v24 = vld [vmem:[#allocation21_spill] sm:$0xff] }
 0x383   : > { %17349 = vst [vmem:[#allocation147_spill] sm:$0xff] %v13936_v10  ;;  %v5247_v36 = vadd.f32 %v5246_v49, %v13282_v5  ;;  %v9454_v58 = vpop.eup %9453  ;;  %v13955_v45 = vmul.f32 %v6592_v33, %v13789_v25  ;;  %v6600_v51 = vadd.f32 1.0, %v9450_v17  ;;  %v6361_v3 = vmul.f32 0.7978846, %v6233_v57  ;;  %v5248_v60 = vpop.f32.mrf.mxu0  ;;  %v17384_v10 = vld [vmem:[#allocation112_spill] sm:$0xff] }
 0x384   : > { %17350 = vst [vmem:[#allocation30_spill] sm:$0xff] %v13946_v31  ;;  %17351 = vst [vmem:[#allocation31_spill] sm:$0xff] %v13951_v46  ;;  %v13958_v59 = vmul.f32 %v6504_v39, %v13490_v32  ;;  %v13960_v18 = vpop.eup %9455  ;;  %v5249_v35 = vadd.f32 %v5248_v60, %v13286_v11  ;;  %v5361_v42 = vpop.f32.mrf.mxu1  ;;  %v13966_v1 = vmul.f32 %v6513_v41, %v13560_v54  ;;  %v6608_v33 = vadd.f32 1.0, %v9452_v38  ;;  %v17358_v32 = vld [vmem:[#allocation124_spill] sm:$0xff] }
 0x385   : > { %17352 = vst [vmem:[#allocation32_spill] sm:$0xff] %v13955_v45  ;;  %v13962_v16 = vadd.f32 %v5359_v20, %v5247_v36  ;;  %v6928_v25 = vmul.f32 %v13663_v0, %v13663_v0  ;;  %v6369_v17 = vmul.f32 0.7978846, %v6241_v61  ;;  %v5250_v57 = vpop.f32.mrf.mxu0  ;;  %v13971_v49 = vmul.f32 %v6505_v43, %v17356_v24  ;;  %v17360_v54 = vld [vmem:[#allocation20_spill] sm:$0xff]  ;;  %v17362_v43 = vld [vmem:[#allocation55_spill] sm:$0xff] }
 0x386   : > { %17353 = vst [vmem:[#allocation33_spill] sm:$0xff] %v13958_v59  ;;  %17355 = vst [vmem:[#allocation39_spill] sm:$0xff] %v13966_v1  ;;  %v6521_v39 = vadd.f32 1.0, %v17358_v32  ;;  %v6616_v31 = vadd.f32 1.0, %v9454_v58  ;;  %v13974_v36 = vadd.f32 %v5361_v42, %v5249_v35  ;;  %v5251_v20 = vadd.f32 %v5250_v57, %v13282_v5  ;;  %v5363_v60 = vpop.f32.mrf.mxu1 }
 0x387   : > { %17354 = vst [vmem:[#allocation36_spill] sm:$0xff] %v13962_v16  ;;  %17357 = vst [vmem:[#allocation41_spill] sm:$0xff] %v13971_v49  ;;  %v6768_v41 = vadd.f32 %v17360_v54, %v13663_v0  ;;  %v13979_v16 = vpop.eup %9457  ;;  %v13982_v38 = vmul.f32 %v6600_v51, %v13884_v6  ;;  %9465 = vtanh.f32 %v6361_v3  ;;  %v5252_v61 = vpop.f32.mrf.mxu0  ;;  %v6759_v24 = vadd.f32 %v17362_v43, %v13958_v59  ;;  %v17364_v54 = vld [vmem:[#allocation60_spill] sm:$0xff]  ;;  %v17366_v43 = vld [vmem:[#allocation70_spill] sm:$0xff] }
 0x388   : > { %17359 = vst [vmem:[#allocation43_spill] sm:$0xff] %v13974_v36  ;;  %v6920_v58 = vmul.f32 %v13958_v59, %v13958_v59  ;;  %v13988_v35 = vadd.f32 %v5363_v60, %v5251_v20  ;;  %v5253_v42 = vadd.f32 %v5252_v61, %v13286_v11  ;;  %v5365_v57 = vpop.f32.mrf.mxu1  ;;  %v6929_v32 = vmul.f32 %v13966_v1, %v13966_v1  ;;  %v17373_v36 = vld [vmem:[#allocation145_spill] sm:$0xff] }
 0x389   : > { %17361 = vst [vmem:[#allocation21_spill] sm:$0xff] %v13982_v38  ;;  %v7056_v0 = vadd.f32 %v17364_v54, %v6928_v25  ;;  %v13995_v6 = vmul.f32 %v6608_v33, %v13891_v63  ;;  %9467 = vtanh.f32 %v6369_v17  ;;  %v5256_v51 = vpop.f32.mrf.mxu0  ;;  %v6921_v3 = vmul.f32 %v13971_v49, %v13971_v49 }
 0x38a   : > { %17363 = vst [vmem:[#allocation124_spill] sm:$0xff] %v13988_v35  ;;  %v14000_v59 = vmul.f32 %v6521_v39, %v17366_v43  ;;  %v14002_v20 = vpop.eup %9459  ;;  %v14005_v60 = vmul.f32 %v6616_v31, %v13911_v13  ;;  %v14007_v61 = vadd.f32 %v5365_v57, %v5253_v42  ;;  %v5257_v25 = vadd.f32 %v5256_v51, %v13282_v5  ;;  %v5369_v54 = vpop.f32.mrf.mxu1  ;;  %v17372_v39 = vld [vmem:[#allocation57_spill] sm:$0xff]  ;;  %v17374_v13 = vld [vmem:[#allocation76_spill] sm:$0xff] }
 0x38b   : > { %17365 = vst [vmem:[#allocation20_spill] sm:$0xff] %v13995_v6  ;;  %v14011_v63 = vadd.f32 %v6768_v41, %v13966_v1  ;;  %v9462_v33 = vpop.eup %9461  ;;  %v5258_v17 = vpop.f32.mrf.mxu0  ;;  %v14014_v35 = vadd.f32 %v6759_v24, %v13971_v49  ;;  %v7047_v43 = vadd.f32 %v17372_v39, %v6920_v58  ;;  %v6936_v46 = vmul.f32 %v17373_v36, %v17373_v36  ;;  %v17377_v41 = vld [vmem:[#allocation108_spill] sm:$0xff]  ;;  %v17378_v24 = vld [vmem:[#allocation142_spill] sm:$0xff] }
 0x38c   : > { %17367 = vst [vmem:[#allocation55_spill] sm:$0xff] %v14000_v59  ;;  %17368 = vst [vmem:[#allocation60_spill] sm:$0xff] %v14005_v60  ;;  %v6529_v31 = vadd.f32 1.0, %v17374_v13  ;;  %v14020_v42 = vadd.f32 %v5369_v54, %v5257_v25  ;;  %v5259_v57 = vadd.f32 %v5258_v17, %v13286_v11  ;;  %v5371_v51 = vpop.f32.mrf.mxu1  ;;  %v14023_v60 = vadd.f32 %v7056_v0, %v6929_v32  ;;  %v17379_v39 = vld [vmem:[#allocation46_spill] sm:$0xff]  ;;  %v17382_v54 = vld [vmem:[#allocation16_spill] sm:$0xff] }
 0x38d   : > { %17369 = vst [vmem:[#allocation70_spill] sm:$0xff] %v14007_v61  ;;  %17370 = vst [vmem:[#allocation169_spill] sm:$0xff] %v14011_v63  ;;  %v6982_v1 = vmul.f32 %v17377_v41, %v17377_v41  ;;  %v5260_v61 = vpop.f32.mrf.mxu0  ;;  %v6777_v49 = vadd.f32 %v17378_v24, %v17373_v36  ;;  %v6937_v58 = vmul.f32 %v14000_v59, %v14000_v59  ;;  %v17380_v63 = vld [vmem:[#allocation67_spill] sm:$0xff]  ;;  %v17381_v25 = vld [vmem:[#allocation66_spill] sm:$0xff]  ;;  %v6624_v0 = vadd.f32 1.0, %v9462_v33 }
 0x38e   : > { %17371 = vst [vmem:[#allocation170_spill] sm:$0xff] %v14014_v35  ;;  %17375 = vst [vmem:[#allocation57_spill] sm:$0xff] %v14020_v42  ;;  %v14033_v13 = vadd.f32 %v17380_v63, %v17379_v39  ;;  %v7108_v17 = vadd.f32 %v17382_v54, %v17381_v25  ;;  %v14037_v42 = vpop.eup %9463  ;;  %v14039_v32 = vadd.f32 %v5371_v51, %v5259_v57  ;;  %v6537_v24 = vadd.f32 1.0, %v17384_v10  ;;  %v17388_v63 = vld [vmem:[#allocation74_spill] sm:$0xff]  ;;  %v17390_v25 = vld [vmem:[#allocation47_spill] sm:$0xff] }
 0x38f   : > { %17376 = vst [vmem:[#allocation76_spill] sm:$0xff] %v14023_v60  ;;  %v5261_v41 = vadd.f32 %v5260_v61, %v13282_v5  ;;  %v5373_v60 = vpop.f32.mrf.mxu1  ;;  %v5262_v36 = vpop.f32.mrf.mxu0  ;;  %v7065_v27 = vadd.f32 %v17385_v47, %v6936_v46  ;;  %v14045_v35 = vmul.f32 %v6529_v31, %v17386_v15  ;;  %v6786_v29 = vadd.f32 %v17389_v44, %v17388_v63  ;;  %v17392_v10 = vld [vmem:[#allocation117_spill] sm:$0xff]  ;;  %v17395_v44 = vld [vmem:[#allocation134_spill] sm:$0xff]  ;;  %v17396_v31 = vld [vmem:[#allocation111_spill] sm:$0xff] }
 0x390   : > { %17383 = vst [vmem:[#allocation142_spill] sm:$0xff] %v14039_v32  ;;  %v6990_v54 = vmul.f32 %v17390_v25, %v17390_v25  ;;  %v5263_v57 = vadd.f32 %v5262_v36, %v13286_v11  ;;  %v6983_v5 = vmul.f32 %v17379_v39, %v17379_v39  ;;  %v7117_v61 = vadd.f32 %v17392_v10, %v6982_v1  ;;  %v17397_v32 = vld [vmem:[#allocation62_spill] sm:$0xff]  ;;  %v17399_v11 = vld [vmem:[#allocation80_spill] sm:$0xff]  ;;  %v17401_v39 = vld [vmem:[#allocation75_spill] sm:$0xff] }
 0x391   : > { %17387 = vst [vmem:[#allocation67_spill] sm:$0xff] %v14045_v35  ;;  %v14051_v33 = vadd.f32 %v5373_v60, %v5261_v41  ;;  %v5375_v51 = vpop.f32.mrf.mxu1  ;;  %v14057_v47 = vadd.f32 %v7047_v43, %v6921_v3  ;;  %v14060_v15 = vadd.f32 %v6777_v49, %v14000_v59  ;;  %v6838_v46 = vadd.f32 %v17395_v44, %v17390_v25  ;;  %v17403_v10 = vld [vmem:[#allocation69_spill] sm:$0xff]  ;;  %v17404_v43 = vld [vmem:[#allocation48_spill] sm:$0xff] }
 0x392   : > { %v6847_v60 = vadd.f32 %v17397_v32, %v17396_v31  ;;  %v14066_v41 = vadd.f32 %v5375_v51, %v5263_v57  ;;  %v14069_v36 = vmul.f32 %v6537_v24, %v17399_v11  ;;  %v14074_v3 = vadd.f32 %v7108_v17, %v17403_v10  ;;  %v17405_v25 = vld [vmem:[#allocation64_spill] sm:$0xff] }
 0x393   : > { %17391 = vst [vmem:[#allocation66_spill] sm:$0xff] %v14051_v33  ;;  %17393 = vst [vmem:[#allocation16_spill] sm:$0xff] %v14057_v47  ;;  %v17402_v33 = vld [vmem:[#allocation22_spill] sm:$0xff]  ;;  %v6944_v49 = vmul.f32 %v17388_v63, %v17388_v63  ;;  %v6991_v44 = vmul.f32 %v17404_v43, %v17404_v43  ;;  %v7126_v59 = vadd.f32 %v17405_v25, %v6990_v54  ;;  %v17410_v54 = vld [vmem:[#allocation49_spill] sm:$0xff] }
 0x394   : > { %17394 = vst [vmem:[#allocation112_spill] sm:$0xff] %v14060_v15  ;;  %17398 = vst [vmem:[#allocation59_spill] sm:$0xff] %v14066_v41  ;;  %v6795_v1 = vadd.f32 %v17402_v33, %v17401_v39  ;;  %v6998_v32 = vmul.f32 %v17396_v31, %v17396_v31  ;;  %v14083_v57 = vpop.eup %9465  ;;  %v14086_v24 = vmul.f32 %v6624_v0, %v13930_v26  ;;  %v17411_v31 = vld [vmem:[#allocation149_spill] sm:$0xff]  ;;  %v17425_v15 = vld [vmem:[#allocation71_spill] sm:$0xff] }
 0x395   : > { %17400 = vst [vmem:[#allocation72_spill] sm:$0xff] %v14069_v36  ;;  %17406 = vst [vmem:[#allocation61_spill] sm:$0xff] %v14083_v57  ;;  %v14088_v33 = vadd.f32 %v7065_v27, %v6937_v58  ;;  %v14091_v17 = vadd.f32 %v6786_v29, %v14045_v35  ;;  %v14093_v51 = vadd.f32 %v7117_v61, %v6983_v5  ;;  %v17414_v58 = vld [vmem:[#allocation102_spill] sm:$0xff]  ;;  %v17418_v57 = vld [vmem:[#allocation63_spill] sm:$0xff] }
 0x396   : > { %17407 = vst [vmem:[#allocation117_spill] sm:$0xff] %v14086_v24  ;;  %v6952_v11 = vmul.f32 %v17401_v39, %v17401_v39  ;;  %v14098_v25 = vadd.f32 %v6838_v46, %v17404_v43  ;;  %v14101_v10 = vadd.f32 %v6847_v60, %v17410_v54  ;;  %v7006_v26 = vmul.f32 %v17411_v31, %v17411_v31  ;;  %v14105_v0 = vpop.eup %9467  ;;  %v17415_v61 = vld [vmem:[#allocation150_spill] sm:$0xff]  ;;  %v17416_v43 = vld [vmem:[#allocation116_spill] sm:$0xff]  ;;  %v17417_v24 = vld [vmem:[#allocation17_spill] sm:$0xff] }
 0x397   : > { %17408 = vst [vmem:[#allocation134_spill] sm:$0xff] %v14088_v33  ;;  %17409 = vst [vmem:[#allocation62_spill] sm:$0xff] %v14091_v17  ;;  %v14108_v27 = vadd.f32 %v6795_v1, %v14069_v36  ;;  %v6945_v29 = vmul.f32 %v14045_v35, %v14045_v35  ;;  %v6545_v5 = vadd.f32 1.0, %v17414_v58  ;;  %v7014_v46 = vmul.f32 %v17415_v61, %v17415_v61  ;;  %v17419_v58 = vld [vmem:[#allocation118_spill] sm:$0xff]  ;;  %v17427_v47 = vld [vmem:[#allocation153_spill] sm:$0xff] }
 0x398   : > { %17412 = vst [vmem:[#allocation80_spill] sm:$0xff] %v14105_v0  ;;  %v7074_v39 = vadd.f32 %v17416_v43, %v6944_v49  ;;  %v14116_v60 = vadd.f32 %v7126_v59, %v6991_v44  ;;  %v6999_v63 = vmul.f32 %v17410_v54, %v17410_v54  ;;  %v7135_v0 = vadd.f32 %v17417_v24, %v6998_v32  ;;  %v17421_v49 = vld [vmem:[#allocation94_spill] sm:$0xff]  ;;  %v17422_v43 = vld [vmem:[#allocation137_spill] sm:$0xff]  ;;  %v17423_v44 = vld [vmem:[#allocation168_spill] sm:$0xff] }
 0x399   : > { %17413 = vst [vmem:[#allocation22_spill] sm:$0xff] %v14108_v27  ;;  %v6953_v1 = vmul.f32 %v14069_v36, %v14069_v36  ;;  %v6856_v35 = vadd.f32 %v17418_v57, %v17411_v31  ;;  %v6865_v41 = vadd.f32 %v17419_v58, %v17415_v61  ;;  %v17420_v27 = vld [vmem:[#allocation135_spill] sm:$0xff]  ;;  %v7083_v59 = vadd.f32 %v17421_v49, %v6952_v11  ;;  %v17428_v31 = vld [vmem:[#allocation133_spill] sm:$0xff] }
 0x39a   : > { %v7007_v17 = vmul.f32 %v17420_v27, %v17420_v27  ;;  %v6804_v33 = vadd.f32 %v17423_v44, %v17422_v43  ;;  %v6553_v54 = vadd.f32 1.0, %v13812_v56  ;;  %v17424_v32 = vld [vmem:[#allocation19_spill] sm:$0xff]  ;;  %v14135_v36 = vmul.f32 %v6545_v5, %v17425_v15  ;;  %v17429_v61 = vld [vmem:[#allocation109_spill] sm:$0xff]  ;;  %v17431_v56 = vld [vmem:[#allocation52_spill] sm:$0xff] }
 0x39b   : > { %v7144_v24 = vadd.f32 %v17424_v32, %v7006_v26  ;;  %v7015_v57 = vmul.f32 %v17427_v47, %v17427_v47  ;;  %v7153_v58 = vadd.f32 %v17428_v31, %v7014_v46  ;;  %v6882_v30 = vadd.f32 %v17430_v28, %v17429_v61  ;;  %v17432_v44 = vld [vmem:[#allocation18_spill] sm:$0xff]  ;;  %v17433_v31 = vld [vmem:[#allocation53_spill] sm:$0xff] }
 0x39c   : > { %17426 = vst [vmem:[#allocation69_spill] sm:$0xff] %v14135_v36  ;;  %v14142_v40 = vadd.f32 %v7074_v39, %v6945_v29  ;;  %v6561_v11 = vadd.f32 1.0, %v13833_v50  ;;  %v14145_v49 = vadd.f32 %v7135_v0, %v6999_v63  ;;  %v6874_v26 = vadd.f32 %v17432_v44, %v17431_v56  ;;  %v17434_v28 = vld [vmem:[#allocation105_spill] sm:$0xff]  ;;  %v17436_v50 = vld [vmem:[#allocation96_spill] sm:$0xff] }
 0x39d   : > { %v6569_v15 = vadd.f32 1.0, %v13841_v8  ;;  %v14151_v5 = vadd.f32 %v6856_v35, %v17420_v27  ;;  %v14154_v32 = vadd.f32 %v6865_v41, %v17427_v47  ;;  %v6883_v46 = vadd.f32 %v6882_v30, %v17433_v31  ;;  %v17437_v29 = vld [vmem:[#allocation89_spill] sm:$0xff] }
 0x39e   : > { %v14158_v39 = vmul.f32 %v6553_v54, %v17434_v28  ;;  %v6813_v63 = vadd.f32 %v17436_v50, %v13845_v9  ;;  %v14162_v0 = vadd.f32 %v7144_v24, %v7007_v17  ;;  %v7021_v44 = vmul.f32 %v17437_v29, %v17437_v29  ;;  %v17438_v54 = vld [vmem:[#allocation120_spill] sm:$0xff]  ;;  %v17440_v17 = vld [vmem:[#allocation51_spill] sm:$0xff]  ;;  %v17447_v47 = vld [vmem:[#allocation65_spill] sm:$0xff] }
 0x39f   : > { %v14166_v8 = vadd.f32 %v7083_v59, %v6953_v1  ;;  %v14169_v35 = vadd.f32 %v6804_v33, %v14135_v36  ;;  %v6960_v41 = vmul.f32 %v17422_v43, %v17422_v43  ;;  %v14173_v30 = vadd.f32 %v7153_v58, %v7015_v57  ;;  %v17441_v59 = vld [vmem:[#allocation130_spill] sm:$0xff] }
 0x3a0   : > { %17435 = vst [vmem:[#allocation64_spill] sm:$0xff] %v14158_v39  ;;  %v6968_v28 = vmul.f32 %v13845_v9, %v13845_v9  ;;  %v14178_v50 = vmul.f32 %v6561_v11, %v17438_v54  ;;  %v14181_v24 = vadd.f32 %v6874_v26, %v17440_v17  ;;  %v7022_v1 = vmul.f32 %v17431_v56, %v17431_v56  ;;  %v17443_v58 = vld [vmem:[#allocation54_spill] sm:$0xff] }
 0x3a1   : > { %v14186_v33 = vmul.f32 %v6569_v15, %v17441_v59  ;;  %v6976_v61 = vmul.f32 %v13869_v22, %v13869_v22  ;;  %v6984_v57 = vmul.f32 %v13897_v62, %v13897_v62  ;;  %v14193_v29 = vadd.f32 %v6883_v46, %v17443_v58  ;;  %v17446_v54 = vld [vmem:[#allocation166_spill] sm:$0xff] }
 0x3a2   : > { %17439 = vst [vmem:[#allocation102_spill] sm:$0xff] %v14178_v50  ;;  %v14196_v11 = vadd.f32 %v6813_v63, %v14158_v39  ;;  %v7023_v26 = vmul.f32 %v17440_v17, %v17440_v17  ;;  %v7161_v56 = vadd.f32 %v7021_v44, %v17446_v54  ;;  %v7030_v15 = vmul.f32 %v17433_v31, %v17433_v31  ;;  %v17448_v63 = vld [vmem:[#allocation23_spill] sm:$0xff] }
 0x3a3   : > { %17442 = vst [vmem:[#allocation116_spill] sm:$0xff] %v14186_v33  ;;  %17444 = vst [vmem:[#allocation17_spill] sm:$0xff] %v14193_v29  ;;  %v6961_v59 = vmul.f32 %v14135_v36, %v14135_v36  ;;  %v7092_v27 = vadd.f32 %v17447_v47, %v6960_v41  ;;  %v6969_v46 = vmul.f32 %v14158_v39, %v14158_v39  ;;  %v6577_v9 = vadd.f32 1.0, %v13919_v55  ;;  %v17449_v29 = vld [vmem:[#allocation68_spill] sm:$0xff] }
 0x3a4   : > { %17445 = vst [vmem:[#allocation63_spill] sm:$0xff] %v14196_v11  ;;  %v7101_v43 = vadd.f32 %v17448_v63, %v6968_v28  ;;  %v6822_v17 = vadd.f32 %v17449_v29, %v13869_v22  ;;  %v6831_v44 = vadd.f32 %v14033_v13, %v13897_v62  ;;  %v6977_v54 = vmul.f32 %v14178_v50, %v14178_v50  ;;  %v17450_v29 = vld [vmem:[#allocation90_spill] sm:$0xff]  ;;  %v17451_v63 = vld [vmem:[#allocation92_spill] sm:$0xff]  ;;  %v17452_v13 = vld [vmem:[#allocation113_spill] sm:$0xff] }
 0x3a5   : > { %v7110_v31 = vadd.f32 %v14074_v3, %v6976_v61  ;;  %v6985_v47 = vmul.f32 %v14186_v33, %v14186_v33  ;;  %v7119_v41 = vadd.f32 %v14093_v51, %v6984_v57  ;;  %v6585_v55 = vadd.f32 1.0, %v13960_v18  ;;  %v17453_v62 = vld [vmem:[#allocation114_spill] sm:$0xff]  ;;  %v17454_v3 = vld [vmem:[#allocation77_spill] sm:$0xff] }
 0x3a6   : > { %v7162_v39 = vadd.f32 %v7161_v56, %v7022_v1  ;;  %v7031_v28 = vmul.f32 %v17443_v58, %v17443_v58  ;;  %v7170_v22 = vadd.f32 %v17451_v63, %v17450_v29  ;;  %v6891_v36 = vadd.f32 %v17453_v62, %v17452_v13  ;;  %v17456_v29 = vld [vmem:[#allocation25_spill] sm:$0xff] }
 0x3a7   : > { %v14227_v11 = vadd.f32 %v7092_v27, %v6961_v59  ;;  %v14230_v61 = vmul.f32 %v6577_v9, %v17454_v3  ;;  %v6840_v51 = vadd.f32 %v14098_v25, %v13905_v2  ;;  %v7037_v18 = vmul.f32 %v17453_v62, %v17453_v62 }
 0x3a8   : > { %v14236_v56 = vadd.f32 %v7101_v43, %v6969_v46  ;;  %v14239_v1 = vadd.f32 %v6822_v17, %v14178_v50  ;;  %v14242_v57 = vadd.f32 %v6831_v44, %v14186_v33  ;;  %v6992_v27 = vmul.f32 %v13905_v2, %v13905_v2  ;;  %v5412_v46 = vpop.f32.mrf.mxu0 }
 0x3a9   : > { %17455 = vst [vmem:[#allocation118_spill] sm:$0xff] %v14230_v61  ;;  %v14246_v59 = vadd.f32 %v7110_v31, %v6977_v54  ;;  %v14248_v9 = vadd.f32 %v7119_v41, %v6985_v47  ;;  %v14251_v25 = vmul.f32 %v6585_v55, %v17456_v29  ;;  %v6849_v43 = vadd.f32 %v14101_v10, %v13934_v12  ;;  %v17459_v47 = vld [vmem:[#allocation56_spill] sm:$0xff]  ;;  %v5525_v10 = vpop.f32.mrf.mxu1 }
 0x3aa   : > { %v7000_v17 = vmul.f32 %v13934_v12, %v13934_v12  ;;  %v6593_v44 = vadd.f32 1.0, %v13979_v16  ;;  %v14258_v63 = vadd.f32 %v7162_v39, %v7023_v26  ;;  %v7171_v3 = vadd.f32 %v7170_v22, %v7030_v15  ;;  %v5414_v29 = vpop.f32.mrf.mxu0  ;;  %v17461_v39 = vld [vmem:[#allocation58_spill] sm:$0xff] }
 0x3ab   : > { %17457 = vst [vmem:[#allocation94_spill] sm:$0xff] %v14251_v25  ;;  %v5413_v31 = vadd.f32 %v5412_v46, %v13942_v53  ;;  %v14262_v54 = vadd.f32 %v6840_v51, %v14230_v61  ;;  %v6892_v41 = vadd.f32 %v6891_v36, %v17459_v47  ;;  %v14267_v55 = vmul.f32 %v17459_v47, %v17459_v47  ;;  %v5527_v46 = vpop.f32.mrf.mxu1 }
 0x3ac   : > { %17458 = vst [vmem:[#allocation168_spill] sm:$0xff] %v14258_v63  ;;  %v6993_v62 = vmul.f32 %v14230_v61, %v14230_v61  ;;  %v7128_v16 = vadd.f32 %v14116_v60, %v6992_v27  ;;  %v6601_v22 = vadd.f32 1.0, %v14002_v20  ;;  %v14275_v53 = vmul.f32 %v17461_v39, %v17461_v39  ;;  %v5416_v47 = vpop.f32.mrf.mxu0 }
 0x3ad   : > { %17460 = vst [vmem:[#allocation19_spill] sm:$0xff] %v14267_v55  ;;  %v14277_v26 = vadd.f32 %v5525_v10, %v5413_v31  ;;  %v5415_v36 = vadd.f32 %v5414_v29, %v13949_v7  ;;  %v14281_v15 = vadd.f32 %v6849_v43, %v14251_v25  ;;  %v7001_v51 = vmul.f32 %v14251_v25, %v14251_v25  ;;  %v5529_v13 = vpop.f32.mrf.mxu1  ;;  %v17480_v25 = vld [vmem:[#allocation79_spill] sm:$0xff] }
 0x3ae   : > { %17462 = vst [vmem:[#allocation71_spill] sm:$0xff] %v14275_v53  ;;  %v7137_v60 = vadd.f32 %v14145_v49, %v7000_v17  ;;  %v14287_v20 = vmul.f32 %v6593_v44, %v13862_v48  ;;  %v7008_v27 = vmul.f32 %v13955_v45, %v13955_v45  ;;  %v14291_v31 = vadd.f32 %v7171_v3, %v7031_v28  ;;  %v5418_v49 = vpop.f32.mrf.mxu0 }
 0x3af   : > { %v5738_v7 = vmul.f32 %v14277_v26, %v14277_v26  ;;  %v14295_v43 = vadd.f32 %v5527_v46, %v5415_v36  ;;  %v5417_v10 = vadd.f32 %v5416_v47, %v13796_v21  ;;  %v6858_v29 = vadd.f32 %v14151_v5, %v13955_v45  ;;  %v5531_v36 = vpop.f32.mrf.mxu1 }
 0x3b0   : > { %17463 = vst [vmem:[#allocation133_spill] sm:$0xff] %v14287_v20  ;;  %17464 = vst [vmem:[#allocation18_spill] sm:$0xff] %v14291_v31  ;;  %v14300_v17 = vadd.f32 %v7128_v16, %v6993_v62  ;;  %v14303_v48 = vmul.f32 %v6601_v22, %v13888_v52  ;;  %v6867_v28 = vadd.f32 %v14154_v32, %v13982_v38  ;;  %v5422_v62 = vpop.f32.mrf.mxu0  ;;  %v17468_v22 = vld [vmem:[#allocation93_spill] sm:$0xff] }
 0x3b1   : > { %v14308_v44 = vadd.f32 %v6892_v41, %v17461_v39  ;;  %v5866_v3 = vmul.f32 %v5738_v7, %v14277_v26  ;;  %v5739_v21 = vmul.f32 %v14295_v43, %v14295_v43  ;;  %v5530_v47 = vadd.f32 %v5529_v13, %v5417_v10 }
 0x3b2   : > { %17465 = vst [vmem:[#allocation105_spill] sm:$0xff] %v14303_v48  ;;  %v5419_v5 = vadd.f32 %v5418_v49, %v13799_v14  ;;  %v14314_v16 = vadd.f32 %v7137_v60, %v7001_v51  ;;  %v7009_v52 = vmul.f32 %v14287_v20, %v14287_v20  ;;  %v7146_v32 = vadd.f32 %v14162_v0, %v7008_v27  ;;  %v5535_v60 = vpop.f32.mrf.mxu1  ;;  %v5424_v10 = vpop.f32.mrf.mxu0 }
 0x3b3   : > { %17466 = vst [vmem:[#allocation96_spill] sm:$0xff] %v14308_v44  ;;  %v14320_v41 = vadd.f32 %v7037_v18, %v17468_v22  ;;  %v5994_v46 = vmul.f32 0.044715, %v5866_v3  ;;  %v5867_v7 = vmul.f32 %v5739_v21, %v14295_v43  ;;  %v5746_v39 = vmul.f32 %v5530_v47, %v5530_v47  ;;  %v17472_v3 = vld [vmem:[#allocation78_spill] sm:$0xff] }
 0x3b4   : > { %17467 = vst [vmem:[#allocation120_spill] sm:$0xff] %v14314_v16  ;;  %v14324_v13 = vadd.f32 %v6858_v29, %v14287_v20  ;;  %v14326_v14 = vadd.f32 %v5531_v36, %v5419_v5  ;;  %v5423_v51 = vadd.f32 %v5422_v62, %v13804_v4  ;;  %v14330_v49 = vadd.f32 %v6867_v28, %v14303_v48  ;;  %v5537_v4 = vpop.f32.mrf.mxu1  ;;  %v5426_v36 = vpop.f32.mrf.mxu0 }
 0x3b5   : > { %17469 = vst [vmem:[#allocation130_spill] sm:$0xff] %v14320_v41  ;;  %v7016_v0 = vmul.f32 %v13982_v38, %v13982_v38  ;;  %v5995_v18 = vmul.f32 0.044715, %v5867_v7  ;;  %v5874_v27 = vmul.f32 %v5746_v39, %v5530_v47  ;;  %v5425_v21 = vadd.f32 %v5424_v10, %v17472_v3 }
 0x3b6   : > { %17470 = vst [vmem:[#allocation166_spill] sm:$0xff] %v14324_v13  ;;  %17471 = vst [vmem:[#allocation65_spill] sm:$0xff] %v14330_v49  ;;  %v6609_v22 = vadd.f32 1.0, %v14037_v42  ;;  %v5747_v29 = vmul.f32 %v14326_v14, %v14326_v14  ;;  %v14338_v5 = vadd.f32 %v5535_v60, %v5423_v51  ;;  %v14340_v62 = vadd.f32 %v7146_v32, %v7009_v52  ;;  %v17476_v32 = vld [vmem:[#allocation26_spill] sm:$0xff]  ;;  %v5539_v3 = vpop.f32.mrf.mxu1 }
 0x3b7   : > { %v14344_v28 = vmul.f32 %v14303_v48, %v14303_v48  ;;  %v6122_v7 = vadd.f32 %v5994_v46, %v14277_v26  ;;  %v6002_v39 = vmul.f32 0.044715, %v5874_v27  ;;  %v14347_v58 = vadd.f32 %v5537_v4, %v5425_v21  ;;  %v5428_v48 = vpop.f32.mrf.mxu0 }
 0x3b8   : > { %17473 = vst [vmem:[#allocation23_spill] sm:$0xff] %v14340_v62  ;;  %v14351_v42 = vadd.f32 %v14181_v24, %v13995_v6  ;;  %v6123_v51 = vadd.f32 %v5995_v18, %v14295_v43  ;;  %v5875_v60 = vmul.f32 %v5747_v29, %v14326_v14  ;;  %v5754_v52 = vmul.f32 %v14338_v5, %v14338_v5 }
 0x3b9   : > { %17474 = vst [vmem:[#allocation68_spill] sm:$0xff] %v14344_v28  ;;  %v5427_v10 = vadd.f32 %v5426_v36, %v17476_v32  ;;  %v6130_v38 = vadd.f32 %v6002_v39, %v5530_v47  ;;  %v5755_v46 = vmul.f32 %v14347_v58, %v14347_v58  ;;  %v14361_v27 = vadd.f32 %v14173_v30, %v7016_v0  ;;  %v5541_v36 = vpop.f32.mrf.mxu1  ;;  %v5432_v32 = vpop.f32.mrf.mxu0  ;;  %v17496_v28 = vld [vmem:[#allocation147_spill] sm:$0xff] }
 0x3ba   : > { %17475 = vst [vmem:[#allocation90_spill] sm:$0xff] %v14351_v42  ;;  %v14364_v24 = vmul.f32 %v6609_v22, %v13908_v37  ;;  %v6003_v18 = vmul.f32 0.044715, %v5875_v60  ;;  %v5882_v21 = vmul.f32 %v5754_v52, %v14338_v5  ;;  %v5429_v4 = vadd.f32 %v5428_v48, %v13821_v19 }
 0x3bb   : > { %17477 = vst [vmem:[#allocation92_spill] sm:$0xff] %v14361_v27  ;;  %v14367_v29 = vadd.f32 %v5539_v3, %v5427_v10  ;;  %v6250_v20 = vmul.f32 0.7978846, %v6122_v7  ;;  %v5883_v39 = vmul.f32 %v5755_v46, %v14347_v58  ;;  %v5433_v45 = vadd.f32 %v5432_v32, %v13823_v34  ;;  %v5545_v52 = vpop.f32.mrf.mxu1  ;;  %v5434_v10 = vpop.f32.mrf.mxu0 }
 0x3bc   : > { %17478 = vst [vmem:[#allocation77_spill] sm:$0xff] %v14364_v24  ;;  %v14373_v30 = vmul.f32 0.5, %v14277_v26  ;;  %v6251_v0 = vmul.f32 0.7978846, %v6123_v51  ;;  %v6131_v37 = vadd.f32 %v6003_v18, %v14326_v14  ;;  %v6010_v22 = vmul.f32 0.044715, %v5882_v21 }
 0x3bd   : > { %v5762_v60 = vmul.f32 %v14367_v29, %v14367_v29  ;;  %v6011_v19 = vmul.f32 0.044715, %v5883_v39  ;;  %v14378_v48 = vadd.f32 %v5541_v36, %v5429_v4  ;;  %v14380_v7 = vadd.f32 %v5545_v52, %v5433_v45  ;;  %v5547_v18 = vpop.f32.mrf.mxu1  ;;  %v5436_v21 = vpop.f32.mrf.mxu0 }
 0x3be   : > { %v14383_v3 = vmul.f32 0.5, %v14295_v43  ;;  %v14385_v34 = vmul.f32 0.5, %v5530_v47  ;;  %v6258_v26 = vmul.f32 0.7978846, %v6130_v38  ;;  %v5435_v46 = vadd.f32 %v5434_v10, %v13825_v23 }
 0x3bf   : > { %v5890_v51 = vmul.f32 %v5762_v60, %v14367_v29  ;;  %9469 = vtanh.f32 %v6250_v20  ;;  %v6138_v32 = vadd.f32 %v6010_v22, %v14338_v5  ;;  %v5763_v4 = vmul.f32 %v14378_v48, %v14378_v48  ;;  %v5549_v38 = vpop.f32.mrf.mxu1  ;;  %v5438_v39 = vpop.f32.mrf.mxu0  ;;  %v17479_v22 = vld [vmem:[#allocation101_spill] sm:$0xff] }
 0x3c0   : > { %v5770_v45 = vmul.f32 %v14380_v7, %v14380_v7  ;;  %9471 = vtanh.f32 %v6251_v0  ;;  %v6259_v43 = vmul.f32 0.7978846, %v6131_v37  ;;  %v14394_v36 = vadd.f32 %v5547_v18, %v5435_v46 }
 0x3c1   : > { %v6018_v47 = vmul.f32 0.044715, %v5890_v51  ;;  %v6139_v23 = vadd.f32 %v6011_v19, %v14347_v58  ;;  %v5891_v60 = vmul.f32 %v5763_v4, %v14378_v48  ;;  %v5437_v52 = vadd.f32 %v5436_v21, %v17479_v22  ;;  %v5551_v37 = vpop.f32.mrf.mxu1  ;;  %v5442_v51 = vpop.f32.mrf.mxu0 }
 0x3c2   : > { %v5898_v20 = vmul.f32 %v5770_v45, %v14380_v7  ;;  %9473 = vtanh.f32 %v6258_v26  ;;  %v5771_v10 = vmul.f32 %v14394_v36, %v14394_v36  ;;  %v5439_v0 = vadd.f32 %v5438_v39, %v17480_v25  ;;  %v17481_v45 = vld [vmem:[#allocation27_spill] sm:$0xff] }
 0x3c3   : > { %v14404_v46 = vmul.f32 0.5, %v14326_v14  ;;  %v6266_v18 = vmul.f32 0.7978846, %v6138_v32  ;;  %v6019_v12 = vmul.f32 0.044715, %v5891_v60  ;;  %v14406_v61 = vadd.f32 %v5549_v38, %v5437_v52  ;;  %v5555_v2 = vpop.f32.mrf.mxu1  ;;  %v5444_v25 = vpop.f32.mrf.mxu0 }
 0x3c4   : > { %v6026_v19 = vmul.f32 0.044715, %v5898_v20  ;;  %v6146_v4 = vadd.f32 %v6018_v47, %v14367_v29  ;;  %v5899_v21 = vmul.f32 %v5771_v10, %v14394_v36  ;;  %v14410_v26 = vadd.f32 %v5551_v37, %v5439_v0 }
 0x3c5   : > { %v5443_v22 = vadd.f32 %v5442_v51, %v17481_v45  ;;  %9475 = vtanh.f32 %v6259_v43  ;;  %v6267_v39 = vmul.f32 0.7978846, %v6139_v23  ;;  %v6147_v14 = vadd.f32 %v6019_v12, %v14378_v48  ;;  %v5557_v52 = vpop.f32.mrf.mxu1  ;;  %v5446_v10 = vpop.f32.mrf.mxu0  ;;  %v17482_v12 = vld [vmem:[#allocation85_spill] sm:$0xff] }
 0x3c6   : > { %v5778_v32 = vmul.f32 %v14406_v61, %v14406_v61  ;;  %v6154_v38 = vadd.f32 %v6026_v19, %v14380_v7  ;;  %v6027_v60 = vmul.f32 0.044715, %v5899_v21  ;;  %v5779_v47 = vmul.f32 %v14410_v26, %v14410_v26 }
 0x3c7   : > { %v14419_v20 = vadd.f32 %v5555_v2, %v5443_v22  ;;  %v14422_v0 = vmul.f32 0.5, %v14338_v5  ;;  %9477 = vtanh.f32 %v6266_v18  ;;  %v5445_v23 = vadd.f32 %v5444_v25, %v17482_v12  ;;  %v5559_v2 = vpop.f32.mrf.mxu1  ;;  %v5448_v45 = vpop.f32.mrf.mxu0  ;;  %v17483_v5 = vld [vmem:[#allocation141_spill] sm:$0xff] }
 0x3c8   : > { %v5906_v43 = vmul.f32 %v5778_v32, %v14406_v61  ;;  %v6274_v37 = vmul.f32 0.7978846, %v6146_v4  ;;  %v6155_v51 = vadd.f32 %v6027_v60, %v14394_v36  ;;  %v5907_v19 = vmul.f32 %v5779_v47, %v14410_v26 }
 0x3c9   : > { %v5786_v21 = vmul.f32 %v14419_v20, %v14419_v20  ;;  %v6275_v22 = vmul.f32 0.7978846, %v6147_v14  ;;  %v14430_v50 = vadd.f32 %v5557_v52, %v5445_v23  ;;  %v5447_v18 = vadd.f32 %v5446_v10, %v17483_v5  ;;  %v5561_v60 = vpop.f32.mrf.mxu1  ;;  %v5452_v47 = vpop.f32.mrf.mxu0  ;;  %v17484_v14 = vld [vmem:[#allocation28_spill] sm:$0xff] }
 0x3ca   : > { %v6034_v33 = vmul.f32 0.044715, %v5906_v43  ;;  %9479 = vtanh.f32 %v6267_v39  ;;  %v14434_v32 = vmul.f32 0.5, %v14367_v29  ;;  %v6282_v4 = vmul.f32 0.7978846, %v6154_v38  ;;  %v17485_v29 = vld [vmem:[#allocation86_spill] sm:$0xff] }
 0x3cb   : > { %v5914_v25 = vmul.f32 %v5786_v21, %v14419_v20  ;;  %v6035_v12 = vmul.f32 0.044715, %v5907_v19  ;;  %v5787_v53 = vmul.f32 %v14430_v50, %v14430_v50  ;;  %v14439_v44 = vadd.f32 %v5559_v2, %v5447_v18  ;;  %v5565_v38 = vpop.f32.mrf.mxu1  ;;  %v5454_v5 = vpop.f32.mrf.mxu0 }
 0x3cc   : > { %v5449_v52 = vadd.f32 %v5448_v45, %v17484_v14  ;;  %v9470_v43 = vpop.eup %9469  ;;  %9481 = vtanh.f32 %v6274_v37  ;;  %v6283_v10 = vmul.f32 0.7978846, %v6155_v51  ;;  %v6162_v39 = vadd.f32 %v6034_v33, %v14406_v61  ;;  %v17486_v14 = vld [vmem:[#allocation154_spill] sm:$0xff] }
 0x3cd   : > { %v5453_v23 = vadd.f32 %v5452_v47, %v17485_v29  ;;  %v9472_v21 = vpop.eup %9471  ;;  %9483 = vtanh.f32 %v6275_v22  ;;  %v6042_v31 = vmul.f32 0.044715, %v5914_v25  ;;  %v5915_v19 = vmul.f32 %v5787_v53, %v14430_v50  ;;  %v5567_v33 = vpop.f32.mrf.mxu1 }
 0x3ce   : > { %v5794_v2 = vmul.f32 %v14439_v44, %v14439_v44  ;;  %v14448_v18 = vmul.f32 0.5, %v14380_v7  ;;  %9485 = vtanh.f32 %v6282_v4  ;;  %v14450_v37 = vadd.f32 %v5561_v60, %v5449_v52  ;;  %v5456_v45 = vpop.f32.mrf.mxu0 }
 0x3cf   : > { %v14452_v51 = vadd.f32 %v5565_v38, %v5453_v23  ;;  %v14454_v47 = vpop.eup %9473  ;;  %v6163_v22 = vadd.f32 %v6035_v12, %v14410_v26  ;;  %v6043_v25 = vmul.f32 0.044715, %v5915_v19  ;;  %v5455_v29 = vadd.f32 %v5454_v5, %v17486_v14  ;;  %v5569_v52 = vpop.f32.mrf.mxu1 }
 0x3d0   : > { %v5922_v53 = vmul.f32 %v5794_v2, %v14439_v44  ;;  %9487 = vtanh.f32 %v6283_v10  ;;  %v14460_v7 = vmul.f32 0.5, %v14406_v61  ;;  %v6290_v4 = vmul.f32 0.7978846, %v6162_v39  ;;  %v5458_v23 = vpop.f32.mrf.mxu0  ;;  %v17487_v39 = vld [vmem:[#allocation151_spill] sm:$0xff] }
 0x3d1   : > { %v5795_v60 = vmul.f32 %v14450_v37, %v14450_v37  ;;  %v6170_v38 = vadd.f32 %v6042_v31, %v14419_v20  ;;  %v5802_v12 = vmul.f32 %v14452_v51, %v14452_v51  ;;  %v14467_v19 = vadd.f32 %v5567_v33, %v5455_v29  ;;  %v5571_v55 = vpop.f32.mrf.mxu1 }
 0x3d2   : > { %v6050_v41 = vmul.f32 0.044715, %v5922_v53  ;;  %v14469_v2 = vpop.eup %9475  ;;  %v6171_v10 = vadd.f32 %v6043_v25, %v14430_v50  ;;  %v5457_v5 = vadd.f32 %v5456_v45, %v17487_v39  ;;  %v6506_v14 = vadd.f32 1.0, %v9470_v43  ;;  %v5462_v42 = vpop.f32.mrf.mxu0 }
 0x3d3   : > { %v5923_v61 = vmul.f32 %v5795_v60, %v14450_v37  ;;  %v6291_v62 = vmul.f32 0.7978846, %v6163_v22  ;;  %v5930_v53 = vmul.f32 %v5802_v12, %v14452_v51  ;;  %v5803_v33 = vmul.f32 %v14467_v19, %v14467_v19  ;;  %v5575_v43 = vpop.f32.mrf.mxu1 }
 0x3d4   : > { %v6178_v31 = vadd.f32 %v6050_v41, %v14439_v44  ;;  %v14478_v29 = vpop.eup %9477  ;;  %v14480_v13 = vadd.f32 %v5569_v52, %v5457_v5  ;;  %v6507_v25 = vadd.f32 1.0, %v9472_v21  ;;  %v14483_v60 = vmul.f32 %v6506_v14, %v14373_v30  ;;  %v5464_v45 = vpop.f32.mrf.mxu0  ;;  %v17491_v14 = vld [vmem:[#allocation88_spill] sm:$0xff] }
 0x3d5   : > { %v6051_v63 = vmul.f32 0.044715, %v5923_v61  ;;  %9489 = vtanh.f32 %v6290_v4  ;;  %v6298_v22 = vmul.f32 0.7978846, %v6170_v38  ;;  %v6058_v39 = vmul.f32 0.044715, %v5930_v53  ;;  %v5577_v6 = vpop.f32.mrf.mxu1 }
 0x3d6   : > { %17488 = vst [vmem:[#allocation25_spill] sm:$0xff] %v14483_v60  ;;  %v5931_v41 = vmul.f32 %v5803_v33, %v14467_v19  ;;  %v6299_v12 = vmul.f32 0.7978846, %v6171_v10  ;;  %v5810_v49 = vmul.f32 %v14480_v13, %v14480_v13  ;;  %v14490_v52 = vmul.f32 %v6507_v25, %v14383_v3  ;;  %v17490_v4 = vld [vmem:[#allocation170_spill] sm:$0xff]  ;;  %v17492_v53 = vld [vmem:[#allocation165_spill] sm:$0xff]  ;;  %v5466_v27 = vpop.f32.mrf.mxu0 }
 0x3d7   : > { %v6179_v24 = vadd.f32 %v6051_v63, %v14450_v37  ;;  %v14492_v21 = vpop.eup %9479  ;;  %9491 = vtanh.f32 %v6291_v62  ;;  %v6306_v30 = vmul.f32 0.7978846, %v6178_v31  ;;  %v6761_v38 = vadd.f32 %v17490_v4, %v14483_v60 }
 0x3d8   : > { %17489 = vst [vmem:[#allocation93_spill] sm:$0xff] %v14490_v52  ;;  %v6059_v61 = vmul.f32 0.044715, %v5931_v41  ;;  %v6186_v5 = vadd.f32 %v6058_v39, %v14452_v51  ;;  %v5938_v10 = vmul.f32 %v5810_v49, %v14480_v13  ;;  %v5459_v63 = vadd.f32 %v5458_v23, %v17491_v14 }
 0x3d9   : > { %v5463_v33 = vadd.f32 %v5462_v42, %v17492_v53  ;;  %v14500_v3 = vpop.eup %9481  ;;  %9493 = vtanh.f32 %v6298_v22  ;;  %v6307_v25 = vmul.f32 0.7978846, %v6179_v24  ;;  %v6762_v62 = vadd.f32 %v6761_v38, %v14490_v52  ;;  %v17493_v22 = vld [vmem:[#allocation16_spill] sm:$0xff] }
 0x3da   : > { %v6922_v31 = vmul.f32 %v14483_v60, %v14483_v60  ;;  %v14505_v41 = vpop.eup %9483  ;;  %9495 = vtanh.f32 %v6299_v12  ;;  %v6187_v49 = vadd.f32 %v6059_v61, %v14467_v19  ;;  %v14508_v39 = vadd.f32 %v5571_v55, %v5459_v63  ;;  %v5579_v61 = vpop.f32.mrf.mxu1 }
 0x3db   : > { %v14510_v23 = vadd.f32 %v5575_v43, %v5463_v33  ;;  %v14512_v42 = vpop.eup %9485  ;;  %v14515_v4 = vmul.f32 0.5, %v14419_v20  ;;  %9497 = vtanh.f32 %v6306_v30  ;;  %6763 = vadd.xlane.f32.xlu0 %v6762_v62  ;;  %v6923_v24 = vmul.f32 %v14490_v52, %v14490_v52  ;;  %v5468_v63 = vpop.f32.mrf.mxu0  ;;  %v17494_v30 = vld [vmem:[#allocation159_spill] sm:$0xff] }
 0x3dc   : > { %v7049_v38 = vadd.f32 %v17493_v22, %v6922_v31  ;;  %v6314_v14 = vmul.f32 0.7978846, %v6186_v5  ;;  %v6066_v12 = vmul.f32 0.044715, %v5938_v10  ;;  %v5811_v55 = vmul.f32 %v14508_v39, %v14508_v39 }
 0x3dd   : > { %v5818_v43 = vmul.f32 %v14510_v23, %v14510_v23  ;;  %v14524_v53 = vpop.eup %9487  ;;  %9499 = vtanh.f32 %v6307_v25  ;;  %v5465_v33 = vadd.f32 %v5464_v45, %v17494_v30  ;;  %v6514_v62 = vadd.f32 1.0, %v14454_v47  ;;  %v5472_v30 = vpop.f32.mrf.mxu0 }
 0x3de   : > { %v7050_v20 = vadd.f32 %v7049_v38, %v6923_v24  ;;  %v6315_v52 = vmul.f32 0.7978846, %v6187_v49  ;;  %v5939_v5 = vmul.f32 %v5811_v55, %v14508_v39  ;;  %v6515_v31 = vadd.f32 1.0, %v14469_v2  ;;  %v17497_v24 = vld [vmem:[#allocation31_spill] sm:$0xff] }
 0x3df   : > { %v5946_v10 = vmul.f32 %v5818_v43, %v14510_v23  ;;  %v14531_v22 = vadd.f32 %v5577_v6, %v5465_v33  ;;  %v14534_v60 = vmul.f32 %v6514_v62, %v14385_v34  ;;  %v5467_v25 = vadd.f32 %v5466_v27, %v17496_v28  ;;  %v5581_v43 = vpop.f32.mrf.mxu1  ;;  %v17499_v28 = vld [vmem:[#allocation169_spill] sm:$0xff] }
 0x3e0   : > { %7051 = vadd.xlane.f32.xlu0 %v7050_v20  ;;  %v5469_v38 = vadd.f32 %v5468_v63, %v17497_v24  ;;  %v6194_v45 = vadd.f32 %v6066_v12, %v14480_v13  ;;  %v6067_v47 = vmul.f32 0.044715, %v5939_v5  ;;  %v14540_v55 = vmul.f32 %v6515_v31, %v14404_v46  ;;  %v17500_v5 = vld [vmem:[#allocation76_spill] sm:$0xff] }
 0x3e1   : > { %17495 = vst [vmem:[#allocation78_spill] sm:$0xff] %v14534_v60  ;;  %v6074_v49 = vmul.f32 0.044715, %v5946_v10  ;;  %v5819_v6 = vmul.f32 %v14531_v22, %v14531_v22  ;;  %v6930_v34 = vmul.f32 %v14534_v60, %v14534_v60  ;;  %v14546_v2 = vadd.f32 %v5579_v61, %v5467_v25 }
 0x3e2   : > { %17498 = vst [vmem:[#allocation26_spill] sm:$0xff] %v14540_v55  ;;  %v6770_v27 = vadd.f32 %v17499_v28, %v14534_v60  ;;  %v14550_v63 = vpop.eup %9489  ;;  %9501 = vtanh.f32 %v6314_v14  ;;  %v6195_v12 = vadd.f32 %v6067_v47, %v14508_v39  ;;  %v6931_v46 = vmul.f32 %v14540_v55, %v14540_v55  ;;  %v5474_v47 = vpop.f32.mrf.mxu0 }
 0x3e3   : > { %v14555_v20 = vadd.f32 %v5581_v43, %v5469_v38  ;;  %v6202_v33 = vadd.f32 %v6074_v49, %v14510_v23  ;;  %v5947_v62 = vmul.f32 %v5819_v6, %v14531_v22  ;;  %v7058_v61 = vadd.f32 %v17500_v5, %v6930_v34  ;;  %v5585_v38 = vpop.f32.mrf.mxu1 }
 0x3e4   : > { %v5826_v10 = vmul.f32 %v14546_v2, %v14546_v2  ;;  %v14562_v31 = vpop.eup %9491  ;;  %9503 = vtanh.f32 %v6315_v52  ;;  %v6322_v14 = vmul.f32 0.7978846, %v6194_v45  ;;  %v6771_v25 = vadd.f32 %v6770_v27, %v14540_v55  ;;  %v5476_v16 = vpop.f32.mrf.mxu0 }
 0x3e5   : > { %v5827_v24 = vmul.f32 %v14555_v20, %v14555_v20  ;;  %v6323_v43 = vmul.f32 0.7978846, %v6195_v12  ;;  %v6075_v49 = vmul.f32 0.044715, %v5947_v62  ;;  %v7059_v28 = vadd.f32 %v7058_v61, %v6931_v46  ;;  %v17501_v62 = vld [vmem:[#allocation36_spill] sm:$0xff] }
 0x3e6   : > { %v5954_v6 = vmul.f32 %v5826_v10, %v14546_v2  ;;  %v14568_v34 = vpop.eup %9493  ;;  %6772 = vadd.xlane.f32.xlu0 %v6771_v25  ;;  %v5627_v52 = vmul.f32 0.5, %v14347_v58  ;;  %v6522_v45 = vadd.f32 1.0, %v14478_v29  ;;  %v6523_v27 = vadd.f32 1.0, %v14492_v21  ;;  %v17504_v29 = vld [vmem:[#allocation43_spill] sm:$0xff]  ;;  %v5587_v21 = vpop.f32.mrf.mxu1 }
 0x3e7   : > { %v5955_v5 = vmul.f32 %v5827_v24, %v14555_v20  ;;  %v14574_v55 = vpop.eup %9495  ;;  %v6330_v60 = vmul.f32 0.7978846, %v6202_v33  ;;  %v6203_v12 = vadd.f32 %v6075_v49, %v14531_v22  ;;  %7060 = vadd.xlane.f32.xlu1 %v7059_v28  ;;  %v5473_v61 = vadd.f32 %v5472_v30, %v17501_v62 }
 0x3e8   : > { %v6082_v46 = vmul.f32 0.044715, %v5954_v6  ;;  %v14578_v10 = vpop.eup %9497  ;;  %9505 = vtanh.f32 %v6322_v14  ;;  %v14581_v25 = vmul.f32 %v6522_v45, %v14422_v0  ;;  %v14583_v58 = vmul.f32 %v6523_v27, %v5627_v52  ;;  %v17505_v14 = vld [vmem:[#allocation112_spill] sm:$0xff] }
 0x3e9   : > { %v5475_v24 = vadd.f32 %v5474_v47, %v17504_v29  ;;  %v14587_v33 = vmul.f32 0.5, %v14439_v44  ;;  %9507 = vtanh.f32 %v6323_v43  ;;  %v6083_v49 = vmul.f32 0.044715, %v5955_v5  ;;  %v17506_v5 = vld [vmem:[#allocation134_spill] sm:$0xff]  ;;  %v5478_v29 = vpop.f32.mrf.mxu0 }
 0x3ea   : > { %17502 = vst [vmem:[#allocation101_spill] sm:$0xff] %v14581_v25  ;;  %17503 = vst [vmem:[#allocation79_spill] sm:$0xff] %v14583_v58  ;;  %v14589_v28 = vadd.f32 %v5585_v38, %v5473_v61  ;;  %v14591_v30 = vpop.eup %9499  ;;  %v6331_v6 = vmul.f32 0.7978846, %v6203_v12  ;;  %v6779_v0 = vadd.f32 %v17505_v14, %v14581_v25  ;;  %v6938_v52 = vmul.f32 %v14581_v25, %v14581_v25  ;;  %v5589_v61 = vpop.f32.mrf.mxu1 }
 0x3eb   : > { %v6939_v47 = vmul.f32 %v14583_v58, %v14583_v58  ;;  %v14600_v45 = vmul.f32 0.5, %v14452_v51  ;;  %9509 = vtanh.f32 %v6330_v60  ;;  %v6210_v44 = vadd.f32 %v6082_v46, %v14546_v2 }
 0x3ec   : > { %v5834_v38 = vmul.f32 %v14589_v28, %v14589_v28  ;;  %v6780_v43 = vadd.f32 %v6779_v0, %v14583_v58  ;;  %v7067_v27 = vadd.f32 %v17506_v5, %v6938_v52  ;;  %v14607_v12 = vadd.f32 %v5587_v21, %v5475_v24  ;;  %v17507_v24 = vld [vmem:[#allocation124_spill] sm:$0xff] }
 0x3ed   : > { %v5635_v62 = vmul.f32 0.5, %v14378_v48  ;;  %v6211_v14 = vadd.f32 %v6083_v49, %v14555_v20  ;;  %v6530_v60 = vadd.f32 1.0, %v14500_v3  ;;  %v6531_v46 = vadd.f32 1.0, %v14505_v41 }
 0x3ee   : > { %v5962_v51 = vmul.f32 %v5834_v38, %v14589_v28  ;;  %9511 = vtanh.f32 %v6331_v6  ;;  %6781 = vadd.xlane.f32.xlu1 %v6780_v43  ;;  %v7068_v25 = vadd.f32 %v7067_v27, %v6939_v47  ;;  %v5835_v0 = vmul.f32 %v14607_v12, %v14607_v12  ;;  %v5482_v43 = vpop.f32.mrf.mxu0 }
 0x3ef   : > { %v5477_v21 = vadd.f32 %v5476_v16, %v17507_v24  ;;  %v14617_v52 = vpop.eup %9501  ;;  %v14620_v5 = vmul.f32 %v6530_v60, %v14434_v32  ;;  %v14622_v49 = vmul.f32 %v6531_v46, %v5635_v62  ;;  %v5643_v3 = vmul.f32 0.5, %v14394_v36  ;;  %v5591_v16 = vpop.f32.mrf.mxu1  ;;  %v17510_v62 = vld [vmem:[#allocation62_spill] sm:$0xff] }
 0x3f0   : > { %v6090_v48 = vmul.f32 0.044715, %v5962_v51  ;;  %7069 = vadd.xlane.f32.xlu0 %v7068_v25  ;;  %v5963_v41 = vmul.f32 %v5835_v0, %v14607_v12  ;;  %v6538_v47 = vadd.f32 1.0, %v14512_v42  ;;  %v6539_v38 = vadd.f32 1.0, %v14524_v53  ;;  %v17511_v60 = vld [vmem:[#allocation70_spill] sm:$0xff] }
 0x3f1   : > { %17508 = vst [vmem:[#allocation27_spill] sm:$0xff] %v14620_v5  ;;  %17509 = vst [vmem:[#allocation85_spill] sm:$0xff] %v14622_v49  ;;  %v14626_v6 = vadd.f32 %v5589_v61, %v5477_v21  ;;  %v14630_v27 = vpop.eup %9503  ;;  %v6788_v51 = vadd.f32 %v17510_v62, %v14620_v5  ;;  %v5479_v36 = vadd.f32 %v5478_v29, %v17511_v60  ;;  %v6338_v61 = vmul.f32 0.7978846, %v6210_v44  ;;  %v17512_v44 = vld [vmem:[#allocation22_spill] sm:$0xff] }
 0x3f2   : > { %v6218_v32 = vadd.f32 %v6090_v48, %v14589_v28  ;;  %v6946_v25 = vmul.f32 %v14620_v5, %v14620_v5  ;;  %v6091_v46 = vmul.f32 0.044715, %v5963_v41  ;;  %v14641_v53 = vmul.f32 %v6538_v47, %v14448_v18  ;;  %v5595_v5 = vpop.f32.mrf.mxu1  ;;  %v5484_v18 = vpop.f32.mrf.mxu0 }
 0x3f3   : > { %v5842_v42 = vmul.f32 %v14626_v6, %v14626_v6  ;;  %v6339_v0 = vmul.f32 0.7978846, %v6211_v14  ;;  %v6789_v24 = vadd.f32 %v6788_v51, %v14622_v49  ;;  %v14644_v21 = vmul.f32 %v6539_v38, %v5643_v3 }
 0x3f4   : > { %v14646_v48 = vadd.f32 %v5591_v16, %v5479_v36  ;;  %v6219_v29 = vadd.f32 %v6091_v46, %v14607_v12  ;;  %v6797_v41 = vadd.f32 %v17512_v44, %v14641_v53  ;;  %v6947_v60 = vmul.f32 %v14622_v49, %v14622_v49  ;;  %v17513_v16 = vld [vmem:[#allocation57_spill] sm:$0xff] }
 0x3f5   : > { %v5970_v62 = vmul.f32 %v5842_v42, %v14626_v6  ;;  %v14654_v47 = vpop.eup %9505  ;;  %v6346_v14 = vmul.f32 0.7978846, %v6218_v32  ;;  %6790 = vadd.xlane.f32.xlu1 %v6789_v24  ;;  %v7076_v38 = vadd.f32 %v14142_v40, %v6946_v25  ;;  %v5483_v51 = vadd.f32 %v5482_v43, %v17513_v16  ;;  %v5486_v16 = vpop.f32.mrf.mxu0 }
 0x3f6   : > { %v5843_v3 = vmul.f32 %v14646_v48, %v14646_v48  ;;  %v14660_v36 = vpop.eup %9507  ;;  %9513 = vtanh.f32 %v6338_v61  ;;  %v6798_v42 = vadd.f32 %v6797_v41, %v14644_v21  ;;  %v6954_v44 = vmul.f32 %v14641_v53, %v14641_v53  ;;  %v17514_v61 = vld [vmem:[#allocation142_spill] sm:$0xff]  ;;  %v5597_v41 = vpop.f32.mrf.mxu1 }
 0x3f7   : > { %v6098_v46 = vmul.f32 0.044715, %v5970_v62  ;;  %v7077_v32 = vadd.f32 %v7076_v38, %v6947_v60  ;;  %v14666_v24 = vadd.f32 %v5595_v5, %v5483_v51  ;;  %v6955_v58 = vmul.f32 %v14644_v21, %v14644_v21 }
 0x3f8   : > { %v5971_v49 = vmul.f32 %v5843_v3, %v14646_v48  ;;  %v14670_v40 = vpop.eup %9509  ;;  %9515 = vtanh.f32 %v6339_v0  ;;  %v6347_v43 = vmul.f32 0.7978846, %v6219_v29  ;;  %6799 = vadd.xlane.f32.xlu0 %v6798_v42  ;;  %v7085_v25 = vadd.f32 %v14166_v8, %v6954_v44 }
 0x3f9   : > { %v5485_v62 = vadd.f32 %v5484_v18, %v17514_v61  ;;  %9517 = vtanh.f32 %v6346_v14  ;;  %v6226_v3 = vadd.f32 %v6098_v46, %v14626_v6  ;;  %7078 = vadd.xlane.f32.xlu1 %v7077_v32  ;;  %v5850_v5 = vmul.f32 %v14666_v24, %v14666_v24 }
 0x3fa   : > { %v6099_v60 = vmul.f32 0.044715, %v5971_v49  ;;  %v7086_v38 = vadd.f32 %v7085_v25, %v6955_v58  ;;  %v5651_v0 = vmul.f32 0.5, %v14410_v26  ;;  %v6546_v29 = vadd.f32 1.0, %v14550_v63  ;;  %v17515_v49 = vld [vmem:[#allocation66_spill] sm:$0xff]  ;;  %v5599_v58 = vpop.f32.mrf.mxu1 }
 0x3fb   : > { %v14677_v51 = vadd.f32 %v5597_v41, %v5485_v62  ;;  %v14681_v8 = vpop.eup %9511  ;;  %v5978_v14 = vmul.f32 %v5850_v5, %v14666_v24  ;;  %v6547_v46 = vadd.f32 1.0, %v14562_v31  ;;  %v5487_v42 = vadd.f32 %v5486_v16, %v17515_v49  ;;  %v5488_v16 = vpop.f32.mrf.mxu0  ;;  %v17517_v49 = vld [vmem:[#allocation63_spill] sm:$0xff] }
 0x3fc   : > { %v6227_v18 = vadd.f32 %v6099_v60, %v14646_v48  ;;  %v14688_v44 = vmul.f32 0.5, %v14480_v13  ;;  %9519 = vtanh.f32 %v6347_v43  ;;  %7087 = vadd.xlane.f32.xlu0 %v7086_v38  ;;  %v14693_v63 = vmul.f32 %v6546_v29, %v14460_v7 }
 0x3fd   : > { %v5851_v26 = vmul.f32 %v14677_v51, %v14677_v51  ;;  %v6106_v32 = vmul.f32 0.044715, %v5978_v14  ;;  %v14695_v25 = vmul.f32 %v6547_v46, %v5651_v0  ;;  %v14697_v61 = vadd.f32 %v5599_v58, %v5487_v42 }
 0x3fe   : > { %v5659_v31 = vmul.f32 0.5, %v14430_v50  ;;  %v6806_v13 = vadd.f32 %v14169_v35, %v14693_v63  ;;  %v6554_v43 = vadd.f32 1.0, %v14568_v34  ;;  %v6555_v41 = vadd.f32 1.0, %v14574_v55  ;;  %v17516_v55 = vld [vmem:[#allocation59_spill] sm:$0xff] }
 0x3ff   : > { %v5979_v62 = vmul.f32 %v5851_v26, %v14677_v51  ;;  %v6354_v7 = vmul.f32 0.7978846, %v6226_v3  ;;  %v6355_v60 = vmul.f32 0.7978846, %v6227_v18  ;;  %v6234_v5 = vadd.f32 %v6106_v32, %v14666_v24  ;;  %v5601_v26 = vpop.f32.mrf.mxu1 }
 0x400   : > { %v5858_v38 = vmul.f32 %v14697_v61, %v14697_v61  ;;  %v6807_v50 = vadd.f32 %v6806_v13, %v14695_v25  ;;  %v14710_v29 = vmul.f32 %v6554_v43, %v14515_v4  ;;  %v14712_v14 = vmul.f32 %v6555_v41, %v5659_v31 }
 0x401   : > { %v6107_v0 = vmul.f32 0.044715, %v5979_v62  ;;  %v6362_v35 = vmul.f32 0.7978846, %v6234_v5  ;;  %v5489_v46 = vadd.f32 %v5488_v16, %v17516_v55  ;;  %v6962_v3 = vmul.f32 %v14693_v63, %v14693_v63 }
 0x402   : > { %v5986_v34 = vmul.f32 %v5858_v38, %v14697_v61  ;;  %6808 = vadd.xlane.f32.xlu1 %v6807_v50  ;;  %v6815_v42 = vadd.f32 %v17517_v49, %v14710_v29  ;;  %v6963_v4 = vmul.f32 %v14695_v25, %v14695_v25  ;;  %v6970_v58 = vmul.f32 %v14710_v29, %v14710_v29 }
 0x403   : > { %v6235_v18 = vadd.f32 %v6107_v0, %v14677_v51  ;;  %v14725_v32 = vpop.eup %9513  ;;  %9521 = vtanh.f32 %v6354_v7  ;;  %v14727_v62 = vadd.f32 %v5601_v26, %v5489_v46  ;;  %v7094_v13 = vadd.f32 %v14227_v11, %v6962_v3 }
 0x404   : > { %v6114_v31 = vmul.f32 0.044715, %v5986_v34  ;;  %v6816_v41 = vadd.f32 %v6815_v42, %v14712_v14  ;;  %v6971_v16 = vmul.f32 %v14712_v14, %v14712_v14  ;;  %v7103_v5 = vadd.f32 %v14236_v56, %v6970_v58 }
 0x405   : > { %v6363_v43 = vmul.f32 0.7978846, %v6235_v18  ;;  %v14734_v38 = vpop.eup %9515  ;;  %9523 = vtanh.f32 %v6355_v60  ;;  %v5859_v7 = vmul.f32 %v14727_v62, %v14727_v62  ;;  %v7095_v50 = vadd.f32 %v7094_v13, %v6963_v4 }
 0x406   : > { %v6242_v0 = vadd.f32 %v6114_v31, %v14697_v61  ;;  %v9518_v34 = vpop.eup %9517  ;;  %9525 = vtanh.f32 %v6362_v35  ;;  %6817 = vadd.xlane.f32.xlu0 %v6816_v41  ;;  %v5667_v11 = vmul.f32 0.5, %v14450_v37  ;;  %v6562_v55 = vadd.f32 1.0, %v14578_v10 }
 0x407   : > { %v6563_v46 = vadd.f32 1.0, %v14591_v30  ;;  %9527 = vtanh.f32 %v6363_v43  ;;  %v5987_v56 = vmul.f32 %v5859_v7, %v14727_v62  ;;  %7096 = vadd.xlane.f32.xlu1 %v7095_v50  ;;  %v7104_v60 = vadd.f32 %v7103_v5, %v6971_v16  ;;  %v17520_v5 = vld [vmem:[#allocation61_spill] sm:$0xff] }
 0x408   : > { %v6570_v3 = vadd.f32 1.0, %v14617_v52  ;;  %v14745_v18 = vmul.f32 %v6562_v55, %v14587_v33  ;;  %v5675_v35 = vmul.f32 0.5, %v14467_v19  ;;  %v6571_v37 = vadd.f32 1.0, %v14630_v27 }
 0x409   : > { %v14747_v49 = vmul.f32 %v6563_v46, %v5667_v11  ;;  %v9520_v42 = vpop.eup %9519  ;;  %v6370_v10 = vmul.f32 0.7978846, %v6242_v0  ;;  %v6115_v26 = vmul.f32 0.044715, %v5987_v56  ;;  %v6578_v4 = vadd.f32 1.0, %v14654_v47 }
 0x40a   : > { %v14752_v30 = vmul.f32 %v6570_v3, %v14600_v45  ;;  %7105 = vadd.xlane.f32.xlu0 %v7104_v60  ;;  %v6824_v52 = vadd.f32 %v14239_v1, %v14745_v18  ;;  %v14757_v33 = vmul.f32 %v6571_v37, %v5675_v35  ;;  %v6978_v58 = vmul.f32 %v14745_v18, %v14745_v18 }
 0x40b   : > { %v5683_v19 = vmul.f32 0.5, %v14508_v39  ;;  %v6243_v27 = vadd.f32 %v6115_v26, %v14727_v62  ;;  %v6579_v47 = vadd.f32 1.0, %v14660_v36  ;;  %v6979_v1 = vmul.f32 %v14747_v49, %v14747_v49 }
 0x40c   : > { %17518 = vst [vmem:[#allocation141_spill] sm:$0xff] %v14757_v33  ;;  %v6833_v31 = vadd.f32 %v14242_v57, %v14752_v30  ;;  %v6986_v45 = vmul.f32 %v14752_v30, %v14752_v30  ;;  %v6825_v13 = vadd.f32 %v6824_v52, %v14747_v49  ;;  %v7112_v43 = vadd.f32 %v14246_v59, %v6978_v58 }
 0x40d   : > { %v14773_v41 = vmul.f32 %v6578_v4, %v14688_v44  ;;  %v6987_v57 = vmul.f32 %v14757_v33, %v14757_v33  ;;  %v6617_v0 = vadd.f32 1.0, %v17520_v5  ;;  %v5690_v36 = vmul.f32 0.5, %v14510_v23  ;;  %v17533_v5 = vld [vmem:[#allocation20_spill] sm:$0xff] }
 0x40e   : > { %v6834_v39 = vadd.f32 %v6833_v31, %v14757_v33  ;;  %v7121_v16 = vadd.f32 %v14248_v9, %v6986_v45  ;;  %v6371_v7 = vmul.f32 0.7978846, %v6243_v27  ;;  %6826 = vadd.xlane.f32.xlu1 %v6825_v13  ;;  %v14781_v50 = vmul.f32 %v6579_v47, %v5683_v19  ;;  %v17526_v31 = vld [vmem:[#allocation120_spill] sm:$0xff] }
 0x40f   : > { %17519 = vst [vmem:[#allocation28_spill] sm:$0xff] %v14773_v41  ;;  %v6586_v59 = vadd.f32 1.0, %v14670_v40  ;;  %v6842_v44 = vadd.f32 %v14262_v54, %v14773_v41  ;;  %v5691_v11 = vmul.f32 0.5, %v14531_v22  ;;  %v6587_v55 = vadd.f32 1.0, %v14681_v8  ;;  %v17527_v13 = vld [vmem:[#allocation68_spill] sm:$0xff] }
 0x410   : > { %17521 = vst [vmem:[#allocation86_spill] sm:$0xff] %v14781_v50  ;;  %6835 = vadd.xlane.f32.xlu0 %v6834_v39  ;;  %v6994_v9 = vmul.f32 %v14773_v41, %v14773_v41  ;;  %v9522_v46 = vpop.eup %9521  ;;  %v5698_v23 = vmul.f32 0.5, %v14546_v2  ;;  %9529 = vtanh.f32 %v6370_v10  ;;  %v7113_v56 = vadd.f32 %v7112_v43, %v6979_v1  ;;  %v17528_v1 = vld [vmem:[#allocation92_spill] sm:$0xff] }
 0x411   : > { %v14791_v60 = vmul.f32 %v6586_v59, %v5690_v36  ;;  %v5706_v40 = vmul.f32 0.5, %v14589_v28  ;;  %v7122_v3 = vadd.f32 %v7121_v16, %v6987_v57  ;;  %v14794_v35 = vmul.f32 %v6587_v55, %v5691_v11  ;;  %v17529_v43 = vld [vmem:[#allocation164_spill] sm:$0xff]  ;;  %v17536_v11 = vld [vmem:[#allocation77_spill] sm:$0xff] }
 0x412   : > { %v6594_v54 = vadd.f32 1.0, %v14725_v32  ;;  %v9524_v22 = vpop.eup %9523  ;;  %9531 = vtanh.f32 %v6371_v7  ;;  %7114 = vadd.xlane.f32.xlu1 %v7113_v56  ;;  %v6602_v37 = vadd.f32 1.0, %v9518_v34  ;;  %v6843_v26 = vadd.f32 %v6842_v44, %v14781_v50  ;;  %v17531_v57 = vld [vmem:[#allocation60_spill] sm:$0xff] }
 0x413   : > { %17522 = vst [vmem:[#allocation154_spill] sm:$0xff] %v14791_v60  ;;  %17523 = vst [vmem:[#allocation151_spill] sm:$0xff] %v14794_v35  ;;  %v6851_v8 = vadd.f32 %v14281_v15, %v14791_v60  ;;  %v7002_v2 = vmul.f32 %v14791_v60, %v14791_v60  ;;  %v9526_v10 = vpop.eup %9525  ;;  %v6995_v28 = vmul.f32 %v14781_v50, %v14781_v50  ;;  %v6595_v32 = vadd.f32 1.0, %v14734_v38 }
 0x414   : > { %7123 = vadd.xlane.f32.xlu0 %v7122_v3  ;;  %v7130_v4 = vadd.f32 %v14300_v17, %v6994_v9  ;;  %v9528_v52 = vpop.eup %9527  ;;  %v14807_v19 = vmul.f32 %v6594_v54, %v5698_v23  ;;  %v6603_v15 = vadd.f32 1.0, %v9520_v42  ;;  %v14809_v27 = vmul.f32 %v6602_v37, %v5706_v40  ;;  %v17532_v42 = vld [vmem:[#allocation17_spill] sm:$0xff] }
 0x415   : > { %v6852_v58 = vadd.f32 %v6851_v8, %v14794_v35  ;;  %v7003_v34 = vmul.f32 %v14794_v35, %v14794_v35  ;;  %v7139_v45 = vadd.f32 %v17526_v31, %v7002_v2  ;;  %v5707_v47 = vmul.f32 0.5, %v14607_v12  ;;  %v17535_v12 = vld [vmem:[#allocation65_spill] sm:$0xff] }
 0x416   : > { %17524 = vst [vmem:[#allocation170_spill] sm:$0xff] %v14807_v19  ;;  %17525 = vst [vmem:[#allocation88_spill] sm:$0xff] %v14809_v27  ;;  %v7156_v17 = vadd.f32 %v17528_v1, %v17527_v13  ;;  %6844 = vadd.xlane.f32.xlu1 %v6843_v26  ;;  %v5699_v38 = vmul.f32 0.5, %v14555_v20  ;;  %v14819_v39 = vmul.f32 %v6617_v0, %v17529_v43  ;;  %v17538_v0 = vld [vmem:[#allocation166_spill] sm:$0xff]  ;;  %v6610_v56 = vadd.f32 1.0, %v9522_v46  ;;  %v17539_v26 = vld [vmem:[#allocation168_spill] sm:$0xff] }
 0x417   : > { %v6885_v16 = vadd.f32 %v17532_v42, %v17531_v57  ;;  %v7024_v36 = vmul.f32 %v17533_v5, %v17533_v5  ;;  %v7131_v7 = vadd.f32 %v7130_v4, %v6995_v28  ;;  %v14825_v59 = vmul.f32 %v6603_v15, %v5707_v47  ;;  %v17544_v42 = vld [vmem:[#allocation80_spill] sm:$0xff] }
 0x418   : > { %17530 = vst [vmem:[#allocation165_spill] sm:$0xff] %v14819_v39  ;;  %6853 = vadd.xlane.f32.xlu0 %v6852_v58  ;;  %v6869_v44 = vadd.f32 %v17535_v12, %v14809_v27  ;;  %v7025_v55 = vmul.f32 %v17536_v11, %v17536_v11  ;;  %v14831_v20 = vmul.f32 %v6595_v32, %v5699_v38  ;;  %v5722_v40 = vmul.f32 0.5, %v14666_v24 }
 0x419   : > { %17534 = vst [vmem:[#allocation16_spill] sm:$0xff] %v14825_v59  ;;  %v6860_v9 = vadd.f32 %v17538_v0, %v14807_v19  ;;  %v7010_v23 = vmul.f32 %v14807_v19, %v14807_v19  ;;  %v7140_v3 = vadd.f32 %v7139_v45, %v7003_v34  ;;  %v7018_v54 = vmul.f32 %v14809_v27, %v14809_v27 }
 0x41a   : > { %17537 = vst [vmem:[#allocation159_spill] sm:$0xff] %v14831_v20  ;;  %v6618_v8 = vadd.f32 1.0, %v9526_v10  ;;  %v5714_v2 = vmul.f32 0.5, %v14626_v6  ;;  %7132 = vadd.xlane.f32.xlu1 %v7131_v7  ;;  %v6886_v37 = vadd.f32 %v6885_v16, %v14819_v39  ;;  %v7164_v28 = vadd.f32 %v17539_v26, %v7024_v36  ;;  %v17541_v10 = vld [vmem:[#allocation23_spill] sm:$0xff]  ;;  %v17546_v7 = vld [vmem:[#allocation130_spill] sm:$0xff] }
 0x41b   : > { %v7032_v4 = vmul.f32 %v17531_v57, %v17531_v57  ;;  %v6870_v46 = vadd.f32 %v6869_v44, %v14825_v59  ;;  %v6611_v32 = vadd.f32 1.0, %v9524_v22  ;;  %v6619_v24 = vadd.f32 1.0, %v9528_v52  ;;  %v17543_v52 = vld [vmem:[#allocation90_spill] sm:$0xff]  ;;  %v17545_v36 = vld [vmem:[#allocation19_spill] sm:$0xff] }
 0x41c   : > { %7141 = vadd.xlane.f32.xlu0 %v7140_v3  ;;  %v14846_v58 = vmul.f32 %v6618_v8, %v5722_v40  ;;  %v6861_v15 = vadd.f32 %v6860_v9, %v14831_v20  ;;  %v7011_v6 = vmul.f32 %v14831_v20, %v14831_v20  ;;  %v7148_v34 = vadd.f32 %v17541_v10, %v7010_v23  ;;  %v17554_v10 = vld [vmem:[#allocation71_spill] sm:$0xff] }
 0x41d   : > { %v14852_v31 = vmul.f32 %v6610_v56, %v5714_v2  ;;  %v9530_v45 = vpop.eup %9529  ;;  %v7019_v47 = vmul.f32 %v14825_v59, %v14825_v59  ;;  %v7157_v13 = vadd.f32 %v7156_v17, %v7018_v54  ;;  %v5715_v1 = vmul.f32 0.5, %v14646_v48 }
 0x41e   : > { %17540 = vst [vmem:[#allocation147_spill] sm:$0xff] %v14846_v58  ;;  %v5723_v22 = vmul.f32 0.5, %v14677_v51  ;;  %6862 = vadd.xlane.f32.xlu1 %v6861_v15  ;;  %v6877_v38 = vadd.f32 %v17543_v52, %v17536_v11  ;;  %v7033_v43 = vmul.f32 %v14819_v39, %v14819_v39  ;;  %v6625_v16 = vadd.f32 1.0, %v17544_v42  ;;  %v17549_v51 = vld [vmem:[#allocation18_spill] sm:$0xff] }
 0x41f   : > { %17542 = vst [vmem:[#allocation31_spill] sm:$0xff] %v14852_v31  ;;  %v7180_v12 = vadd.f32 %v17546_v7, %v17545_v36  ;;  %v9532_v44 = vpop.eup %9531  ;;  %v14865_v0 = vmul.f32 %v6611_v32, %v5715_v1  ;;  %v6887_v48 = vadd.f32 %v6886_v37, %v14846_v58  ;;  %v7173_v9 = vadd.f32 %v17549_v51, %v7032_v4  ;;  %v17552_v37 = vld [vmem:[#allocation117_spill] sm:$0xff]  ;;  %v17553_v4 = vld [vmem:[#allocation96_spill] sm:$0xff] }
 0x420   : > { %6871 = vadd.xlane.f32.xlu0 %v6870_v46  ;;  %v14867_v17 = vmul.f32 %v6619_v24, %v5723_v22  ;;  %v7149_v23 = vadd.f32 %v7148_v34, %v7011_v6  ;;  %v6878_v56 = vadd.f32 %v6877_v38, %v14852_v31  ;;  %v7026_v40 = vmul.f32 %v14852_v31, %v14852_v31  ;;  %v17550_v46 = vld [vmem:[#allocation30_spill] sm:$0xff] }
 0x421   : > { %17547 = vst [vmem:[#allocation169_spill] sm:$0xff] %v14865_v0  ;;  %v6626_v3 = vadd.f32 1.0, %v9530_v45  ;;  %v7158_v54 = vadd.f32 %v7157_v13, %v7019_v47  ;;  %v7165_v8 = vadd.f32 %v7164_v28, %v7025_v55  ;;  %v7034_v2 = vmul.f32 %v14846_v58, %v14846_v58 }
 0x422   : > { %17548 = vst [vmem:[#allocation76_spill] sm:$0xff] %v14867_v17  ;;  %v5730_v26 = vmul.f32 0.5, %v14697_v61  ;;  %7150 = vadd.xlane.f32.xlu1 %v7149_v23  ;;  %v14878_v32 = vmul.f32 %v6625_v16, %v17550_v46  ;;  %v6894_v24 = vadd.f32 %v17553_v4, %v17552_v37  ;;  %v7040_v15 = vmul.f32 %v17552_v37, %v17552_v37 }
 0x423   : > { %v6888_v6 = vadd.f32 %v6887_v48, %v14867_v17  ;;  %v7027_v55 = vmul.f32 %v14865_v0, %v14865_v0  ;;  %v7174_v28 = vadd.f32 %v7173_v9, %v7033_v43  ;;  %v7181_v34 = vadd.f32 %v7180_v12, %v17554_v10  ;;  %v7710_v10 = vld [vmem:[#allocation10] sm:$0xff] }
 0x424   : > { %17551 = vst [vmem:[#allocation36_spill] sm:$0xff] %v14878_v32  ;;  %7159 = vadd.xlane.f32.xlu0 %v7158_v54  ;;  %v6879_v61 = vadd.f32 %v6878_v56, %v14865_v0  ;;  %v7166_v45 = vadd.f32 %v7165_v8, %v7026_v40  ;;  %v6627_v47 = vadd.f32 1.0, %v9532_v44  ;;  %v14889_v13 = vmul.f32 %v6626_v3, %v5730_v26 }
 0x425   : > { %v7035_v1 = vmul.f32 %v14867_v17, %v14867_v17  ;;  %v7175_v22 = vadd.f32 %v7174_v28, %v7034_v2  ;;  %v5731_v52 = vmul.f32 0.5, %v14727_v62  ;;  %v6895_v38 = vadd.f32 %v6894_v24, %v14878_v32  ;;  %v7540_v28 = vld [vmem:[#allocation8] sm:$0xff] }
 0x426   : > { %17555 = vst [vmem:[#allocation43_spill] sm:$0xff] %v14889_v13  ;;  %6880 = vadd.xlane.f32.xlu1 %v6879_v61  ;;  %v7041_v43 = vmul.f32 %v14878_v32, %v14878_v32  ;;  %v7182_v42 = vadd.f32 %v7181_v34, %v7040_v15  ;;  %v7167_v16 = vadd.f32 %v7166_v45, %v7027_v55  ;;  %v17557_v45 = vld [vmem:[#allocation82_spill] sm:$0xff]  ;;  %v17571_v32 = vld [vmem:[#allocation25_spill] sm:$0xff] }
 0x427   : > { %v14897_v36 = vmul.f32 %v6627_v47, %v5731_v52  ;;  %v6896_v7 = vadd.f32 %v6895_v38, %v14889_v13  ;;  %v7042_v12 = vmul.f32 %v14889_v13, %v14889_v13  ;;  %v7176_v44 = vadd.f32 %v7175_v22, %v7035_v1  ;;  %v17558_v22 = vld [vmem:[#allocation81_spill] sm:$0xff] }
 0x428   : > { %6889 = vadd.xlane.f32.xlu0 %v6888_v6  ;;  %v7183_v48 = vadd.f32 %v7182_v42, %v7041_v43  ;;  %v14910_v47 = vrot.slane %v7540_v28, %v17557_v45  ;;  %v14913_v1 = vrot.slane %v7710_v10, %v17557_v45  ;;  %v14916_v52 = vrot.slane %v7540_v28, %v17558_v22  ;;  %v17559_v42 = vld [vmem:[#allocation129_spill] sm:$0xff]  ;;  %v17566_v45 = vld [vmem:[#allocation99_spill] sm:$0xff] }
 0x429   : > { %17556 = vst [vmem:[#allocation112_spill] sm:$0xff] %v14897_v36  ;;  %v6897_v62 = vadd.f32 %v6896_v7, %v14897_v36  ;;  %v7043_v51 = vmul.f32 %v14897_v36, %v14897_v36  ;;  %v14919_v38 = vrot.slane %v7710_v10, %v17558_v22  ;;  %v14925_v7 = vrot.slane %v7710_v10, %v17559_v42  ;;  %v17570_v13 = vld [vmem:[#allocation41_spill] sm:$0xff] }
 0x42a   : > { %7168 = vadd.xlane.f32.xlu1 %v7167_v16  ;;  %v7184_v9 = vadd.f32 %v7183_v48, %v7042_v12  ;;  %v14922_v16 = vrot.slane %v7540_v28, %v17559_v42  ;;  %v17560_v48 = vld [vmem:[#allocation125_spill] sm:$0xff] }
 0x42c   : > { %7177 = vadd.xlane.f32.xlu0 %v7176_v44  ;;  %v7185_v23 = vadd.f32 %v7184_v9, %v7043_v51  ;;  %v14933_v51 = vrot.slane %v7710_v10, %v17560_v48  ;;  %v17561_v9 = vld [vmem:[#allocation115_spill] sm:$0xff] }
 0x42e   : > { %6898 = vadd.xlane.f32.xlu1 %v6897_v62  ;;  %v14930_v62 = vrot.slane %v7540_v28, %v17560_v48 }
 0x432   : > { %7186 = vadd.xlane.f32.xlu1 %v7185_v23  ;;  %v14936_v23 = vrot.slane %v7540_v28, %v17561_v9 }
 0x464   : > { %v6764_v56 = vpop.xlane.xlu0 %6763 }
 0x465   : > { %v6900_v40 = vmul.f32 0.0009765625, %v6764_v56  ;;  %v14939_v56 = vrot.slane %v7710_v10, %v17561_v9 }
 0x467   : > { %v7204_v54 = vmul.f32 %v6900_v40, %v6900_v40  ;;  %v7253_v22 = vsub.f32 %v17566_v45, %v6900_v40  ;;  %v7258_v37 = vsub.f32 %v17571_v32, %v6900_v40 }
 0x469   : > { %v7052_v3 = vpop.xlane.xlu0 %7051 }
 0x46a   : > { %v7188_v8 = vmul.f32 0.0009765625, %v7052_v3 }
 0x46c   : > { %v7220_v2 = vsub.f32 %v7188_v8, %v7204_v54  ;;  %v17562_v54 = vld [vmem:[#allocation167_spill] sm:$0xff] }
 0x46d   : > { %v14942_v8 = vrot.slane %v7540_v28, %v17562_v54 }
 0x46e   : > { %v7236_v26 = vmax.f32 %v7220_v2, 0.0  ;;  %v14945_v2 = vrot.slane %v7710_v10, %v17562_v54 }
 0x46f   : > { %v6773_v4 = vpop.xlane.xlu0 %6772 }
 0x470   : > { %v7380_v46 = vadd.f32 1e-12, %v7236_v26  ;;  %v7061_v24 = vpop.xlane.xlu1 %7060  ;;  %v14905_v15 = vmul.f32 0.0009765625, %v6773_v4  ;;  %v17563_v26 = vld [vmem:[#allocation100_spill] sm:$0xff] }
 0x471   : > { %v7189_v6 = vmul.f32 0.0009765625, %v7061_v24  ;;  %v14951_v4 = vrot.slane %v7710_v10, %v17563_v26  ;;  %v17564_v24 = vld [vmem:[#allocation50_spill] sm:$0xff] }
 0x472   : > { %9533 = vrsqrt.f32 %v7380_v46  ;;  %v7205_v55 = vmul.f32 %v14905_v15, %v14905_v15  ;;  %v14948_v46 = vrot.slane %v7540_v28, %v17563_v26  ;;  %v17569_v26 = vld [vmem:[#allocation33_spill] sm:$0xff] }
 0x473   : > { %v7256_v36 = vsub.f32 %v17569_v26, %v6900_v40 }
 0x474   : > { %v7221_v34 = vsub.f32 %v7189_v6, %v7205_v55  ;;  %v14954_v6 = vrot.slane %v7540_v28, %v17564_v24  ;;  %v14957_v55 = vrot.slane %v7710_v10, %v17564_v24  ;;  %v7257_v28 = vsub.f32 %v17570_v13, %v6900_v40  ;;  %v17572_v24 = vld [vmem:[#allocation93_spill] sm:$0xff] }
 0x475   : > { %v7259_v17 = vsub.f32 %v17572_v24, %v6900_v40 }
 0x476   : > { %v7237_v61 = vmax.f32 %v7221_v34, 0.0  ;;  %v17565_v34 = vld [vmem:[#allocation98_spill] sm:$0xff] }
 0x477   : > { %v6782_v43 = vpop.xlane.xlu1 %6781 }
 0x478   : > { %v7381_v12 = vadd.f32 1e-12, %v7237_v61  ;;  %v14927_v44 = vmul.f32 0.0009765625, %v6782_v43  ;;  %v7252_v61 = vsub.f32 %v17565_v34, %v6900_v40  ;;  %v17567_v43 = vld [vmem:[#allocation95_spill] sm:$0xff] }
 0x479   : > { %v7070_v3 = vpop.xlane.xlu0 %7069  ;;  %v7254_v42 = vsub.f32 %v17567_v43, %v6900_v40  ;;  %v17573_v34 = vld [vmem:[#allocation123_spill] sm:$0xff]  ;;  %v17574_v43 = vld [vmem:[#allocation128_spill] sm:$0xff] }
 0x47a   : > { %9535 = vrsqrt.f32 %v7381_v12  ;;  %v7206_v48 = vmul.f32 %v14927_v44, %v14927_v44  ;;  %v7190_v9 = vmul.f32 0.0009765625, %v7070_v3  ;;  %v17568_v12 = vld [vmem:[#allocation119_spill] sm:$0xff]  ;;  %v7260_v45 = vsub.f32 %v17573_v34, %v14905_v15 }
 0x47b   : > { %v7255_v54 = vsub.f32 %v17568_v12, %v6900_v40  ;;  %v7261_v58 = vsub.f32 %v17574_v43, %v14905_v15 }
 0x47c   : > { %v7222_v39 = vsub.f32 %v7190_v9, %v7206_v48 }
 0x47e   : > { %v7238_v43 = vmax.f32 %v7222_v39, 0.0  ;;  %v17578_v39 = vld [vmem:[#allocation39_spill] sm:$0xff] }
 0x47f   : > { %v9534_v10 = vpop.eup %9533 }
 0x480   : > { %v7412_v57 = vmul.f32 %v9534_v10, %v7252_v61  ;;  %v7413_v3 = vmul.f32 %v9534_v10, %v7253_v22  ;;  %v7414_v0 = vmul.f32 %v9534_v10, %v7254_v42  ;;  %v7415_v12 = vmul.f32 %v9534_v10, %v7255_v54 }
 0x481   : > { %v7416_v31 = vmul.f32 %v9534_v10, %v7256_v36  ;;  %v7417_v26 = vmul.f32 %v9534_v10, %v7257_v28  ;;  %v7418_v11 = vmul.f32 %v9534_v10, %v7258_v37  ;;  %v7419_v13 = vmul.f32 %v9534_v10, %v7259_v17  ;;  %v17575_v28 = vld [vmem:[#allocation103_spill] sm:$0xff] }
 0x482   : > { %v7582_v32 = vmul.f32 %v14916_v52, %v7412_v57  ;;  %v7583_v5 = vmul.f32 %v14910_v47, %v7413_v3  ;;  %v7584_v40 = vmul.f32 %v14930_v62, %v7414_v0  ;;  %v7585_v24 = vmul.f32 %v14922_v16, %v7415_v12 }
 0x483   : > { %v7586_v34 = vmul.f32 %v14936_v23, %v7416_v31  ;;  %v7587_v48 = vmul.f32 %v14942_v8, %v7417_v26  ;;  %v7588_v61 = vmul.f32 %v14948_v46, %v7418_v11  ;;  %v7589_v22 = vmul.f32 %v14954_v6, %v7419_v13  ;;  %v17576_v26 = vld [vmem:[#allocation106_spill] sm:$0xff] }
 0x484   : > { %v7752_v36 = vadd.f32 %v14919_v38, %v7582_v32  ;;  %v7753_v17 = vadd.f32 %v14913_v1, %v7583_v5  ;;  %v7754_v57 = vadd.f32 %v14933_v51, %v7584_v40  ;;  %v7755_v37 = vadd.f32 %v14925_v7, %v7585_v24  ;;  %v6791_v5 = vpop.xlane.xlu1 %6790  ;;  %v17577_v32 = vld [vmem:[#allocation73_spill] sm:$0xff]  ;;  %v6800_v24 = vpop.xlane.xlu0 %6799 }
 0x485   : > { %v7756_v0 = vadd.f32 %v14939_v56, %v7586_v34  ;;  %v7757_v42 = vadd.f32 %v14945_v2, %v7587_v48  ;;  %v7758_v31 = vadd.f32 %v14951_v4, %v7588_v61  ;;  %v7759_v9 = vadd.f32 %v14957_v55, %v7589_v22  ;;  %v17579_v61 = vld [vmem:[#allocation78_spill] sm:$0xff] }
 0x486   : > { %v9120_v11 = vpack.c.bf16 %v7753_v17, %v7752_v36  ;;  %v9121_v54 = vpack.c.bf16 %v7755_v37, %v7754_v57  ;;  %v7262_v10 = vsub.f32 %v17575_v28, %v14905_v15  ;;  %v7263_v13 = vsub.f32 %v17576_v26, %v14905_v15  ;;  %v17580_v36 = vld [vmem:[#allocation26_spill] sm:$0xff] }
 0x487   : > { %v9122_v3 = vpack.c.bf16 %v7757_v42, %v7756_v0  ;;  %v9123_v12 = vpack.c.bf16 %v7759_v9, %v7758_v31  ;;  %v7264_v40 = vsub.f32 %v17577_v32, %v14905_v15  ;;  %v9536_v34 = vpop.eup %9535  ;;  %v7265_v48 = vsub.f32 %v17578_v39, %v14905_v15 }
 0x488   : > { %8264 = vst [vmem:[%s14997_s24] sm:$0xff] %v9120_v11  ;;  %8265 = vst [vmem:[%s14997_s24 + $0x8] sm:$0xff] %v9121_v54  ;;  %v7266_v22 = vsub.f32 %v17579_v61, %v14905_v15  ;;  %v7267_v17 = vsub.f32 %v17580_v36, %v14905_v15  ;;  %v7382_v57 = vadd.f32 1e-12, %v7238_v43  ;;  %v7420_v37 = vmul.f32 %v9536_v34, %v7260_v45 }
 0x489   : > { %8266 = vst [vmem:[%s14997_s24 + $0x10] sm:$0xff] %v9122_v3  ;;  %8267 = vst [vmem:[%s14997_s24 + $0x18] sm:$0xff] %v9123_v12  ;;  %v7421_v0 = vmul.f32 %v9536_v34, %v7261_v58  ;;  %v7422_v42 = vmul.f32 %v9536_v34, %v7262_v10  ;;  %v7423_v31 = vmul.f32 %v9536_v34, %v7263_v13  ;;  %v7079_v10 = vpop.xlane.xlu1 %7078 }
 0x48a   : > { %v7424_v9 = vmul.f32 %v9536_v34, %v7264_v40  ;;  %v7425_v28 = vmul.f32 %v9536_v34, %v7265_v48  ;;  %v7426_v11 = vmul.f32 %v9536_v34, %v7266_v22  ;;  %v7427_v54 = vmul.f32 %v9536_v34, %v7267_v17  ;;  %v7088_v34 = vpop.xlane.xlu0 %7087 }
 0x48b   : > { %v7590_v26 = vmul.f32 %v14916_v52, %v7420_v37  ;;  %v7591_v32 = vmul.f32 %v14910_v47, %v7421_v0  ;;  %v7592_v39 = vmul.f32 %v14930_v62, %v7422_v42  ;;  %v7593_v61 = vmul.f32 %v14922_v16, %v7423_v31 }
 0x48c   : > { %v7594_v15 = vmul.f32 %v14936_v23, %v7424_v9  ;;  %v7595_v43 = vmul.f32 %v14942_v8, %v7425_v28  ;;  %v7596_v58 = vmul.f32 %v14948_v46, %v7426_v11  ;;  %v7597_v45 = vmul.f32 %v14954_v6, %v7427_v54 }
 0x48d   : > { %v7760_v3 = vadd.f32 %v14919_v38, %v7590_v26  ;;  %v7761_v12 = vadd.f32 %v14913_v1, %v7591_v32  ;;  %v7762_v13 = vadd.f32 %v14933_v51, %v7592_v39  ;;  %v7763_v40 = vadd.f32 %v14925_v7, %v7593_v61  ;;  %v6809_v54 = vpop.xlane.xlu1 %6808 }
 0x48e   : > { %v7764_v48 = vadd.f32 %v14939_v56, %v7594_v15  ;;  %v7765_v22 = vadd.f32 %v14945_v2, %v7595_v43  ;;  %v7766_v36 = vadd.f32 %v14951_v4, %v7596_v58  ;;  %v7767_v17 = vadd.f32 %v14957_v55, %v7597_v45  ;;  %v17583_v58 = vld [vmem:[#allocation107_spill] sm:$0xff] }
 0x48f   : > { %v9124_v37 = vpack.c.bf16 %v7761_v12, %v7760_v3  ;;  %v9125_v0 = vpack.c.bf16 %v7763_v40, %v7762_v13  ;;  %9537 = vrsqrt.f32 %v7382_v57  ;;  %v15025_v42 = vmul.f32 0.0009765625, %v6791_v5  ;;  %v6818_v32 = vpop.xlane.xlu0 %6817  ;;  %v17581_v5 = vld [vmem:[#allocation126_spill] sm:$0xff]  ;;  %v17585_v13 = vld [vmem:[#allocation145_spill] sm:$0xff] }
 0x490   : > { %v9126_v31 = vpack.c.bf16 %v7765_v22, %v7764_v48  ;;  %v9127_v9 = vpack.c.bf16 %v7767_v17, %v7766_v36  ;;  %v15027_v28 = vmul.f32 0.0009765625, %v6800_v24  ;;  %v7191_v11 = vmul.f32 0.0009765625, %v7079_v10  ;;  %v17582_v24 = vld [vmem:[#allocation127_spill] sm:$0xff]  ;;  %v17584_v10 = vld [vmem:[#allocation104_spill] sm:$0xff]  ;;  %v17587_v22 = vld [vmem:[#allocation101_spill] sm:$0xff] }
 0x491   : > { %8268 = vst [vmem:[%s14997_s24 + $0x20] sm:$0xff] %v9124_v37  ;;  %8269 = vst [vmem:[%s14997_s24 + $0x28] sm:$0xff] %v9125_v0  ;;  %v7207_v26 = vmul.f32 %v15025_v42, %v15025_v42  ;;  %v7192_v57 = vmul.f32 0.0009765625, %v7088_v34  ;;  %v7268_v61 = vsub.f32 %v17581_v5, %v14927_v44  ;;  %v7269_v43 = vsub.f32 %v17582_v24, %v14927_v44  ;;  %v17586_v48 = vld [vmem:[#allocation55_spill] sm:$0xff]  ;;  %v17590_v5 = vld [vmem:[#allocation136_spill] sm:$0xff] }
 0x492   : > { %8270 = vst [vmem:[%s14997_s24 + $0x30] sm:$0xff] %v9126_v31  ;;  %8271 = vst [vmem:[%s14997_s24 + $0x38] sm:$0xff] %v9127_v9  ;;  %v7208_v39 = vmul.f32 %v15027_v28, %v15027_v28  ;;  %v7270_v45 = vsub.f32 %v17583_v58, %v14927_v44  ;;  %v7271_v3 = vsub.f32 %v17584_v10, %v14927_v44  ;;  %v17588_v37 = vld [vmem:[#allocation79_spill] sm:$0xff]  ;;  %v15053_v9 = vmul.f32 0.0009765625, %v6809_v54  ;;  %v17591_v58 = vld [vmem:[#allocation24_spill] sm:$0xff] }
 0x493   : > { %v7223_v15 = vsub.f32 %v7191_v11, %v7207_v26  ;;  %v7272_v40 = vsub.f32 %v17585_v13, %v14927_v44  ;;  %v7273_v34 = vsub.f32 %v17586_v48, %v14927_v44  ;;  %v7274_v36 = vsub.f32 %v17587_v22, %v14927_v44  ;;  %v7097_v26 = vpop.xlane.xlu1 %7096  ;;  %v17592_v48 = vld [vmem:[#allocation34_spill] sm:$0xff]  ;;  %v17596_v24 = vld [vmem:[#allocation85_spill] sm:$0xff] }
 0x494   : > { %v7224_v12 = vsub.f32 %v7192_v57, %v7208_v39  ;;  %v7275_v0 = vsub.f32 %v17588_v37, %v14927_v44  ;;  %v15055_v11 = vmul.f32 0.0009765625, %v6818_v32  ;;  %v17589_v39 = vld [vmem:[#allocation131_spill] sm:$0xff]  ;;  %v17593_v54 = vld [vmem:[#allocation74_spill] sm:$0xff]  ;;  %v7193_v10 = vmul.f32 0.0009765625, %v7097_v26 }
 0x495   : > { %v7239_v17 = vmax.f32 %v7223_v15, 0.0  ;;  %v7106_v15 = vpop.xlane.xlu0 %7105  ;;  %v17594_v32 = vld [vmem:[#allocation67_spill] sm:$0xff]  ;;  %v7209_v44 = vmul.f32 %v15053_v9, %v15053_v9 }
 0x496   : > { %v7240_v31 = vmax.f32 %v7224_v12, 0.0  ;;  %v17595_v57 = vld [vmem:[#allocation27_spill] sm:$0xff]  ;;  %v7210_v12 = vmul.f32 %v15055_v11, %v15055_v11  ;;  %v7194_v20 = vmul.f32 0.0009765625, %v7106_v15 }
 0x497   : > { %v7383_v13 = vadd.f32 1e-12, %v7239_v17 }
 0x498   : > { %v7384_v37 = vadd.f32 1e-12, %v7240_v31 }
 0x499   : > { %9539 = vrsqrt.f32 %v7383_v13 }
 0x49a   : > { %9541 = vrsqrt.f32 %v7384_v37 }
 0x49c   : > { %v9538_v17 = vpop.eup %9537 }
 0x49d   : > { %v7428_v19 = vmul.f32 %v9538_v17, %v7268_v61  ;;  %v7429_v22 = vmul.f32 %v9538_v17, %v7269_v43  ;;  %v7430_v31 = vmul.f32 %v9538_v17, %v7270_v45  ;;  %v7431_v35 = vmul.f32 %v9538_v17, %v7271_v3 }
 0x49e   : > { %v7432_v60 = vmul.f32 %v9538_v17, %v7272_v40  ;;  %v7433_v59 = vmul.f32 %v9538_v17, %v7273_v34  ;;  %v7434_v50 = vmul.f32 %v9538_v17, %v7274_v36  ;;  %v7435_v41 = vmul.f32 %v9538_v17, %v7275_v0  ;;  %v17597_v36 = vld [vmem:[#allocation132_spill] sm:$0xff] }
 0x49f   : > { %v7598_v13 = vmul.f32 %v14916_v52, %v7428_v19  ;;  %v7599_v26 = vmul.f32 %v14910_v47, %v7429_v22  ;;  %v7600_v37 = vmul.f32 %v14930_v62, %v7430_v31  ;;  %v7601_v27 = vmul.f32 %v14922_v16, %v7431_v35 }
 0x4a0   : > { %v7602_v33 = vmul.f32 %v14936_v23, %v7432_v60  ;;  %v7603_v15 = vmul.f32 %v14942_v8, %v7433_v59  ;;  %v7604_v61 = vmul.f32 %v14948_v46, %v7434_v50  ;;  %v7605_v43 = vmul.f32 %v14954_v6, %v7435_v41 }
 0x4a1   : > { %v7768_v45 = vadd.f32 %v14919_v38, %v7598_v13  ;;  %v7769_v3 = vadd.f32 %v14913_v1, %v7599_v26  ;;  %v7770_v19 = vadd.f32 %v14933_v51, %v7600_v37  ;;  %v7771_v40 = vadd.f32 %v14925_v7, %v7601_v27  ;;  %v17598_v27 = vld [vmem:[#allocation91_spill] sm:$0xff] }
 0x4a2   : > { %v7772_v35 = vadd.f32 %v14939_v56, %v7602_v33  ;;  %v7773_v60 = vadd.f32 %v14945_v2, %v7603_v15  ;;  %v7774_v59 = vadd.f32 %v14951_v4, %v7604_v61  ;;  %v7775_v50 = vadd.f32 %v14957_v55, %v7605_v43  ;;  %v17599_v26 = vld [vmem:[#allocation35_spill] sm:$0xff]  ;;  %v17600_v15 = vld [vmem:[#allocation37_spill] sm:$0xff] }
 0x4a3   : > { %v9128_v34 = vpack.c.bf16 %v7769_v3, %v7768_v45  ;;  %v9129_v41 = vpack.c.bf16 %v7771_v40, %v7770_v19  ;;  %v7284_v0 = vsub.f32 %v17597_v36, %v15027_v28  ;;  %v7225_v22 = vsub.f32 %v7193_v10, %v7209_v44  ;;  %v17601_v43 = vld [vmem:[#allocation75_spill] sm:$0xff]  ;;  %v6827_v19 = vpop.xlane.xlu1 %6826  ;;  %v6836_v10 = vpop.xlane.xlu0 %6835  ;;  %v17602_v44 = vld [vmem:[#allocation72_spill] sm:$0xff] }
 0x4a4   : > { %v9130_v17 = vpack.c.bf16 %v7773_v60, %v7772_v35  ;;  %v9131_v31 = vpack.c.bf16 %v7775_v50, %v7774_v59  ;;  %v7285_v13 = vsub.f32 %v17598_v27, %v15027_v28  ;;  %v7226_v33 = vsub.f32 %v7194_v20, %v7210_v12  ;;  %v17603_v35 = vld [vmem:[#allocation139_spill] sm:$0xff] }
 0x4a5   : > { %8272 = vst [vmem:[%s14997_s24 + $0x40] sm:$0xff] %v9128_v34  ;;  %8273 = vst [vmem:[%s14997_s24 + $0x48] sm:$0xff] %v9129_v41  ;;  %v7286_v37 = vsub.f32 %v17599_v26, %v15027_v28  ;;  %v7287_v61 = vsub.f32 %v17600_v15, %v15027_v28  ;;  %v7288_v45 = vsub.f32 %v17601_v43, %v15027_v28  ;;  %v7241_v3 = vmax.f32 %v7225_v22, 0.0  ;;  %v17604_v59 = vld [vmem:[#allocation143_spill] sm:$0xff] }
 0x4a6   : > { %8274 = vst [vmem:[%s14997_s24 + $0x50] sm:$0xff] %v9130_v17  ;;  %8275 = vst [vmem:[%s14997_s24 + $0x58] sm:$0xff] %v9131_v31  ;;  %v7289_v40 = vsub.f32 %v17602_v44, %v15027_v28  ;;  %v7290_v20 = vsub.f32 %v14641_v53, %v15027_v28  ;;  %v7291_v12 = vsub.f32 %v14644_v21, %v15027_v28  ;;  %v9540_v27 = vpop.eup %9539  ;;  %v15125_v26 = vmax.f32 %v7226_v33, 0.0 }
 0x4a7   : > { %v15123_v53 = vadd.f32 1e-12, %v7241_v3  ;;  %v15127_v21 = vmul.f32 0.0009765625, %v6827_v19  ;;  %v15129_v28 = vmul.f32 0.0009765625, %v6836_v10  ;;  %v9542_v15 = vpop.eup %9541  ;;  %v17608_v43 = vsub.f32 %v17589_v39, %v15025_v42 }
 0x4a8   : > { %v17609_v22 = vsub.f32 %v17590_v5, %v15025_v42  ;;  %v17610_v31 = vsub.f32 %v17591_v58, %v15025_v42  ;;  %v17611_v33 = vsub.f32 %v17592_v48, %v15025_v42  ;;  %v17612_v10 = vsub.f32 %v17593_v54, %v15025_v42 }
 0x4a9   : > { %v7436_v44 = vmul.f32 %v9540_v27, %v17608_v43  ;;  %v17613_v39 = vsub.f32 %v17594_v32, %v15025_v42  ;;  %v17614_v5 = vsub.f32 %v17595_v57, %v15025_v42  ;;  %v17615_v58 = vsub.f32 %v17596_v24, %v15025_v42 }
 0x4aa   : > { %v7437_v41 = vmul.f32 %v9540_v27, %v17609_v22  ;;  %v7438_v3 = vmul.f32 %v9540_v27, %v17610_v31  ;;  %v7439_v19 = vmul.f32 %v9540_v27, %v17611_v33  ;;  %v7440_v50 = vmul.f32 %v9540_v27, %v17612_v10 }
 0x4ab   : > { %v7441_v43 = vmul.f32 %v9540_v27, %v17613_v39  ;;  %v7442_v22 = vmul.f32 %v9540_v27, %v17614_v5  ;;  %v7443_v31 = vmul.f32 %v9540_v27, %v17615_v58  ;;  %v7606_v60 = vmul.f32 %v14916_v52, %v7436_v44  ;;  %v7115_v27 = vpop.xlane.xlu1 %7114 }
 0x4ac   : > { %v7607_v48 = vmul.f32 %v14910_v47, %v7437_v41  ;;  %v7608_v33 = vmul.f32 %v14930_v62, %v7438_v3  ;;  %v7609_v54 = vmul.f32 %v14922_v16, %v7439_v19  ;;  %v7610_v10 = vmul.f32 %v14936_v23, %v7440_v50 }
 0x4ad   : > { %v7611_v32 = vmul.f32 %v14942_v8, %v7441_v43  ;;  %v7612_v39 = vmul.f32 %v14948_v46, %v7442_v22  ;;  %v7613_v57 = vmul.f32 %v14954_v6, %v7443_v31  ;;  %v7776_v5 = vadd.f32 %v14919_v38, %v7606_v60  ;;  %v7124_v43 = vpop.xlane.xlu0 %7123 }
 0x4ae   : > { %v7777_v42 = vadd.f32 %v14913_v1, %v7607_v48  ;;  %v7778_v24 = vadd.f32 %v14933_v51, %v7608_v33  ;;  %v7779_v41 = vadd.f32 %v14925_v7, %v7609_v54  ;;  %v7780_v44 = vadd.f32 %v14939_v56, %v7610_v10 }
 0x4af   : > { %v7781_v50 = vadd.f32 %v14945_v2, %v7611_v32  ;;  %v7782_v3 = vadd.f32 %v14951_v4, %v7612_v39  ;;  %v7783_v19 = vadd.f32 %v14957_v55, %v7613_v57  ;;  %v7444_v58 = vmul.f32 %v9542_v15, %v7284_v0 }
 0x4b0   : > { %v9132_v60 = vpack.c.bf16 %v7777_v42, %v7776_v5  ;;  %v9133_v22 = vpack.c.bf16 %v7779_v41, %v7778_v24  ;;  %v7445_v31 = vmul.f32 %v9542_v15, %v7285_v13  ;;  %v7446_v54 = vmul.f32 %v9542_v15, %v7286_v37 }
 0x4b1   : > { %v9134_v48 = vpack.c.bf16 %v7781_v50, %v7780_v44  ;;  %v9135_v33 = vpack.c.bf16 %v7783_v19, %v7782_v3  ;;  %v7447_v17 = vmul.f32 %v9542_v15, %v7287_v61  ;;  %v7448_v10 = vmul.f32 %v9542_v15, %v7288_v45 }
 0x4b2   : > { %8276 = vst [vmem:[%s14997_s24 + $0x60] sm:$0xff] %v9132_v60  ;;  %8277 = vst [vmem:[%s14997_s24 + $0x68] sm:$0xff] %v9133_v22  ;;  %v7449_v36 = vmul.f32 %v9542_v15, %v7289_v40  ;;  %v7450_v32 = vmul.f32 %v9542_v15, %v7290_v20  ;;  %v7451_v34 = vmul.f32 %v9542_v15, %v7291_v12  ;;  %v6845_v40 = vpop.xlane.xlu1 %6844  ;;  %9543 = vrsqrt.f32 %v15123_v53  ;;  %v17616_v22 = vld [vmem:[#allocation69_spill] sm:$0xff] }
 0x4b3   : > { %8278 = vst [vmem:[%s14997_s24 + $0x70] sm:$0xff] %v9134_v48  ;;  %8279 = vst [vmem:[%s14997_s24 + $0x78] sm:$0xff] %v9135_v33  ;;  %v7614_v39 = vmul.f32 %v14916_v52, %v7444_v58  ;;  %v7615_v57 = vmul.f32 %v14910_v47, %v7445_v31  ;;  %v7616_v5 = vmul.f32 %v14930_v62, %v7446_v54  ;;  %v7386_v3 = vadd.f32 1e-12, %v15125_v26 }
 0x4b4   : > { %v7617_v0 = vmul.f32 %v14922_v16, %v7447_v17  ;;  %v7618_v13 = vmul.f32 %v14936_v23, %v7448_v10  ;;  %v7619_v37 = vmul.f32 %v14942_v8, %v7449_v36  ;;  %v7620_v61 = vmul.f32 %v14948_v46, %v7450_v32  ;;  %v6854_v17 = vpop.xlane.xlu0 %6853  ;;  %v17617_v10 = vld [vmem:[#allocation140_spill] sm:$0xff] }
 0x4b5   : > { %v7621_v45 = vmul.f32 %v14954_v6, %v7451_v34  ;;  %v7784_v20 = vadd.f32 %v14919_v38, %v7614_v39  ;;  %v7785_v12 = vadd.f32 %v14913_v1, %v7615_v57  ;;  %v7786_v15 = vadd.f32 %v14933_v51, %v7616_v5  ;;  %v17618_v39 = vld [vmem:[#allocation84_spill] sm:$0xff]  ;;  %v17619_v5 = vld [vmem:[#allocation42_spill] sm:$0xff] }
 0x4b6   : > { %v7787_v42 = vadd.f32 %v14925_v7, %v7617_v0  ;;  %v7788_v24 = vadd.f32 %v14939_v56, %v7618_v13  ;;  %v7789_v36 = vadd.f32 %v14945_v2, %v7619_v37  ;;  %v7790_v41 = vadd.f32 %v14951_v4, %v7620_v61  ;;  %v7133_v13 = vpop.xlane.xlu1 %7132 }
 0x4b7   : > { %v7791_v34 = vadd.f32 %v14957_v55, %v7621_v45  ;;  %v9136_v44 = vpack.c.bf16 %v7785_v12, %v7784_v20  ;;  %v7211_v48 = vmul.f32 %v15127_v21, %v15127_v21  ;;  %v7195_v33 = vmul.f32 0.0009765625, %v7115_v27  ;;  %v17620_v27 = vld [vmem:[#allocation148_spill] sm:$0xff]  ;;  %v17621_v20 = vld [vmem:[#allocation83_spill] sm:$0xff] }
 0x4b8   : > { %v9137_v50 = vpack.c.bf16 %v7787_v42, %v7786_v15  ;;  %v9138_v19 = vpack.c.bf16 %v7789_v36, %v7788_v24  ;;  %v7212_v54 = vmul.f32 %v15129_v28, %v15129_v28  ;;  %v7196_v53 = vmul.f32 0.0009765625, %v7124_v43  ;;  %v7142_v45 = vpop.xlane.xlu0 %7141  ;;  %v17622_v12 = vld [vmem:[#allocation64_spill] sm:$0xff]  ;;  %v17629_v24 = vld [vmem:[#allocation29_spill] sm:$0xff]  ;;  %v17633_v42 = vld [vmem:[#allocation87_spill] sm:$0xff] }
 0x4b9   : > { %v9139_v60 = vpack.c.bf16 %v7791_v34, %v7790_v41  ;;  %8280 = vst [vmem:[%s14997_s24 + $0x80] sm:$0xff] %v9136_v44  ;;  %v7299_v26 = vsub.f32 %v14695_v25, %v15053_v9  ;;  %9545 = vrsqrt.f32 %v7386_v3  ;;  %v7227_v43 = vsub.f32 %v7195_v33, %v7211_v48  ;;  %v17623_v36 = vld [vmem:[#allocation144_spill] sm:$0xff]  ;;  %v17624_v34 = vld [vmem:[#allocation138_spill] sm:$0xff]  ;;  %v17626_v48 = vld [vmem:[#allocation45_spill] sm:$0xff] }
 0x4ba   : > { %8281 = vst [vmem:[%s14997_s24 + $0x88] sm:$0xff] %v9137_v50  ;;  %8282 = vst [vmem:[%s14997_s24 + $0x90] sm:$0xff] %v9138_v19  ;;  %v7228_v61 = vsub.f32 %v7196_v53, %v7212_v54  ;;  %v17625_v19 = vld [vmem:[#allocation44_spill] sm:$0xff]  ;;  %v15231_v54 = vmul.f32 0.0009765625, %v6845_v40  ;;  %v15233_v53 = vmul.f32 0.0009765625, %v6854_v17  ;;  %v17630_v41 = vld [vmem:[#allocation102_spill] sm:$0xff]  ;;  %v6863_v17 = vpop.xlane.xlu1 %6862  ;;  %v17644_v57 = vsub.f32 %v17604_v59, %v15053_v9 }
 0x4bb   : > { %8283 = vst [vmem:[%s14997_s24 + $0x98] sm:$0xff] %v9139_v60  ;;  %v7243_v50 = vmax.f32 %v7227_v43, 0.0  ;;  %v15243_v25 = vmul.f32 0.0009765625, %v7133_v13  ;;  %v15245_v40 = vmul.f32 0.0009765625, %v7142_v45  ;;  %v17632_v33 = vld [vmem:[#allocation152_spill] sm:$0xff]  ;;  %v15271_v58 = vmul.f32 0.0009765625, %v6863_v17 }
 0x4bc   : > { %v7244_v3 = vmax.f32 %v7228_v61, 0.0  ;;  %17627 = vst [vmem:[#allocation134_spill] sm:$0xff] %v15231_v54  ;;  %17628 = vst [vmem:[#allocation124_spill] sm:$0xff] %v15233_v53  ;;  %v17634_v15 = vld [vmem:[#allocation108_spill] sm:$0xff]  ;;  %v6872_v32 = vpop.xlane.xlu0 %6871  ;;  %v15259_v45 = vmul.f32 %v15231_v54, %v15231_v54  ;;  %v15263_v37 = vmul.f32 %v15233_v53, %v15233_v53  ;;  %v17643_v60 = vsub.f32 %v17603_v35, %v15053_v9  ;;  %v17645_v17 = vld [vmem:[#allocation38_spill] sm:$0xff] }
 0x4bd   : > { %v7387_v61 = vadd.f32 1e-12, %v7243_v50  ;;  %17631 = vst [vmem:[#allocation62_spill] sm:$0xff] %v15243_v25  ;;  %v17635_v50 = vld [vmem:[#allocation46_spill] sm:$0xff]  ;;  %17641 = vst [vmem:[#allocation57_spill] sm:$0xff] %v15271_v58  ;;  %v15277_v54 = vmul.f32 0.0009765625, %v6872_v32  ;;  %v17646_v58 = vsub.f32 %v17645_v17, %v15053_v9  ;;  %v17651_v35 = vsub.f32 %v17616_v22, %v15053_v9 }
 0x4be   : > { %v7388_v44 = vadd.f32 1e-12, %v7244_v3  ;;  %v17636_v3 = vld [vmem:[#allocation157_spill] sm:$0xff]  ;;  %17637 = vst [vmem:[#allocation70_spill] sm:$0xff] %v15259_v45  ;;  %17638 = vst [vmem:[#allocation22_spill] sm:$0xff] %v15263_v37  ;;  %v17647_v43 = vld [vmem:[#allocation40_spill] sm:$0xff]  ;;  %v17652_v59 = vsub.f32 %v14693_v63, %v15053_v9 }
 0x4bf   : > { %9547 = vrsqrt.f32 %v7387_v61  ;;  %v9544_v61 = vpop.eup %9543  ;;  %17642 = vst [vmem:[#allocation142_spill] sm:$0xff] %v15277_v54  ;;  %v17648_v13 = vsub.f32 %v17647_v43, %v15053_v9  ;;  %v17649_v25 = vld [vmem:[#allocation137_spill] sm:$0xff] }
 0x4c0   : > { %9549 = vrsqrt.f32 %v7388_v44  ;;  %v7452_v0 = vmul.f32 %v9544_v61, %v17643_v60  ;;  %v7453_v31 = vmul.f32 %v9544_v61, %v17644_v57  ;;  %v7454_v44 = vmul.f32 %v9544_v61, %v17646_v58 }
 0x4c1   : > { %v7455_v45 = vmul.f32 %v9544_v61, %v17648_v13  ;;  %v17650_v32 = vsub.f32 %v17649_v25, %v15053_v9  ;;  %v7457_v60 = vmul.f32 %v9544_v61, %v17651_v35  ;;  %v7458_v57 = vmul.f32 %v9544_v61, %v17652_v59 }
 0x4c2   : > { %v7459_v54 = vmul.f32 %v9544_v61, %v7299_v26  ;;  %v7622_v17 = vmul.f32 %v14916_v52, %v7452_v0  ;;  %v7623_v58 = vmul.f32 %v14910_v47, %v7453_v31  ;;  %v7624_v43 = vmul.f32 %v14930_v62, %v7454_v44 }
 0x4c3   : > { %v7456_v53 = vmul.f32 %v9544_v61, %v17650_v32  ;;  %v7625_v13 = vmul.f32 %v14922_v16, %v7455_v45  ;;  %v7627_v32 = vmul.f32 %v14942_v8, %v7457_v60  ;;  %v7628_v22 = vmul.f32 %v14948_v46, %v7458_v57 }
 0x4c4   : > { %v7629_v35 = vmul.f32 %v14954_v6, %v7459_v54  ;;  %v7792_v63 = vadd.f32 %v14919_v38, %v7622_v17  ;;  %v7793_v9 = vadd.f32 %v14913_v1, %v7623_v58  ;;  %v7794_v31 = vadd.f32 %v14933_v51, %v7624_v43 }
 0x4c5   : > { %v7626_v25 = vmul.f32 %v14936_v23, %v7456_v53  ;;  %v7795_v26 = vadd.f32 %v14925_v7, %v7625_v13  ;;  %v7797_v53 = vadd.f32 %v14945_v2, %v7627_v32  ;;  %v7798_v45 = vadd.f32 %v14951_v4, %v7628_v22 }
 0x4c6   : > { %v9546_v37 = vpop.eup %9545  ;;  %v7799_v61 = vadd.f32 %v14957_v55, %v7629_v35  ;;  %v9140_v54 = vpack.c.bf16 %v7793_v9, %v7792_v63  ;;  %v17653_v60 = vsub.f32 %v17617_v10, %v15055_v11  ;;  %v17654_v57 = vsub.f32 %v17618_v39, %v15055_v11 }
 0x4c7   : > { %v7796_v0 = vadd.f32 %v14939_v56, %v7626_v25  ;;  %v9141_v44 = vpack.c.bf16 %v7795_v26, %v7794_v31  ;;  %v17655_v13 = vsub.f32 %v17619_v5, %v15055_v11  ;;  %v17656_v32 = vsub.f32 %v17620_v27, %v15055_v11 }
 0x4c8   : > { %v7460_v59 = vmul.f32 %v9546_v37, %v17653_v60  ;;  %v7461_v17 = vmul.f32 %v9546_v37, %v17654_v57  ;;  %v9143_v43 = vpack.c.bf16 %v7799_v61, %v7798_v45  ;;  %8284 = vst [vmem:[%s14997_s24 + $0xa0] sm:$0xff] %v9140_v54  ;;  %v17657_v10 = vsub.f32 %v17621_v20, %v15055_v11 }
 0x4c9   : > { %v9142_v58 = vpack.c.bf16 %v7797_v53, %v7796_v0  ;;  %v7462_v25 = vmul.f32 %v9546_v37, %v17655_v13  ;;  %v7463_v22 = vmul.f32 %v9546_v37, %v17656_v32  ;;  %8285 = vst [vmem:[%s14997_s24 + $0xa8] sm:$0xff] %v9141_v44  ;;  %v17658_v39 = vsub.f32 %v17622_v12, %v15055_v11 }
 0x4ca   : > { %v7464_v35 = vmul.f32 %v9546_v37, %v17657_v10  ;;  %v17659_v9 = vsub.f32 %v14710_v29, %v15055_v11  ;;  %v17660_v5 = vsub.f32 %v14712_v14, %v15055_v11  ;;  %8287 = vst [vmem:[%s14997_s24 + $0xb8] sm:$0xff] %v9143_v43  ;;  %v7630_v27 = vmul.f32 %v14916_v52, %v7460_v59 }
 0x4cb   : > { %v7465_v63 = vmul.f32 %v9546_v37, %v17658_v39  ;;  %8286 = vst [vmem:[%s14997_s24 + $0xb0] sm:$0xff] %v9142_v58  ;;  %v7631_v0 = vmul.f32 %v14910_v47, %v7461_v17  ;;  %v7632_v20 = vmul.f32 %v14930_v62, %v7462_v25  ;;  %v7633_v53 = vmul.f32 %v14922_v16, %v7463_v22 }
 0x4cc   : > { %v7466_v31 = vmul.f32 %v9546_v37, %v17659_v9  ;;  %v7467_v26 = vmul.f32 %v9546_v37, %v17660_v5  ;;  %v9548_v12 = vpop.eup %9547  ;;  %v7634_v45 = vmul.f32 %v14936_v23, %v7464_v35  ;;  %v7800_v11 = vadd.f32 %v14919_v38, %v7630_v27 }
 0x4cd   : > { %v7635_v29 = vmul.f32 %v14942_v8, %v7465_v63  ;;  %v7801_v37 = vadd.f32 %v14913_v1, %v7631_v0  ;;  %v7802_v54 = vadd.f32 %v14933_v51, %v7632_v20  ;;  %v7803_v44 = vadd.f32 %v14925_v7, %v7633_v53  ;;  %v9550_v60 = vpop.eup %9549 }
 0x4ce   : > { %v7636_v61 = vmul.f32 %v14948_v46, %v7466_v31  ;;  %v7637_v14 = vmul.f32 %v14954_v6, %v7467_v26  ;;  %v7804_v59 = vadd.f32 %v14939_v56, %v7634_v45  ;;  %v17661_v25 = vsub.f32 %v17623_v36, %v15127_v21 }
 0x4cf   : > { %v7805_v57 = vadd.f32 %v14945_v2, %v7635_v29  ;;  %v9144_v43 = vpack.c.bf16 %v7801_v37, %v7800_v11  ;;  %v9145_v13 = vpack.c.bf16 %v7803_v44, %v7802_v54  ;;  %v17662_v22 = vsub.f32 %v17624_v34, %v15127_v21 }
 0x4d0   : > { %v7806_v17 = vadd.f32 %v14951_v4, %v7636_v61  ;;  %v7807_v58 = vadd.f32 %v14957_v55, %v7637_v14  ;;  %v7468_v32 = vmul.f32 %v9548_v12, %v17661_v25  ;;  %v17663_v63 = vsub.f32 %v17625_v19, %v15127_v21 }
 0x4d1   : > { %v7469_v10 = vmul.f32 %v9548_v12, %v17662_v22  ;;  %v9146_v35 = vpack.c.bf16 %v7805_v57, %v7804_v59  ;;  %v17664_v31 = vsub.f32 %v17626_v48, %v15127_v21  ;;  %8288 = vst [vmem:[%s14997_s24 + $0xc0] sm:$0xff] %v9144_v43  ;;  %8289 = vst [vmem:[%s14997_s24 + $0xc8] sm:$0xff] %v9145_v13 }
 0x4d2   : > { %v9147_v39 = vpack.c.bf16 %v7807_v58, %v7806_v17  ;;  %v7470_v9 = vmul.f32 %v9548_v12, %v17663_v63  ;;  %v17665_v36 = vsub.f32 %v17629_v24, %v15127_v21  ;;  %v17666_v34 = vsub.f32 %v17630_v41, %v15127_v21 }
 0x4d3   : > { %v7471_v5 = vmul.f32 %v9548_v12, %v17664_v31  ;;  %v17667_v0 = vsub.f32 %v14745_v18, %v15127_v21  ;;  %v17668_v19 = vsub.f32 %v14747_v49, %v15127_v21  ;;  %8290 = vst [vmem:[%s14997_s24 + $0xd0] sm:$0xff] %v9146_v35  ;;  %v7638_v48 = vmul.f32 %v14916_v52, %v7468_v32  ;;  %v7151_v49 = vpop.xlane.xlu1 %7150 }
 0x4d4   : > { %v7472_v26 = vmul.f32 %v9548_v12, %v17665_v36  ;;  %v7473_v27 = vmul.f32 %v9548_v12, %v17666_v34  ;;  %8291 = vst [vmem:[%s14997_s24 + $0xd8] sm:$0xff] %v9147_v39  ;;  %v7639_v45 = vmul.f32 %v14910_v47, %v7469_v10  ;;  %v7640_v24 = vmul.f32 %v14930_v62, %v7470_v9 }
 0x4d5   : > { %v7474_v20 = vmul.f32 %v9548_v12, %v17667_v0  ;;  %v7475_v53 = vmul.f32 %v9548_v12, %v17668_v19  ;;  %v7641_v29 = vmul.f32 %v14922_v16, %v7471_v5  ;;  %v7808_v21 = vadd.f32 %v14919_v38, %v7638_v48  ;;  %v17674_v5 = vld [vmem:[#allocation116_spill] sm:$0xff] }
 0x4d6   : > { %v7642_v41 = vmul.f32 %v14936_v23, %v7472_v26  ;;  %v7643_v61 = vmul.f32 %v14942_v8, %v7473_v27  ;;  %v7809_v12 = vadd.f32 %v14913_v1, %v7639_v45  ;;  %v7810_v11 = vadd.f32 %v14933_v51, %v7640_v24 }
 0x4d7   : > { %v7644_v18 = vmul.f32 %v14948_v46, %v7474_v20  ;;  %v7645_v14 = vmul.f32 %v14954_v6, %v7475_v53  ;;  %v7811_v37 = vadd.f32 %v14925_v7, %v7641_v29  ;;  %v17669_v43 = vsub.f32 %v17632_v33, %v15129_v28  ;;  %v6881_v53 = vpop.xlane.xlu1 %6880 }
 0x4d8   : > { %v7812_v54 = vadd.f32 %v14939_v56, %v7642_v41  ;;  %v7813_v44 = vadd.f32 %v14945_v2, %v7643_v61  ;;  %v9148_v17 = vpack.c.bf16 %v7809_v12, %v7808_v21  ;;  %v17670_v25 = vsub.f32 %v17633_v42, %v15129_v28 }
 0x4d9   : > { %v7814_v59 = vadd.f32 %v14951_v4, %v7644_v18  ;;  %v7815_v57 = vadd.f32 %v14957_v55, %v7645_v14  ;;  %v9149_v58 = vpack.c.bf16 %v7811_v37, %v7810_v11  ;;  %v7476_v13 = vmul.f32 %v9550_v60, %v17669_v43 }
 0x4da   : > { %v7477_v32 = vmul.f32 %v9550_v60, %v17670_v25  ;;  %v9150_v22 = vpack.c.bf16 %v7813_v44, %v7812_v54  ;;  %v17671_v35 = vsub.f32 %v17634_v15, %v15129_v28  ;;  %v17672_v63 = vsub.f32 %v17635_v50, %v15129_v28  ;;  %8292 = vst [vmem:[%s14997_s24 + $0xe0] sm:$0xff] %v9148_v17  ;;  %v17677_v15 = vld [vmem:[#allocation141_spill] sm:$0xff]  ;;  %v17679_v54 = vld [vmem:[#allocation62_spill] sm:$0xff] }
 0x4db   : > { %v9151_v10 = vpack.c.bf16 %v7815_v57, %v7814_v59  ;;  %8293 = vst [vmem:[%s14997_s24 + $0xe8] sm:$0xff] %v9149_v58  ;;  %v17673_v33 = vsub.f32 %v17636_v3, %v15129_v28  ;;  %v17675_v42 = vsub.f32 %v17674_v5, %v15129_v28  ;;  %v17676_v26 = vsub.f32 %v14752_v30, %v15129_v28  ;;  %v17680_v44 = vld [vmem:[#allocation70_spill] sm:$0xff]  ;;  %v17688_v5 = vld [vmem:[#allocation57_spill] sm:$0xff] }
 0x4dc   : > { %v7478_v39 = vmul.f32 %v9550_v60, %v17671_v35  ;;  %v7479_v9 = vmul.f32 %v9550_v60, %v17672_v63  ;;  %v17678_v27 = vsub.f32 %v17677_v15, %v15129_v28  ;;  %8294 = vst [vmem:[%s14997_s24 + $0xf0] sm:$0xff] %v9150_v22  ;;  %v7646_v50 = vmul.f32 %v14916_v52, %v7476_v13  ;;  %v17682_v17 = vld [vmem:[#allocation22_spill] sm:$0xff]  ;;  %v17685_v22 = vld [vmem:[#allocation121_spill] sm:$0xff]  ;;  %v17686_v63 = vld [vmem:[#allocation155_spill] sm:$0xff] }
 0x4dd   : > { %v7480_v31 = vmul.f32 %v9550_v60, %v17673_v33  ;;  %v7481_v36 = vmul.f32 %v9550_v60, %v17675_v42  ;;  %v7482_v34 = vmul.f32 %v9550_v60, %v17676_v26  ;;  %8295 = vst [vmem:[%s14997_s24 + $0xf8] sm:$0xff] %v9151_v10  ;;  %v7647_v20 = vmul.f32 %v14910_v47, %v7477_v32  ;;  %v17684_v32 = vld [vmem:[#allocation134_spill] sm:$0xff]  ;;  %v17687_v33 = vld [vmem:[#allocation47_spill] sm:$0xff] }
 0x4de   : > { %v7483_v0 = vmul.f32 %v9550_v60, %v17678_v27  ;;  %v7648_v3 = vmul.f32 %v14930_v62, %v7478_v39  ;;  %v7649_v19 = vmul.f32 %v14922_v16, %v7479_v9  ;;  %v7160_v60 = vpop.xlane.xlu0 %7159  ;;  %v7816_v24 = vadd.f32 %v14919_v38, %v7646_v50  ;;  %v7169_v39 = vpop.xlane.xlu1 %7168 }
 0x4df   : > { %v7650_v48 = vmul.f32 %v14936_v23, %v7480_v31  ;;  %v7651_v30 = vmul.f32 %v14942_v8, %v7481_v36  ;;  %v7652_v45 = vmul.f32 %v14948_v46, %v7482_v34  ;;  %v7817_v29 = vadd.f32 %v14913_v1, %v7647_v20  ;;  %v17689_v34 = vld [vmem:[#allocation142_spill] sm:$0xff]  ;;  %v17721_v31 = vld [vmem:[#allocation88_spill] sm:$0xff] }
 0x4e0   : > { %v7653_v28 = vmul.f32 %v14954_v6, %v7483_v0  ;;  %v7818_v41 = vadd.f32 %v14933_v51, %v7648_v3  ;;  %v7819_v61 = vadd.f32 %v14925_v7, %v7649_v19  ;;  %v17681_v59 = vsub.f32 %v17679_v54, %v17680_v44  ;;  %v17690_v0 = vld [vmem:[#allocation48_spill] sm:$0xff]  ;;  %v17691_v20 = vld [vmem:[#allocation158_spill] sm:$0xff]  ;;  %v17700_v54 = vld [vmem:[#allocation49_spill] sm:$0xff] }
 0x4e1   : > { %v7820_v18 = vadd.f32 %v14939_v56, %v7650_v48  ;;  %v7821_v14 = vadd.f32 %v14945_v2, %v7651_v30  ;;  %v7822_v21 = vadd.f32 %v14951_v4, %v7652_v45  ;;  %v9152_v11 = vpack.c.bf16 %v7817_v29, %v7816_v24  ;;  %v17692_v19 = vld [vmem:[#allocation118_spill] sm:$0xff]  ;;  %v17693_v45 = vld [vmem:[#allocation28_spill] sm:$0xff] }
 0x4e2   : > { %v7823_v12 = vadd.f32 %v14957_v55, %v7653_v28  ;;  %v9153_v37 = vpack.c.bf16 %v7819_v61, %v7818_v41  ;;  %v7245_v57 = vmax.f32 %v17681_v59, 0.0  ;;  %v17683_v58 = vsub.f32 %v15245_v40, %v17682_v17  ;;  %v6890_v36 = vpop.xlane.xlu0 %6889  ;;  %v17694_v28 = vld [vmem:[#allocation86_spill] sm:$0xff]  ;;  %v17695_v29 = vld [vmem:[#allocation124_spill] sm:$0xff]  ;;  %v6899_v17 = vpop.xlane.xlu1 %6898 }
 0x4e3   : > { %v9154_v13 = vpack.c.bf16 %v7821_v14, %v7820_v18  ;;  %8296 = vst [vmem:[%s14997_s24 + $0x100] sm:$0xff] %v9152_v11  ;;  %v7215_v40 = vmul.f32 %v17688_v5, %v17688_v5  ;;  %v7199_v42 = vmul.f32 0.0009765625, %v7151_v49  ;;  %v7216_v15 = vmul.f32 %v17689_v34, %v17689_v34  ;;  %v17696_v41 = vld [vmem:[#allocation122_spill] sm:$0xff]  ;;  %v17697_v18 = vld [vmem:[#allocation97_spill] sm:$0xff] }
 0x4e4   : > { %v7246_v43 = vmax.f32 %v17683_v58, 0.0  ;;  %v9155_v25 = vpack.c.bf16 %v7823_v12, %v7822_v21  ;;  %8297 = vst [vmem:[%s14997_s24 + $0x108] sm:$0xff] %v9153_v37  ;;  %v7389_v35 = vadd.f32 1e-12, %v7245_v57  ;;  %v7200_v27 = vmul.f32 0.0009765625, %v7160_v60  ;;  %v17698_v21 = vld [vmem:[#allocation111_spill] sm:$0xff] }
 0x4e5   : > { %8298 = vst [vmem:[%s14997_s24 + $0x110] sm:$0xff] %v9154_v13  ;;  %v7327_v50 = vsub.f32 %v17690_v0, %v17684_v32  ;;  %v7328_v3 = vsub.f32 %v17691_v20, %v17684_v32  ;;  %v7329_v48 = vsub.f32 %v17692_v19, %v17684_v32  ;;  %v7231_v30 = vsub.f32 %v7199_v42, %v7215_v40  ;;  %v17702_v58 = vld [vmem:[#allocation146_spill] sm:$0xff]  ;;  %v17708_v19 = vld [vmem:[#allocation149_spill] sm:$0xff] }
 0x4e6   : > { %8299 = vst [vmem:[%s14997_s24 + $0x118] sm:$0xff] %v9155_v25  ;;  %9551 = vrsqrt.f32 %v7389_v35  ;;  %v7390_v26 = vadd.f32 1e-12, %v7246_v43  ;;  %v7330_v49 = vsub.f32 %v17693_v45, %v17684_v32  ;;  %v7331_v24 = vsub.f32 %v17694_v28, %v17684_v32  ;;  %v17703_v13 = vld [vmem:[#allocation94_spill] sm:$0xff]  ;;  %v17709_v45 = vld [vmem:[#allocation135_spill] sm:$0xff]  ;;  %v17722_v43 = vld [vmem:[#allocation16_spill] sm:$0xff] }
 0x4e7   : > { %v7232_v60 = vsub.f32 %v7200_v27, %v7216_v15  ;;  %v7247_v11 = vmax.f32 %v7231_v30, 0.0  ;;  %v15484_v37 = vmul.f32 0.0009765625, %v6881_v53  ;;  %v15488_v57 = vmul.f32 0.0009765625, %v6890_v36  ;;  %v17704_v35 = vld [vmem:[#allocation154_spill] sm:$0xff]  ;;  %v7178_v53 = vpop.xlane.xlu0 %7177  ;;  %v17705_v15 = vld [vmem:[#allocation151_spill] sm:$0xff]  ;;  %v17711_v27 = vld [vmem:[#allocation133_spill] sm:$0xff] }
 0x4e8   : > { %9553 = vrsqrt.f32 %v7390_v26  ;;  %v7201_v42 = vmul.f32 0.0009765625, %v7169_v39  ;;  %v17706_v26 = vld [vmem:[#allocation156_spill] sm:$0xff]  ;;  %v17707_v36 = vld [vmem:[#allocation163_spill] sm:$0xff]  ;;  %v7202_v44 = vmul.f32 0.0009765625, %v7178_v53  ;;  %v15518_v40 = vmul.f32 0.0009765625, %v6899_v17  ;;  %v7187_v53 = vpop.xlane.xlu1 %7186  ;;  %v17719_v30 = vld [vmem:[#allocation21_spill] sm:$0xff] }
 0x4e9   : > { %17699 = vst [vmem:[#allocation66_spill] sm:$0xff] %v15484_v37  ;;  %v7248_v59 = vmax.f32 %v7232_v60, 0.0  ;;  %17701 = vst [vmem:[#allocation59_spill] sm:$0xff] %v15488_v57  ;;  %v17710_v60 = vld [vmem:[#allocation32_spill] sm:$0xff]  ;;  %v7391_v39 = vadd.f32 1e-12, %v7247_v11  ;;  %v7217_v25 = vmul.f32 %v15484_v37, %v15484_v37  ;;  %v7218_v20 = vmul.f32 %v15488_v57, %v15488_v57 }
 0x4ea   : > { %v17713_v28 = vld [vmem:[#allocation159_spill] sm:$0xff]  ;;  %17714 = vst [vmem:[#allocation63_spill] sm:$0xff] %v15518_v40  ;;  %v17718_v37 = vld [vmem:[#allocation153_spill] sm:$0xff]  ;;  %v15542_v14 = vmul.f32 %v15518_v40, %v15518_v40  ;;  %v17728_v11 = vsub.f32 %v17686_v63, %v17684_v32 }
 0x4eb   : > { %v7392_v0 = vadd.f32 1e-12, %v7248_v59  ;;  %v7233_v61 = vsub.f32 %v7201_v42, %v7217_v25  ;;  %v17717_v59 = vld [vmem:[#allocation150_spill] sm:$0xff]  ;;  %v7234_v57 = vsub.f32 %v7202_v44, %v7218_v20  ;;  %9555 = vrsqrt.f32 %v7391_v39  ;;  %v17720_v25 = vld [vmem:[#allocation105_spill] sm:$0xff] }
 0x4ec   : > { %17725 = vst [vmem:[#allocation68_spill] sm:$0xff] %v15542_v14  ;;  %v17727_v39 = vsub.f32 %v17685_v22, %v17684_v32 }
 0x4ed   : > { %v7249_v17 = vmax.f32 %v7233_v61, 0.0  ;;  %9557 = vrsqrt.f32 %v7392_v0  ;;  %v15538_v10 = vmax.f32 %v7234_v57, 0.0  ;;  %v15544_v61 = vmul.f32 0.0009765625, %v7187_v53 }
 0x4ee   : > { %v17729_v0 = vsub.f32 %v17687_v33, %v17684_v32 }
 0x4ef   : > { %v15536_v20 = vadd.f32 1e-12, %v7249_v17  ;;  %17724 = vst [vmem:[#allocation120_spill] sm:$0xff] %v15538_v10  ;;  %17726 = vst [vmem:[#allocation92_spill] sm:$0xff] %v15544_v61 }
 0x4f1   : > { %17723 = vst [vmem:[#allocation61_spill] sm:$0xff] %v15536_v20 }
 0x4f3   : > { %v9552_v44 = vpop.eup %9551 }
 0x4f4   : > { %v7484_v42 = vmul.f32 %v9552_v44, %v17727_v39  ;;  %v7485_v9 = vmul.f32 %v9552_v44, %v17728_v11  ;;  %v7486_v17 = vmul.f32 %v9552_v44, %v17729_v0  ;;  %v7487_v57 = vmul.f32 %v9552_v44, %v7327_v50 }
 0x4f5   : > { %v7488_v12 = vmul.f32 %v9552_v44, %v7328_v3  ;;  %v7489_v10 = vmul.f32 %v9552_v44, %v7329_v48  ;;  %v7490_v20 = vmul.f32 %v9552_v44, %v7330_v49  ;;  %v7491_v40 = vmul.f32 %v9552_v44, %v7331_v24  ;;  %v9554_v14 = vpop.eup %9553 }
 0x4f6   : > { %v7654_v53 = vmul.f32 %v14916_v52, %v7484_v42  ;;  %v7655_v61 = vmul.f32 %v14910_v47, %v7485_v9  ;;  %v7656_v22 = vmul.f32 %v14930_v62, %v7486_v17  ;;  %v7657_v39 = vmul.f32 %v14922_v16, %v7487_v57 }
 0x4f7   : > { %v7658_v63 = vmul.f32 %v14936_v23, %v7488_v12  ;;  %v7659_v11 = vmul.f32 %v14942_v8, %v7489_v10  ;;  %v7660_v32 = vmul.f32 %v14948_v46, %v7490_v20  ;;  %v7661_v33 = vmul.f32 %v14954_v6, %v7491_v40 }
 0x4f8   : > { %v7824_v50 = vadd.f32 %v14919_v38, %v7654_v53  ;;  %v7825_v3 = vadd.f32 %v14913_v1, %v7655_v61  ;;  %v7826_v9 = vadd.f32 %v14933_v51, %v7656_v22  ;;  %v7827_v48 = vadd.f32 %v14925_v7, %v7657_v39 }
 0x4f9   : > { %v7828_v49 = vadd.f32 %v14939_v56, %v7658_v63  ;;  %v7829_v24 = vadd.f32 %v14945_v2, %v7659_v11  ;;  %v7830_v10 = vadd.f32 %v14951_v4, %v7660_v32  ;;  %v7831_v12 = vadd.f32 %v14957_v55, %v7661_v33 }
 0x4fa   : > { %v9156_v40 = vpack.c.bf16 %v7825_v3, %v7824_v50  ;;  %v9157_v42 = vpack.c.bf16 %v7827_v48, %v7826_v9  ;;  %v17730_v44 = vsub.f32 %v17696_v41, %v17695_v29  ;;  %v17731_v61 = vsub.f32 %v17697_v18, %v17695_v29 }
 0x4fb   : > { %v9158_v17 = vpack.c.bf16 %v7829_v24, %v7828_v49  ;;  %v9159_v57 = vpack.c.bf16 %v7831_v12, %v7830_v10  ;;  %v17732_v53 = vsub.f32 %v17698_v21, %v17695_v29  ;;  %v17733_v39 = vsub.f32 %v17700_v54, %v17695_v29 }
 0x4fc   : > { %v7492_v20 = vmul.f32 %v9554_v14, %v17730_v44  ;;  %v7493_v0 = vmul.f32 %v9554_v14, %v17731_v61  ;;  %8300 = vst [vmem:[%s14997_s24 + $0x120] sm:$0xff] %v9156_v40  ;;  %8301 = vst [vmem:[%s14997_s24 + $0x128] sm:$0xff] %v9157_v42  ;;  %v17734_v41 = vsub.f32 %v17702_v58, %v17695_v29 }
 0x4fd   : > { %v7494_v22 = vmul.f32 %v9554_v14, %v17732_v53  ;;  %v7495_v63 = vmul.f32 %v9554_v14, %v17733_v39  ;;  %v17735_v18 = vsub.f32 %v17703_v13, %v17695_v29  ;;  %v17736_v33 = vsub.f32 %v17704_v35, %v17695_v29  ;;  %8302 = vst [vmem:[%s14997_s24 + $0x130] sm:$0xff] %v9158_v17  ;;  %v9556_v13 = vpop.eup %9555 }
 0x4fe   : > { %v7496_v11 = vmul.f32 %v9554_v14, %v17734_v41  ;;  %v17737_v21 = vsub.f32 %v17705_v15, %v17695_v29  ;;  %8303 = vst [vmem:[%s14997_s24 + $0x138] sm:$0xff] %v9159_v57  ;;  %v7662_v54 = vmul.f32 %v14916_v52, %v7492_v20  ;;  %v7663_v9 = vmul.f32 %v14910_v47, %v7493_v0 }
 0x4ff   : > { %v7497_v32 = vmul.f32 %v9554_v14, %v17735_v18  ;;  %v7498_v50 = vmul.f32 %v9554_v14, %v17736_v33  ;;  %v7664_v58 = vmul.f32 %v14930_v62, %v7494_v22  ;;  %v7665_v48 = vmul.f32 %v14922_v16, %v7495_v63 }
 0x500   : > { %v7499_v3 = vmul.f32 %v9554_v14, %v17737_v21  ;;  %v7666_v49 = vmul.f32 %v14936_v23, %v7496_v11  ;;  %v9558_v14 = vpop.eup %9557  ;;  %v7832_v15 = vadd.f32 %v14919_v38, %v7662_v54  ;;  %v7833_v10 = vadd.f32 %v14913_v1, %v7663_v9 }
 0x501   : > { %v7667_v35 = vmul.f32 %v14942_v8, %v7497_v32  ;;  %v7668_v24 = vmul.f32 %v14948_v46, %v7498_v50  ;;  %v7834_v12 = vadd.f32 %v14933_v51, %v7664_v58  ;;  %v7835_v40 = vadd.f32 %v14925_v7, %v7665_v48 }
 0x502   : > { %v7669_v29 = vmul.f32 %v14954_v6, %v7499_v3  ;;  %v7836_v42 = vadd.f32 %v14939_v56, %v7666_v49  ;;  %v9160_v0 = vpack.c.bf16 %v7833_v10, %v7832_v15  ;;  %v17738_v57 = vsub.f32 %v17706_v26, %v17688_v5  ;;  %v17744_v3 = vld [vmem:[#allocation170_spill] sm:$0xff] }
 0x503   : > { %v7837_v44 = vadd.f32 %v14945_v2, %v7667_v35  ;;  %v7838_v20 = vadd.f32 %v14951_v4, %v7668_v24  ;;  %v9161_v17 = vpack.c.bf16 %v7835_v40, %v7834_v12  ;;  %v17739_v22 = vsub.f32 %v17707_v36, %v17688_v5 }
 0x504   : > { %v7839_v61 = vadd.f32 %v14957_v55, %v7669_v29  ;;  %v7500_v53 = vmul.f32 %v9556_v13, %v17738_v57  ;;  %v17740_v11 = vsub.f32 %v17708_v19, %v17688_v5  ;;  %v17741_v32 = vsub.f32 %v17709_v45, %v17688_v5  ;;  %8304 = vst [vmem:[%s14997_s24 + $0x140] sm:$0xff] %v9160_v0  ;;  %v17749_v57 = vld [vmem:[#allocation161_spill] sm:$0xff] }
 0x505   : > { %v7501_v39 = vmul.f32 %v9556_v13, %v17739_v22  ;;  %v9162_v63 = vpack.c.bf16 %v7837_v44, %v7836_v42  ;;  %8305 = vst [vmem:[%s14997_s24 + $0x148] sm:$0xff] %v9161_v17  ;;  %v17742_v26 = vsub.f32 %v17710_v60, %v17688_v5  ;;  %v17743_v36 = vsub.f32 %v17711_v27, %v17688_v5 }
 0x506   : > { %v9163_v41 = vpack.c.bf16 %v7839_v61, %v7838_v20  ;;  %v7502_v18 = vmul.f32 %v9556_v13, %v17740_v11  ;;  %v7503_v33 = vmul.f32 %v9556_v13, %v17741_v32  ;;  %v17745_v54 = vsub.f32 %v17744_v3, %v17688_v5  ;;  %v17747_v61 = vld [vmem:[#allocation160_spill] sm:$0xff] }
 0x507   : > { %v7504_v50 = vmul.f32 %v9556_v13, %v17742_v26  ;;  %v7505_v21 = vmul.f32 %v9556_v13, %v17743_v36  ;;  %v17746_v19 = vsub.f32 %v17713_v28, %v17688_v5  ;;  %8306 = vst [vmem:[%s14997_s24 + $0x150] sm:$0xff] %v9162_v63  ;;  %v7670_v45 = vmul.f32 %v14916_v52, %v7500_v53 }
 0x508   : > { %v7506_v9 = vmul.f32 %v9556_v13, %v17745_v54  ;;  %8307 = vst [vmem:[%s14997_s24 + $0x158] sm:$0xff] %v9163_v41  ;;  %v7671_v48 = vmul.f32 %v14910_v47, %v7501_v39  ;;  %v7672_v60 = vmul.f32 %v14930_v62, %v7502_v18  ;;  %v7673_v49 = vmul.f32 %v14922_v16, %v7503_v33 }
 0x509   : > { %v7507_v58 = vmul.f32 %v9556_v13, %v17746_v19  ;;  %v7674_v27 = vmul.f32 %v14936_v23, %v7504_v50  ;;  %v7675_v35 = vmul.f32 %v14942_v8, %v7505_v21  ;;  %v7840_v5 = vadd.f32 %v14919_v38, %v7670_v45 }
 0x50a   : > { %v7676_v24 = vmul.f32 %v14948_v46, %v7506_v9  ;;  %v7841_v28 = vadd.f32 %v14913_v1, %v7671_v48  ;;  %v7842_v13 = vadd.f32 %v14933_v51, %v7672_v60  ;;  %v7843_v15 = vadd.f32 %v14925_v7, %v7673_v49 }
 0x50b   : > { %v7677_v29 = vmul.f32 %v14954_v6, %v7507_v58  ;;  %v7844_v10 = vadd.f32 %v14939_v56, %v7674_v27  ;;  %v7845_v12 = vadd.f32 %v14945_v2, %v7675_v35  ;;  %v17748_v0 = vsub.f32 %v17747_v61, %v17689_v34  ;;  %v17762_v61 = vld [vmem:[#allocation162_spill] sm:$0xff] }
 0x50c   : > { %v7846_v40 = vadd.f32 %v14951_v4, %v7676_v24  ;;  %v9164_v44 = vpack.c.bf16 %v7841_v28, %v7840_v5  ;;  %v9165_v20 = vpack.c.bf16 %v7843_v15, %v7842_v13  ;;  %v17750_v53 = vsub.f32 %v17749_v57, %v17689_v34  ;;  %v17757_v5 = vld [vmem:[#allocation61_spill] sm:$0xff]  ;;  %v17758_v28 = vld [vmem:[#allocation120_spill] sm:$0xff] }
 0x50d   : > { %v7847_v42 = vadd.f32 %v14957_v55, %v7677_v29  ;;  %v7508_v17 = vmul.f32 %v9558_v14, %v17748_v0  ;;  %v9166_v39 = vpack.c.bf16 %v7845_v12, %v7844_v10  ;;  %v17751_v41 = vsub.f32 %v17717_v59, %v17689_v34  ;;  %v17759_v12 = vld [vmem:[#allocation68_spill] sm:$0xff]  ;;  %v17763_v57 = vld [vmem:[#allocation89_spill] sm:$0xff] }
 0x50e   : > { %v7509_v22 = vmul.f32 %v9558_v14, %v17750_v53  ;;  %v17752_v18 = vsub.f32 %v17718_v37, %v17689_v34  ;;  %8308 = vst [vmem:[%s14997_s24 + $0x160] sm:$0xff] %v9164_v44  ;;  %8309 = vst [vmem:[%s14997_s24 + $0x168] sm:$0xff] %v9165_v20  ;;  %v17753_v33 = vsub.f32 %v17719_v30, %v17689_v34  ;;  %9559 = vrsqrt.f32 %v17757_v5  ;;  %v17761_v20 = vld [vmem:[#allocation66_spill] sm:$0xff] }
 0x50f   : > { %v9167_v63 = vpack.c.bf16 %v7847_v42, %v7846_v40  ;;  %v7510_v11 = vmul.f32 %v9558_v14, %v17751_v41  ;;  %v17754_v50 = vsub.f32 %v17720_v25, %v17689_v34  ;;  %v17755_v21 = vsub.f32 %v17721_v31, %v17689_v34  ;;  %8310 = vst [vmem:[%s14997_s24 + $0x170] sm:$0xff] %v9166_v39  ;;  %v17760_v40 = vld [vmem:[#allocation92_spill] sm:$0xff] }
 0x510   : > { %v7511_v32 = vmul.f32 %v9558_v14, %v17752_v18  ;;  %v7512_v26 = vmul.f32 %v9558_v14, %v17753_v33  ;;  %v17756_v59 = vsub.f32 %v17722_v43, %v17689_v34  ;;  %v7678_v37 = vmul.f32 %v14916_v52, %v7508_v17 }
 0x511   : > { %v7513_v36 = vmul.f32 %v9558_v14, %v17754_v50  ;;  %v7514_v3 = vmul.f32 %v9558_v14, %v17755_v21  ;;  %8311 = vst [vmem:[%s14997_s24 + $0x178] sm:$0xff] %v9167_v63  ;;  %v7679_v9 = vmul.f32 %v14910_v47, %v7509_v22  ;;  %v7680_v30 = vmul.f32 %v14930_v62, %v7510_v11  ;;  %v17764_v22 = vld [vmem:[#allocation52_spill] sm:$0xff]  ;;  %v17765_v63 = vld [vmem:[#allocation51_spill] sm:$0xff] }
 0x512   : > { %v7515_v54 = vmul.f32 %v9558_v14, %v17756_v59  ;;  %v7681_v19 = vmul.f32 %v14922_v16, %v7511_v32  ;;  %v7682_v25 = vmul.f32 %v14936_v23, %v7512_v26  ;;  %v7848_v34 = vadd.f32 %v14919_v38, %v7678_v37  ;;  %v17766_v11 = vld [vmem:[#allocation20_spill] sm:$0xff]  ;;  %v17767_v32 = vld [vmem:[#allocation77_spill] sm:$0xff]  ;;  %v17768_v26 = vld [vmem:[#allocation31_spill] sm:$0xff] }
 0x513   : > { %v7683_v58 = vmul.f32 %v14942_v8, %v7513_v36  ;;  %v7684_v31 = vmul.f32 %v14948_v46, %v7514_v3  ;;  %v7849_v43 = vadd.f32 %v14913_v1, %v7679_v9  ;;  %v7850_v14 = vadd.f32 %v14933_v51, %v7680_v30  ;;  %v17769_v36 = vld [vmem:[#allocation169_spill] sm:$0xff]  ;;  %v17770_v3 = vld [vmem:[#allocation59_spill] sm:$0xff]  ;;  %v17772_v37 = vld [vmem:[#allocation110_spill] sm:$0xff] }
 0x514   : > { %v7685_v45 = vmul.f32 %v14954_v6, %v7515_v54  ;;  %v7851_v48 = vadd.f32 %v14925_v7, %v7681_v19  ;;  %v7852_v60 = vadd.f32 %v14939_v56, %v7682_v25  ;;  %v7394_v13 = vadd.f32 1e-12, %v17758_v28  ;;  %v17771_v59 = vld [vmem:[#allocation109_spill] sm:$0xff]  ;;  %v17774_v25 = vld [vmem:[#allocation54_spill] sm:$0xff]  ;;  %v17782_v28 = vld [vmem:[#allocation56_spill] sm:$0xff] }
 0x515   : > { %v7853_v49 = vadd.f32 %v14945_v2, %v7683_v58  ;;  %v7854_v27 = vadd.f32 %v14951_v4, %v7684_v31  ;;  %v9168_v24 = vpack.c.bf16 %v7849_v43, %v7848_v34  ;;  %v7235_v42 = vsub.f32 %v17760_v40, %v17759_v12  ;;  %v17773_v30 = vld [vmem:[#allocation53_spill] sm:$0xff]  ;;  %v17775_v31 = vld [vmem:[#allocation60_spill] sm:$0xff] }
 0x516   : > { %v7855_v35 = vadd.f32 %v14957_v55, %v7685_v45  ;;  %v9169_v29 = vpack.c.bf16 %v7851_v48, %v7850_v14  ;;  %9561 = vrsqrt.f32 %v7394_v13  ;;  %v7356_v0 = vsub.f32 %v17762_v61, %v17761_v20  ;;  %v17776_v34 = vld [vmem:[#allocation165_spill] sm:$0xff]  ;;  %v17777_v14 = vld [vmem:[#allocation147_spill] sm:$0xff] }
 0x517   : > { %v9170_v15 = vpack.c.bf16 %v7853_v49, %v7852_v60  ;;  %8312 = vst [vmem:[%s14997_s24 + $0x180] sm:$0xff] %v9168_v24  ;;  %v7251_v44 = vmax.f32 %v7235_v42, 0.0  ;;  %v7357_v53 = vsub.f32 %v17763_v57, %v17761_v20  ;;  %v7358_v39 = vsub.f32 %v17764_v22, %v17761_v20  ;;  %v17778_v60 = vld [vmem:[#allocation76_spill] sm:$0xff]  ;;  %v17784_v40 = vld [vmem:[#allocation117_spill] sm:$0xff]  ;;  %v17786_v61 = vld [vmem:[#allocation43_spill] sm:$0xff] }
 0x518   : > { %v9171_v10 = vpack.c.bf16 %v7855_v35, %v7854_v27  ;;  %8313 = vst [vmem:[%s14997_s24 + $0x188] sm:$0xff] %v9169_v29  ;;  %v7359_v41 = vsub.f32 %v17765_v63, %v17761_v20  ;;  %v7360_v18 = vsub.f32 %v17766_v11, %v17761_v20  ;;  %v7361_v33 = vsub.f32 %v17767_v32, %v17761_v20  ;;  %v17779_v27 = vld [vmem:[#allocation63_spill] sm:$0xff]  ;;  %v17780_v35 = vld [vmem:[#allocation113_spill] sm:$0xff]  ;;  %v17781_v29 = vld [vmem:[#allocation114_spill] sm:$0xff] }
 0x519   : > { %8314 = vst [vmem:[%s14997_s24 + $0x190] sm:$0xff] %v9170_v15  ;;  %v7395_v17 = vadd.f32 1e-12, %v7251_v44  ;;  %v7362_v50 = vsub.f32 %v17768_v26, %v17761_v20  ;;  %v7363_v21 = vsub.f32 %v17769_v36, %v17761_v20  ;;  %v7364_v54 = vsub.f32 %v17771_v59, %v17770_v3  ;;  %v17783_v15 = vld [vmem:[#allocation58_spill] sm:$0xff]  ;;  %v17785_v44 = vld [vmem:[#allocation36_spill] sm:$0xff] }
 0x51a   : > { %8315 = vst [vmem:[%s14997_s24 + $0x198] sm:$0xff] %v9171_v10  ;;  %v7365_v9 = vsub.f32 %v17772_v37, %v17770_v3  ;;  %v7366_v19 = vsub.f32 %v17773_v30, %v17770_v3  ;;  %v7367_v58 = vsub.f32 %v17774_v25, %v17770_v3  ;;  %v7368_v45 = vsub.f32 %v17775_v31, %v17770_v3  ;;  %v17787_v57 = vld [vmem:[#allocation112_spill] sm:$0xff] }
 0x51b   : > { %v7369_v43 = vsub.f32 %v17776_v34, %v17770_v3  ;;  %v7370_v48 = vsub.f32 %v17777_v14, %v17770_v3  ;;  %v7371_v49 = vsub.f32 %v17778_v60, %v17770_v3  ;;  %9563 = vrsqrt.f32 %v7395_v17  ;;  %v9560_v12 = vpop.eup %9559 }
 0x51c   : > { %v7372_v24 = vsub.f32 %v17780_v35, %v17779_v27  ;;  %v7373_v5 = vsub.f32 %v17781_v29, %v17779_v27  ;;  %v7374_v13 = vsub.f32 %v17782_v28, %v17779_v27  ;;  %v7375_v10 = vsub.f32 %v17783_v15, %v17779_v27 }
 0x51d   : > { %v7376_v42 = vsub.f32 %v17784_v40, %v17779_v27  ;;  %v7377_v20 = vsub.f32 %v17785_v44, %v17779_v27  ;;  %v7378_v17 = vsub.f32 %v17786_v61, %v17779_v27  ;;  %v7379_v22 = vsub.f32 %v17787_v57, %v17779_v27 }
 0x51e   : > { %v7516_v63 = vmul.f32 %v9560_v12, %v7356_v0  ;;  %v7517_v11 = vmul.f32 %v9560_v12, %v7357_v53  ;;  %v7518_v32 = vmul.f32 %v9560_v12, %v7358_v39  ;;  %v7519_v26 = vmul.f32 %v9560_v12, %v7359_v41 }
 0x51f   : > { %v7520_v36 = vmul.f32 %v9560_v12, %v7360_v18  ;;  %v7521_v3 = vmul.f32 %v9560_v12, %v7361_v33  ;;  %v7522_v59 = vmul.f32 %v9560_v12, %v7362_v50  ;;  %v7523_v37 = vmul.f32 %v9560_v12, %v7363_v21 }
 0x520   : > { %v7686_v30 = vmul.f32 %v14916_v52, %v7516_v63  ;;  %v7687_v25 = vmul.f32 %v14910_v47, %v7517_v11  ;;  %v7688_v31 = vmul.f32 %v14930_v62, %v7518_v32  ;;  %v7689_v34 = vmul.f32 %v14922_v16, %v7519_v26 }
 0x521   : > { %v7690_v60 = vmul.f32 %v14936_v23, %v7520_v36  ;;  %v7691_v0 = vmul.f32 %v14942_v8, %v7521_v3  ;;  %v7692_v53 = vmul.f32 %v14948_v46, %v7522_v59  ;;  %v7693_v39 = vmul.f32 %v14954_v6, %v7523_v37 }
 0x522   : > { %v7856_v41 = vadd.f32 %v14919_v38, %v7686_v30  ;;  %v7857_v18 = vadd.f32 %v14913_v1, %v7687_v25  ;;  %v7858_v33 = vadd.f32 %v14933_v51, %v7688_v31  ;;  %v7859_v50 = vadd.f32 %v14925_v7, %v7689_v34 }
 0x523   : > { %v9562_v14 = vpop.eup %9561  ;;  %v7860_v21 = vadd.f32 %v14939_v56, %v7690_v60  ;;  %v7861_v12 = vadd.f32 %v14945_v2, %v7691_v0  ;;  %v7862_v63 = vadd.f32 %v14951_v4, %v7692_v53  ;;  %v7863_v11 = vadd.f32 %v14957_v55, %v7693_v39 }
 0x524   : > { %v9172_v32 = vpack.c.bf16 %v7857_v18, %v7856_v41  ;;  %v9173_v26 = vpack.c.bf16 %v7859_v50, %v7858_v33  ;;  %v7524_v36 = vmul.f32 %v9562_v14, %v7364_v54  ;;  %v7525_v3 = vmul.f32 %v9562_v14, %v7365_v9 }
 0x525   : > { %v9174_v59 = vpack.c.bf16 %v7861_v12, %v7860_v21  ;;  %v9175_v37 = vpack.c.bf16 %v7863_v11, %v7862_v63  ;;  %v7526_v30 = vmul.f32 %v9562_v14, %v7366_v19  ;;  %v7527_v25 = vmul.f32 %v9562_v14, %v7367_v58 }
 0x526   : > { %8316 = vst [vmem:[%s14997_s24 + $0x1a0] sm:$0xff] %v9172_v32  ;;  %8317 = vst [vmem:[%s14997_s24 + $0x1a8] sm:$0xff] %v9173_v26  ;;  %v7528_v31 = vmul.f32 %v9562_v14, %v7368_v45  ;;  %v7529_v34 = vmul.f32 %v9562_v14, %v7369_v43  ;;  %v7530_v60 = vmul.f32 %v9562_v14, %v7370_v48 }
 0x527   : > { %v7531_v0 = vmul.f32 %v9562_v14, %v7371_v49  ;;  %8318 = vst [vmem:[%s14997_s24 + $0x1b0] sm:$0xff] %v9174_v59  ;;  %8319 = vst [vmem:[%s14997_s24 + $0x1b8] sm:$0xff] %v9175_v37  ;;  %v7694_v53 = vmul.f32 %v14916_v52, %v7524_v36  ;;  %v7695_v39 = vmul.f32 %v14910_v47, %v7525_v3 }
 0x528   : > { %v7696_v41 = vmul.f32 %v14930_v62, %v7526_v30  ;;  %v7697_v54 = vmul.f32 %v14922_v16, %v7527_v25  ;;  %v9564_v9 = vpop.eup %9563  ;;  %v7698_v19 = vmul.f32 %v14936_v23, %v7528_v31  ;;  %v7699_v58 = vmul.f32 %v14942_v8, %v7529_v34 }
 0x529   : > { %v7700_v45 = vmul.f32 %v14948_v46, %v7530_v60  ;;  %v7701_v43 = vmul.f32 %v14954_v6, %v7531_v0  ;;  %v7864_v48 = vadd.f32 %v14919_v38, %v7694_v53  ;;  %v7865_v49 = vadd.f32 %v14913_v1, %v7695_v39 }
 0x52a   : > { %v7866_v14 = vadd.f32 %v14933_v51, %v7696_v41  ;;  %v7867_v18 = vadd.f32 %v14925_v7, %v7697_v54  ;;  %v7868_v33 = vadd.f32 %v14939_v56, %v7698_v19  ;;  %v7869_v50 = vadd.f32 %v14945_v2, %v7699_v58 }
 0x52b   : > { %v7870_v21 = vadd.f32 %v14951_v4, %v7700_v45  ;;  %v7871_v12 = vadd.f32 %v14957_v55, %v7701_v43  ;;  %v9176_v63 = vpack.c.bf16 %v7865_v49, %v7864_v48  ;;  %v7532_v32 = vmul.f32 %v9564_v9, %v7372_v24 }
 0x52c   : > { %v9177_v11 = vpack.c.bf16 %v7867_v18, %v7866_v14  ;;  %v7533_v26 = vmul.f32 %v9564_v9, %v7373_v5  ;;  %v9178_v36 = vpack.c.bf16 %v7869_v50, %v7868_v33  ;;  %v7534_v59 = vmul.f32 %v9564_v9, %v7374_v13 }
 0x52d   : > { %v9179_v3 = vpack.c.bf16 %v7871_v12, %v7870_v21  ;;  %v7535_v37 = vmul.f32 %v9564_v9, %v7375_v10  ;;  %8320 = vst [vmem:[%s14997_s24 + $0x1c0] sm:$0xff] %v9176_v63  ;;  %v7536_v35 = vmul.f32 %v9564_v9, %v7376_v42  ;;  %v7537_v24 = vmul.f32 %v9564_v9, %v7377_v20 }
 0x52e   : > { %8321 = vst [vmem:[%s14997_s24 + $0x1c8] sm:$0xff] %v9177_v11  ;;  %v7538_v29 = vmul.f32 %v9564_v9, %v7378_v17  ;;  %v7539_v5 = vmul.f32 %v9564_v9, %v7379_v22  ;;  %8322 = vst [vmem:[%s14997_s24 + $0x1d0] sm:$0xff] %v9178_v36  ;;  %v7702_v28 = vmul.f32 %v14916_v52, %v7532_v32 }
 0x52f   : > { %8323 = vst [vmem:[%s14997_s24 + $0x1d8] sm:$0xff] %v9179_v3  ;;  %v7703_v13 = vmul.f32 %v14910_v47, %v7533_v26  ;;  %v7704_v15 = vmul.f32 %v14930_v62, %v7534_v59  ;;  %v7705_v10 = vmul.f32 %v14922_v16, %v7535_v37  ;;  %v7706_v40 = vmul.f32 %v14936_v23, %v7536_v35 }
 0x530   : > { %v7707_v42 = vmul.f32 %v14942_v8, %v7537_v24  ;;  %v7708_v44 = vmul.f32 %v14948_v46, %v7538_v29  ;;  %v7709_v20 = vmul.f32 %v14954_v6, %v7539_v5  ;;  %v7872_v52 = vadd.f32 %v14919_v38, %v7702_v28 }
 0x531   : > { %v7873_v47 = vadd.f32 %v14913_v1, %v7703_v13  ;;  %v7874_v16 = vadd.f32 %v14933_v51, %v7704_v15  ;;  %v7875_v62 = vadd.f32 %v14925_v7, %v7705_v10  ;;  %v7876_v23 = vadd.f32 %v14939_v56, %v7706_v40 }
 0x532   : > { %v7877_v8 = vadd.f32 %v14945_v2, %v7707_v42  ;;  %v7878_v46 = vadd.f32 %v14951_v4, %v7708_v44  ;;  %v7879_v6 = vadd.f32 %v14957_v55, %v7709_v20 }
 0x533   : > { %v9180_v27 = vpack.c.bf16 %v7873_v47, %v7872_v52  ;;  %v9181_v38 = vpack.c.bf16 %v7875_v62, %v7874_v16 }
 0x534   : > { %v9182_v1 = vpack.c.bf16 %v7877_v8, %v7876_v23  ;;  %v9183_v7 = vpack.c.bf16 %v7879_v6, %v7878_v46 }
 0x535   : > { %8324 = vst [vmem:[%s14997_s24 + $0x1e0] sm:$0xff] %v9180_v27  ;;  %8325 = vst [vmem:[%s14997_s24 + $0x1e8] sm:$0xff] %v9181_v38 }
 0x536   : > { %8326 = vst [vmem:[%s14997_s24 + $0x1f0] sm:$0xff] %v9182_v1  ;;  %8327 = vst [vmem:[%s14997_s24 + $0x1f8] sm:$0xff] %v9183_v7 }
 0x537   : > { %9712 = shalt.err (!%p9709_p6)
}
 0x538   : > { %s9713_s29 = scalar_lea.hbm %s15844_s6, 8192  ;;  %s9717_s16 = scalar_lea.hbm %s15898_s5, 16384 }
 0x539   : > { %p9714_p10 = scmp.ne.s32.totalorder %s15844_s6, %s9713_s29  ;;  %p9718_p11 = scmp.lt.s32.totalorder %s15844_s6, %s15898_s5 }
 0x53a   : > { %p9719_p4 = scmp.lt.s32.totalorder %s9717_s16, %s9713_s29 }
 0x53b   : > { %p9715_p8 = pnand %p9714_p10, %p17788_p9 }
 0x53c   : > { %p9720_p7 = por %p9719_p4, %p9718_p11 }
 0x53d   : > { %p9716_p3 = pneg %p9715_p8 }
 0x53f   : > { %p9721_p12 = pnand %p9720_p7, %p9716_p3 }
 0x541   : > { %9724 = shalt.err (!%p9721_p12)
}
 0x542   : > { %s9781_s26 = smov 512   ;;  %s9782_s22 = smov 32  }
 0x543   : > { %9204 = dma.vmem_to_hbm [thread:$0]  (%p17788_p9), %s15846_s11, 8192, %s15844_s6, %s8329_s9, %s9781_s26, %s9781_s26, %s9782_s22  }
 0x544 PF: > { %s8358_s28 = sand.u32 1, %s9759_s18   ;;  %p17789_p13 = scmp.ne.s32.totalorder %s16441_s25, 0 }
 0x545   : > { %p17790_p0 = scmp.ge.s32.totalorder %s9771_s21, 2  ;;  %s8359_s23 = scalar_lea.sflag [#allocation4], %s8358_s28 }
 0x547   : > { %p9224_p5 = pnand %p17790_p0, %p17789_p13 }
 0x549   : > { %p9225_p1 = pneg %p9224_p5 }
 0x54b   : > { %9754 = dma.done.wait (%p9225_p1), %s8359_s23, 8192  }
 0x54c   : > { %9756 = vsyncadd (%p9225_p1), %s8359_s23, 4294959104  ;;  %p20_p2 = scmp.ge.s32.totalorder %s9904_s8, 4   ;;  %s17791_s18 = smov %s9763_s19 }
 0x54d   : > { %s17792_s19 = smov %s9767_s20  ;;  %s17793_s20 = smov %s9920_s14 }
 0x54e   : > { %s17794_s21 = smov %s9904_s8  ;;  %22 = sbr.rel (!%p20_p2) target bundleno = 7 (0x7), region = 101 }
 0x553   :  { %8364 = vsyncpa [#allocation3], 1 }
 0x554   :  { %8366 = vsyncpa [#allocation3 + $0x1], 1 }
 0x555   :  { %8367 = vsyncpa [#allocation6], 1 }
 0x556   :  { %8368 = vsyncpa [#allocation9], 1 }
 0x557   :  { %8369 = vsyncpa [#allocation4], 1 }
 0x558   :  { %8371 = vsyncpa [#allocation4 + $0x1], 1 }

</bundles_post_ra>
